<compile_context>
chip_gen: v7x
topology: tpu7x:2x2x1
jax: 0.10.0
libtpu: 0.0.40
codegen_flags: <defaults>
</compile_context>

<pallas_src>
import functools

import jax
import jax.numpy as jnp
from jax import lax
from jax.experimental import pallas as pl
from jax.experimental.pallas import tpu as pltpu

_SUBLANES = 8
_LANES = 128
_UNROLL_MAX_T = 32


def _round_up(x, m):
    return (x + m - 1) // m * m


# ----------------------------------------------------------------------------
# Shared recurrence helper (runs inside the kernels)
# ----------------------------------------------------------------------------
def _lstm_recurrence(gates_scr, whh, bp, hp, seq_len, gx_index, write_h, unroll):
    """LSTM recurrence over `seq_len` steps.

    gates_scr : VMEM ref (T, bp, 4*hp) holding x-projection + bias.
    whh       : (hp, 4*hp) recurrent weight (already loaded).
    gx_index  : processing step -> index into gates_scr.
    write_h   : callback(step, h) storing the hidden state (may be a no-op).
    Returns the final hidden state (bp, hp).
    """

    def step(s, h, c):
        gates = gates_scr[gx_index(s)] + jnp.dot(
            h, whh, preferred_element_type=jnp.float32)
        i_g = jax.nn.sigmoid(gates[:, 0 * hp:1 * hp])
        f_g = jax.nn.sigmoid(gates[:, 1 * hp:2 * hp])
        g_g = jnp.tanh(gates[:, 2 * hp:3 * hp])
        o_g = jax.nn.sigmoid(gates[:, 3 * hp:4 * hp])
        c_new = f_g * c + i_g * g_g
        h_new = o_g * jnp.tanh(c_new)
        write_h(s, h_new)
        return h_new, c_new

    h = jnp.zeros((bp, hp), jnp.float32)
    c = jnp.zeros((bp, hp), jnp.float32)
    if unroll:
        # Fully unrolled at trace time (short T) -> full LLO scheduler visibility.
        for s in range(seq_len):
            h, c = step(s, h, c)
        return h
    else:
        def body(s, carry):
            return step(s, carry[0], carry[1])
        h, _ = lax.fori_loop(0, seq_len, body, (h, c))
        return h


# ----------------------------------------------------------------------------
# Kernel 1: all marginal stacks (forward + backward, all groups) in one call
# ----------------------------------------------------------------------------
def _marginal_stack_kernel(x_ref, wih0_ref, wihr_ref, whh_ref, b_ref,
                           out_ref, gates_scr, act_scr,
                           *, num_layers, seq_len, n_fwd, hidden_pad, unroll):
    T = seq_len
    hp = hidden_pad
    bp = x_ref.shape[1]
    # Stacks 0..n_fwd-1 are forward, n_fwd..2*n_fwd-1 are backward (reversed time).
    is_rev = pl.program_id(0) >= n_fwd

    def time_index(s):
        return jnp.where(is_rev, T - 1 - s, s)

    for layer in range(num_layers):
        # ---- hoisted input projection: one big MXU matmul + bias -------------
        if layer == 0:
            inp = x_ref[...].reshape(T * bp, x_ref.shape[2])
            w_in = wih0_ref[...]
        else:
            inp = act_scr[...].reshape(T * bp, hp)
            w_in = wihr_ref[layer - 1]
        gx = jnp.dot(inp, w_in, preferred_element_type=jnp.float32) + b_ref[layer]
        gates_scr[...] = gx.reshape(T, bp, 4 * hp)

        whh = whh_ref[layer]
        is_last = layer == num_layers - 1
        # Layer 0 reads the (natural-order) x-projection in reversed order for
        # backward stacks; intermediate layers run in processing order.
        gx_index = time_index if layer == 0 else (lambda s: s)

        if is_last:
            def write_h(s, h):
                out_ref[time_index(s)] = h.astype(out_ref.dtype)
        else:
            def write_h(s, h):
                act_scr[s] = h

        _lstm_recurrence(gates_scr, whh, bp, hp, T, gx_index, write_h, unroll)


def _marginal_stacks_call(x_pad, prep, *, num_layers, n_group):
    T, Bp, Fp = x_pad.shape
    G2 = prep["m_wih0"].shape[0]
    Hp = prep["m_whh"].shape[2]
    LR = prep["m_wihr"].shape[1]
    kernel = functools.partial(
        _marginal_stack_kernel, num_layers=num_layers, seq_len=T, n_fwd=n_group,
        hidden_pad=Hp, unroll=T <= _UNROLL_MAX_T)
    return pl.pallas_call(
        kernel,
        out_shape=jax.ShapeDtypeStruct((G2, T, Bp, Hp), jnp.float32),
        grid_spec=pltpu.PrefetchScalarGridSpec(
            num_scalar_prefetch=0,
            grid=(G2,),
            in_specs=[
                pl.BlockSpec((T, Bp, Fp), lambda g: (0, 0, 0)),          # x (resident)
                pl.BlockSpec((None, Fp, 4 * Hp), lambda g: (g, 0, 0)),   # W_ih layer 0
                pl.BlockSpec((None, LR, Hp, 4 * Hp), lambda g: (g, 0, 0, 0)),
                pl.BlockSpec((None, num_layers, Hp, 4 * Hp), lambda g: (g, 0, 0, 0)),
                pl.BlockSpec((None, num_layers, 1, 4 * Hp), lambda g: (g, 0, 0, 0)),
            ],
            out_specs=pl.BlockSpec((None, T, Bp, Hp), lambda g: (g, 0, 0, 0)),
            scratch_shapes=[
                pltpu.VMEM((T, Bp, 4 * Hp), jnp.float32),   # x-projection (per layer)
                pltpu.VMEM((T, Bp, Hp), jnp.float32),       # inter-layer activations
            ],
        ),
        compiler_params=pltpu.CompilerParams(
            dimension_semantics=("parallel",)),   # independent stacks -> v7x 2 TCs
    )(x_pad, prep["m_wih0"], prep["m_wihr"], prep["m_whh"], prep["m_bias"])


# ----------------------------------------------------------------------------
# Kernel 2: joint LSTM stack + fused final Linear (only last timestep used)
# ----------------------------------------------------------------------------
def _joint_fc_kernel(marg_ref, wih0_ref, wihr_ref, whh_ref, b_ref, fcw_ref, fcb_ref,
                     out_ref, gates_scr, act_scr,
                     *, num_layers, seq_len, hidden_pad, unroll):
    T = seq_len
    hp = hidden_pad
    G2, _, bp, hmp = marg_ref.shape

    h_last = None
    for layer in range(num_layers):
        if layer == 0:
            # Block-matmul over the stacked marginal outputs (== feature concat).
            gx = jnp.dot(marg_ref[0].reshape(T * bp, hmp), wih0_ref[0],
                         preferred_element_type=jnp.float32)
            for g in range(1, G2):
                gx = gx + jnp.dot(marg_ref[g].reshape(T * bp, hmp), wih0_ref[g],
                                  preferred_element_type=jnp.float32)
        else:
            gx = jnp.dot(act_scr[...].reshape(T * bp, hp), wihr_ref[layer - 1],
                         preferred_element_type=jnp.float32)
        gx = gx + b_ref[layer]
        gates_scr[...] = gx.reshape(T, bp, 4 * hp)

        whh = whh_ref[layer]
        is_last = layer == num_layers - 1
        if is_last:
            write_h = lambda s, h: None     # only the final h is needed (fed to FC)
        else:
            def write_h(s, h):
                act_scr[s] = h
        h_last = _lstm_recurrence(gates_scr, whh, bp, hp, T,
                                  (lambda s: s), write_h, unroll)

    # Fused FC epilogue on the last timestep's hidden state.
    out_ref[...] = (jnp.dot(h_last, fcw_ref[...], preferred_element_type=jnp.float32)
                    + fcb_ref[...]).astype(out_ref.dtype)


def _joint_fc_call(marg, prep, *, num_layers):
    G2, T, Bp, Hmp = marg.shape
    Hjp = prep["j_whh"].shape[1]
    Cp = prep["fc_w"].shape[1]
    LR = prep["j_wihr"].shape[0]
    kernel = functools.partial(
        _joint_fc_kernel, num_layers=num_layers, seq_len=T, hidden_pad=Hjp,
        unroll=T <= _UNROLL_MAX_T)
    return pl.pallas_call(
        kernel,
        out_shape=jax.ShapeDtypeStruct((Bp, Cp), jnp.float32),
        grid_spec=pltpu.PrefetchScalarGridSpec(
            num_scalar_prefetch=0,
            grid=(1,),
            in_specs=[
                pl.BlockSpec((G2, T, Bp, Hmp), lambda i: (0, 0, 0, 0)),
                pl.BlockSpec((G2, Hmp, 4 * Hjp), lambda i: (0, 0, 0)),
                pl.BlockSpec((LR, Hjp, 4 * Hjp), lambda i: (0, 0, 0)),
                pl.BlockSpec((num_layers, Hjp, 4 * Hjp), lambda i: (0, 0, 0)),
                pl.BlockSpec((num_layers, 1, 4 * Hjp), lambda i: (0, 0, 0)),
                pl.BlockSpec((Hjp, Cp), lambda i: (0, 0)),
                pl.BlockSpec((1, Cp), lambda i: (0, 0)),
            ],
            out_specs=pl.BlockSpec((Bp, Cp), lambda i: (0, 0)),
            scratch_shapes=[
                pltpu.VMEM((T, Bp, 4 * Hjp), jnp.float32),
                pltpu.VMEM((T, Bp, Hjp), jnp.float32),
            ],
        ),
        compiler_params=pltpu.CompilerParams(dimension_semantics=("arbitrary",)),
    )(marg, prep["j_wih0"], prep["j_wihr"], prep["j_whh"], prep["j_bias"],
      prep["fc_w"], prep["fc_b"])


# ----------------------------------------------------------------------------
# Parameter packing: pad B->8 sublanes, H/gates/classes -> 128-lane blocks,
# stack per-(group, direction) weights for the single marginal pallas_call.
# Padding is all-zero, so the math is exactly equivalent to the unpadded model.
# ----------------------------------------------------------------------------
def _build_marginal_weights(params, input_size_list, hidden_size, num_layers,
                            feat_total):
    H = hidden_size
    Hp = _round_up(H, _LANES)
    Fp = _round_up(feat_total, _LANES)
    n_group = len(input_size_list)
    G2 = 2 * n_group
    LR = max(num_layers - 1, 1)

    wih0 = jnp.zeros((G2, Fp, 4 * Hp), jnp.float32)
    wihr = jnp.zeros((G2, LR, Hp, 4 * Hp), jnp.float32)
    whh = jnp.zeros((G2, num_layers, Hp, 4 * Hp), jnp.float32)
    bias = jnp.zeros((G2, num_layers, 1, 4 * Hp), jnp.float32)

    feat_offsets = []
    beg = 0
    for isz in input_size_list:
        feat_offsets.append(beg)
        beg += isz

    for d, name in enumerate(("fwd", "bwd")):
        for gi, isz in enumerate(input_size_list):
            g = gi if d == 0 else n_group + gi
            for l, p in enumerate(params[name][gi]):
                w_ih_t = p["w_ih"].T          # (in, 4H)
                w_hh_t = p["w_hh"].T          # (H, 4H)
                b = p["b_ih"] + p["b_hh"]     # (4H,)
                for gate in range(4):
                    dst = slice(gate * Hp, gate * Hp + H)
                    src = slice(gate * H, (gate + 1) * H)
                    if l == 0:
                        # Embed the group's W_ih rows at its feature offset so the
                        # kernel can use the full padded x directly (no slicing).
                        r0 = feat_offsets[gi]
                        wih0 = wih0.at[g, r0:r0 + isz, dst].set(w_ih_t[:, src])
                    else:
                        wihr = wihr.at[g, l - 1, :H, dst].set(w_ih_t[:, src])
                    whh = whh.at[g, l, :H, dst].set(w_hh_t[:, src])
                    bias = bias.at[g, l, 0, dst].set(b[src])
    return wih0, wihr, whh, bias


def _build_joint_weights(params, n_group, hidden_size, joint_size, num_layers,
                         num_classes):
    H = hidden_size
    Hj = joint_size
    Hp = _round_up(H, _LANES)
    Hjp = _round_up(Hj, _LANES)
    Cp = _round_up(num_classes, _LANES)
    G2 = 2 * n_group
    LR = max(num_layers - 1, 1)

    wih0 = jnp.zeros((G2, Hp, 4 * Hjp), jnp.float32)
    wihr = jnp.zeros((LR, Hjp, 4 * Hjp), jnp.float32)
    whh = jnp.zeros((num_layers, Hjp, 4 * Hjp), jnp.float32)
    bias = jnp.zeros((num_layers, 1, 4 * Hjp), jnp.float32)

    for l, p in enumerate(params["joint"]):
        w_ih_t = p["w_ih"].T
        w_hh_t = p["w_hh"].T
        b = p["b_ih"] + p["b_hh"]
        for gate in range(4):
            dst = slice(gate * Hjp, gate * Hjp + Hj)
            src = slice(gate * Hj, (gate + 1) * Hj)
            whh = whh.at[l, :Hj, dst].set(w_hh_t[:, src])
            bias = bias.at[l, 0, dst].set(b[src])
            if l == 0:
                # Marginal-stack ordering in the kernel is [fwd0..fwdN, bwd0..bwdN];
                # PyTorch concat order is [fwd0, bwd0, fwd1, bwd1, ...].
                for g in range(G2):
                    blk = 2 * g if g < n_group else 2 * (g - n_group) + 1
                    rows = slice(blk * H, blk * H + H)
                    wih0 = wih0.at[g, :H, dst].set(w_ih_t[rows, src])
            else:
                wihr = wihr.at[l - 1, :Hj, dst].set(w_ih_t[:, src])

    fc_w = jnp.zeros((Hjp, Cp), jnp.float32).at[:Hj, :num_classes].set(
        params["fc_w"].T)
    fc_b = jnp.zeros((1, Cp), jnp.float32).at[0, :num_classes].set(params["fc_b"])
    return wih0, wihr, whh, bias, fc_w, fc_b


def prepare_params(params, input_size_list, hidden_size, num_layers, num_classes,
                   size_of=1):
    feat_total = sum(input_size_list)
    n_group = len(input_size_list)
    joint_size = int(size_of * hidden_size)
    m_wih0, m_wihr, m_whh, m_bias = _build_marginal_weights(
        params, input_size_list, hidden_size, num_layers, feat_total)
    j_wih0, j_wihr, j_whh, j_bias, fc_w, fc_b = _build_joint_weights(
        params, n_group, hidden_size, joint_size, num_layers, num_classes)
    return dict(m_wih0=m_wih0, m_wihr=m_wihr, m_whh=m_whh, m_bias=m_bias,
                j_wih0=j_wih0, j_wihr=j_wihr, j_whh=j_whh, j_bias=j_bias,
                fc_w=fc_w, fc_b=fc_b)


# ----------------------------------------------------------------------------
# Forward pass (batch_first=False): (T, B, F) -> (B, num_classes)
# ----------------------------------------------------------------------------
@functools.partial(jax.jit, static_argnames=("num_layers", "n_group", "num_classes"))
def channelwise_lstm_forward(x, prep, *, num_layers, n_group, num_classes):
    T, B, F = x.shape
    Bp = _round_up(B, _SUBLANES)
    Fp = prep["m_wih0"].shape[1]
    x_pad = jnp.zeros((T, Bp, Fp), jnp.float32).at[:, :B, :F].set(x)
    marg = _marginal_stacks_call(x_pad, prep, num_layers=num_layers, n_group=n_group)
    logits = _joint_fc_call(marg, prep, num_layers=num_layers)
    return logits[:B, :num_classes]


# ----------------------------------------------------------------------------
# Deterministic parameter init (PyTorch-style uniform(-1/sqrt(H), 1/sqrt(H)))
# ----------------------------------------------------------------------------
def _init_lstm_stack(key, input_size, hidden_size, num_layers):
    layers = []
    bound = 1.0 / jnp.sqrt(hidden_size)
    for l in range(num_layers):
        in_sz = input_size if l == 0 else hidden_size
        key, k1, k2, k3, k4 = jax.random.split(key, 5)
        layers.append({
            "w_ih": jax.random.uniform(k1, (4 * hidden_size, in_sz),
                                       jnp.float32, -bound, bound),
            "w_hh": jax.random.uniform(k2, (4 * hidden_size, hidden_size),
                                       jnp.float32, -bound, bound),
            "b_ih": jax.random.uniform(k3, (4 * hidden_size,),
                                       jnp.float32, -bound, bound),
            "b_hh": jax.random.uniform(k4, (4 * hidden_size,),
                                       jnp.float32, -bound, bound),
        })
    return key, layers


def init_params(key, input_size_list, hidden_size, num_layers, num_classes,
                size_of=1):
    n_group = len(input_size_list)
    joint_size = int(size_of * hidden_size)
    params = {"fwd": [], "bwd": []}
    for isz in input_size_list:
        key, layers = _init_lstm_stack(key, isz, hidden_size, num_layers)
        params["fwd"].append(layers)
        key, layers = _init_lstm_stack(key, isz, hidden_size, num_layers)
        params["bwd"].append(layers)
    key, joint_layers = _init_lstm_stack(key, n_group * hidden_size * 2,
                                         joint_size, num_layers)
    params["joint"] = joint_layers
    bound = 1.0 / jnp.sqrt(joint_size)
    key, kw, kb = jax.random.split(key, 3)
    params["fc_w"] = jax.random.uniform(kw, (num_classes, joint_size),
                                        jnp.float32, -bound, bound)
    params["fc_b"] = jax.random.uniform(kb, (num_classes,),
                                        jnp.float32, -bound, bound)
    return params


# ----------------------------------------------------------------------------
# Pure-JAX reference (correctness check)
# ----------------------------------------------------------------------------
def _ref_lstm_layer(x, w_ih, w_hh, b_ih, b_hh):
    T, B, I = x.shape
    H = w_hh.shape[1]
    b = b_ih + b_hh

    def step(carry, xt):
        h, c = carry
        gates = xt @ w_ih.T + h @ w_hh.T + b
        i_g = jax.nn.sigmoid(gates[:, 0 * H:1 * H])
        f_g = jax.nn.sigmoid(gates[:, 1 * H:2 * H])
        g_g = jnp.tanh(gates[:, 2 * H:3 * H])
        o_g = jax.nn.sigmoid(gates[:, 3 * H:4 * H])
        c = f_g * c + i_g * g_g
        h = o_g * jnp.tanh(c)
        return (h, c), h

    init = (jnp.zeros((B, H), jnp.float32), jnp.zeros((B, H), jnp.float32))
    _, hs = lax.scan(step, init, x)
    return hs


def _ref_multilayer(x, layer_params):
    h = x
    for p in layer_params:
        h = _ref_lstm_layer(h, p["w_ih"], p["w_hh"], p["b_ih"], p["b_hh"])
    return h


def ref_forward(x, params, input_size_list):
    backward_x = jnp.flip(x, axis=0)
    beg = 0
    out_list = []
    for i, isz in enumerate(input_size_list):
        end = beg + isz
        fwd_out = _ref_multilayer(x[:, :, beg:end], params["fwd"][i])
        bwd_out = _ref_multilayer(backward_x[:, :, beg:end], params["bwd"][i])
        out_list += [fwd_out, jnp.flip(bwd_out, axis=0)]
        beg = end
    out = jnp.concatenate(out_list, axis=2)
    out = _ref_multilayer(out, params["joint"])
    out = out[-1, :, :]
    return out @ params["fc_w"].T + params["fc_b"]


# ----------------------------------------------------------------------------
# Main
# ----------------------------------------------------------------------------
if __name__ == "__main__":
    rnn_hidden_size = 32
    num_layers = 2
    num_classes = 3
    input_size_list = (4, 4)
    size_of = 1
    T, B = 8, 2
    F = sum(input_size_list)

    key = jax.random.PRNGKey(0)
    key, kx = jax.random.split(key)
    x = jax.random.normal(kx, (T, B, F), jnp.float32)   # (seq, batch, feature)

    params = init_params(key, input_size_list, rnn_hidden_size, num_layers,
                         num_classes, size_of)
    prep = prepare_params(params, input_size_list, rnn_hidden_size, num_layers,
                          num_classes, size_of)

    out = jax.block_until_ready(
        channelwise_lstm_forward(x, prep, num_layers=num_layers,
                                 n_group=len(input_size_list),
                                 num_classes=num_classes))

    ref = jax.block_until_ready(ref_forward(x, params, input_size_list))
    assert out.shape == (B, num_classes)
    assert jnp.allclose(out, ref, atol=2e-4, rtol=2e-4), (out, ref)

    print("KERNEL_OK")
</pallas_src>

<mosaic_0001>
module attributes {stable_mosaic.version = 11 : i64} {
  func.func @_joint_fc_kernel(%arg0: i32, %arg1: memref<4x8x8x128xf32, #tpu.memory_space<vmem>>, %arg2: memref<4x128x512xf32, #tpu.memory_space<vmem>>, %arg3: memref<1x128x512xf32, #tpu.memory_space<vmem>>, %arg4: memref<2x128x512xf32, #tpu.memory_space<vmem>>, %arg5: memref<2x1x512xf32, #tpu.memory_space<vmem>>, %arg6: memref<128x128xf32, #tpu.memory_space<vmem>>, %arg7: memref<1x128xf32, #tpu.memory_space<vmem>>, %arg8: memref<8x128xf32, #tpu.memory_space<vmem>>, %arg9: memref<8x8x512xf32, #tpu.memory_space<vmem>>, %arg10: memref<8x8x128xf32, #tpu.memory_space<vmem>>) attributes {dimension_semantics = [#tpu.dimension_semantics<arbitrary>], iteration_bounds = array<i64: 1>, scalar_prefetch = 0 : i64, scratch_operands = 2 : i64, tpu.core_type = #tpu.core_type<tc>, window_params = [{pipeline_mode = #tpu.pipeline_mode<synchronous>, transform_indices = @transform_0, window_bounds = array<i64: 4, 8, 8, 128>}, {pipeline_mode = #tpu.pipeline_mode<synchronous>, transform_indices = @transform_1, window_bounds = array<i64: 4, 128, 512>}, {pipeline_mode = #tpu.pipeline_mode<synchronous>, transform_indices = @transform_2, window_bounds = array<i64: 1, 128, 512>}, {pipeline_mode = #tpu.pipeline_mode<synchronous>, transform_indices = @transform_3, window_bounds = array<i64: 2, 128, 512>}, {pipeline_mode = #tpu.pipeline_mode<synchronous>, transform_indices = @transform_4, window_bounds = array<i64: 2, 1, 512>}, {pipeline_mode = #tpu.pipeline_mode<synchronous>, transform_indices = @transform_5, window_bounds = array<i64: 128, 128>}, {pipeline_mode = #tpu.pipeline_mode<synchronous>, transform_indices = @transform_6, window_bounds = array<i64: 1, 128>}, {pipeline_mode = #tpu.pipeline_mode<synchronous>, transform_indices = @transform_7, window_bounds = array<i64: 8, 128>}]} {
    %c0 = arith.constant 0 : index
    %c0_0 = arith.constant 0 : index
    %c0_1 = arith.constant 0 : index
    %c0_2 = arith.constant 0 : index
    %0 = vector.load %arg1[%c0, %c0_0, %c0_1, %c0_2] : memref<4x8x8x128xf32, #tpu.memory_space<vmem>>, vector<1x8x8x128xf32>
    %1 = vector.shape_cast %0 : vector<1x8x8x128xf32> to vector<8x8x128xf32>
    %2 = vector.shape_cast %1 : vector<8x8x128xf32> to vector<64x128xf32>
    %c0_3 = arith.constant 0 : index
    %c0_4 = arith.constant 0 : index
    %c0_5 = arith.constant 0 : index
    %3 = vector.load %arg2[%c0_3, %c0_4, %c0_5] : memref<4x128x512xf32, #tpu.memory_space<vmem>>, vector<1x128x512xf32>
    %4 = vector.shape_cast %3 : vector<1x128x512xf32> to vector<128x512xf32>
    %cst = arith.constant dense<0.000000e+00> : vector<64x512xf32>
    %5 = tpu.matmul %2, %4, %cst {dimension_numbers = #tpu.dot_dimension_numbers<[1], [0], [0], [1], [0, 0, 1, 1], [], []>} : vector<64x128xf32>, vector<128x512xf32>, vector<64x512xf32> -> vector<64x512xf32>
    %c1 = arith.constant 1 : index
    %c0_6 = arith.constant 0 : index
    %c0_7 = arith.constant 0 : index
    %c0_8 = arith.constant 0 : index
    %6 = vector.load %arg1[%c1, %c0_6, %c0_7, %c0_8] : memref<4x8x8x128xf32, #tpu.memory_space<vmem>>, vector<1x8x8x128xf32>
    %7 = vector.shape_cast %6 : vector<1x8x8x128xf32> to vector<8x8x128xf32>
    %8 = vector.shape_cast %7 : vector<8x8x128xf32> to vector<64x128xf32>
    %c1_9 = arith.constant 1 : index
    %c0_10 = arith.constant 0 : index
    %c0_11 = arith.constant 0 : index
    %9 = vector.load %arg2[%c1_9, %c0_10, %c0_11] : memref<4x128x512xf32, #tpu.memory_space<vmem>>, vector<1x128x512xf32>
    %10 = vector.shape_cast %9 : vector<1x128x512xf32> to vector<128x512xf32>
    %cst_12 = arith.constant dense<0.000000e+00> : vector<64x512xf32>
    %11 = tpu.matmul %8, %10, %cst_12 {dimension_numbers = #tpu.dot_dimension_numbers<[1], [0], [0], [1], [0, 0, 1, 1], [], []>} : vector<64x128xf32>, vector<128x512xf32>, vector<64x512xf32> -> vector<64x512xf32>
    %12 = arith.addf %5, %11 : vector<64x512xf32>
    %c2 = arith.constant 2 : index
    %c0_13 = arith.constant 0 : index
    %c0_14 = arith.constant 0 : index
    %c0_15 = arith.constant 0 : index
    %13 = vector.load %arg1[%c2, %c0_13, %c0_14, %c0_15] : memref<4x8x8x128xf32, #tpu.memory_space<vmem>>, vector<1x8x8x128xf32>
    %14 = vector.shape_cast %13 : vector<1x8x8x128xf32> to vector<8x8x128xf32>
    %15 = vector.shape_cast %14 : vector<8x8x128xf32> to vector<64x128xf32>
    %c2_16 = arith.constant 2 : index
    %c0_17 = arith.constant 0 : index
    %c0_18 = arith.constant 0 : index
    %16 = vector.load %arg2[%c2_16, %c0_17, %c0_18] : memref<4x128x512xf32, #tpu.memory_space<vmem>>, vector<1x128x512xf32>
    %17 = vector.shape_cast %16 : vector<1x128x512xf32> to vector<128x512xf32>
    %cst_19 = arith.constant dense<0.000000e+00> : vector<64x512xf32>
    %18 = tpu.matmul %15, %17, %cst_19 {dimension_numbers = #tpu.dot_dimension_numbers<[1], [0], [0], [1], [0, 0, 1, 1], [], []>} : vector<64x128xf32>, vector<128x512xf32>, vector<64x512xf32> -> vector<64x512xf32>
    %19 = arith.addf %12, %18 : vector<64x512xf32>
    %c3 = arith.constant 3 : index
    %c0_20 = arith.constant 0 : index
    %c0_21 = arith.constant 0 : index
    %c0_22 = arith.constant 0 : index
    %20 = vector.load %arg1[%c3, %c0_20, %c0_21, %c0_22] : memref<4x8x8x128xf32, #tpu.memory_space<vmem>>, vector<1x8x8x128xf32>
    %21 = vector.shape_cast %20 : vector<1x8x8x128xf32> to vector<8x8x128xf32>
    %22 = vector.shape_cast %21 : vector<8x8x128xf32> to vector<64x128xf32>
    %c3_23 = arith.constant 3 : index
    %c0_24 = arith.constant 0 : index
    %c0_25 = arith.constant 0 : index
    %23 = vector.load %arg2[%c3_23, %c0_24, %c0_25] : memref<4x128x512xf32, #tpu.memory_space<vmem>>, vector<1x128x512xf32>
    %24 = vector.shape_cast %23 : vector<1x128x512xf32> to vector<128x512xf32>
    %cst_26 = arith.constant dense<0.000000e+00> : vector<64x512xf32>
    %25 = tpu.matmul %22, %24, %cst_26 {dimension_numbers = #tpu.dot_dimension_numbers<[1], [0], [0], [1], [0, 0, 1, 1], [], []>} : vector<64x128xf32>, vector<128x512xf32>, vector<64x512xf32> -> vector<64x512xf32>
    %26 = arith.addf %19, %25 : vector<64x512xf32>
    %c0_27 = arith.constant 0 : index
    %c0_28 = arith.constant 0 : index
    %c0_29 = arith.constant 0 : index
    %27 = vector.load %arg5[%c0_27, %c0_28, %c0_29] : memref<2x1x512xf32, #tpu.memory_space<vmem>>, vector<1x1x512xf32>
    %28 = vector.shape_cast %27 : vector<1x1x512xf32> to vector<1x512xf32>
    %29 = vector.broadcast %28 : vector<1x512xf32> to vector<64x512xf32>
    %30 = arith.addf %26, %29 : vector<64x512xf32>
    %31 = vector.shape_cast %30 : vector<64x512xf32> to vector<8x8x512xf32>
    %c0_30 = arith.constant 0 : index
    %c0_31 = arith.constant 0 : index
    %c0_32 = arith.constant 0 : index
    %32 = vector.load %arg9[%c0_30, %c0_31, %c0_32] : memref<8x8x512xf32, #tpu.memory_space<vmem>>, vector<8x8x512xf32>
    tpu.vector_store %arg9[%c0_30, %c0_31, %c0_32], %31 {strides = array<i32>} : memref<8x8x512xf32, #tpu.memory_space<vmem>>, vector<8x8x512xf32>,
    %c0_33 = arith.constant 0 : index
    %c0_34 = arith.constant 0 : index
    %c0_35 = arith.constant 0 : index
    %33 = vector.load %arg4[%c0_33, %c0_34, %c0_35] : memref<2x128x512xf32, #tpu.memory_space<vmem>>, vector<1x128x512xf32>
    %34 = vector.shape_cast %33 : vector<1x128x512xf32> to vector<128x512xf32>
    %cst_36 = arith.constant 0.000000e+00 : f32
    %35 = vector.broadcast %cst_36 : f32 to vector<8x128xf32>
    %cst_37 = arith.constant 0.000000e+00 : f32
    %36 = vector.broadcast %cst_37 : f32 to vector<8x128xf32>
    %c0_38 = arith.constant 0 : index
    %c0_39 = arith.constant 0 : index
    %c0_40 = arith.constant 0 : index
    %37 = vector.load %arg9[%c0_38, %c0_39, %c0_40] : memref<8x8x512xf32, #tpu.memory_space<vmem>>, vector<1x8x512xf32>
    %38 = vector.shape_cast %37 : vector<1x8x512xf32> to vector<8x512xf32>
    %cst_41 = arith.constant dense<0.000000e+00> : vector<8x512xf32>
    %39 = tpu.matmul %35, %34, %cst_41 {dimension_numbers = #tpu.dot_dimension_numbers<[1], [0], [0], [1], [0, 0, 1, 1], [], []>} : vector<8x128xf32>, vector<128x512xf32>, vector<8x512xf32> -> vector<8x512xf32>
    %40 = arith.addf %38, %39 : vector<8x512xf32>
    %41 = vector.extract_strided_slice %40 {offsets = [0, 0], sizes = [8, 128], strides = [1, 1]} : vector<8x512xf32> to vector<8x128xf32>
    %42 = arith.negf %41 : vector<8x128xf32>
    %43 = math.exp %42 : vector<8x128xf32>
    %cst_42 = arith.constant 1.000000e+00 : f32
    %44 = vector.broadcast %cst_42 : f32 to vector<8x128xf32>
    %45 = arith.addf %44, %43 : vector<8x128xf32>
    %46 = arith.divf %44, %45 : vector<8x128xf32>
    %47 = vector.extract_strided_slice %40 {offsets = [0, 128], sizes = [8, 128], strides = [1, 1]} : vector<8x512xf32> to vector<8x128xf32>
    %48 = arith.negf %47 : vector<8x128xf32>
    %49 = math.exp %48 : vector<8x128xf32>
    %cst_43 = arith.constant 1.000000e+00 : f32
    %50 = vector.broadcast %cst_43 : f32 to vector<8x128xf32>
    %51 = arith.addf %50, %49 : vector<8x128xf32>
    %52 = arith.divf %50, %51 : vector<8x128xf32>
    %53 = vector.extract_strided_slice %40 {offsets = [0, 256], sizes = [8, 128], strides = [1, 1]} : vector<8x512xf32> to vector<8x128xf32>
    %54 = math.tanh %53 : vector<8x128xf32>
    %55 = vector.extract_strided_slice %40 {offsets = [0, 384], sizes = [8, 128], strides = [1, 1]} : vector<8x512xf32> to vector<8x128xf32>
    %56 = arith.negf %55 : vector<8x128xf32>
    %57 = math.exp %56 : vector<8x128xf32>
    %cst_44 = arith.constant 1.000000e+00 : f32
    %58 = vector.broadcast %cst_44 : f32 to vector<8x128xf32>
    %59 = arith.addf %58, %57 : vector<8x128xf32>
    %60 = arith.divf %58, %59 : vector<8x128xf32>
    %61 = arith.mulf %52, %36 : vector<8x128xf32>
    %62 = arith.mulf %46, %54 : vector<8x128xf32>
    %63 = arith.addf %61, %62 : vector<8x128xf32>
    %64 = math.tanh %63 : vector<8x128xf32>
    %65 = arith.mulf %60, %64 : vector<8x128xf32>
    %c0_45 = arith.constant 0 : index
    %c0_46 = arith.constant 0 : index
    %c0_47 = arith.constant 0 : index
    %66 = vector.load %arg10[%c0_45, %c0_46, %c0_47] : memref<8x8x128xf32, #tpu.memory_space<vmem>>, vector<1x8x128xf32>
    %67 = vector.shape_cast %66 : vector<1x8x128xf32> to vector<8x128xf32>
    %68 = vector.shape_cast %65 : vector<8x128xf32> to vector<1x8x128xf32>
    tpu.vector_store %arg10[%c0_45, %c0_46, %c0_47], %68 {strides = array<i32>} : memref<8x8x128xf32, #tpu.memory_space<vmem>>, vector<1x8x128xf32>,
    %c1_48 = arith.constant 1 : index
    %c0_49 = arith.constant 0 : index
    %c0_50 = arith.constant 0 : index
    %69 = vector.load %arg9[%c1_48, %c0_49, %c0_50] : memref<8x8x512xf32, #tpu.memory_space<vmem>>, vector<1x8x512xf32>
    %70 = vector.shape_cast %69 : vector<1x8x512xf32> to vector<8x512xf32>
    %cst_51 = arith.constant dense<0.000000e+00> : vector<8x512xf32>
    %71 = tpu.matmul %65, %34, %cst_51 {dimension_numbers = #tpu.dot_dimension_numbers<[1], [0], [0], [1], [0, 0, 1, 1], [], []>} : vector<8x128xf32>, vector<128x512xf32>, vector<8x512xf32> -> vector<8x512xf32>
    %72 = arith.addf %70, %71 : vector<8x512xf32>
    %73 = vector.extract_strided_slice %72 {offsets = [0, 0], sizes = [8, 128], strides = [1, 1]} : vector<8x512xf32> to vector<8x128xf32>
    %74 = arith.negf %73 : vector<8x128xf32>
    %75 = math.exp %74 : vector<8x128xf32>
    %cst_52 = arith.constant 1.000000e+00 : f32
    %76 = vector.broadcast %cst_52 : f32 to vector<8x128xf32>
    %77 = arith.addf %76, %75 : vector<8x128xf32>
    %78 = arith.divf %76, %77 : vector<8x128xf32>
    %79 = vector.extract_strided_slice %72 {offsets = [0, 128], sizes = [8, 128], strides = [1, 1]} : vector<8x512xf32> to vector<8x128xf32>
    %80 = arith.negf %79 : vector<8x128xf32>
    %81 = math.exp %80 : vector<8x128xf32>
    %cst_53 = arith.constant 1.000000e+00 : f32
    %82 = vector.broadcast %cst_53 : f32 to vector<8x128xf32>
    %83 = arith.addf %82, %81 : vector<8x128xf32>
    %84 = arith.divf %82, %83 : vector<8x128xf32>
    %85 = vector.extract_strided_slice %72 {offsets = [0, 256], sizes = [8, 128], strides = [1, 1]} : vector<8x512xf32> to vector<8x128xf32>
    %86 = math.tanh %85 : vector<8x128xf32>
    %87 = vector.extract_strided_slice %72 {offsets = [0, 384], sizes = [8, 128], strides = [1, 1]} : vector<8x512xf32> to vector<8x128xf32>
    %88 = arith.negf %87 : vector<8x128xf32>
    %89 = math.exp %88 : vector<8x128xf32>
    %cst_54 = arith.constant 1.000000e+00 : f32
    %90 = vector.broadcast %cst_54 : f32 to vector<8x128xf32>
    %91 = arith.addf %90, %89 : vector<8x128xf32>
    %92 = arith.divf %90, %91 : vector<8x128xf32>
    %93 = arith.mulf %84, %63 : vector<8x128xf32>
    %94 = arith.mulf %78, %86 : vector<8x128xf32>
    %95 = arith.addf %93, %94 : vector<8x128xf32>
    %96 = math.tanh %95 : vector<8x128xf32>
    %97 = arith.mulf %92, %96 : vector<8x128xf32>
    %c1_55 = arith.constant 1 : index
    %c0_56 = arith.constant 0 : index
    %c0_57 = arith.constant 0 : index
    %98 = vector.load %arg10[%c1_55, %c0_56, %c0_57] : memref<8x8x128xf32, #tpu.memory_space<vmem>>, vector<1x8x128xf32>
    %99 = vector.shape_cast %98 : vector<1x8x128xf32> to vector<8x128xf32>
    %100 = vector.shape_cast %97 : vector<8x128xf32> to vector<1x8x128xf32>
    tpu.vector_store %arg10[%c1_55, %c0_56, %c0_57], %100 {strides = array<i32>} : memref<8x8x128xf32, #tpu.memory_space<vmem>>, vector<1x8x128xf32>,
    %c2_58 = arith.constant 2 : index
    %c0_59 = arith.constant 0 : index
    %c0_60 = arith.constant 0 : index
    %101 = vector.load %arg9[%c2_58, %c0_59, %c0_60] : memref<8x8x512xf32, #tpu.memory_space<vmem>>, vector<1x8x512xf32>
    %102 = vector.shape_cast %101 : vector<1x8x512xf32> to vector<8x512xf32>
    %cst_61 = arith.constant dense<0.000000e+00> : vector<8x512xf32>
    %103 = tpu.matmul %97, %34, %cst_61 {dimension_numbers = #tpu.dot_dimension_numbers<[1], [0], [0], [1], [0, 0, 1, 1], [], []>} : vector<8x128xf32>, vector<128x512xf32>, vector<8x512xf32> -> vector<8x512xf32>
    %104 = arith.addf %102, %103 : vector<8x512xf32>
    %105 = vector.extract_strided_slice %104 {offsets = [0, 0], sizes = [8, 128], strides = [1, 1]} : vector<8x512xf32> to vector<8x128xf32>
    %106 = arith.negf %105 : vector<8x128xf32>
    %107 = math.exp %106 : vector<8x128xf32>
    %cst_62 = arith.constant 1.000000e+00 : f32
    %108 = vector.broadcast %cst_62 : f32 to vector<8x128xf32>
    %109 = arith.addf %108, %107 : vector<8x128xf32>
    %110 = arith.divf %108, %109 : vector<8x128xf32>
    %111 = vector.extract_strided_slice %104 {offsets = [0, 128], sizes = [8, 128], strides = [1, 1]} : vector<8x512xf32> to vector<8x128xf32>
    %112 = arith.negf %111 : vector<8x128xf32>
    %113 = math.exp %112 : vector<8x128xf32>
    %cst_63 = arith.constant 1.000000e+00 : f32
    %114 = vector.broadcast %cst_63 : f32 to vector<8x128xf32>
    %115 = arith.addf %114, %113 : vector<8x128xf32>
    %116 = arith.divf %114, %115 : vector<8x128xf32>
    %117 = vector.extract_strided_slice %104 {offsets = [0, 256], sizes = [8, 128], strides = [1, 1]} : vector<8x512xf32> to vector<8x128xf32>
    %118 = math.tanh %117 : vector<8x128xf32>
    %119 = vector.extract_strided_slice %104 {offsets = [0, 384], sizes = [8, 128], strides = [1, 1]} : vector<8x512xf32> to vector<8x128xf32>
    %120 = arith.negf %119 : vector<8x128xf32>
    %121 = math.exp %120 : vector<8x128xf32>
    %cst_64 = arith.constant 1.000000e+00 : f32
    %122 = vector.broadcast %cst_64 : f32 to vector<8x128xf32>
    %123 = arith.addf %122, %121 : vector<8x128xf32>
    %124 = arith.divf %122, %123 : vector<8x128xf32>
    %125 = arith.mulf %116, %95 : vector<8x128xf32>
    %126 = arith.mulf %110, %118 : vector<8x128xf32>
    %127 = arith.addf %125, %126 : vector<8x128xf32>
    %128 = math.tanh %127 : vector<8x128xf32>
    %129 = arith.mulf %124, %128 : vector<8x128xf32>
    %c2_65 = arith.constant 2 : index
    %c0_66 = arith.constant 0 : index
    %c0_67 = arith.constant 0 : index
    %130 = vector.load %arg10[%c2_65, %c0_66, %c0_67] : memref<8x8x128xf32, #tpu.memory_space<vmem>>, vector<1x8x128xf32>
    %131 = vector.shape_cast %130 : vector<1x8x128xf32> to vector<8x128xf32>
    %132 = vector.shape_cast %129 : vector<8x128xf32> to vector<1x8x128xf32>
    tpu.vector_store %arg10[%c2_65, %c0_66, %c0_67], %132 {strides = array<i32>} : memref<8x8x128xf32, #tpu.memory_space<vmem>>, vector<1x8x128xf32>,
    %c3_68 = arith.constant 3 : index
    %c0_69 = arith.constant 0 : index
    %c0_70 = arith.constant 0 : index
    %133 = vector.load %arg9[%c3_68, %c0_69, %c0_70] : memref<8x8x512xf32, #tpu.memory_space<vmem>>, vector<1x8x512xf32>
    %134 = vector.shape_cast %133 : vector<1x8x512xf32> to vector<8x512xf32>
    %cst_71 = arith.constant dense<0.000000e+00> : vector<8x512xf32>
    %135 = tpu.matmul %129, %34, %cst_71 {dimension_numbers = #tpu.dot_dimension_numbers<[1], [0], [0], [1], [0, 0, 1, 1], [], []>} : vector<8x128xf32>, vector<128x512xf32>, vector<8x512xf32> -> vector<8x512xf32>
    %136 = arith.addf %134, %135 : vector<8x512xf32>
    %137 = vector.extract_strided_slice %136 {offsets = [0, 0], sizes = [8, 128], strides = [1, 1]} : vector<8x512xf32> to vector<8x128xf32>
    %138 = arith.negf %137 : vector<8x128xf32>
    %139 = math.exp %138 : vector<8x128xf32>
    %cst_72 = arith.constant 1.000000e+00 : f32
    %140 = vector.broadcast %cst_72 : f32 to vector<8x128xf32>
    %141 = arith.addf %140, %139 : vector<8x128xf32>
    %142 = arith.divf %140, %141 : vector<8x128xf32>
    %143 = vector.extract_strided_slice %136 {offsets = [0, 128], sizes = [8, 128], strides = [1, 1]} : vector<8x512xf32> to vector<8x128xf32>
    %144 = arith.negf %143 : vector<8x128xf32>
    %145 = math.exp %144 : vector<8x128xf32>
    %cst_73 = arith.constant 1.000000e+00 : f32
    %146 = vector.broadcast %cst_73 : f32 to vector<8x128xf32>
    %147 = arith.addf %146, %145 : vector<8x128xf32>
    %148 = arith.divf %146, %147 : vector<8x128xf32>
    %149 = vector.extract_strided_slice %136 {offsets = [0, 256], sizes = [8, 128], strides = [1, 1]} : vector<8x512xf32> to vector<8x128xf32>
    %150 = math.tanh %149 : vector<8x128xf32>
    %151 = vector.extract_strided_slice %136 {offsets = [0, 384], sizes = [8, 128], strides = [1, 1]} : vector<8x512xf32> to vector<8x128xf32>
    %152 = arith.negf %151 : vector<8x128xf32>
    %153 = math.exp %152 : vector<8x128xf32>
    %cst_74 = arith.constant 1.000000e+00 : f32
    %154 = vector.broadcast %cst_74 : f32 to vector<8x128xf32>
    %155 = arith.addf %154, %153 : vector<8x128xf32>
    %156 = arith.divf %154, %155 : vector<8x128xf32>
    %157 = arith.mulf %148, %127 : vector<8x128xf32>
    %158 = arith.mulf %142, %150 : vector<8x128xf32>
    %159 = arith.addf %157, %158 : vector<8x128xf32>
    %160 = math.tanh %159 : vector<8x128xf32>
    %161 = arith.mulf %156, %160 : vector<8x128xf32>
    %c3_75 = arith.constant 3 : index
    %c0_76 = arith.constant 0 : index
    %c0_77 = arith.constant 0 : index
    %162 = vector.load %arg10[%c3_75, %c0_76, %c0_77] : memref<8x8x128xf32, #tpu.memory_space<vmem>>, vector<1x8x128xf32>
    %163 = vector.shape_cast %162 : vector<1x8x128xf32> to vector<8x128xf32>
    %164 = vector.shape_cast %161 : vector<8x128xf32> to vector<1x8x128xf32>
    tpu.vector_store %arg10[%c3_75, %c0_76, %c0_77], %164 {strides = array<i32>} : memref<8x8x128xf32, #tpu.memory_space<vmem>>, vector<1x8x128xf32>,
    %c4 = arith.constant 4 : index
    %c0_78 = arith.constant 0 : index
    %c0_79 = arith.constant 0 : index
    %165 = vector.load %arg9[%c4, %c0_78, %c0_79] : memref<8x8x512xf32, #tpu.memory_space<vmem>>, vector<1x8x512xf32>
    %166 = vector.shape_cast %165 : vector<1x8x512xf32> to vector<8x512xf32>
    %cst_80 = arith.constant dense<0.000000e+00> : vector<8x512xf32>
    %167 = tpu.matmul %161, %34, %cst_80 {dimension_numbers = #tpu.dot_dimension_numbers<[1], [0], [0], [1], [0, 0, 1, 1], [], []>} : vector<8x128xf32>, vector<128x512xf32>, vector<8x512xf32> -> vector<8x512xf32>
    %168 = arith.addf %166, %167 : vector<8x512xf32>
    %169 = vector.extract_strided_slice %168 {offsets = [0, 0], sizes = [8, 128], strides = [1, 1]} : vector<8x512xf32> to vector<8x128xf32>
    %170 = arith.negf %169 : vector<8x128xf32>
    %171 = math.exp %170 : vector<8x128xf32>
    %cst_81 = arith.constant 1.000000e+00 : f32
    %172 = vector.broadcast %cst_81 : f32 to vector<8x128xf32>
    %173 = arith.addf %172, %171 : vector<8x128xf32>
    %174 = arith.divf %172, %173 : vector<8x128xf32>
    %175 = vector.extract_strided_slice %168 {offsets = [0, 128], sizes = [8, 128], strides = [1, 1]} : vector<8x512xf32> to vector<8x128xf32>
    %176 = arith.negf %175 : vector<8x128xf32>
    %177 = math.exp %176 : vector<8x128xf32>
    %cst_82 = arith.constant 1.000000e+00 : f32
    %178 = vector.broadcast %cst_82 : f32 to vector<8x128xf32>
    %179 = arith.addf %178, %177 : vector<8x128xf32>
    %180 = arith.divf %178, %179 : vector<8x128xf32>
    %181 = vector.extract_strided_slice %168 {offsets = [0, 256], sizes = [8, 128], strides = [1, 1]} : vector<8x512xf32> to vector<8x128xf32>
    %182 = math.tanh %181 : vector<8x128xf32>
    %183 = vector.extract_strided_slice %168 {offsets = [0, 384], sizes = [8, 128], strides = [1, 1]} : vector<8x512xf32> to vector<8x128xf32>
    %184 = arith.negf %183 : vector<8x128xf32>
    %185 = math.exp %184 : vector<8x128xf32>
    %cst_83 = arith.constant 1.000000e+00 : f32
    %186 = vector.broadcast %cst_83 : f32 to vector<8x128xf32>
    %187 = arith.addf %186, %185 : vector<8x128xf32>
    %188 = arith.divf %186, %187 : vector<8x128xf32>
    %189 = arith.mulf %180, %159 : vector<8x128xf32>
    %190 = arith.mulf %174, %182 : vector<8x128xf32>
    %191 = arith.addf %189, %190 : vector<8x128xf32>
    %192 = math.tanh %191 : vector<8x128xf32>
    %193 = arith.mulf %188, %192 : vector<8x128xf32>
    %c4_84 = arith.constant 4 : index
    %c0_85 = arith.constant 0 : index
    %c0_86 = arith.constant 0 : index
    %194 = vector.load %arg10[%c4_84, %c0_85, %c0_86] : memref<8x8x128xf32, #tpu.memory_space<vmem>>, vector<1x8x128xf32>
    %195 = vector.shape_cast %194 : vector<1x8x128xf32> to vector<8x128xf32>
    %196 = vector.shape_cast %193 : vector<8x128xf32> to vector<1x8x128xf32>
    tpu.vector_store %arg10[%c4_84, %c0_85, %c0_86], %196 {strides = array<i32>} : memref<8x8x128xf32, #tpu.memory_space<vmem>>, vector<1x8x128xf32>,
    %c5 = arith.constant 5 : index
    %c0_87 = arith.constant 0 : index
    %c0_88 = arith.constant 0 : index
    %197 = vector.load %arg9[%c5, %c0_87, %c0_88] : memref<8x8x512xf32, #tpu.memory_space<vmem>>, vector<1x8x512xf32>
    %198 = vector.shape_cast %197 : vector<1x8x512xf32> to vector<8x512xf32>
    %cst_89 = arith.constant dense<0.000000e+00> : vector<8x512xf32>
    %199 = tpu.matmul %193, %34, %cst_89 {dimension_numbers = #tpu.dot_dimension_numbers<[1], [0], [0], [1], [0, 0, 1, 1], [], []>} : vector<8x128xf32>, vector<128x512xf32>, vector<8x512xf32> -> vector<8x512xf32>
    %200 = arith.addf %198, %199 : vector<8x512xf32>
    %201 = vector.extract_strided_slice %200 {offsets = [0, 0], sizes = [8, 128], strides = [1, 1]} : vector<8x512xf32> to vector<8x128xf32>
    %202 = arith.negf %201 : vector<8x128xf32>
    %203 = math.exp %202 : vector<8x128xf32>
    %cst_90 = arith.constant 1.000000e+00 : f32
    %204 = vector.broadcast %cst_90 : f32 to vector<8x128xf32>
    %205 = arith.addf %204, %203 : vector<8x128xf32>
    %206 = arith.divf %204, %205 : vector<8x128xf32>
    %207 = vector.extract_strided_slice %200 {offsets = [0, 128], sizes = [8, 128], strides = [1, 1]} : vector<8x512xf32> to vector<8x128xf32>
    %208 = arith.negf %207 : vector<8x128xf32>
    %209 = math.exp %208 : vector<8x128xf32>
    %cst_91 = arith.constant 1.000000e+00 : f32
    %210 = vector.broadcast %cst_91 : f32 to vector<8x128xf32>
    %211 = arith.addf %210, %209 : vector<8x128xf32>
    %212 = arith.divf %210, %211 : vector<8x128xf32>
    %213 = vector.extract_strided_slice %200 {offsets = [0, 256], sizes = [8, 128], strides = [1, 1]} : vector<8x512xf32> to vector<8x128xf32>
    %214 = math.tanh %213 : vector<8x128xf32>
    %215 = vector.extract_strided_slice %200 {offsets = [0, 384], sizes = [8, 128], strides = [1, 1]} : vector<8x512xf32> to vector<8x128xf32>
    %216 = arith.negf %215 : vector<8x128xf32>
    %217 = math.exp %216 : vector<8x128xf32>
    %cst_92 = arith.constant 1.000000e+00 : f32
    %218 = vector.broadcast %cst_92 : f32 to vector<8x128xf32>
    %219 = arith.addf %218, %217 : vector<8x128xf32>
    %220 = arith.divf %218, %219 : vector<8x128xf32>
    %221 = arith.mulf %212, %191 : vector<8x128xf32>
    %222 = arith.mulf %206, %214 : vector<8x128xf32>
    %223 = arith.addf %221, %222 : vector<8x128xf32>
    %224 = math.tanh %223 : vector<8x128xf32>
    %225 = arith.mulf %220, %224 : vector<8x128xf32>
    %c5_93 = arith.constant 5 : index
    %c0_94 = arith.constant 0 : index
    %c0_95 = arith.constant 0 : index
    %226 = vector.load %arg10[%c5_93, %c0_94, %c0_95] : memref<8x8x128xf32, #tpu.memory_space<vmem>>, vector<1x8x128xf32>
    %227 = vector.shape_cast %226 : vector<1x8x128xf32> to vector<8x128xf32>
    %228 = vector.shape_cast %225 : vector<8x128xf32> to vector<1x8x128xf32>
    tpu.vector_store %arg10[%c5_93, %c0_94, %c0_95], %228 {strides = array<i32>} : memref<8x8x128xf32, #tpu.memory_space<vmem>>, vector<1x8x128xf32>,
    %c6 = arith.constant 6 : index
    %c0_96 = arith.constant 0 : index
    %c0_97 = arith.constant 0 : index
    %229 = vector.load %arg9[%c6, %c0_96, %c0_97] : memref<8x8x512xf32, #tpu.memory_space<vmem>>, vector<1x8x512xf32>
    %230 = vector.shape_cast %229 : vector<1x8x512xf32> to vector<8x512xf32>
    %cst_98 = arith.constant dense<0.000000e+00> : vector<8x512xf32>
    %231 = tpu.matmul %225, %34, %cst_98 {dimension_numbers = #tpu.dot_dimension_numbers<[1], [0], [0], [1], [0, 0, 1, 1], [], []>} : vector<8x128xf32>, vector<128x512xf32>, vector<8x512xf32> -> vector<8x512xf32>
    %232 = arith.addf %230, %231 : vector<8x512xf32>
    %233 = vector.extract_strided_slice %232 {offsets = [0, 0], sizes = [8, 128], strides = [1, 1]} : vector<8x512xf32> to vector<8x128xf32>
    %234 = arith.negf %233 : vector<8x128xf32>
    %235 = math.exp %234 : vector<8x128xf32>
    %cst_99 = arith.constant 1.000000e+00 : f32
    %236 = vector.broadcast %cst_99 : f32 to vector<8x128xf32>
    %237 = arith.addf %236, %235 : vector<8x128xf32>
    %238 = arith.divf %236, %237 : vector<8x128xf32>
    %239 = vector.extract_strided_slice %232 {offsets = [0, 128], sizes = [8, 128], strides = [1, 1]} : vector<8x512xf32> to vector<8x128xf32>
    %240 = arith.negf %239 : vector<8x128xf32>
    %241 = math.exp %240 : vector<8x128xf32>
    %cst_100 = arith.constant 1.000000e+00 : f32
    %242 = vector.broadcast %cst_100 : f32 to vector<8x128xf32>
    %243 = arith.addf %242, %241 : vector<8x128xf32>
    %244 = arith.divf %242, %243 : vector<8x128xf32>
    %245 = vector.extract_strided_slice %232 {offsets = [0, 256], sizes = [8, 128], strides = [1, 1]} : vector<8x512xf32> to vector<8x128xf32>
    %246 = math.tanh %245 : vector<8x128xf32>
    %247 = vector.extract_strided_slice %232 {offsets = [0, 384], sizes = [8, 128], strides = [1, 1]} : vector<8x512xf32> to vector<8x128xf32>
    %248 = arith.negf %247 : vector<8x128xf32>
    %249 = math.exp %248 : vector<8x128xf32>
    %cst_101 = arith.constant 1.000000e+00 : f32
    %250 = vector.broadcast %cst_101 : f32 to vector<8x128xf32>
    %251 = arith.addf %250, %249 : vector<8x128xf32>
    %252 = arith.divf %250, %251 : vector<8x128xf32>
    %253 = arith.mulf %244, %223 : vector<8x128xf32>
    %254 = arith.mulf %238, %246 : vector<8x128xf32>
    %255 = arith.addf %253, %254 : vector<8x128xf32>
    %256 = math.tanh %255 : vector<8x128xf32>
    %257 = arith.mulf %252, %256 : vector<8x128xf32>
    %c6_102 = arith.constant 6 : index
    %c0_103 = arith.constant 0 : index
    %c0_104 = arith.constant 0 : index
    %258 = vector.load %arg10[%c6_102, %c0_103, %c0_104] : memref<8x8x128xf32, #tpu.memory_space<vmem>>, vector<1x8x128xf32>
    %259 = vector.shape_cast %258 : vector<1x8x128xf32> to vector<8x128xf32>
    %260 = vector.shape_cast %257 : vector<8x128xf32> to vector<1x8x128xf32>
    tpu.vector_store %arg10[%c6_102, %c0_103, %c0_104], %260 {strides = array<i32>} : memref<8x8x128xf32, #tpu.memory_space<vmem>>, vector<1x8x128xf32>,
    %c7 = arith.constant 7 : index
    %c0_105 = arith.constant 0 : index
    %c0_106 = arith.constant 0 : index
    %261 = vector.load %arg9[%c7, %c0_105, %c0_106] : memref<8x8x512xf32, #tpu.memory_space<vmem>>, vector<1x8x512xf32>
    %262 = vector.shape_cast %261 : vector<1x8x512xf32> to vector<8x512xf32>
    %cst_107 = arith.constant dense<0.000000e+00> : vector<8x512xf32>
    %263 = tpu.matmul %257, %34, %cst_107 {dimension_numbers = #tpu.dot_dimension_numbers<[1], [0], [0], [1], [0, 0, 1, 1], [], []>} : vector<8x128xf32>, vector<128x512xf32>, vector<8x512xf32> -> vector<8x512xf32>
    %264 = arith.addf %262, %263 : vector<8x512xf32>
    %265 = vector.extract_strided_slice %264 {offsets = [0, 0], sizes = [8, 128], strides = [1, 1]} : vector<8x512xf32> to vector<8x128xf32>
    %266 = arith.negf %265 : vector<8x128xf32>
    %267 = math.exp %266 : vector<8x128xf32>
    %cst_108 = arith.constant 1.000000e+00 : f32
    %268 = vector.broadcast %cst_108 : f32 to vector<8x128xf32>
    %269 = arith.addf %268, %267 : vector<8x128xf32>
    %270 = arith.divf %268, %269 : vector<8x128xf32>
    %271 = vector.extract_strided_slice %264 {offsets = [0, 128], sizes = [8, 128], strides = [1, 1]} : vector<8x512xf32> to vector<8x128xf32>
    %272 = arith.negf %271 : vector<8x128xf32>
    %273 = math.exp %272 : vector<8x128xf32>
    %cst_109 = arith.constant 1.000000e+00 : f32
    %274 = vector.broadcast %cst_109 : f32 to vector<8x128xf32>
    %275 = arith.addf %274, %273 : vector<8x128xf32>
    %276 = arith.divf %274, %275 : vector<8x128xf32>
    %277 = vector.extract_strided_slice %264 {offsets = [0, 256], sizes = [8, 128], strides = [1, 1]} : vector<8x512xf32> to vector<8x128xf32>
    %278 = math.tanh %277 : vector<8x128xf32>
    %279 = vector.extract_strided_slice %264 {offsets = [0, 384], sizes = [8, 128], strides = [1, 1]} : vector<8x512xf32> to vector<8x128xf32>
    %280 = arith.negf %279 : vector<8x128xf32>
    %281 = math.exp %280 : vector<8x128xf32>
    %cst_110 = arith.constant 1.000000e+00 : f32
    %282 = vector.broadcast %cst_110 : f32 to vector<8x128xf32>
    %283 = arith.addf %282, %281 : vector<8x128xf32>
    %284 = arith.divf %282, %283 : vector<8x128xf32>
    %285 = arith.mulf %276, %255 : vector<8x128xf32>
    %286 = arith.mulf %270, %278 : vector<8x128xf32>
    %287 = arith.addf %285, %286 : vector<8x128xf32>
    %288 = math.tanh %287 : vector<8x128xf32>
    %289 = arith.mulf %284, %288 : vector<8x128xf32>
    %c7_111 = arith.constant 7 : index
    %c0_112 = arith.constant 0 : index
    %c0_113 = arith.constant 0 : index
    %290 = vector.load %arg10[%c7_111, %c0_112, %c0_113] : memref<8x8x128xf32, #tpu.memory_space<vmem>>, vector<1x8x128xf32>
    %291 = vector.shape_cast %290 : vector<1x8x128xf32> to vector<8x128xf32>
    %292 = vector.shape_cast %289 : vector<8x128xf32> to vector<1x8x128xf32>
    tpu.vector_store %arg10[%c7_111, %c0_112, %c0_113], %292 {strides = array<i32>} : memref<8x8x128xf32, #tpu.memory_space<vmem>>, vector<1x8x128xf32>,
    %c0_114 = arith.constant 0 : index
    %c0_115 = arith.constant 0 : index
    %c0_116 = arith.constant 0 : index
    %293 = vector.load %arg10[%c0_114, %c0_115, %c0_116] : memref<8x8x128xf32, #tpu.memory_space<vmem>>, vector<8x8x128xf32>
    %294 = vector.shape_cast %293 : vector<8x8x128xf32> to vector<64x128xf32>
    %c0_117 = arith.constant 0 : index
    %c0_118 = arith.constant 0 : index
    %c0_119 = arith.constant 0 : index
    %295 = vector.load %arg3[%c0_117, %c0_118, %c0_119] : memref<1x128x512xf32, #tpu.memory_space<vmem>>, vector<1x128x512xf32>
    %296 = vector.shape_cast %295 : vector<1x128x512xf32> to vector<128x512xf32>
    %cst_120 = arith.constant dense<0.000000e+00> : vector<64x512xf32>
    %297 = tpu.matmul %294, %296, %cst_120 {dimension_numbers = #tpu.dot_dimension_numbers<[1], [0], [0], [1], [0, 0, 1, 1], [], []>} : vector<64x128xf32>, vector<128x512xf32>, vector<64x512xf32> -> vector<64x512xf32>
    %c1_121 = arith.constant 1 : index
    %c0_122 = arith.constant 0 : index
    %c0_123 = arith.constant 0 : index
    %298 = vector.load %arg5[%c1_121, %c0_122, %c0_123] : memref<2x1x512xf32, #tpu.memory_space<vmem>>, vector<1x1x512xf32>
    %299 = vector.shape_cast %298 : vector<1x1x512xf32> to vector<1x512xf32>
    %300 = vector.broadcast %299 : vector<1x512xf32> to vector<64x512xf32>
    %301 = arith.addf %297, %300 : vector<64x512xf32>
    %302 = vector.shape_cast %301 : vector<64x512xf32> to vector<8x8x512xf32>
    %c0_124 = arith.constant 0 : index
    %c0_125 = arith.constant 0 : index
    %c0_126 = arith.constant 0 : index
    %303 = vector.load %arg9[%c0_124, %c0_125, %c0_126] : memref<8x8x512xf32, #tpu.memory_space<vmem>>, vector<8x8x512xf32>
    tpu.vector_store %arg9[%c0_124, %c0_125, %c0_126], %302 {strides = array<i32>} : memref<8x8x512xf32, #tpu.memory_space<vmem>>, vector<8x8x512xf32>,
    %c1_127 = arith.constant 1 : index
    %c0_128 = arith.constant 0 : index
    %c0_129 = arith.constant 0 : index
    %304 = vector.load %arg4[%c1_127, %c0_128, %c0_129] : memref<2x128x512xf32, #tpu.memory_space<vmem>>, vector<1x128x512xf32>
    %305 = vector.shape_cast %304 : vector<1x128x512xf32> to vector<128x512xf32>
    %cst_130 = arith.constant 0.000000e+00 : f32
    %306 = vector.broadcast %cst_130 : f32 to vector<8x128xf32>
    %cst_131 = arith.constant 0.000000e+00 : f32
    %307 = vector.broadcast %cst_131 : f32 to vector<8x128xf32>
    %c0_132 = arith.constant 0 : index
    %c0_133 = arith.constant 0 : index
    %c0_134 = arith.constant 0 : index
    %308 = vector.load %arg9[%c0_132, %c0_133, %c0_134] : memref<8x8x512xf32, #tpu.memory_space<vmem>>, vector<1x8x512xf32>
    %309 = vector.shape_cast %308 : vector<1x8x512xf32> to vector<8x512xf32>
    %cst_135 = arith.constant dense<0.000000e+00> : vector<8x512xf32>
    %310 = tpu.matmul %306, %305, %cst_135 {dimension_numbers = #tpu.dot_dimension_numbers<[1], [0], [0], [1], [0, 0, 1, 1], [], []>} : vector<8x128xf32>, vector<128x512xf32>, vector<8x512xf32> -> vector<8x512xf32>
    %311 = arith.addf %309, %310 : vector<8x512xf32>
    %312 = vector.extract_strided_slice %311 {offsets = [0, 0], sizes = [8, 128], strides = [1, 1]} : vector<8x512xf32> to vector<8x128xf32>
    %313 = arith.negf %312 : vector<8x128xf32>
    %314 = math.exp %313 : vector<8x128xf32>
    %cst_136 = arith.constant 1.000000e+00 : f32
    %315 = vector.broadcast %cst_136 : f32 to vector<8x128xf32>
    %316 = arith.addf %315, %314 : vector<8x128xf32>
    %317 = arith.divf %315, %316 : vector<8x128xf32>
    %318 = vector.extract_strided_slice %311 {offsets = [0, 128], sizes = [8, 128], strides = [1, 1]} : vector<8x512xf32> to vector<8x128xf32>
    %319 = arith.negf %318 : vector<8x128xf32>
    %320 = math.exp %319 : vector<8x128xf32>
    %cst_137 = arith.constant 1.000000e+00 : f32
    %321 = vector.broadcast %cst_137 : f32 to vector<8x128xf32>
    %322 = arith.addf %321, %320 : vector<8x128xf32>
    %323 = arith.divf %321, %322 : vector<8x128xf32>
    %324 = vector.extract_strided_slice %311 {offsets = [0, 256], sizes = [8, 128], strides = [1, 1]} : vector<8x512xf32> to vector<8x128xf32>
    %325 = math.tanh %324 : vector<8x128xf32>
    %326 = vector.extract_strided_slice %311 {offsets = [0, 384], sizes = [8, 128], strides = [1, 1]} : vector<8x512xf32> to vector<8x128xf32>
    %327 = arith.negf %326 : vector<8x128xf32>
    %328 = math.exp %327 : vector<8x128xf32>
    %cst_138 = arith.constant 1.000000e+00 : f32
    %329 = vector.broadcast %cst_138 : f32 to vector<8x128xf32>
    %330 = arith.addf %329, %328 : vector<8x128xf32>
    %331 = arith.divf %329, %330 : vector<8x128xf32>
    %332 = arith.mulf %323, %307 : vector<8x128xf32>
    %333 = arith.mulf %317, %325 : vector<8x128xf32>
    %334 = arith.addf %332, %333 : vector<8x128xf32>
    %335 = math.tanh %334 : vector<8x128xf32>
    %336 = arith.mulf %331, %335 : vector<8x128xf32>
    %c1_139 = arith.constant 1 : index
    %c0_140 = arith.constant 0 : index
    %c0_141 = arith.constant 0 : index
    %337 = vector.load %arg9[%c1_139, %c0_140, %c0_141] : memref<8x8x512xf32, #tpu.memory_space<vmem>>, vector<1x8x512xf32>
    %338 = vector.shape_cast %337 : vector<1x8x512xf32> to vector<8x512xf32>
    %cst_142 = arith.constant dense<0.000000e+00> : vector<8x512xf32>
    %339 = tpu.matmul %336, %305, %cst_142 {dimension_numbers = #tpu.dot_dimension_numbers<[1], [0], [0], [1], [0, 0, 1, 1], [], []>} : vector<8x128xf32>, vector<128x512xf32>, vector<8x512xf32> -> vector<8x512xf32>
    %340 = arith.addf %338, %339 : vector<8x512xf32>
    %341 = vector.extract_strided_slice %340 {offsets = [0, 0], sizes = [8, 128], strides = [1, 1]} : vector<8x512xf32> to vector<8x128xf32>
    %342 = arith.negf %341 : vector<8x128xf32>
    %343 = math.exp %342 : vector<8x128xf32>
    %cst_143 = arith.constant 1.000000e+00 : f32
    %344 = vector.broadcast %cst_143 : f32 to vector<8x128xf32>
    %345 = arith.addf %344, %343 : vector<8x128xf32>
    %346 = arith.divf %344, %345 : vector<8x128xf32>
    %347 = vector.extract_strided_slice %340 {offsets = [0, 128], sizes = [8, 128], strides = [1, 1]} : vector<8x512xf32> to vector<8x128xf32>
    %348 = arith.negf %347 : vector<8x128xf32>
    %349 = math.exp %348 : vector<8x128xf32>
    %cst_144 = arith.constant 1.000000e+00 : f32
    %350 = vector.broadcast %cst_144 : f32 to vector<8x128xf32>
    %351 = arith.addf %350, %349 : vector<8x128xf32>
    %352 = arith.divf %350, %351 : vector<8x128xf32>
    %353 = vector.extract_strided_slice %340 {offsets = [0, 256], sizes = [8, 128], strides = [1, 1]} : vector<8x512xf32> to vector<8x128xf32>
    %354 = math.tanh %353 : vector<8x128xf32>
    %355 = vector.extract_strided_slice %340 {offsets = [0, 384], sizes = [8, 128], strides = [1, 1]} : vector<8x512xf32> to vector<8x128xf32>
    %356 = arith.negf %355 : vector<8x128xf32>
    %357 = math.exp %356 : vector<8x128xf32>
    %cst_145 = arith.constant 1.000000e+00 : f32
    %358 = vector.broadcast %cst_145 : f32 to vector<8x128xf32>
    %359 = arith.addf %358, %357 : vector<8x128xf32>
    %360 = arith.divf %358, %359 : vector<8x128xf32>
    %361 = arith.mulf %352, %334 : vector<8x128xf32>
    %362 = arith.mulf %346, %354 : vector<8x128xf32>
    %363 = arith.addf %361, %362 : vector<8x128xf32>
    %364 = math.tanh %363 : vector<8x128xf32>
    %365 = arith.mulf %360, %364 : vector<8x128xf32>
    %c2_146 = arith.constant 2 : index
    %c0_147 = arith.constant 0 : index
    %c0_148 = arith.constant 0 : index
    %366 = vector.load %arg9[%c2_146, %c0_147, %c0_148] : memref<8x8x512xf32, #tpu.memory_space<vmem>>, vector<1x8x512xf32>
    %367 = vector.shape_cast %366 : vector<1x8x512xf32> to vector<8x512xf32>
    %cst_149 = arith.constant dense<0.000000e+00> : vector<8x512xf32>
    %368 = tpu.matmul %365, %305, %cst_149 {dimension_numbers = #tpu.dot_dimension_numbers<[1], [0], [0], [1], [0, 0, 1, 1], [], []>} : vector<8x128xf32>, vector<128x512xf32>, vector<8x512xf32> -> vector<8x512xf32>
    %369 = arith.addf %367, %368 : vector<8x512xf32>
    %370 = vector.extract_strided_slice %369 {offsets = [0, 0], sizes = [8, 128], strides = [1, 1]} : vector<8x512xf32> to vector<8x128xf32>
    %371 = arith.negf %370 : vector<8x128xf32>
    %372 = math.exp %371 : vector<8x128xf32>
    %cst_150 = arith.constant 1.000000e+00 : f32
    %373 = vector.broadcast %cst_150 : f32 to vector<8x128xf32>
    %374 = arith.addf %373, %372 : vector<8x128xf32>
    %375 = arith.divf %373, %374 : vector<8x128xf32>
    %376 = vector.extract_strided_slice %369 {offsets = [0, 128], sizes = [8, 128], strides = [1, 1]} : vector<8x512xf32> to vector<8x128xf32>
    %377 = arith.negf %376 : vector<8x128xf32>
    %378 = math.exp %377 : vector<8x128xf32>
    %cst_151 = arith.constant 1.000000e+00 : f32
    %379 = vector.broadcast %cst_151 : f32 to vector<8x128xf32>
    %380 = arith.addf %379, %378 : vector<8x128xf32>
    %381 = arith.divf %379, %380 : vector<8x128xf32>
    %382 = vector.extract_strided_slice %369 {offsets = [0, 256], sizes = [8, 128], strides = [1, 1]} : vector<8x512xf32> to vector<8x128xf32>
    %383 = math.tanh %382 : vector<8x128xf32>
    %384 = vector.extract_strided_slice %369 {offsets = [0, 384], sizes = [8, 128], strides = [1, 1]} : vector<8x512xf32> to vector<8x128xf32>
    %385 = arith.negf %384 : vector<8x128xf32>
    %386 = math.exp %385 : vector<8x128xf32>
    %cst_152 = arith.constant 1.000000e+00 : f32
    %387 = vector.broadcast %cst_152 : f32 to vector<8x128xf32>
    %388 = arith.addf %387, %386 : vector<8x128xf32>
    %389 = arith.divf %387, %388 : vector<8x128xf32>
    %390 = arith.mulf %381, %363 : vector<8x128xf32>
    %391 = arith.mulf %375, %383 : vector<8x128xf32>
    %392 = arith.addf %390, %391 : vector<8x128xf32>
    %393 = math.tanh %392 : vector<8x128xf32>
    %394 = arith.mulf %389, %393 : vector<8x128xf32>
    %c3_153 = arith.constant 3 : index
    %c0_154 = arith.constant 0 : index
    %c0_155 = arith.constant 0 : index
    %395 = vector.load %arg9[%c3_153, %c0_154, %c0_155] : memref<8x8x512xf32, #tpu.memory_space<vmem>>, vector<1x8x512xf32>
    %396 = vector.shape_cast %395 : vector<1x8x512xf32> to vector<8x512xf32>
    %cst_156 = arith.constant dense<0.000000e+00> : vector<8x512xf32>
    %397 = tpu.matmul %394, %305, %cst_156 {dimension_numbers = #tpu.dot_dimension_numbers<[1], [0], [0], [1], [0, 0, 1, 1], [], []>} : vector<8x128xf32>, vector<128x512xf32>, vector<8x512xf32> -> vector<8x512xf32>
    %398 = arith.addf %396, %397 : vector<8x512xf32>
    %399 = vector.extract_strided_slice %398 {offsets = [0, 0], sizes = [8, 128], strides = [1, 1]} : vector<8x512xf32> to vector<8x128xf32>
    %400 = arith.negf %399 : vector<8x128xf32>
    %401 = math.exp %400 : vector<8x128xf32>
    %cst_157 = arith.constant 1.000000e+00 : f32
    %402 = vector.broadcast %cst_157 : f32 to vector<8x128xf32>
    %403 = arith.addf %402, %401 : vector<8x128xf32>
    %404 = arith.divf %402, %403 : vector<8x128xf32>
    %405 = vector.extract_strided_slice %398 {offsets = [0, 128], sizes = [8, 128], strides = [1, 1]} : vector<8x512xf32> to vector<8x128xf32>
    %406 = arith.negf %405 : vector<8x128xf32>
    %407 = math.exp %406 : vector<8x128xf32>
    %cst_158 = arith.constant 1.000000e+00 : f32
    %408 = vector.broadcast %cst_158 : f32 to vector<8x128xf32>
    %409 = arith.addf %408, %407 : vector<8x128xf32>
    %410 = arith.divf %408, %409 : vector<8x128xf32>
    %411 = vector.extract_strided_slice %398 {offsets = [0, 256], sizes = [8, 128], strides = [1, 1]} : vector<8x512xf32> to vector<8x128xf32>
    %412 = math.tanh %411 : vector<8x128xf32>
    %413 = vector.extract_strided_slice %398 {offsets = [0, 384], sizes = [8, 128], strides = [1, 1]} : vector<8x512xf32> to vector<8x128xf32>
    %414 = arith.negf %413 : vector<8x128xf32>
    %415 = math.exp %414 : vector<8x128xf32>
    %cst_159 = arith.constant 1.000000e+00 : f32
    %416 = vector.broadcast %cst_159 : f32 to vector<8x128xf32>
    %417 = arith.addf %416, %415 : vector<8x128xf32>
    %418 = arith.divf %416, %417 : vector<8x128xf32>
    %419 = arith.mulf %410, %392 : vector<8x128xf32>
    %420 = arith.mulf %404, %412 : vector<8x128xf32>
    %421 = arith.addf %419, %420 : vector<8x128xf32>
    %422 = math.tanh %421 : vector<8x128xf32>
    %423 = arith.mulf %418, %422 : vector<8x128xf32>
    %c4_160 = arith.constant 4 : index
    %c0_161 = arith.constant 0 : index
    %c0_162 = arith.constant 0 : index
    %424 = vector.load %arg9[%c4_160, %c0_161, %c0_162] : memref<8x8x512xf32, #tpu.memory_space<vmem>>, vector<1x8x512xf32>
    %425 = vector.shape_cast %424 : vector<1x8x512xf32> to vector<8x512xf32>
    %cst_163 = arith.constant dense<0.000000e+00> : vector<8x512xf32>
    %426 = tpu.matmul %423, %305, %cst_163 {dimension_numbers = #tpu.dot_dimension_numbers<[1], [0], [0], [1], [0, 0, 1, 1], [], []>} : vector<8x128xf32>, vector<128x512xf32>, vector<8x512xf32> -> vector<8x512xf32>
    %427 = arith.addf %425, %426 : vector<8x512xf32>
    %428 = vector.extract_strided_slice %427 {offsets = [0, 0], sizes = [8, 128], strides = [1, 1]} : vector<8x512xf32> to vector<8x128xf32>
    %429 = arith.negf %428 : vector<8x128xf32>
    %430 = math.exp %429 : vector<8x128xf32>
    %cst_164 = arith.constant 1.000000e+00 : f32
    %431 = vector.broadcast %cst_164 : f32 to vector<8x128xf32>
    %432 = arith.addf %431, %430 : vector<8x128xf32>
    %433 = arith.divf %431, %432 : vector<8x128xf32>
    %434 = vector.extract_strided_slice %427 {offsets = [0, 128], sizes = [8, 128], strides = [1, 1]} : vector<8x512xf32> to vector<8x128xf32>
    %435 = arith.negf %434 : vector<8x128xf32>
    %436 = math.exp %435 : vector<8x128xf32>
    %cst_165 = arith.constant 1.000000e+00 : f32
    %437 = vector.broadcast %cst_165 : f32 to vector<8x128xf32>
    %438 = arith.addf %437, %436 : vector<8x128xf32>
    %439 = arith.divf %437, %438 : vector<8x128xf32>
    %440 = vector.extract_strided_slice %427 {offsets = [0, 256], sizes = [8, 128], strides = [1, 1]} : vector<8x512xf32> to vector<8x128xf32>
    %441 = math.tanh %440 : vector<8x128xf32>
    %442 = vector.extract_strided_slice %427 {offsets = [0, 384], sizes = [8, 128], strides = [1, 1]} : vector<8x512xf32> to vector<8x128xf32>
    %443 = arith.negf %442 : vector<8x128xf32>
    %444 = math.exp %443 : vector<8x128xf32>
    %cst_166 = arith.constant 1.000000e+00 : f32
    %445 = vector.broadcast %cst_166 : f32 to vector<8x128xf32>
    %446 = arith.addf %445, %444 : vector<8x128xf32>
    %447 = arith.divf %445, %446 : vector<8x128xf32>
    %448 = arith.mulf %439, %421 : vector<8x128xf32>
    %449 = arith.mulf %433, %441 : vector<8x128xf32>
    %450 = arith.addf %448, %449 : vector<8x128xf32>
    %451 = math.tanh %450 : vector<8x128xf32>
    %452 = arith.mulf %447, %451 : vector<8x128xf32>
    %c5_167 = arith.constant 5 : index
    %c0_168 = arith.constant 0 : index
    %c0_169 = arith.constant 0 : index
    %453 = vector.load %arg9[%c5_167, %c0_168, %c0_169] : memref<8x8x512xf32, #tpu.memory_space<vmem>>, vector<1x8x512xf32>
    %454 = vector.shape_cast %453 : vector<1x8x512xf32> to vector<8x512xf32>
    %cst_170 = arith.constant dense<0.000000e+00> : vector<8x512xf32>
    %455 = tpu.matmul %452, %305, %cst_170 {dimension_numbers = #tpu.dot_dimension_numbers<[1], [0], [0], [1], [0, 0, 1, 1], [], []>} : vector<8x128xf32>, vector<128x512xf32>, vector<8x512xf32> -> vector<8x512xf32>
    %456 = arith.addf %454, %455 : vector<8x512xf32>
    %457 = vector.extract_strided_slice %456 {offsets = [0, 0], sizes = [8, 128], strides = [1, 1]} : vector<8x512xf32> to vector<8x128xf32>
    %458 = arith.negf %457 : vector<8x128xf32>
    %459 = math.exp %458 : vector<8x128xf32>
    %cst_171 = arith.constant 1.000000e+00 : f32
    %460 = vector.broadcast %cst_171 : f32 to vector<8x128xf32>
    %461 = arith.addf %460, %459 : vector<8x128xf32>
    %462 = arith.divf %460, %461 : vector<8x128xf32>
    %463 = vector.extract_strided_slice %456 {offsets = [0, 128], sizes = [8, 128], strides = [1, 1]} : vector<8x512xf32> to vector<8x128xf32>
    %464 = arith.negf %463 : vector<8x128xf32>
    %465 = math.exp %464 : vector<8x128xf32>
    %cst_172 = arith.constant 1.000000e+00 : f32
    %466 = vector.broadcast %cst_172 : f32 to vector<8x128xf32>
    %467 = arith.addf %466, %465 : vector<8x128xf32>
    %468 = arith.divf %466, %467 : vector<8x128xf32>
    %469 = vector.extract_strided_slice %456 {offsets = [0, 256], sizes = [8, 128], strides = [1, 1]} : vector<8x512xf32> to vector<8x128xf32>
    %470 = math.tanh %469 : vector<8x128xf32>
    %471 = vector.extract_strided_slice %456 {offsets = [0, 384], sizes = [8, 128], strides = [1, 1]} : vector<8x512xf32> to vector<8x128xf32>
    %472 = arith.negf %471 : vector<8x128xf32>
    %473 = math.exp %472 : vector<8x128xf32>
    %cst_173 = arith.constant 1.000000e+00 : f32
    %474 = vector.broadcast %cst_173 : f32 to vector<8x128xf32>
    %475 = arith.addf %474, %473 : vector<8x128xf32>
    %476 = arith.divf %474, %475 : vector<8x128xf32>
    %477 = arith.mulf %468, %450 : vector<8x128xf32>
    %478 = arith.mulf %462, %470 : vector<8x128xf32>
    %479 = arith.addf %477, %478 : vector<8x128xf32>
    %480 = math.tanh %479 : vector<8x128xf32>
    %481 = arith.mulf %476, %480 : vector<8x128xf32>
    %c6_174 = arith.constant 6 : index
    %c0_175 = arith.constant 0 : index
    %c0_176 = arith.constant 0 : index
    %482 = vector.load %arg9[%c6_174, %c0_175, %c0_176] : memref<8x8x512xf32, #tpu.memory_space<vmem>>, vector<1x8x512xf32>
    %483 = vector.shape_cast %482 : vector<1x8x512xf32> to vector<8x512xf32>
    %cst_177 = arith.constant dense<0.000000e+00> : vector<8x512xf32>
    %484 = tpu.matmul %481, %305, %cst_177 {dimension_numbers = #tpu.dot_dimension_numbers<[1], [0], [0], [1], [0, 0, 1, 1], [], []>} : vector<8x128xf32>, vector<128x512xf32>, vector<8x512xf32> -> vector<8x512xf32>
    %485 = arith.addf %483, %484 : vector<8x512xf32>
    %486 = vector.extract_strided_slice %485 {offsets = [0, 0], sizes = [8, 128], strides = [1, 1]} : vector<8x512xf32> to vector<8x128xf32>
    %487 = arith.negf %486 : vector<8x128xf32>
    %488 = math.exp %487 : vector<8x128xf32>
    %cst_178 = arith.constant 1.000000e+00 : f32
    %489 = vector.broadcast %cst_178 : f32 to vector<8x128xf32>
    %490 = arith.addf %489, %488 : vector<8x128xf32>
    %491 = arith.divf %489, %490 : vector<8x128xf32>
    %492 = vector.extract_strided_slice %485 {offsets = [0, 128], sizes = [8, 128], strides = [1, 1]} : vector<8x512xf32> to vector<8x128xf32>
    %493 = arith.negf %492 : vector<8x128xf32>
    %494 = math.exp %493 : vector<8x128xf32>
    %cst_179 = arith.constant 1.000000e+00 : f32
    %495 = vector.broadcast %cst_179 : f32 to vector<8x128xf32>
    %496 = arith.addf %495, %494 : vector<8x128xf32>
    %497 = arith.divf %495, %496 : vector<8x128xf32>
    %498 = vector.extract_strided_slice %485 {offsets = [0, 256], sizes = [8, 128], strides = [1, 1]} : vector<8x512xf32> to vector<8x128xf32>
    %499 = math.tanh %498 : vector<8x128xf32>
    %500 = vector.extract_strided_slice %485 {offsets = [0, 384], sizes = [8, 128], strides = [1, 1]} : vector<8x512xf32> to vector<8x128xf32>
    %501 = arith.negf %500 : vector<8x128xf32>
    %502 = math.exp %501 : vector<8x128xf32>
    %cst_180 = arith.constant 1.000000e+00 : f32
    %503 = vector.broadcast %cst_180 : f32 to vector<8x128xf32>
    %504 = arith.addf %503, %502 : vector<8x128xf32>
    %505 = arith.divf %503, %504 : vector<8x128xf32>
    %506 = arith.mulf %497, %479 : vector<8x128xf32>
    %507 = arith.mulf %491, %499 : vector<8x128xf32>
    %508 = arith.addf %506, %507 : vector<8x128xf32>
    %509 = math.tanh %508 : vector<8x128xf32>
    %510 = arith.mulf %505, %509 : vector<8x128xf32>
    %c7_181 = arith.constant 7 : index
    %c0_182 = arith.constant 0 : index
    %c0_183 = arith.constant 0 : index
    %511 = vector.load %arg9[%c7_181, %c0_182, %c0_183] : memref<8x8x512xf32, #tpu.memory_space<vmem>>, vector<1x8x512xf32>
    %512 = vector.shape_cast %511 : vector<1x8x512xf32> to vector<8x512xf32>
    %cst_184 = arith.constant dense<0.000000e+00> : vector<8x512xf32>
    %513 = tpu.matmul %510, %305, %cst_184 {dimension_numbers = #tpu.dot_dimension_numbers<[1], [0], [0], [1], [0, 0, 1, 1], [], []>} : vector<8x128xf32>, vector<128x512xf32>, vector<8x512xf32> -> vector<8x512xf32>
    %514 = arith.addf %512, %513 : vector<8x512xf32>
    %515 = vector.extract_strided_slice %514 {offsets = [0, 0], sizes = [8, 128], strides = [1, 1]} : vector<8x512xf32> to vector<8x128xf32>
    %516 = arith.negf %515 : vector<8x128xf32>
    %517 = math.exp %516 : vector<8x128xf32>
    %cst_185 = arith.constant 1.000000e+00 : f32
    %518 = vector.broadcast %cst_185 : f32 to vector<8x128xf32>
    %519 = arith.addf %518, %517 : vector<8x128xf32>
    %520 = arith.divf %518, %519 : vector<8x128xf32>
    %521 = vector.extract_strided_slice %514 {offsets = [0, 128], sizes = [8, 128], strides = [1, 1]} : vector<8x512xf32> to vector<8x128xf32>
    %522 = arith.negf %521 : vector<8x128xf32>
    %523 = math.exp %522 : vector<8x128xf32>
    %cst_186 = arith.constant 1.000000e+00 : f32
    %524 = vector.broadcast %cst_186 : f32 to vector<8x128xf32>
    %525 = arith.addf %524, %523 : vector<8x128xf32>
    %526 = arith.divf %524, %525 : vector<8x128xf32>
    %527 = vector.extract_strided_slice %514 {offsets = [0, 256], sizes = [8, 128], strides = [1, 1]} : vector<8x512xf32> to vector<8x128xf32>
    %528 = math.tanh %527 : vector<8x128xf32>
    %529 = vector.extract_strided_slice %514 {offsets = [0, 384], sizes = [8, 128], strides = [1, 1]} : vector<8x512xf32> to vector<8x128xf32>
    %530 = arith.negf %529 : vector<8x128xf32>
    %531 = math.exp %530 : vector<8x128xf32>
    %cst_187 = arith.constant 1.000000e+00 : f32
    %532 = vector.broadcast %cst_187 : f32 to vector<8x128xf32>
    %533 = arith.addf %532, %531 : vector<8x128xf32>
    %534 = arith.divf %532, %533 : vector<8x128xf32>
    %535 = arith.mulf %526, %508 : vector<8x128xf32>
    %536 = arith.mulf %520, %528 : vector<8x128xf32>
    %537 = arith.addf %535, %536 : vector<8x128xf32>
    %538 = math.tanh %537 : vector<8x128xf32>
    %539 = arith.mulf %534, %538 : vector<8x128xf32>
    %c0_188 = arith.constant 0 : index
    %c0_189 = arith.constant 0 : index
    %540 = vector.load %arg6[%c0_188, %c0_189] : memref<128x128xf32, #tpu.memory_space<vmem>>, vector<128x128xf32>
    %cst_190 = arith.constant dense<0.000000e+00> : vector<8x128xf32>
    %541 = tpu.matmul %539, %540, %cst_190 {dimension_numbers = #tpu.dot_dimension_numbers<[1], [0], [0], [1], [0, 0, 1, 1], [], []>} : vector<8x128xf32>, vector<128x128xf32>, vector<8x128xf32> -> vector<8x128xf32>
    %c0_191 = arith.constant 0 : index
    %c0_192 = arith.constant 0 : index
    %542 = vector.load %arg7[%c0_191, %c0_192] : memref<1x128xf32, #tpu.memory_space<vmem>>, vector<1x128xf32>
    %543 = vector.broadcast %542 : vector<1x128xf32> to vector<8x128xf32>
    %544 = arith.addf %541, %543 : vector<8x128xf32>
    %c0_193 = arith.constant 0 : index
    %c0_194 = arith.constant 0 : index
    %545 = vector.load %arg8[%c0_193, %c0_194] : memref<8x128xf32, #tpu.memory_space<vmem>>, vector<8x128xf32>
    tpu.vector_store %arg8[%c0_193, %c0_194], %544 {strides = array<i32>} : memref<8x128xf32, #tpu.memory_space<vmem>>, vector<8x128xf32>,
    return
  }
  func.func @transform_0(%arg0: i32) -> (i32, i32, i32, i32) {
    %c0_i32 = arith.constant 0 : i32
    %c0_i32_0 = arith.constant 0 : i32
    %c0_i32_1 = arith.constant 0 : i32
    %c0_i32_2 = arith.constant 0 : i32
    %c0_i32_3 = arith.constant 0 : i32
    return %c0_i32, %c0_i32_0, %c0_i32_1, %c0_i32_2 : i32, i32, i32, i32
  }
  func.func @transform_1(%arg0: i32) -> (i32, i32, i32) {
    %c0_i32 = arith.constant 0 : i32
    %c0_i32_0 = arith.constant 0 : i32
    %c0_i32_1 = arith.constant 0 : i32
    %c0_i32_2 = arith.constant 0 : i32
    return %c0_i32, %c0_i32_0, %c0_i32_1 : i32, i32, i32
  }
  func.func @transform_2(%arg0: i32) -> (i32, i32, i32) {
    %c0_i32 = arith.constant 0 : i32
    %c0_i32_0 = arith.constant 0 : i32
    %c0_i32_1 = arith.constant 0 : i32
    %c0_i32_2 = arith.constant 0 : i32
    return %c0_i32, %c0_i32_0, %c0_i32_1 : i32, i32, i32
  }
  func.func @transform_3(%arg0: i32) -> (i32, i32, i32) {
    %c0_i32 = arith.constant 0 : i32
    %c0_i32_0 = arith.constant 0 : i32
    %c0_i32_1 = arith.constant 0 : i32
    %c0_i32_2 = arith.constant 0 : i32
    return %c0_i32, %c0_i32_0, %c0_i32_1 : i32, i32, i32
  }
  func.func @transform_4(%arg0: i32) -> (i32, i32, i32) {
    %c0_i32 = arith.constant 0 : i32
    %c0_i32_0 = arith.constant 0 : i32
    %c0_i32_1 = arith.constant 0 : i32
    %c0_i32_2 = arith.constant 0 : i32
    return %c0_i32, %c0_i32_0, %c0_i32_1 : i32, i32, i32
  }
  func.func @transform_5(%arg0: i32) -> (i32, i32) {
    %c0_i32 = arith.constant 0 : i32
    %c0_i32_0 = arith.constant 0 : i32
    %c0_i32_1 = arith.constant 0 : i32
    return %c0_i32, %c0_i32_0 : i32, i32
  }
  func.func @transform_6(%arg0: i32) -> (i32, i32) {
    %c0_i32 = arith.constant 0 : i32
    %c0_i32_0 = arith.constant 0 : i32
    %c0_i32_1 = arith.constant 0 : i32
    return %c0_i32, %c0_i32_0 : i32, i32
  }
  func.func @transform_7(%arg0: i32) -> (i32, i32) {
    %c0_i32 = arith.constant 0 : i32
    %c0_i32_0 = arith.constant 0 : i32
    %c0_i32_1 = arith.constant 0 : i32
    return %c0_i32, %c0_i32_0 : i32, i32
  }
}

module attributes {stable_mosaic.version = 11 : i64} {
  func.func @_marginal_stack_kernel(%arg0: i32, %arg1: memref<8x8x128xf32, #tpu.memory_space<vmem>>, %arg2: memref<1x128x512xf32, #tpu.memory_space<vmem>>, %arg3: memref<1x1x128x512xf32, #tpu.memory_space<vmem>>, %arg4: memref<1x2x128x512xf32, #tpu.memory_space<vmem>>, %arg5: memref<1x2x1x512xf32, #tpu.memory_space<vmem>>, %arg6: memref<1x8x8x128xf32, #tpu.memory_space<vmem>>, %arg7: memref<8x8x512xf32, #tpu.memory_space<vmem>>, %arg8: memref<8x8x128xf32, #tpu.memory_space<vmem>>) attributes {dimension_semantics = [#tpu.dimension_semantics<parallel>], iteration_bounds = array<i64: 4>, scalar_prefetch = 0 : i64, scratch_operands = 2 : i64, tpu.core_type = #tpu.core_type<tc>, window_params = [{pipeline_mode = #tpu.pipeline_mode<synchronous>, transform_indices = @transform_0, window_bounds = array<i64: 8, 8, 128>}, {transform_indices = @transform_1, window_bounds = array<i64: 1, 128, 512>}, {transform_indices = @transform_2, window_bounds = array<i64: 1, 1, 128, 512>}, {transform_indices = @transform_3, window_bounds = array<i64: 1, 2, 128, 512>}, {transform_indices = @transform_4, window_bounds = array<i64: 1, 2, 1, 512>}, {transform_indices = @transform_5, window_bounds = array<i64: 1, 8, 8, 128>}]} {
    %c2_i32 = arith.constant 2 : i32
    %0 = arith.cmpi sge, %arg0, %c2_i32 : i32
    %c0 = arith.constant 0 : index
    %c0_0 = arith.constant 0 : index
    %c0_1 = arith.constant 0 : index
    %1 = vector.load %arg1[%c0, %c0_0, %c0_1] : memref<8x8x128xf32, #tpu.memory_space<vmem>>, vector<8x8x128xf32>
    %2 = vector.shape_cast %1 : vector<8x8x128xf32> to vector<64x128xf32>
    %c0_2 = arith.constant 0 : index
    %c0_3 = arith.constant 0 : index
    %c0_4 = arith.constant 0 : index
    %3 = vector.load %arg2[%c0_2, %c0_3, %c0_4] : memref<1x128x512xf32, #tpu.memory_space<vmem>>, vector<1x128x512xf32>
    %4 = vector.shape_cast %3 : vector<1x128x512xf32> to vector<128x512xf32>
    %cst = arith.constant dense<0.000000e+00> : vector<64x512xf32>
    %5 = tpu.matmul %2, %4, %cst {dimension_numbers = #tpu.dot_dimension_numbers<[1], [0], [0], [1], [0, 0, 1, 1], [], []>} : vector<64x128xf32>, vector<128x512xf32>, vector<64x512xf32> -> vector<64x512xf32>
    %c0_5 = arith.constant 0 : index
    %c0_6 = arith.constant 0 : index
    %c0_7 = arith.constant 0 : index
    %c0_8 = arith.constant 0 : index
    %6 = vector.load %arg5[%c0_5, %c0_6, %c0_7, %c0_8] : memref<1x2x1x512xf32, #tpu.memory_space<vmem>>, vector<1x1x1x512xf32>
    %7 = vector.shape_cast %6 : vector<1x1x1x512xf32> to vector<1x512xf32>
    %8 = vector.broadcast %7 : vector<1x512xf32> to vector<64x512xf32>
    %9 = arith.addf %5, %8 : vector<64x512xf32>
    %10 = vector.shape_cast %9 : vector<64x512xf32> to vector<8x8x512xf32>
    %c0_9 = arith.constant 0 : index
    %c0_10 = arith.constant 0 : index
    %c0_11 = arith.constant 0 : index
    %11 = vector.load %arg7[%c0_9, %c0_10, %c0_11] : memref<8x8x512xf32, #tpu.memory_space<vmem>>, vector<8x8x512xf32>
    tpu.vector_store %arg7[%c0_9, %c0_10, %c0_11], %10 {strides = array<i32>} : memref<8x8x512xf32, #tpu.memory_space<vmem>>, vector<8x8x512xf32>,
    %c0_12 = arith.constant 0 : index
    %c0_13 = arith.constant 0 : index
    %c0_14 = arith.constant 0 : index
    %c0_15 = arith.constant 0 : index
    %12 = vector.load %arg4[%c0_12, %c0_13, %c0_14, %c0_15] : memref<1x2x128x512xf32, #tpu.memory_space<vmem>>, vector<1x1x128x512xf32>
    %13 = vector.shape_cast %12 : vector<1x1x128x512xf32> to vector<128x512xf32>
    %cst_16 = arith.constant 0.000000e+00 : f32
    %14 = vector.broadcast %cst_16 : f32 to vector<8x128xf32>
    %cst_17 = arith.constant 0.000000e+00 : f32
    %15 = vector.broadcast %cst_17 : f32 to vector<8x128xf32>
    %c7_i32 = arith.constant 7 : i32
    %c0_i32 = arith.constant 0 : i32
    %16 = arith.select %0, %c7_i32, %c0_i32 : i32
    %17 = arith.index_cast %16 : i32 to index
    %c0_18 = arith.constant 0 : index
    %c0_19 = arith.constant 0 : index
    %18 = vector.load %arg7[%17, %c0_18, %c0_19] : memref<8x8x512xf32, #tpu.memory_space<vmem>>, vector<1x8x512xf32>
    %19 = vector.shape_cast %18 : vector<1x8x512xf32> to vector<8x512xf32>
    %cst_20 = arith.constant dense<0.000000e+00> : vector<8x512xf32>
    %20 = tpu.matmul %14, %13, %cst_20 {dimension_numbers = #tpu.dot_dimension_numbers<[1], [0], [0], [1], [0, 0, 1, 1], [], []>} : vector<8x128xf32>, vector<128x512xf32>, vector<8x512xf32> -> vector<8x512xf32>
    %21 = arith.addf %19, %20 : vector<8x512xf32>
    %22 = vector.extract_strided_slice %21 {offsets = [0, 0], sizes = [8, 128], strides = [1, 1]} : vector<8x512xf32> to vector<8x128xf32>
    %23 = arith.negf %22 : vector<8x128xf32>
    %24 = math.exp %23 : vector<8x128xf32>
    %cst_21 = arith.constant 1.000000e+00 : f32
    %25 = vector.broadcast %cst_21 : f32 to vector<8x128xf32>
    %26 = arith.addf %25, %24 : vector<8x128xf32>
    %27 = arith.divf %25, %26 : vector<8x128xf32>
    %28 = vector.extract_strided_slice %21 {offsets = [0, 128], sizes = [8, 128], strides = [1, 1]} : vector<8x512xf32> to vector<8x128xf32>
    %29 = arith.negf %28 : vector<8x128xf32>
    %30 = math.exp %29 : vector<8x128xf32>
    %cst_22 = arith.constant 1.000000e+00 : f32
    %31 = vector.broadcast %cst_22 : f32 to vector<8x128xf32>
    %32 = arith.addf %31, %30 : vector<8x128xf32>
    %33 = arith.divf %31, %32 : vector<8x128xf32>
    %34 = vector.extract_strided_slice %21 {offsets = [0, 256], sizes = [8, 128], strides = [1, 1]} : vector<8x512xf32> to vector<8x128xf32>
    %35 = math.tanh %34 : vector<8x128xf32>
    %36 = vector.extract_strided_slice %21 {offsets = [0, 384], sizes = [8, 128], strides = [1, 1]} : vector<8x512xf32> to vector<8x128xf32>
    %37 = arith.negf %36 : vector<8x128xf32>
    %38 = math.exp %37 : vector<8x128xf32>
    %cst_23 = arith.constant 1.000000e+00 : f32
    %39 = vector.broadcast %cst_23 : f32 to vector<8x128xf32>
    %40 = arith.addf %39, %38 : vector<8x128xf32>
    %41 = arith.divf %39, %40 : vector<8x128xf32>
    %42 = arith.mulf %33, %15 : vector<8x128xf32>
    %43 = arith.mulf %27, %35 : vector<8x128xf32>
    %44 = arith.addf %42, %43 : vector<8x128xf32>
    %45 = math.tanh %44 : vector<8x128xf32>
    %46 = arith.mulf %41, %45 : vector<8x128xf32>
    %c0_24 = arith.constant 0 : index
    %c0_25 = arith.constant 0 : index
    %c0_26 = arith.constant 0 : index
    %47 = vector.load %arg8[%c0_24, %c0_25, %c0_26] : memref<8x8x128xf32, #tpu.memory_space<vmem>>, vector<1x8x128xf32>
    %48 = vector.shape_cast %47 : vector<1x8x128xf32> to vector<8x128xf32>
    %49 = vector.shape_cast %46 : vector<8x128xf32> to vector<1x8x128xf32>
    tpu.vector_store %arg8[%c0_24, %c0_25, %c0_26], %49 {strides = array<i32>} : memref<8x8x128xf32, #tpu.memory_space<vmem>>, vector<1x8x128xf32>,
    %c6_i32 = arith.constant 6 : i32
    %c1_i32 = arith.constant 1 : i32
    %50 = arith.select %0, %c6_i32, %c1_i32 : i32
    %51 = arith.index_cast %50 : i32 to index
    %c0_27 = arith.constant 0 : index
    %c0_28 = arith.constant 0 : index
    %52 = vector.load %arg7[%51, %c0_27, %c0_28] : memref<8x8x512xf32, #tpu.memory_space<vmem>>, vector<1x8x512xf32>
    %53 = vector.shape_cast %52 : vector<1x8x512xf32> to vector<8x512xf32>
    %cst_29 = arith.constant dense<0.000000e+00> : vector<8x512xf32>
    %54 = tpu.matmul %46, %13, %cst_29 {dimension_numbers = #tpu.dot_dimension_numbers<[1], [0], [0], [1], [0, 0, 1, 1], [], []>} : vector<8x128xf32>, vector<128x512xf32>, vector<8x512xf32> -> vector<8x512xf32>
    %55 = arith.addf %53, %54 : vector<8x512xf32>
    %56 = vector.extract_strided_slice %55 {offsets = [0, 0], sizes = [8, 128], strides = [1, 1]} : vector<8x512xf32> to vector<8x128xf32>
    %57 = arith.negf %56 : vector<8x128xf32>
    %58 = math.exp %57 : vector<8x128xf32>
    %cst_30 = arith.constant 1.000000e+00 : f32
    %59 = vector.broadcast %cst_30 : f32 to vector<8x128xf32>
    %60 = arith.addf %59, %58 : vector<8x128xf32>
    %61 = arith.divf %59, %60 : vector<8x128xf32>
    %62 = vector.extract_strided_slice %55 {offsets = [0, 128], sizes = [8, 128], strides = [1, 1]} : vector<8x512xf32> to vector<8x128xf32>
    %63 = arith.negf %62 : vector<8x128xf32>
    %64 = math.exp %63 : vector<8x128xf32>
    %cst_31 = arith.constant 1.000000e+00 : f32
    %65 = vector.broadcast %cst_31 : f32 to vector<8x128xf32>
    %66 = arith.addf %65, %64 : vector<8x128xf32>
    %67 = arith.divf %65, %66 : vector<8x128xf32>
    %68 = vector.extract_strided_slice %55 {offsets = [0, 256], sizes = [8, 128], strides = [1, 1]} : vector<8x512xf32> to vector<8x128xf32>
    %69 = math.tanh %68 : vector<8x128xf32>
    %70 = vector.extract_strided_slice %55 {offsets = [0, 384], sizes = [8, 128], strides = [1, 1]} : vector<8x512xf32> to vector<8x128xf32>
    %71 = arith.negf %70 : vector<8x128xf32>
    %72 = math.exp %71 : vector<8x128xf32>
    %cst_32 = arith.constant 1.000000e+00 : f32
    %73 = vector.broadcast %cst_32 : f32 to vector<8x128xf32>
    %74 = arith.addf %73, %72 : vector<8x128xf32>
    %75 = arith.divf %73, %74 : vector<8x128xf32>
    %76 = arith.mulf %67, %44 : vector<8x128xf32>
    %77 = arith.mulf %61, %69 : vector<8x128xf32>
    %78 = arith.addf %76, %77 : vector<8x128xf32>
    %79 = math.tanh %78 : vector<8x128xf32>
    %80 = arith.mulf %75, %79 : vector<8x128xf32>
    %c1 = arith.constant 1 : index
    %c0_33 = arith.constant 0 : index
    %c0_34 = arith.constant 0 : index
    %81 = vector.load %arg8[%c1, %c0_33, %c0_34] : memref<8x8x128xf32, #tpu.memory_space<vmem>>, vector<1x8x128xf32>
    %82 = vector.shape_cast %81 : vector<1x8x128xf32> to vector<8x128xf32>
    %83 = vector.shape_cast %80 : vector<8x128xf32> to vector<1x8x128xf32>
    tpu.vector_store %arg8[%c1, %c0_33, %c0_34], %83 {strides = array<i32>} : memref<8x8x128xf32, #tpu.memory_space<vmem>>, vector<1x8x128xf32>,
    %c5_i32 = arith.constant 5 : i32
    %c2_i32_35 = arith.constant 2 : i32
    %84 = arith.select %0, %c5_i32, %c2_i32_35 : i32
    %85 = arith.index_cast %84 : i32 to index
    %c0_36 = arith.constant 0 : index
    %c0_37 = arith.constant 0 : index
    %86 = vector.load %arg7[%85, %c0_36, %c0_37] : memref<8x8x512xf32, #tpu.memory_space<vmem>>, vector<1x8x512xf32>
    %87 = vector.shape_cast %86 : vector<1x8x512xf32> to vector<8x512xf32>
    %cst_38 = arith.constant dense<0.000000e+00> : vector<8x512xf32>
    %88 = tpu.matmul %80, %13, %cst_38 {dimension_numbers = #tpu.dot_dimension_numbers<[1], [0], [0], [1], [0, 0, 1, 1], [], []>} : vector<8x128xf32>, vector<128x512xf32>, vector<8x512xf32> -> vector<8x512xf32>
    %89 = arith.addf %87, %88 : vector<8x512xf32>
    %90 = vector.extract_strided_slice %89 {offsets = [0, 0], sizes = [8, 128], strides = [1, 1]} : vector<8x512xf32> to vector<8x128xf32>
    %91 = arith.negf %90 : vector<8x128xf32>
    %92 = math.exp %91 : vector<8x128xf32>
    %cst_39 = arith.constant 1.000000e+00 : f32
    %93 = vector.broadcast %cst_39 : f32 to vector<8x128xf32>
    %94 = arith.addf %93, %92 : vector<8x128xf32>
    %95 = arith.divf %93, %94 : vector<8x128xf32>
    %96 = vector.extract_strided_slice %89 {offsets = [0, 128], sizes = [8, 128], strides = [1, 1]} : vector<8x512xf32> to vector<8x128xf32>
    %97 = arith.negf %96 : vector<8x128xf32>
    %98 = math.exp %97 : vector<8x128xf32>
    %cst_40 = arith.constant 1.000000e+00 : f32
    %99 = vector.broadcast %cst_40 : f32 to vector<8x128xf32>
    %100 = arith.addf %99, %98 : vector<8x128xf32>
    %101 = arith.divf %99, %100 : vector<8x128xf32>
    %102 = vector.extract_strided_slice %89 {offsets = [0, 256], sizes = [8, 128], strides = [1, 1]} : vector<8x512xf32> to vector<8x128xf32>
    %103 = math.tanh %102 : vector<8x128xf32>
    %104 = vector.extract_strided_slice %89 {offsets = [0, 384], sizes = [8, 128], strides = [1, 1]} : vector<8x512xf32> to vector<8x128xf32>
    %105 = arith.negf %104 : vector<8x128xf32>
    %106 = math.exp %105 : vector<8x128xf32>
    %cst_41 = arith.constant 1.000000e+00 : f32
    %107 = vector.broadcast %cst_41 : f32 to vector<8x128xf32>
    %108 = arith.addf %107, %106 : vector<8x128xf32>
    %109 = arith.divf %107, %108 : vector<8x128xf32>
    %110 = arith.mulf %101, %78 : vector<8x128xf32>
    %111 = arith.mulf %95, %103 : vector<8x128xf32>
    %112 = arith.addf %110, %111 : vector<8x128xf32>
    %113 = math.tanh %112 : vector<8x128xf32>
    %114 = arith.mulf %109, %113 : vector<8x128xf32>
    %c2 = arith.constant 2 : index
    %c0_42 = arith.constant 0 : index
    %c0_43 = arith.constant 0 : index
    %115 = vector.load %arg8[%c2, %c0_42, %c0_43] : memref<8x8x128xf32, #tpu.memory_space<vmem>>, vector<1x8x128xf32>
    %116 = vector.shape_cast %115 : vector<1x8x128xf32> to vector<8x128xf32>
    %117 = vector.shape_cast %114 : vector<8x128xf32> to vector<1x8x128xf32>
    tpu.vector_store %arg8[%c2, %c0_42, %c0_43], %117 {strides = array<i32>} : memref<8x8x128xf32, #tpu.memory_space<vmem>>, vector<1x8x128xf32>,
    %c4_i32 = arith.constant 4 : i32
    %c3_i32 = arith.constant 3 : i32
    %118 = arith.select %0, %c4_i32, %c3_i32 : i32
    %119 = arith.index_cast %118 : i32 to index
    %c0_44 = arith.constant 0 : index
    %c0_45 = arith.constant 0 : index
    %120 = vector.load %arg7[%119, %c0_44, %c0_45] : memref<8x8x512xf32, #tpu.memory_space<vmem>>, vector<1x8x512xf32>
    %121 = vector.shape_cast %120 : vector<1x8x512xf32> to vector<8x512xf32>
    %cst_46 = arith.constant dense<0.000000e+00> : vector<8x512xf32>
    %122 = tpu.matmul %114, %13, %cst_46 {dimension_numbers = #tpu.dot_dimension_numbers<[1], [0], [0], [1], [0, 0, 1, 1], [], []>} : vector<8x128xf32>, vector<128x512xf32>, vector<8x512xf32> -> vector<8x512xf32>
    %123 = arith.addf %121, %122 : vector<8x512xf32>
    %124 = vector.extract_strided_slice %123 {offsets = [0, 0], sizes = [8, 128], strides = [1, 1]} : vector<8x512xf32> to vector<8x128xf32>
    %125 = arith.negf %124 : vector<8x128xf32>
    %126 = math.exp %125 : vector<8x128xf32>
    %cst_47 = arith.constant 1.000000e+00 : f32
    %127 = vector.broadcast %cst_47 : f32 to vector<8x128xf32>
    %128 = arith.addf %127, %126 : vector<8x128xf32>
    %129 = arith.divf %127, %128 : vector<8x128xf32>
    %130 = vector.extract_strided_slice %123 {offsets = [0, 128], sizes = [8, 128], strides = [1, 1]} : vector<8x512xf32> to vector<8x128xf32>
    %131 = arith.negf %130 : vector<8x128xf32>
    %132 = math.exp %131 : vector<8x128xf32>
    %cst_48 = arith.constant 1.000000e+00 : f32
    %133 = vector.broadcast %cst_48 : f32 to vector<8x128xf32>
    %134 = arith.addf %133, %132 : vector<8x128xf32>
    %135 = arith.divf %133, %134 : vector<8x128xf32>
    %136 = vector.extract_strided_slice %123 {offsets = [0, 256], sizes = [8, 128], strides = [1, 1]} : vector<8x512xf32> to vector<8x128xf32>
    %137 = math.tanh %136 : vector<8x128xf32>
    %138 = vector.extract_strided_slice %123 {offsets = [0, 384], sizes = [8, 128], strides = [1, 1]} : vector<8x512xf32> to vector<8x128xf32>
    %139 = arith.negf %138 : vector<8x128xf32>
    %140 = math.exp %139 : vector<8x128xf32>
    %cst_49 = arith.constant 1.000000e+00 : f32
    %141 = vector.broadcast %cst_49 : f32 to vector<8x128xf32>
    %142 = arith.addf %141, %140 : vector<8x128xf32>
    %143 = arith.divf %141, %142 : vector<8x128xf32>
    %144 = arith.mulf %135, %112 : vector<8x128xf32>
    %145 = arith.mulf %129, %137 : vector<8x128xf32>
    %146 = arith.addf %144, %145 : vector<8x128xf32>
    %147 = math.tanh %146 : vector<8x128xf32>
    %148 = arith.mulf %143, %147 : vector<8x128xf32>
    %c3 = arith.constant 3 : index
    %c0_50 = arith.constant 0 : index
    %c0_51 = arith.constant 0 : index
    %149 = vector.load %arg8[%c3, %c0_50, %c0_51] : memref<8x8x128xf32, #tpu.memory_space<vmem>>, vector<1x8x128xf32>
    %150 = vector.shape_cast %149 : vector<1x8x128xf32> to vector<8x128xf32>
    %151 = vector.shape_cast %148 : vector<8x128xf32> to vector<1x8x128xf32>
    tpu.vector_store %arg8[%c3, %c0_50, %c0_51], %151 {strides = array<i32>} : memref<8x8x128xf32, #tpu.memory_space<vmem>>, vector<1x8x128xf32>,
    %c3_i32_52 = arith.constant 3 : i32
    %c4_i32_53 = arith.constant 4 : i32
    %152 = arith.select %0, %c3_i32_52, %c4_i32_53 : i32
    %153 = arith.index_cast %152 : i32 to index
    %c0_54 = arith.constant 0 : index
    %c0_55 = arith.constant 0 : index
    %154 = vector.load %arg7[%153, %c0_54, %c0_55] : memref<8x8x512xf32, #tpu.memory_space<vmem>>, vector<1x8x512xf32>
    %155 = vector.shape_cast %154 : vector<1x8x512xf32> to vector<8x512xf32>
    %cst_56 = arith.constant dense<0.000000e+00> : vector<8x512xf32>
    %156 = tpu.matmul %148, %13, %cst_56 {dimension_numbers = #tpu.dot_dimension_numbers<[1], [0], [0], [1], [0, 0, 1, 1], [], []>} : vector<8x128xf32>, vector<128x512xf32>, vector<8x512xf32> -> vector<8x512xf32>
    %157 = arith.addf %155, %156 : vector<8x512xf32>
    %158 = vector.extract_strided_slice %157 {offsets = [0, 0], sizes = [8, 128], strides = [1, 1]} : vector<8x512xf32> to vector<8x128xf32>
    %159 = arith.negf %158 : vector<8x128xf32>
    %160 = math.exp %159 : vector<8x128xf32>
    %cst_57 = arith.constant 1.000000e+00 : f32
    %161 = vector.broadcast %cst_57 : f32 to vector<8x128xf32>
    %162 = arith.addf %161, %160 : vector<8x128xf32>
    %163 = arith.divf %161, %162 : vector<8x128xf32>
    %164 = vector.extract_strided_slice %157 {offsets = [0, 128], sizes = [8, 128], strides = [1, 1]} : vector<8x512xf32> to vector<8x128xf32>
    %165 = arith.negf %164 : vector<8x128xf32>
    %166 = math.exp %165 : vector<8x128xf32>
    %cst_58 = arith.constant 1.000000e+00 : f32
    %167 = vector.broadcast %cst_58 : f32 to vector<8x128xf32>
    %168 = arith.addf %167, %166 : vector<8x128xf32>
    %169 = arith.divf %167, %168 : vector<8x128xf32>
    %170 = vector.extract_strided_slice %157 {offsets = [0, 256], sizes = [8, 128], strides = [1, 1]} : vector<8x512xf32> to vector<8x128xf32>
    %171 = math.tanh %170 : vector<8x128xf32>
    %172 = vector.extract_strided_slice %157 {offsets = [0, 384], sizes = [8, 128], strides = [1, 1]} : vector<8x512xf32> to vector<8x128xf32>
    %173 = arith.negf %172 : vector<8x128xf32>
    %174 = math.exp %173 : vector<8x128xf32>
    %cst_59 = arith.constant 1.000000e+00 : f32
    %175 = vector.broadcast %cst_59 : f32 to vector<8x128xf32>
    %176 = arith.addf %175, %174 : vector<8x128xf32>
    %177 = arith.divf %175, %176 : vector<8x128xf32>
    %178 = arith.mulf %169, %146 : vector<8x128xf32>
    %179 = arith.mulf %163, %171 : vector<8x128xf32>
    %180 = arith.addf %178, %179 : vector<8x128xf32>
    %181 = math.tanh %180 : vector<8x128xf32>
    %182 = arith.mulf %177, %181 : vector<8x128xf32>
    %c4 = arith.constant 4 : index
    %c0_60 = arith.constant 0 : index
    %c0_61 = arith.constant 0 : index
    %183 = vector.load %arg8[%c4, %c0_60, %c0_61] : memref<8x8x128xf32, #tpu.memory_space<vmem>>, vector<1x8x128xf32>
    %184 = vector.shape_cast %183 : vector<1x8x128xf32> to vector<8x128xf32>
    %185 = vector.shape_cast %182 : vector<8x128xf32> to vector<1x8x128xf32>
    tpu.vector_store %arg8[%c4, %c0_60, %c0_61], %185 {strides = array<i32>} : memref<8x8x128xf32, #tpu.memory_space<vmem>>, vector<1x8x128xf32>,
    %c2_i32_62 = arith.constant 2 : i32
    %c5_i32_63 = arith.constant 5 : i32
    %186 = arith.select %0, %c2_i32_62, %c5_i32_63 : i32
    %187 = arith.index_cast %186 : i32 to index
    %c0_64 = arith.constant 0 : index
    %c0_65 = arith.constant 0 : index
    %188 = vector.load %arg7[%187, %c0_64, %c0_65] : memref<8x8x512xf32, #tpu.memory_space<vmem>>, vector<1x8x512xf32>
    %189 = vector.shape_cast %188 : vector<1x8x512xf32> to vector<8x512xf32>
    %cst_66 = arith.constant dense<0.000000e+00> : vector<8x512xf32>
    %190 = tpu.matmul %182, %13, %cst_66 {dimension_numbers = #tpu.dot_dimension_numbers<[1], [0], [0], [1], [0, 0, 1, 1], [], []>} : vector<8x128xf32>, vector<128x512xf32>, vector<8x512xf32> -> vector<8x512xf32>
    %191 = arith.addf %189, %190 : vector<8x512xf32>
    %192 = vector.extract_strided_slice %191 {offsets = [0, 0], sizes = [8, 128], strides = [1, 1]} : vector<8x512xf32> to vector<8x128xf32>
    %193 = arith.negf %192 : vector<8x128xf32>
    %194 = math.exp %193 : vector<8x128xf32>
    %cst_67 = arith.constant 1.000000e+00 : f32
    %195 = vector.broadcast %cst_67 : f32 to vector<8x128xf32>
    %196 = arith.addf %195, %194 : vector<8x128xf32>
    %197 = arith.divf %195, %196 : vector<8x128xf32>
    %198 = vector.extract_strided_slice %191 {offsets = [0, 128], sizes = [8, 128], strides = [1, 1]} : vector<8x512xf32> to vector<8x128xf32>
    %199 = arith.negf %198 : vector<8x128xf32>
    %200 = math.exp %199 : vector<8x128xf32>
    %cst_68 = arith.constant 1.000000e+00 : f32
    %201 = vector.broadcast %cst_68 : f32 to vector<8x128xf32>
    %202 = arith.addf %201, %200 : vector<8x128xf32>
    %203 = arith.divf %201, %202 : vector<8x128xf32>
    %204 = vector.extract_strided_slice %191 {offsets = [0, 256], sizes = [8, 128], strides = [1, 1]} : vector<8x512xf32> to vector<8x128xf32>
    %205 = math.tanh %204 : vector<8x128xf32>
    %206 = vector.extract_strided_slice %191 {offsets = [0, 384], sizes = [8, 128], strides = [1, 1]} : vector<8x512xf32> to vector<8x128xf32>
    %207 = arith.negf %206 : vector<8x128xf32>
    %208 = math.exp %207 : vector<8x128xf32>
    %cst_69 = arith.constant 1.000000e+00 : f32
    %209 = vector.broadcast %cst_69 : f32 to vector<8x128xf32>
    %210 = arith.addf %209, %208 : vector<8x128xf32>
    %211 = arith.divf %209, %210 : vector<8x128xf32>
    %212 = arith.mulf %203, %180 : vector<8x128xf32>
    %213 = arith.mulf %197, %205 : vector<8x128xf32>
    %214 = arith.addf %212, %213 : vector<8x128xf32>
    %215 = math.tanh %214 : vector<8x128xf32>
    %216 = arith.mulf %211, %215 : vector<8x128xf32>
    %c5 = arith.constant 5 : index
    %c0_70 = arith.constant 0 : index
    %c0_71 = arith.constant 0 : index
    %217 = vector.load %arg8[%c5, %c0_70, %c0_71] : memref<8x8x128xf32, #tpu.memory_space<vmem>>, vector<1x8x128xf32>
    %218 = vector.shape_cast %217 : vector<1x8x128xf32> to vector<8x128xf32>
    %219 = vector.shape_cast %216 : vector<8x128xf32> to vector<1x8x128xf32>
    tpu.vector_store %arg8[%c5, %c0_70, %c0_71], %219 {strides = array<i32>} : memref<8x8x128xf32, #tpu.memory_space<vmem>>, vector<1x8x128xf32>,
    %c1_i32_72 = arith.constant 1 : i32
    %c6_i32_73 = arith.constant 6 : i32
    %220 = arith.select %0, %c1_i32_72, %c6_i32_73 : i32
    %221 = arith.index_cast %220 : i32 to index
    %c0_74 = arith.constant 0 : index
    %c0_75 = arith.constant 0 : index
    %222 = vector.load %arg7[%221, %c0_74, %c0_75] : memref<8x8x512xf32, #tpu.memory_space<vmem>>, vector<1x8x512xf32>
    %223 = vector.shape_cast %222 : vector<1x8x512xf32> to vector<8x512xf32>
    %cst_76 = arith.constant dense<0.000000e+00> : vector<8x512xf32>
    %224 = tpu.matmul %216, %13, %cst_76 {dimension_numbers = #tpu.dot_dimension_numbers<[1], [0], [0], [1], [0, 0, 1, 1], [], []>} : vector<8x128xf32>, vector<128x512xf32>, vector<8x512xf32> -> vector<8x512xf32>
    %225 = arith.addf %223, %224 : vector<8x512xf32>
    %226 = vector.extract_strided_slice %225 {offsets = [0, 0], sizes = [8, 128], strides = [1, 1]} : vector<8x512xf32> to vector<8x128xf32>
    %227 = arith.negf %226 : vector<8x128xf32>
    %228 = math.exp %227 : vector<8x128xf32>
    %cst_77 = arith.constant 1.000000e+00 : f32
    %229 = vector.broadcast %cst_77 : f32 to vector<8x128xf32>
    %230 = arith.addf %229, %228 : vector<8x128xf32>
    %231 = arith.divf %229, %230 : vector<8x128xf32>
    %232 = vector.extract_strided_slice %225 {offsets = [0, 128], sizes = [8, 128], strides = [1, 1]} : vector<8x512xf32> to vector<8x128xf32>
    %233 = arith.negf %232 : vector<8x128xf32>
    %234 = math.exp %233 : vector<8x128xf32>
    %cst_78 = arith.constant 1.000000e+00 : f32
    %235 = vector.broadcast %cst_78 : f32 to vector<8x128xf32>
    %236 = arith.addf %235, %234 : vector<8x128xf32>
    %237 = arith.divf %235, %236 : vector<8x128xf32>
    %238 = vector.extract_strided_slice %225 {offsets = [0, 256], sizes = [8, 128], strides = [1, 1]} : vector<8x512xf32> to vector<8x128xf32>
    %239 = math.tanh %238 : vector<8x128xf32>
    %240 = vector.extract_strided_slice %225 {offsets = [0, 384], sizes = [8, 128], strides = [1, 1]} : vector<8x512xf32> to vector<8x128xf32>
    %241 = arith.negf %240 : vector<8x128xf32>
    %242 = math.exp %241 : vector<8x128xf32>
    %cst_79 = arith.constant 1.000000e+00 : f32
    %243 = vector.broadcast %cst_79 : f32 to vector<8x128xf32>
    %244 = arith.addf %243, %242 : vector<8x128xf32>
    %245 = arith.divf %243, %244 : vector<8x128xf32>
    %246 = arith.mulf %237, %214 : vector<8x128xf32>
    %247 = arith.mulf %231, %239 : vector<8x128xf32>
    %248 = arith.addf %246, %247 : vector<8x128xf32>
    %249 = math.tanh %248 : vector<8x128xf32>
    %250 = arith.mulf %245, %249 : vector<8x128xf32>
    %c6 = arith.constant 6 : index
    %c0_80 = arith.constant 0 : index
    %c0_81 = arith.constant 0 : index
    %251 = vector.load %arg8[%c6, %c0_80, %c0_81] : memref<8x8x128xf32, #tpu.memory_space<vmem>>, vector<1x8x128xf32>
    %252 = vector.shape_cast %251 : vector<1x8x128xf32> to vector<8x128xf32>
    %253 = vector.shape_cast %250 : vector<8x128xf32> to vector<1x8x128xf32>
    tpu.vector_store %arg8[%c6, %c0_80, %c0_81], %253 {strides = array<i32>} : memref<8x8x128xf32, #tpu.memory_space<vmem>>, vector<1x8x128xf32>,
    %c0_i32_82 = arith.constant 0 : i32
    %c7_i32_83 = arith.constant 7 : i32
    %254 = arith.select %0, %c0_i32_82, %c7_i32_83 : i32
    %255 = arith.index_cast %254 : i32 to index
    %c0_84 = arith.constant 0 : index
    %c0_85 = arith.constant 0 : index
    %256 = vector.load %arg7[%255, %c0_84, %c0_85] : memref<8x8x512xf32, #tpu.memory_space<vmem>>, vector<1x8x512xf32>
    %257 = vector.shape_cast %256 : vector<1x8x512xf32> to vector<8x512xf32>
    %cst_86 = arith.constant dense<0.000000e+00> : vector<8x512xf32>
    %258 = tpu.matmul %250, %13, %cst_86 {dimension_numbers = #tpu.dot_dimension_numbers<[1], [0], [0], [1], [0, 0, 1, 1], [], []>} : vector<8x128xf32>, vector<128x512xf32>, vector<8x512xf32> -> vector<8x512xf32>
    %259 = arith.addf %257, %258 : vector<8x512xf32>
    %260 = vector.extract_strided_slice %259 {offsets = [0, 0], sizes = [8, 128], strides = [1, 1]} : vector<8x512xf32> to vector<8x128xf32>
    %261 = arith.negf %260 : vector<8x128xf32>
    %262 = math.exp %261 : vector<8x128xf32>
    %cst_87 = arith.constant 1.000000e+00 : f32
    %263 = vector.broadcast %cst_87 : f32 to vector<8x128xf32>
    %264 = arith.addf %263, %262 : vector<8x128xf32>
    %265 = arith.divf %263, %264 : vector<8x128xf32>
    %266 = vector.extract_strided_slice %259 {offsets = [0, 128], sizes = [8, 128], strides = [1, 1]} : vector<8x512xf32> to vector<8x128xf32>
    %267 = arith.negf %266 : vector<8x128xf32>
    %268 = math.exp %267 : vector<8x128xf32>
    %cst_88 = arith.constant 1.000000e+00 : f32
    %269 = vector.broadcast %cst_88 : f32 to vector<8x128xf32>
    %270 = arith.addf %269, %268 : vector<8x128xf32>
    %271 = arith.divf %269, %270 : vector<8x128xf32>
    %272 = vector.extract_strided_slice %259 {offsets = [0, 256], sizes = [8, 128], strides = [1, 1]} : vector<8x512xf32> to vector<8x128xf32>
    %273 = math.tanh %272 : vector<8x128xf32>
    %274 = vector.extract_strided_slice %259 {offsets = [0, 384], sizes = [8, 128], strides = [1, 1]} : vector<8x512xf32> to vector<8x128xf32>
    %275 = arith.negf %274 : vector<8x128xf32>
    %276 = math.exp %275 : vector<8x128xf32>
    %cst_89 = arith.constant 1.000000e+00 : f32
    %277 = vector.broadcast %cst_89 : f32 to vector<8x128xf32>
    %278 = arith.addf %277, %276 : vector<8x128xf32>
    %279 = arith.divf %277, %278 : vector<8x128xf32>
    %280 = arith.mulf %271, %248 : vector<8x128xf32>
    %281 = arith.mulf %265, %273 : vector<8x128xf32>
    %282 = arith.addf %280, %281 : vector<8x128xf32>
    %283 = math.tanh %282 : vector<8x128xf32>
    %284 = arith.mulf %279, %283 : vector<8x128xf32>
    %c7 = arith.constant 7 : index
    %c0_90 = arith.constant 0 : index
    %c0_91 = arith.constant 0 : index
    %285 = vector.load %arg8[%c7, %c0_90, %c0_91] : memref<8x8x128xf32, #tpu.memory_space<vmem>>, vector<1x8x128xf32>
    %286 = vector.shape_cast %285 : vector<1x8x128xf32> to vector<8x128xf32>
    %287 = vector.shape_cast %284 : vector<8x128xf32> to vector<1x8x128xf32>
    tpu.vector_store %arg8[%c7, %c0_90, %c0_91], %287 {strides = array<i32>} : memref<8x8x128xf32, #tpu.memory_space<vmem>>, vector<1x8x128xf32>,
    %c0_92 = arith.constant 0 : index
    %c0_93 = arith.constant 0 : index
    %c0_94 = arith.constant 0 : index
    %288 = vector.load %arg8[%c0_92, %c0_93, %c0_94] : memref<8x8x128xf32, #tpu.memory_space<vmem>>, vector<8x8x128xf32>
    %289 = vector.shape_cast %288 : vector<8x8x128xf32> to vector<64x128xf32>
    %c0_95 = arith.constant 0 : index
    %c0_96 = arith.constant 0 : index
    %c0_97 = arith.constant 0 : index
    %c0_98 = arith.constant 0 : index
    %290 = vector.load %arg3[%c0_95, %c0_96, %c0_97, %c0_98] : memref<1x1x128x512xf32, #tpu.memory_space<vmem>>, vector<1x1x128x512xf32>
    %291 = vector.shape_cast %290 : vector<1x1x128x512xf32> to vector<128x512xf32>
    %cst_99 = arith.constant dense<0.000000e+00> : vector<64x512xf32>
    %292 = tpu.matmul %289, %291, %cst_99 {dimension_numbers = #tpu.dot_dimension_numbers<[1], [0], [0], [1], [0, 0, 1, 1], [], []>} : vector<64x128xf32>, vector<128x512xf32>, vector<64x512xf32> -> vector<64x512xf32>
    %c0_100 = arith.constant 0 : index
    %c1_101 = arith.constant 1 : index
    %c0_102 = arith.constant 0 : index
    %c0_103 = arith.constant 0 : index
    %293 = vector.load %arg5[%c0_100, %c1_101, %c0_102, %c0_103] : memref<1x2x1x512xf32, #tpu.memory_space<vmem>>, vector<1x1x1x512xf32>
    %294 = vector.shape_cast %293 : vector<1x1x1x512xf32> to vector<1x512xf32>
    %295 = vector.broadcast %294 : vector<1x512xf32> to vector<64x512xf32>
    %296 = arith.addf %292, %295 : vector<64x512xf32>
    %297 = vector.shape_cast %296 : vector<64x512xf32> to vector<8x8x512xf32>
    %c0_104 = arith.constant 0 : index
    %c0_105 = arith.constant 0 : index
    %c0_106 = arith.constant 0 : index
    %298 = vector.load %arg7[%c0_104, %c0_105, %c0_106] : memref<8x8x512xf32, #tpu.memory_space<vmem>>, vector<8x8x512xf32>
    tpu.vector_store %arg7[%c0_104, %c0_105, %c0_106], %297 {strides = array<i32>} : memref<8x8x512xf32, #tpu.memory_space<vmem>>, vector<8x8x512xf32>,
    %c0_107 = arith.constant 0 : index
    %c1_108 = arith.constant 1 : index
    %c0_109 = arith.constant 0 : index
    %c0_110 = arith.constant 0 : index
    %299 = vector.load %arg4[%c0_107, %c1_108, %c0_109, %c0_110] : memref<1x2x128x512xf32, #tpu.memory_space<vmem>>, vector<1x1x128x512xf32>
    %300 = vector.shape_cast %299 : vector<1x1x128x512xf32> to vector<128x512xf32>
    %cst_111 = arith.constant 0.000000e+00 : f32
    %301 = vector.broadcast %cst_111 : f32 to vector<8x128xf32>
    %cst_112 = arith.constant 0.000000e+00 : f32
    %302 = vector.broadcast %cst_112 : f32 to vector<8x128xf32>
    %c0_113 = arith.constant 0 : index
    %c0_114 = arith.constant 0 : index
    %c0_115 = arith.constant 0 : index
    %303 = vector.load %arg7[%c0_113, %c0_114, %c0_115] : memref<8x8x512xf32, #tpu.memory_space<vmem>>, vector<1x8x512xf32>
    %304 = vector.shape_cast %303 : vector<1x8x512xf32> to vector<8x512xf32>
    %cst_116 = arith.constant dense<0.000000e+00> : vector<8x512xf32>
    %305 = tpu.matmul %301, %300, %cst_116 {dimension_numbers = #tpu.dot_dimension_numbers<[1], [0], [0], [1], [0, 0, 1, 1], [], []>} : vector<8x128xf32>, vector<128x512xf32>, vector<8x512xf32> -> vector<8x512xf32>
    %306 = arith.addf %304, %305 : vector<8x512xf32>
    %307 = vector.extract_strided_slice %306 {offsets = [0, 0], sizes = [8, 128], strides = [1, 1]} : vector<8x512xf32> to vector<8x128xf32>
    %308 = arith.negf %307 : vector<8x128xf32>
    %309 = math.exp %308 : vector<8x128xf32>
    %cst_117 = arith.constant 1.000000e+00 : f32
    %310 = vector.broadcast %cst_117 : f32 to vector<8x128xf32>
    %311 = arith.addf %310, %309 : vector<8x128xf32>
    %312 = arith.divf %310, %311 : vector<8x128xf32>
    %313 = vector.extract_strided_slice %306 {offsets = [0, 128], sizes = [8, 128], strides = [1, 1]} : vector<8x512xf32> to vector<8x128xf32>
    %314 = arith.negf %313 : vector<8x128xf32>
    %315 = math.exp %314 : vector<8x128xf32>
    %cst_118 = arith.constant 1.000000e+00 : f32
    %316 = vector.broadcast %cst_118 : f32 to vector<8x128xf32>
    %317 = arith.addf %316, %315 : vector<8x128xf32>
    %318 = arith.divf %316, %317 : vector<8x128xf32>
    %319 = vector.extract_strided_slice %306 {offsets = [0, 256], sizes = [8, 128], strides = [1, 1]} : vector<8x512xf32> to vector<8x128xf32>
    %320 = math.tanh %319 : vector<8x128xf32>
    %321 = vector.extract_strided_slice %306 {offsets = [0, 384], sizes = [8, 128], strides = [1, 1]} : vector<8x512xf32> to vector<8x128xf32>
    %322 = arith.negf %321 : vector<8x128xf32>
    %323 = math.exp %322 : vector<8x128xf32>
    %cst_119 = arith.constant 1.000000e+00 : f32
    %324 = vector.broadcast %cst_119 : f32 to vector<8x128xf32>
    %325 = arith.addf %324, %323 : vector<8x128xf32>
    %326 = arith.divf %324, %325 : vector<8x128xf32>
    %327 = arith.mulf %318, %302 : vector<8x128xf32>
    %328 = arith.mulf %312, %320 : vector<8x128xf32>
    %329 = arith.addf %327, %328 : vector<8x128xf32>
    %330 = math.tanh %329 : vector<8x128xf32>
    %331 = arith.mulf %326, %330 : vector<8x128xf32>
    %c7_i32_120 = arith.constant 7 : i32
    %c0_i32_121 = arith.constant 0 : i32
    %332 = arith.select %0, %c7_i32_120, %c0_i32_121 : i32
    %c0_122 = arith.constant 0 : index
    %333 = arith.index_cast %332 : i32 to index
    %c0_123 = arith.constant 0 : index
    %c0_124 = arith.constant 0 : index
    %334 = vector.load %arg6[%c0_122, %333, %c0_123, %c0_124] : memref<1x8x8x128xf32, #tpu.memory_space<vmem>>, vector<1x1x8x128xf32>
    %335 = vector.shape_cast %334 : vector<1x1x8x128xf32> to vector<8x128xf32>
    %336 = vector.shape_cast %331 : vector<8x128xf32> to vector<1x1x8x128xf32>
    tpu.vector_store %arg6[%c0_122, %333, %c0_123, %c0_124], %336 {strides = array<i32>} : memref<1x8x8x128xf32, #tpu.memory_space<vmem>>, vector<1x1x8x128xf32>,
    %c1_125 = arith.constant 1 : index
    %c0_126 = arith.constant 0 : index
    %c0_127 = arith.constant 0 : index
    %337 = vector.load %arg7[%c1_125, %c0_126, %c0_127] : memref<8x8x512xf32, #tpu.memory_space<vmem>>, vector<1x8x512xf32>
    %338 = vector.shape_cast %337 : vector<1x8x512xf32> to vector<8x512xf32>
    %cst_128 = arith.constant dense<0.000000e+00> : vector<8x512xf32>
    %339 = tpu.matmul %331, %300, %cst_128 {dimension_numbers = #tpu.dot_dimension_numbers<[1], [0], [0], [1], [0, 0, 1, 1], [], []>} : vector<8x128xf32>, vector<128x512xf32>, vector<8x512xf32> -> vector<8x512xf32>
    %340 = arith.addf %338, %339 : vector<8x512xf32>
    %341 = vector.extract_strided_slice %340 {offsets = [0, 0], sizes = [8, 128], strides = [1, 1]} : vector<8x512xf32> to vector<8x128xf32>
    %342 = arith.negf %341 : vector<8x128xf32>
    %343 = math.exp %342 : vector<8x128xf32>
    %cst_129 = arith.constant 1.000000e+00 : f32
    %344 = vector.broadcast %cst_129 : f32 to vector<8x128xf32>
    %345 = arith.addf %344, %343 : vector<8x128xf32>
    %346 = arith.divf %344, %345 : vector<8x128xf32>
    %347 = vector.extract_strided_slice %340 {offsets = [0, 128], sizes = [8, 128], strides = [1, 1]} : vector<8x512xf32> to vector<8x128xf32>
    %348 = arith.negf %347 : vector<8x128xf32>
    %349 = math.exp %348 : vector<8x128xf32>
    %cst_130 = arith.constant 1.000000e+00 : f32
    %350 = vector.broadcast %cst_130 : f32 to vector<8x128xf32>
    %351 = arith.addf %350, %349 : vector<8x128xf32>
    %352 = arith.divf %350, %351 : vector<8x128xf32>
    %353 = vector.extract_strided_slice %340 {offsets = [0, 256], sizes = [8, 128], strides = [1, 1]} : vector<8x512xf32> to vector<8x128xf32>
    %354 = math.tanh %353 : vector<8x128xf32>
    %355 = vector.extract_strided_slice %340 {offsets = [0, 384], sizes = [8, 128], strides = [1, 1]} : vector<8x512xf32> to vector<8x128xf32>
    %356 = arith.negf %355 : vector<8x128xf32>
    %357 = math.exp %356 : vector<8x128xf32>
    %cst_131 = arith.constant 1.000000e+00 : f32
    %358 = vector.broadcast %cst_131 : f32 to vector<8x128xf32>
    %359 = arith.addf %358, %357 : vector<8x128xf32>
    %360 = arith.divf %358, %359 : vector<8x128xf32>
    %361 = arith.mulf %352, %329 : vector<8x128xf32>
    %362 = arith.mulf %346, %354 : vector<8x128xf32>
    %363 = arith.addf %361, %362 : vector<8x128xf32>
    %364 = math.tanh %363 : vector<8x128xf32>
    %365 = arith.mulf %360, %364 : vector<8x128xf32>
    %c6_i32_132 = arith.constant 6 : i32
    %c1_i32_133 = arith.constant 1 : i32
    %366 = arith.select %0, %c6_i32_132, %c1_i32_133 : i32
    %c0_134 = arith.constant 0 : index
    %367 = arith.index_cast %366 : i32 to index
    %c0_135 = arith.constant 0 : index
    %c0_136 = arith.constant 0 : index
    %368 = vector.load %arg6[%c0_134, %367, %c0_135, %c0_136] : memref<1x8x8x128xf32, #tpu.memory_space<vmem>>, vector<1x1x8x128xf32>
    %369 = vector.shape_cast %368 : vector<1x1x8x128xf32> to vector<8x128xf32>
    %370 = vector.shape_cast %365 : vector<8x128xf32> to vector<1x1x8x128xf32>
    tpu.vector_store %arg6[%c0_134, %367, %c0_135, %c0_136], %370 {strides = array<i32>} : memref<1x8x8x128xf32, #tpu.memory_space<vmem>>, vector<1x1x8x128xf32>,
    %c2_137 = arith.constant 2 : index
    %c0_138 = arith.constant 0 : index
    %c0_139 = arith.constant 0 : index
    %371 = vector.load %arg7[%c2_137, %c0_138, %c0_139] : memref<8x8x512xf32, #tpu.memory_space<vmem>>, vector<1x8x512xf32>
    %372 = vector.shape_cast %371 : vector<1x8x512xf32> to vector<8x512xf32>
    %cst_140 = arith.constant dense<0.000000e+00> : vector<8x512xf32>
    %373 = tpu.matmul %365, %300, %cst_140 {dimension_numbers = #tpu.dot_dimension_numbers<[1], [0], [0], [1], [0, 0, 1, 1], [], []>} : vector<8x128xf32>, vector<128x512xf32>, vector<8x512xf32> -> vector<8x512xf32>
    %374 = arith.addf %372, %373 : vector<8x512xf32>
    %375 = vector.extract_strided_slice %374 {offsets = [0, 0], sizes = [8, 128], strides = [1, 1]} : vector<8x512xf32> to vector<8x128xf32>
    %376 = arith.negf %375 : vector<8x128xf32>
    %377 = math.exp %376 : vector<8x128xf32>
    %cst_141 = arith.constant 1.000000e+00 : f32
    %378 = vector.broadcast %cst_141 : f32 to vector<8x128xf32>
    %379 = arith.addf %378, %377 : vector<8x128xf32>
    %380 = arith.divf %378, %379 : vector<8x128xf32>
    %381 = vector.extract_strided_slice %374 {offsets = [0, 128], sizes = [8, 128], strides = [1, 1]} : vector<8x512xf32> to vector<8x128xf32>
    %382 = arith.negf %381 : vector<8x128xf32>
    %383 = math.exp %382 : vector<8x128xf32>
    %cst_142 = arith.constant 1.000000e+00 : f32
    %384 = vector.broadcast %cst_142 : f32 to vector<8x128xf32>
    %385 = arith.addf %384, %383 : vector<8x128xf32>
    %386 = arith.divf %384, %385 : vector<8x128xf32>
    %387 = vector.extract_strided_slice %374 {offsets = [0, 256], sizes = [8, 128], strides = [1, 1]} : vector<8x512xf32> to vector<8x128xf32>
    %388 = math.tanh %387 : vector<8x128xf32>
    %389 = vector.extract_strided_slice %374 {offsets = [0, 384], sizes = [8, 128], strides = [1, 1]} : vector<8x512xf32> to vector<8x128xf32>
    %390 = arith.negf %389 : vector<8x128xf32>
    %391 = math.exp %390 : vector<8x128xf32>
    %cst_143 = arith.constant 1.000000e+00 : f32
    %392 = vector.broadcast %cst_143 : f32 to vector<8x128xf32>
    %393 = arith.addf %392, %391 : vector<8x128xf32>
    %394 = arith.divf %392, %393 : vector<8x128xf32>
    %395 = arith.mulf %386, %363 : vector<8x128xf32>
    %396 = arith.mulf %380, %388 : vector<8x128xf32>
    %397 = arith.addf %395, %396 : vector<8x128xf32>
    %398 = math.tanh %397 : vector<8x128xf32>
    %399 = arith.mulf %394, %398 : vector<8x128xf32>
    %c5_i32_144 = arith.constant 5 : i32
    %c2_i32_145 = arith.constant 2 : i32
    %400 = arith.select %0, %c5_i32_144, %c2_i32_145 : i32
    %c0_146 = arith.constant 0 : index
    %401 = arith.index_cast %400 : i32 to index
    %c0_147 = arith.constant 0 : index
    %c0_148 = arith.constant 0 : index
    %402 = vector.load %arg6[%c0_146, %401, %c0_147, %c0_148] : memref<1x8x8x128xf32, #tpu.memory_space<vmem>>, vector<1x1x8x128xf32>
    %403 = vector.shape_cast %402 : vector<1x1x8x128xf32> to vector<8x128xf32>
    %404 = vector.shape_cast %399 : vector<8x128xf32> to vector<1x1x8x128xf32>
    tpu.vector_store %arg6[%c0_146, %401, %c0_147, %c0_148], %404 {strides = array<i32>} : memref<1x8x8x128xf32, #tpu.memory_space<vmem>>, vector<1x1x8x128xf32>,
    %c3_149 = arith.constant 3 : index
    %c0_150 = arith.constant 0 : index
    %c0_151 = arith.constant 0 : index
    %405 = vector.load %arg7[%c3_149, %c0_150, %c0_151] : memref<8x8x512xf32, #tpu.memory_space<vmem>>, vector<1x8x512xf32>
    %406 = vector.shape_cast %405 : vector<1x8x512xf32> to vector<8x512xf32>
    %cst_152 = arith.constant dense<0.000000e+00> : vector<8x512xf32>
    %407 = tpu.matmul %399, %300, %cst_152 {dimension_numbers = #tpu.dot_dimension_numbers<[1], [0], [0], [1], [0, 0, 1, 1], [], []>} : vector<8x128xf32>, vector<128x512xf32>, vector<8x512xf32> -> vector<8x512xf32>
    %408 = arith.addf %406, %407 : vector<8x512xf32>
    %409 = vector.extract_strided_slice %408 {offsets = [0, 0], sizes = [8, 128], strides = [1, 1]} : vector<8x512xf32> to vector<8x128xf32>
    %410 = arith.negf %409 : vector<8x128xf32>
    %411 = math.exp %410 : vector<8x128xf32>
    %cst_153 = arith.constant 1.000000e+00 : f32
    %412 = vector.broadcast %cst_153 : f32 to vector<8x128xf32>
    %413 = arith.addf %412, %411 : vector<8x128xf32>
    %414 = arith.divf %412, %413 : vector<8x128xf32>
    %415 = vector.extract_strided_slice %408 {offsets = [0, 128], sizes = [8, 128], strides = [1, 1]} : vector<8x512xf32> to vector<8x128xf32>
    %416 = arith.negf %415 : vector<8x128xf32>
    %417 = math.exp %416 : vector<8x128xf32>
    %cst_154 = arith.constant 1.000000e+00 : f32
    %418 = vector.broadcast %cst_154 : f32 to vector<8x128xf32>
    %419 = arith.addf %418, %417 : vector<8x128xf32>
    %420 = arith.divf %418, %419 : vector<8x128xf32>
    %421 = vector.extract_strided_slice %408 {offsets = [0, 256], sizes = [8, 128], strides = [1, 1]} : vector<8x512xf32> to vector<8x128xf32>
    %422 = math.tanh %421 : vector<8x128xf32>
    %423 = vector.extract_strided_slice %408 {offsets = [0, 384], sizes = [8, 128], strides = [1, 1]} : vector<8x512xf32> to vector<8x128xf32>
    %424 = arith.negf %423 : vector<8x128xf32>
    %425 = math.exp %424 : vector<8x128xf32>
    %cst_155 = arith.constant 1.000000e+00 : f32
    %426 = vector.broadcast %cst_155 : f32 to vector<8x128xf32>
    %427 = arith.addf %426, %425 : vector<8x128xf32>
    %428 = arith.divf %426, %427 : vector<8x128xf32>
    %429 = arith.mulf %420, %397 : vector<8x128xf32>
    %430 = arith.mulf %414, %422 : vector<8x128xf32>
    %431 = arith.addf %429, %430 : vector<8x128xf32>
    %432 = math.tanh %431 : vector<8x128xf32>
    %433 = arith.mulf %428, %432 : vector<8x128xf32>
    %c4_i32_156 = arith.constant 4 : i32
    %c3_i32_157 = arith.constant 3 : i32
    %434 = arith.select %0, %c4_i32_156, %c3_i32_157 : i32
    %c0_158 = arith.constant 0 : index
    %435 = arith.index_cast %434 : i32 to index
    %c0_159 = arith.constant 0 : index
    %c0_160 = arith.constant 0 : index
    %436 = vector.load %arg6[%c0_158, %435, %c0_159, %c0_160] : memref<1x8x8x128xf32, #tpu.memory_space<vmem>>, vector<1x1x8x128xf32>
    %437 = vector.shape_cast %436 : vector<1x1x8x128xf32> to vector<8x128xf32>
    %438 = vector.shape_cast %433 : vector<8x128xf32> to vector<1x1x8x128xf32>
    tpu.vector_store %arg6[%c0_158, %435, %c0_159, %c0_160], %438 {strides = array<i32>} : memref<1x8x8x128xf32, #tpu.memory_space<vmem>>, vector<1x1x8x128xf32>,
    %c4_161 = arith.constant 4 : index
    %c0_162 = arith.constant 0 : index
    %c0_163 = arith.constant 0 : index
    %439 = vector.load %arg7[%c4_161, %c0_162, %c0_163] : memref<8x8x512xf32, #tpu.memory_space<vmem>>, vector<1x8x512xf32>
    %440 = vector.shape_cast %439 : vector<1x8x512xf32> to vector<8x512xf32>
    %cst_164 = arith.constant dense<0.000000e+00> : vector<8x512xf32>
    %441 = tpu.matmul %433, %300, %cst_164 {dimension_numbers = #tpu.dot_dimension_numbers<[1], [0], [0], [1], [0, 0, 1, 1], [], []>} : vector<8x128xf32>, vector<128x512xf32>, vector<8x512xf32> -> vector<8x512xf32>
    %442 = arith.addf %440, %441 : vector<8x512xf32>
    %443 = vector.extract_strided_slice %442 {offsets = [0, 0], sizes = [8, 128], strides = [1, 1]} : vector<8x512xf32> to vector<8x128xf32>
    %444 = arith.negf %443 : vector<8x128xf32>
    %445 = math.exp %444 : vector<8x128xf32>
    %cst_165 = arith.constant 1.000000e+00 : f32
    %446 = vector.broadcast %cst_165 : f32 to vector<8x128xf32>
    %447 = arith.addf %446, %445 : vector<8x128xf32>
    %448 = arith.divf %446, %447 : vector<8x128xf32>
    %449 = vector.extract_strided_slice %442 {offsets = [0, 128], sizes = [8, 128], strides = [1, 1]} : vector<8x512xf32> to vector<8x128xf32>
    %450 = arith.negf %449 : vector<8x128xf32>
    %451 = math.exp %450 : vector<8x128xf32>
    %cst_166 = arith.constant 1.000000e+00 : f32
    %452 = vector.broadcast %cst_166 : f32 to vector<8x128xf32>
    %453 = arith.addf %452, %451 : vector<8x128xf32>
    %454 = arith.divf %452, %453 : vector<8x128xf32>
    %455 = vector.extract_strided_slice %442 {offsets = [0, 256], sizes = [8, 128], strides = [1, 1]} : vector<8x512xf32> to vector<8x128xf32>
    %456 = math.tanh %455 : vector<8x128xf32>
    %457 = vector.extract_strided_slice %442 {offsets = [0, 384], sizes = [8, 128], strides = [1, 1]} : vector<8x512xf32> to vector<8x128xf32>
    %458 = arith.negf %457 : vector<8x128xf32>
    %459 = math.exp %458 : vector<8x128xf32>
    %cst_167 = arith.constant 1.000000e+00 : f32
    %460 = vector.broadcast %cst_167 : f32 to vector<8x128xf32>
    %461 = arith.addf %460, %459 : vector<8x128xf32>
    %462 = arith.divf %460, %461 : vector<8x128xf32>
    %463 = arith.mulf %454, %431 : vector<8x128xf32>
    %464 = arith.mulf %448, %456 : vector<8x128xf32>
    %465 = arith.addf %463, %464 : vector<8x128xf32>
    %466 = math.tanh %465 : vector<8x128xf32>
    %467 = arith.mulf %462, %466 : vector<8x128xf32>
    %c3_i32_168 = arith.constant 3 : i32
    %c4_i32_169 = arith.constant 4 : i32
    %468 = arith.select %0, %c3_i32_168, %c4_i32_169 : i32
    %c0_170 = arith.constant 0 : index
    %469 = arith.index_cast %468 : i32 to index
    %c0_171 = arith.constant 0 : index
    %c0_172 = arith.constant 0 : index
    %470 = vector.load %arg6[%c0_170, %469, %c0_171, %c0_172] : memref<1x8x8x128xf32, #tpu.memory_space<vmem>>, vector<1x1x8x128xf32>
    %471 = vector.shape_cast %470 : vector<1x1x8x128xf32> to vector<8x128xf32>
    %472 = vector.shape_cast %467 : vector<8x128xf32> to vector<1x1x8x128xf32>
    tpu.vector_store %arg6[%c0_170, %469, %c0_171, %c0_172], %472 {strides = array<i32>} : memref<1x8x8x128xf32, #tpu.memory_space<vmem>>, vector<1x1x8x128xf32>,
    %c5_173 = arith.constant 5 : index
    %c0_174 = arith.constant 0 : index
    %c0_175 = arith.constant 0 : index
    %473 = vector.load %arg7[%c5_173, %c0_174, %c0_175] : memref<8x8x512xf32, #tpu.memory_space<vmem>>, vector<1x8x512xf32>
    %474 = vector.shape_cast %473 : vector<1x8x512xf32> to vector<8x512xf32>
    %cst_176 = arith.constant dense<0.000000e+00> : vector<8x512xf32>
    %475 = tpu.matmul %467, %300, %cst_176 {dimension_numbers = #tpu.dot_dimension_numbers<[1], [0], [0], [1], [0, 0, 1, 1], [], []>} : vector<8x128xf32>, vector<128x512xf32>, vector<8x512xf32> -> vector<8x512xf32>
    %476 = arith.addf %474, %475 : vector<8x512xf32>
    %477 = vector.extract_strided_slice %476 {offsets = [0, 0], sizes = [8, 128], strides = [1, 1]} : vector<8x512xf32> to vector<8x128xf32>
    %478 = arith.negf %477 : vector<8x128xf32>
    %479 = math.exp %478 : vector<8x128xf32>
    %cst_177 = arith.constant 1.000000e+00 : f32
    %480 = vector.broadcast %cst_177 : f32 to vector<8x128xf32>
    %481 = arith.addf %480, %479 : vector<8x128xf32>
    %482 = arith.divf %480, %481 : vector<8x128xf32>
    %483 = vector.extract_strided_slice %476 {offsets = [0, 128], sizes = [8, 128], strides = [1, 1]} : vector<8x512xf32> to vector<8x128xf32>
    %484 = arith.negf %483 : vector<8x128xf32>
    %485 = math.exp %484 : vector<8x128xf32>
    %cst_178 = arith.constant 1.000000e+00 : f32
    %486 = vector.broadcast %cst_178 : f32 to vector<8x128xf32>
    %487 = arith.addf %486, %485 : vector<8x128xf32>
    %488 = arith.divf %486, %487 : vector<8x128xf32>
    %489 = vector.extract_strided_slice %476 {offsets = [0, 256], sizes = [8, 128], strides = [1, 1]} : vector<8x512xf32> to vector<8x128xf32>
    %490 = math.tanh %489 : vector<8x128xf32>
    %491 = vector.extract_strided_slice %476 {offsets = [0, 384], sizes = [8, 128], strides = [1, 1]} : vector<8x512xf32> to vector<8x128xf32>
    %492 = arith.negf %491 : vector<8x128xf32>
    %493 = math.exp %492 : vector<8x128xf32>
    %cst_179 = arith.constant 1.000000e+00 : f32
    %494 = vector.broadcast %cst_179 : f32 to vector<8x128xf32>
    %495 = arith.addf %494, %493 : vector<8x128xf32>
    %496 = arith.divf %494, %495 : vector<8x128xf32>
    %497 = arith.mulf %488, %465 : vector<8x128xf32>
    %498 = arith.mulf %482, %490 : vector<8x128xf32>
    %499 = arith.addf %497, %498 : vector<8x128xf32>
    %500 = math.tanh %499 : vector<8x128xf32>
    %501 = arith.mulf %496, %500 : vector<8x128xf32>
    %c2_i32_180 = arith.constant 2 : i32
    %c5_i32_181 = arith.constant 5 : i32
    %502 = arith.select %0, %c2_i32_180, %c5_i32_181 : i32
    %c0_182 = arith.constant 0 : index
    %503 = arith.index_cast %502 : i32 to index
    %c0_183 = arith.constant 0 : index
    %c0_184 = arith.constant 0 : index
    %504 = vector.load %arg6[%c0_182, %503, %c0_183, %c0_184] : memref<1x8x8x128xf32, #tpu.memory_space<vmem>>, vector<1x1x8x128xf32>
    %505 = vector.shape_cast %504 : vector<1x1x8x128xf32> to vector<8x128xf32>
    %506 = vector.shape_cast %501 : vector<8x128xf32> to vector<1x1x8x128xf32>
    tpu.vector_store %arg6[%c0_182, %503, %c0_183, %c0_184], %506 {strides = array<i32>} : memref<1x8x8x128xf32, #tpu.memory_space<vmem>>, vector<1x1x8x128xf32>,
    %c6_185 = arith.constant 6 : index
    %c0_186 = arith.constant 0 : index
    %c0_187 = arith.constant 0 : index
    %507 = vector.load %arg7[%c6_185, %c0_186, %c0_187] : memref<8x8x512xf32, #tpu.memory_space<vmem>>, vector<1x8x512xf32>
    %508 = vector.shape_cast %507 : vector<1x8x512xf32> to vector<8x512xf32>
    %cst_188 = arith.constant dense<0.000000e+00> : vector<8x512xf32>
    %509 = tpu.matmul %501, %300, %cst_188 {dimension_numbers = #tpu.dot_dimension_numbers<[1], [0], [0], [1], [0, 0, 1, 1], [], []>} : vector<8x128xf32>, vector<128x512xf32>, vector<8x512xf32> -> vector<8x512xf32>
    %510 = arith.addf %508, %509 : vector<8x512xf32>
    %511 = vector.extract_strided_slice %510 {offsets = [0, 0], sizes = [8, 128], strides = [1, 1]} : vector<8x512xf32> to vector<8x128xf32>
    %512 = arith.negf %511 : vector<8x128xf32>
    %513 = math.exp %512 : vector<8x128xf32>
    %cst_189 = arith.constant 1.000000e+00 : f32
    %514 = vector.broadcast %cst_189 : f32 to vector<8x128xf32>
    %515 = arith.addf %514, %513 : vector<8x128xf32>
    %516 = arith.divf %514, %515 : vector<8x128xf32>
    %517 = vector.extract_strided_slice %510 {offsets = [0, 128], sizes = [8, 128], strides = [1, 1]} : vector<8x512xf32> to vector<8x128xf32>
    %518 = arith.negf %517 : vector<8x128xf32>
    %519 = math.exp %518 : vector<8x128xf32>
    %cst_190 = arith.constant 1.000000e+00 : f32
    %520 = vector.broadcast %cst_190 : f32 to vector<8x128xf32>
    %521 = arith.addf %520, %519 : vector<8x128xf32>
    %522 = arith.divf %520, %521 : vector<8x128xf32>
    %523 = vector.extract_strided_slice %510 {offsets = [0, 256], sizes = [8, 128], strides = [1, 1]} : vector<8x512xf32> to vector<8x128xf32>
    %524 = math.tanh %523 : vector<8x128xf32>
    %525 = vector.extract_strided_slice %510 {offsets = [0, 384], sizes = [8, 128], strides = [1, 1]} : vector<8x512xf32> to vector<8x128xf32>
    %526 = arith.negf %525 : vector<8x128xf32>
    %527 = math.exp %526 : vector<8x128xf32>
    %cst_191 = arith.constant 1.000000e+00 : f32
    %528 = vector.broadcast %cst_191 : f32 to vector<8x128xf32>
    %529 = arith.addf %528, %527 : vector<8x128xf32>
    %530 = arith.divf %528, %529 : vector<8x128xf32>
    %531 = arith.mulf %522, %499 : vector<8x128xf32>
    %532 = arith.mulf %516, %524 : vector<8x128xf32>
    %533 = arith.addf %531, %532 : vector<8x128xf32>
    %534 = math.tanh %533 : vector<8x128xf32>
    %535 = arith.mulf %530, %534 : vector<8x128xf32>
    %c1_i32_192 = arith.constant 1 : i32
    %c6_i32_193 = arith.constant 6 : i32
    %536 = arith.select %0, %c1_i32_192, %c6_i32_193 : i32
    %c0_194 = arith.constant 0 : index
    %537 = arith.index_cast %536 : i32 to index
    %c0_195 = arith.constant 0 : index
    %c0_196 = arith.constant 0 : index
    %538 = vector.load %arg6[%c0_194, %537, %c0_195, %c0_196] : memref<1x8x8x128xf32, #tpu.memory_space<vmem>>, vector<1x1x8x128xf32>
    %539 = vector.shape_cast %538 : vector<1x1x8x128xf32> to vector<8x128xf32>
    %540 = vector.shape_cast %535 : vector<8x128xf32> to vector<1x1x8x128xf32>
    tpu.vector_store %arg6[%c0_194, %537, %c0_195, %c0_196], %540 {strides = array<i32>} : memref<1x8x8x128xf32, #tpu.memory_space<vmem>>, vector<1x1x8x128xf32>,
    %c7_197 = arith.constant 7 : index
    %c0_198 = arith.constant 0 : index
    %c0_199 = arith.constant 0 : index
    %541 = vector.load %arg7[%c7_197, %c0_198, %c0_199] : memref<8x8x512xf32, #tpu.memory_space<vmem>>, vector<1x8x512xf32>
    %542 = vector.shape_cast %541 : vector<1x8x512xf32> to vector<8x512xf32>
    %cst_200 = arith.constant dense<0.000000e+00> : vector<8x512xf32>
    %543 = tpu.matmul %535, %300, %cst_200 {dimension_numbers = #tpu.dot_dimension_numbers<[1], [0], [0], [1], [0, 0, 1, 1], [], []>} : vector<8x128xf32>, vector<128x512xf32>, vector<8x512xf32> -> vector<8x512xf32>
    %544 = arith.addf %542, %543 : vector<8x512xf32>
    %545 = vector.extract_strided_slice %544 {offsets = [0, 0], sizes = [8, 128], strides = [1, 1]} : vector<8x512xf32> to vector<8x128xf32>
    %546 = arith.negf %545 : vector<8x128xf32>
    %547 = math.exp %546 : vector<8x128xf32>
    %cst_201 = arith.constant 1.000000e+00 : f32
    %548 = vector.broadcast %cst_201 : f32 to vector<8x128xf32>
    %549 = arith.addf %548, %547 : vector<8x128xf32>
    %550 = arith.divf %548, %549 : vector<8x128xf32>
    %551 = vector.extract_strided_slice %544 {offsets = [0, 128], sizes = [8, 128], strides = [1, 1]} : vector<8x512xf32> to vector<8x128xf32>
    %552 = arith.negf %551 : vector<8x128xf32>
    %553 = math.exp %552 : vector<8x128xf32>
    %cst_202 = arith.constant 1.000000e+00 : f32
    %554 = vector.broadcast %cst_202 : f32 to vector<8x128xf32>
    %555 = arith.addf %554, %553 : vector<8x128xf32>
    %556 = arith.divf %554, %555 : vector<8x128xf32>
    %557 = vector.extract_strided_slice %544 {offsets = [0, 256], sizes = [8, 128], strides = [1, 1]} : vector<8x512xf32> to vector<8x128xf32>
    %558 = math.tanh %557 : vector<8x128xf32>
    %559 = vector.extract_strided_slice %544 {offsets = [0, 384], sizes = [8, 128], strides = [1, 1]} : vector<8x512xf32> to vector<8x128xf32>
    %560 = arith.negf %559 : vector<8x128xf32>
    %561 = math.exp %560 : vector<8x128xf32>
    %cst_203 = arith.constant 1.000000e+00 : f32
    %562 = vector.broadcast %cst_203 : f32 to vector<8x128xf32>
    %563 = arith.addf %562, %561 : vector<8x128xf32>
    %564 = arith.divf %562, %563 : vector<8x128xf32>
    %565 = arith.mulf %556, %533 : vector<8x128xf32>
    %566 = arith.mulf %550, %558 : vector<8x128xf32>
    %567 = arith.addf %565, %566 : vector<8x128xf32>
    %568 = math.tanh %567 : vector<8x128xf32>
    %569 = arith.mulf %564, %568 : vector<8x128xf32>
    %c0_i32_204 = arith.constant 0 : i32
    %c7_i32_205 = arith.constant 7 : i32
    %570 = arith.select %0, %c0_i32_204, %c7_i32_205 : i32
    %c0_206 = arith.constant 0 : index
    %571 = arith.index_cast %570 : i32 to index
    %c0_207 = arith.constant 0 : index
    %c0_208 = arith.constant 0 : index
    %572 = vector.load %arg6[%c0_206, %571, %c0_207, %c0_208] : memref<1x8x8x128xf32, #tpu.memory_space<vmem>>, vector<1x1x8x128xf32>
    %573 = vector.shape_cast %572 : vector<1x1x8x128xf32> to vector<8x128xf32>
    %574 = vector.shape_cast %569 : vector<8x128xf32> to vector<1x1x8x128xf32>
    tpu.vector_store %arg6[%c0_206, %571, %c0_207, %c0_208], %574 {strides = array<i32>} : memref<1x8x8x128xf32, #tpu.memory_space<vmem>>, vector<1x1x8x128xf32>,
    return
  }
  func.func @transform_0(%arg0: i32) -> (i32, i32, i32) {
    %c0_i32 = arith.constant 0 : i32
    %c0_i32_0 = arith.constant 0 : i32
    %c0_i32_1 = arith.constant 0 : i32
    %c0_i32_2 = arith.constant 0 : i32
    return %c0_i32, %c0_i32_0, %c0_i32_1 : i32, i32, i32
  }
  func.func @transform_1(%arg0: i32) -> (i32, i32, i32) {
    %c0_i32 = arith.constant 0 : i32
    %c0_i32_0 = arith.constant 0 : i32
    %c0_i32_1 = arith.constant 0 : i32
    return %arg0, %c0_i32, %c0_i32_0 : i32, i32, i32
  }
  func.func @transform_2(%arg0: i32) -> (i32, i32, i32, i32) {
    %c0_i32 = arith.constant 0 : i32
    %c0_i32_0 = arith.constant 0 : i32
    %c0_i32_1 = arith.constant 0 : i32
    %c0_i32_2 = arith.constant 0 : i32
    return %arg0, %c0_i32, %c0_i32_0, %c0_i32_1 : i32, i32, i32, i32
  }
  func.func @transform_3(%arg0: i32) -> (i32, i32, i32, i32) {
    %c0_i32 = arith.constant 0 : i32
    %c0_i32_0 = arith.constant 0 : i32
    %c0_i32_1 = arith.constant 0 : i32
    %c0_i32_2 = arith.constant 0 : i32
    return %arg0, %c0_i32, %c0_i32_0, %c0_i32_1 : i32, i32, i32, i32
  }
  func.func @transform_4(%arg0: i32) -> (i32, i32, i32, i32) {
    %c0_i32 = arith.constant 0 : i32
    %c0_i32_0 = arith.constant 0 : i32
    %c0_i32_1 = arith.constant 0 : i32
    %c0_i32_2 = arith.constant 0 : i32
    return %arg0, %c0_i32, %c0_i32_0, %c0_i32_1 : i32, i32, i32, i32
  }
  func.func @transform_5(%arg0: i32) -> (i32, i32, i32, i32) {
    %c0_i32 = arith.constant 0 : i32
    %c0_i32_0 = arith.constant 0 : i32
    %c0_i32_1 = arith.constant 0 : i32
    %c0_i32_2 = arith.constant 0 : i32
    return %arg0, %c0_i32, %c0_i32_0, %c0_i32_1 : i32, i32, i32, i32
  }
}

</mosaic_0001>

<bundles_post_ra>
// kernel: channelwise_lstm_forward.2
= control target key start
LH: loop header
LB: loop body
LE: loop exit
PB: predicated region body
PF: predicated region fallthrough
CT: control target
= control target key end

     0   :  { %10 = vsyncpa [#allocation5], 0  ;;  %s7694_s0 = inlined_call_operand.vmem [shape: f32[8,8,128], index: 0, kind: input, shape index: {}]   ;;  %s7695_s1 = inlined_call_operand.hbm [shape: f32[4,128,512], index: 1, kind: input, shape index: {}]   ;;  %s7696_s2 = inlined_call_operand.hbm [shape: f32[4,1,128,512], index: 2, kind: input, shape index: {}]   ;;  %s7697_s3 = inlined_call_operand.hbm [shape: f32[4,2,128,512], index: 3, kind: input, shape index: {}]   ;;  %s7698_s4 = inlined_call_operand.hbm [shape: f32[4,2,1,512], index: 4, kind: input, shape index: {}]   ;;  %s7699_s5 = inlined_call_operand.vmem [shape: f32[4,8,8,128], index: 5, kind: output, shape index: {}]  }
   0x1   :  { %12 = vsyncpa [#allocation5 + $0x1], 0 }
   0x2   :  { %13 = vsyncpa [#allocation7], 0 }
   0x3   :  { %15 = vsyncpa [#allocation7 + $0x1], 0 }
   0x4   :  { %16 = vsyncpa [#allocation10], 0 }
   0x5   :  { %18 = vsyncpa [#allocation10 + $0x1], 0  ;;  %s6068_s18 = smov 0   ;;  %s6070_s19 = smov 0  }
   0x6   :  { %s6072_s20 = smov 0   ;;  %s6074_s21 = smov 0  }
   0x7 LB: > { %s6087_s22 = sadd.s32 4294967295, %s6027_s21   ;;  %s6090_s23 = sadd.s32 1, %s6027_s21   ;;  %s6027_s21 = sphi %s6074_s21, %s7763_s21   ;;  %s6023_s20 = sphi %s6072_s20, %s7762_s20   ;;  %s6019_s19 = sphi %s6070_s19, %s7761_s19   ;;  %s6015_s18 = sphi %s6068_s18, %s7760_s18  }
   0x8   : > { %s49_s24 = ssub.s32 %s6027_s21, %s6090_s23  ;;  %s52_s25 = sadd.s32 1, %s6023_s20 }
   0x9   : > { %p50_p0 = scmp.eq.s32.totalorder %s49_s24, 0  ;;  %p59_p1 = scmp.ne.s32.totalorder %s6023_s20, %s6019_s19 }
   0xa   : > { %p60_p2 = scmp.eq.s32.totalorder %s6027_s21, 0  ;;  %p65_p3 = scmp.ne.s32.totalorder %s6019_s19, %s6015_s18 }
   0xb   : > { %s6100_s26 = scalar_select %p50_p0, %s6023_s20, %s52_s25  }
   0xc   : > { %p61_p4 = por %p60_p2, %p59_p1  ;;  %p66_p5 = scmp.eq.s32.totalorder %s6087_s22, 0 }
   0xd   : > { %p5571_p6 = scmp.lt.s32.totalorder %s6027_s21, 4  ;;  %s6109_s28 = sand.u32 1, %s6023_s20  }
   0xe   : > { %p6104_p7 = por %p66_p5, %p65_p3  ;;  %s4227_s29 = sshll.u32 %s6109_s28, 9 }
   0xf   : > { %s4385_s30 = sshll.u32 %s6027_s21, 13  ;;  %p6113_p8 = pnand %p5571_p6, %p61_p4 }
  0x10   : > { %s7720_s27 = scalar_select %p6104_p7, 1, 0 }
  0x11   : > { %s217_s7 = sand.u32 1, %s6027_s21   ;;  %s6123_s10 = scalar_lea.hbm %s7696_s2, %s4385_s30 }
  0x12   : > { %s221_s11 = scalar_lea.vmem [#allocation6], %s4227_s29  ;;  %s6131_s13 = scalar_lea.sflag [#allocation7], %s217_s7 }
  0x13   : > { %s228_s12 = sshll.u32 %s221_s11, 4  ;;  %s5865_s14 = scalar_lea.hbm %s6123_s10, 8192  ;;  %s6128_s12 = int_to_ptr.vmem [resolvable:$true] %s228_s12 }
  0x14   : > { %p5866_p11 = scmp.ne.s32.totalorder %s6123_s10, %s5865_s14  ;;  %p6137_p12 = pneg %p6113_p8 }
  0x15   : > { %s5870_s18 = scalar_lea.hbm %s7696_s2, 32768  ;;  %p5871_p1 = scmp.lt.u32.totalorder %s6123_s10, %s7696_s2 }
  0x16   : > { %p5868_p13 = pnand %p6137_p12, %p5866_p11  ;;  %p5872_p2 = scmp.lt.u32.totalorder %s5870_s18, %s5865_s14 }
  0x17   : > { %p5874_p4 = scmp.lt.u32.totalorder %s5865_s14, %s6123_s10 }
  0x18   : > { %p5869_p0 = pneg %p5868_p13  ;;  %p5873_p3 = por %p5872_p2, %p5871_p1 }
  0x1a   : > { %p5875_p5 = por %p5874_p4, %p5873_p3 }
  0x1c   : > { %p5876_p6 = pnand %p5875_p5, %p5869_p0 }
  0x1e   : > { %5879 = shalt.err (!%p5876_p6)
}
  0x1f   : > { %s5880_s7 = scalar_lea.vmem %s6128_s12, 8192  ;;  %s6029_s8 = smov [#allocation6]  }
  0x20   : > { %p5881_p11 = scmp.ne.s32.totalorder %s6128_s12, %s5880_s7  ;;  %s5885_s9 = sshll.u32 %s6029_s8, 4  ;;  %s5886_s9 = int_to_ptr.vmem [resolvable:$false] %s5885_s9 }
  0x21   : > { %s5887_s11 = scalar_lea.vmem %s5886_s9, 16384  ;;  %p5888_p10 = scmp.lt.s32.totalorder %s6128_s12, %s5886_s9 }
  0x22   : > { %p5883_p13 = pnand %p5881_p11, %p6137_p12  ;;  %p5889_p7 = scmp.lt.s32.totalorder %s5887_s11, %s5880_s7 }
  0x24   : > { %p5884_p9 = pneg %p5883_p13  ;;  %p5890_p1 = por %p5889_p7, %p5888_p10 }
  0x26   : > { %p5891_p2 = pnand %p5890_p1, %p5884_p9 }
  0x28   : > { %5894 = shalt.err (!%p5891_p2)
}
  0x29   : > { %s7701_s14 = smov 512   ;;  %s6031_s16 = smov 32  }
  0x2a   : > { %5564 = dma.hbm_to_vmem [thread:$0]  (!%p6113_p8), %s6123_s10, 8192, %s6128_s12, %s6131_s13, %s7701_s14, %s7701_s14, %s6031_s16  }
  0x2b   : > { %p7723_p7 = scmp.lt.s32.totalorder %s6027_s21, 5  ;;  %p7724_p9 = scmp.ge.s32.totalorder %s6027_s21, 1 }
  0x2c   : > { %s6177_s25 = scalar_lea.hbm %s7695_s1, %s4385_s30  ;;  %s200_s7 = scalar_lea.vmem [#allocation4], %s4227_s29 }
  0x2d   : > { %p6168_p10 = pnand %p7724_p9, %p7723_p7  ;;  %s207_s8 = sshll.u32 %s200_s7, 4  ;;  %s6182_s8 = int_to_ptr.vmem [resolvable:$true] %s207_s8 }
  0x2e   : > { %s4233_s10 = sshll.u32 %s6109_s28, 10  ;;  %s197_s12 = scalar_lea.sflag [#allocation5], %s6109_s28 }
  0x2f   : > { %s7725_s17 = scalar_select %p6168_p10, 1, 0 }
  0x30   : > { %s5895_s9 = scalar_lea.hbm %s6177_s25, 8192  ;;  %s5900_s30 = scalar_lea.hbm %s7695_s1, 32768 }
  0x31   : > { %p5896_p0 = scmp.ne.s32.totalorder %s6177_s25, %s5895_s9  ;;  %p5901_p5 = scmp.lt.u32.totalorder %s6177_s25, %s7695_s1 }
  0x32   : > { %p5902_p6 = scmp.lt.u32.totalorder %s5900_s30, %s5895_s9  ;;  %p5904_p13 = scmp.lt.u32.totalorder %s5895_s9, %s6177_s25 }
  0x33   : > { %p5898_p3 = pnand %p5896_p0, %p6137_p12 }
  0x34   : > { %p5903_p11 = por %p5902_p6, %p5901_p5 }
  0x35   : > { %p5899_p4 = pneg %p5898_p3 }
  0x36   : > { %p5905_p1 = por %p5904_p13, %p5903_p11 }
  0x38   : > { %p5906_p2 = pnand %p5905_p1, %p5899_p4 }
  0x3a   : > { %5909 = shalt.err (!%p5906_p2)
}
  0x3b   : > { %s5910_s29 = scalar_lea.vmem %s6182_s8, 8192  ;;  %s6032_s7 = smov [#allocation4]  }
  0x3c   : > { %p5911_p7 = scmp.ne.s32.totalorder %s6182_s8, %s5910_s29  ;;  %s5915_s11 = sshll.u32 %s6032_s7, 4  ;;  %s5916_s11 = int_to_ptr.vmem [resolvable:$false] %s5915_s11 }
  0x3d   : > { %s5917_s14 = scalar_lea.vmem %s5916_s11, 16384  ;;  %p5918_p3 = scmp.lt.s32.totalorder %s6182_s8, %s5916_s11 }
  0x3e   : > { %p5913_p9 = pnand %p5911_p7, %p6137_p12  ;;  %p5919_p10 = scmp.lt.s32.totalorder %s5917_s14, %s5910_s29 }
  0x40   : > { %p5914_p0 = pneg %p5913_p9  ;;  %p5920_p5 = por %p5919_p10, %p5918_p3 }
  0x42   : > { %p5921_p6 = pnand %p5920_p5, %p5914_p0 }
  0x44   : > { %5924 = shalt.err (!%p5921_p6)
}
  0x45   : > { %s7726_s9 = smov 512   ;;  %s4387_s18 = sshll.u32 %s6027_s21, 14 }
  0x46   : > { %5561 = dma.hbm_to_vmem [thread:$0]  (!%p6113_p8), %s6177_s25, 8192, %s6182_s8, %s197_s12, %s7726_s9, %s7726_s9, %s6031_s16  }
  0x47   : > { %s242_s30 = scalar_lea.vmem [#allocation8], %s4233_s10  ;;  %s6217_s11 = scalar_lea.hbm %s7697_s3, %s4387_s18 }
  0x48   : > { %s249_s24 = sshll.u32 %s242_s30, 4  ;;  %s5925_s14 = scalar_lea.hbm %s6217_s11, 16384  ;;  %s6219_s24 = int_to_ptr.vmem [resolvable:$true] %s249_s24 }
  0x49   : > { %p5926_p10 = scmp.ne.s32.totalorder %s6217_s11, %s5925_s14  ;;  %s5930_s10 = scalar_lea.hbm %s7697_s3, 65536 }
  0x4a   : > { %p5931_p13 = scmp.lt.u32.totalorder %s6217_s11, %s7697_s3  ;;  %p5932_p1 = scmp.lt.u32.totalorder %s5930_s10, %s5925_s14 }
  0x4b   : > { %p5928_p4 = pnand %p5926_p10, %p6137_p12  ;;  %p5934_p7 = scmp.lt.u32.totalorder %s5925_s14, %s6217_s11 }
  0x4c   : > { %p5933_p2 = por %p5932_p1, %p5931_p13 }
  0x4d   : > { %p5929_p11 = pneg %p5928_p4 }
  0x4e   : > { %p5935_p9 = por %p5934_p7, %p5933_p2 }
  0x50   : > { %p5936_p0 = pnand %p5935_p9, %p5929_p11 }
  0x52   : > { %5939 = shalt.err (!%p5936_p0)
}
  0x53   : > { %s5940_s18 = scalar_lea.vmem %s6219_s24, 16384  ;;  %s6033_s29 = smov [#allocation8]  }
  0x54   : > { %p5941_p3 = scmp.ne.s32.totalorder %s6219_s24, %s5940_s18  ;;  %s5945_s7 = sshll.u32 %s6033_s29, 4  ;;  %s5946_s7 = int_to_ptr.vmem [resolvable:$false] %s5945_s7 }
  0x55   : > { %s5947_s25 = scalar_lea.vmem %s5946_s7, 32768  ;;  %p5948_p10 = scmp.lt.s32.totalorder %s6219_s24, %s5946_s7 }
  0x56   : > { %p5943_p5 = pnand %p5941_p3, %p6137_p12  ;;  %p5949_p4 = scmp.lt.s32.totalorder %s5947_s25, %s5940_s18 }
  0x58   : > { %p5944_p6 = pneg %p5943_p5  ;;  %p5950_p13 = por %p5949_p4, %p5948_p10 }
  0x5a   : > { %p5951_p1 = pnand %p5950_p13, %p5944_p6 }
  0x5c   : > { %5954 = shalt.err (!%p5951_p1)
}
  0x5d   : > { %5567 = dma.hbm_to_vmem [thread:$0]  (!%p6113_p8), %s6217_s11, 16384, %s6219_s24, %s6131_s13, %s7726_s9, %s7726_s9, %s6031_s16  }
  0x5e   : > { %s4236_s14 = sshll.u32 %s6109_s28, 3  ;;  %s4388_s8 = sshll.u32 %s6027_s21, 7 }
  0x5f   : > { %s6251_s30 = scalar_lea.hbm %s7698_s4, %s4388_s8  ;;  %s263_s18 = scalar_lea.vmem [#allocation9], %s4236_s14 }
  0x60   : > { %s270_s29 = sshll.u32 %s263_s18, 4  ;;  %s260_s7 = scalar_lea.sflag [#allocation10], %s6109_s28  ;;  %s6253_s29 = int_to_ptr.vmem [resolvable:$true] %s270_s29 }
  0x61   : > { %s5955_s25 = scalar_lea.hbm %s6251_s30, 128  ;;  %s5960_s16 = scalar_lea.hbm %s7698_s4, 512 }
  0x62   : > { %p5956_p11 = scmp.ne.s32.totalorder %s6251_s30, %s5955_s25  ;;  %p5961_p9 = scmp.lt.u32.totalorder %s6251_s30, %s7698_s4 }
  0x63   : > { %p5962_p0 = scmp.lt.u32.totalorder %s5960_s16, %s5955_s25  ;;  %p5964_p5 = scmp.lt.u32.totalorder %s5955_s25, %s6251_s30 }
  0x64   : > { %p5958_p2 = pnand %p5956_p11, %p6137_p12 }
  0x65   : > { %p5963_p3 = por %p5962_p0, %p5961_p9 }
  0x66   : > { %p5959_p7 = pneg %p5958_p2 }
  0x67   : > { %p5965_p6 = por %p5964_p5, %p5963_p3 }
  0x69   : > { %p5966_p10 = pnand %p5965_p6, %p5959_p7 }
  0x6b   : > { %5969 = shalt.err (!%p5966_p10)
}
  0x6c   : > { %s5970_s11 = scalar_lea.vmem %s6253_s29, 128  ;;  %s6034_s14 = smov [#allocation9]  }
  0x6d   : > { %p5971_p4 = scmp.ne.s32.totalorder %s6253_s29, %s5970_s11  ;;  %s5975_s8 = sshll.u32 %s6034_s14, 4  ;;  %s5976_s8 = int_to_ptr.vmem [resolvable:$false] %s5975_s8 }
  0x6e   : > { %s5977_s10 = scalar_lea.vmem %s5976_s8, 256  ;;  %p5978_p11 = scmp.lt.s32.totalorder %s6253_s29, %s5976_s8 }
  0x6f   : > { %p5973_p13 = pnand %p5971_p4, %p6137_p12  ;;  %p5979_p2 = scmp.lt.s32.totalorder %s5977_s10, %s5970_s11 }
  0x71   : > { %p5974_p1 = pneg %p5973_p13  ;;  %p5980_p9 = por %p5979_p2, %p5978_p11 }
  0x73   : > { %p5981_p0 = pnand %p5980_p9, %p5974_p1 }
  0x75   : > { %5984 = shalt.err (!%p5981_p0)
}
  0x76   : > { %s6035_s12 = smov 64   ;;  %s6036_s18 = smov 4  }
  0x77   : > { %5570 = dma.hbm_to_vmem [thread:$0]  (!%p6113_p8), %s6251_s30, 128, %s6253_s29, %s260_s7, %s6035_s12, %s6035_s12, %s6036_s18  }
  0x78   : > { %p7727_p12 = scmp.ne.s32.totalorder %s7725_s17, 0 }
  0x7a   : > { %282 = sbr.rel (%p7727_p12) target bundleno = 4349 (0x10fd), region = 40 }
  0x81   : > { %s284_s15 = sand.u32 1, %s6019_s19   ;;  %p7728_p7 = scmp.ne.s32.totalorder %s7720_s27, 0 }
  0x82   : > { %s4240_s25 = sshll.u32 %s284_s15, 9  ;;  %s285_s21 = scalar_lea.sflag [#allocation5], %s284_s15 }
  0x83   : > { %s6282_s13 = scalar_lea.vmem [#allocation4], %s4240_s25 }
  0x84   : > { %6002 = dma.done.wait (%p7728_p7), %s285_s21, 8192  }
  0x85   : > { %6004 = vsyncadd (%p7728_p7), %s285_s21, 4294959104  ;;  %s293_s6 = sand.u32 1, %s6087_s22   ;;  %s6289_s30 = scalar_lea.vmem [#allocation6], %s4240_s25 }
  0x86   : > { %s294_s28 = scalar_lea.sflag [#allocation7], %s293_s6 }
  0x87   : > { %6006 = dma.done.wait (%p7728_p7), %s294_s28, 24576  }
  0x88   : > { %6008 = vsyncadd (%p7728_p7), %s294_s28, 4294942720  ;;  %s4242_s17 = sshll.u32 %s284_s15, 10  ;;  %s4243_s29 = sshll.u32 %s284_s15, 3 }
  0x89   : > { %s6295_s7 = scalar_lea.vmem [#allocation8], %s4242_s17  ;;  %s312_s16 = scalar_lea.sflag [#allocation10], %s284_s15 }
  0x8a   : > { %s6297_s9 = scalar_lea.vmem [#allocation9], %s4243_s29 }
  0x8b   : > { %6010 = dma.done.wait (%p7728_p7), %s312_s16, 128  }
  0x8c   : > { %6012 = vsyncadd (%p7728_p7), %s312_s16, 4294967168  ;;  %v7703_v0 = vmov 0.0   ;;  %v372_v1 = vld [vmem:[%s6282_s13 + $0x8] sm:$0xff]  ;;  %v374_v3 = vld [vmem:[%s6282_s13 + $0x18] sm:$0xff]  ;;  %p362_p8 = scmp.ge.s32.totalorder %s6087_s22, 2  ;;  %p357_p3 = scmp.lt.s32.totalorder %s6087_s22, 3 }
  0x8d   : > { %521 = vmatprep.mubr.f32.mxu0 %v7703_v0  ;;  %634 = vmatprep.mubr.f32.mxu1 %v7703_v0  ;;  %v376_v2 = vld [vmem:[%s6282_s13 + $0x28] sm:$0xff]  ;;  %v378_v5 = vld [vmem:[%s6282_s13 + $0x38] sm:$0xff]  ;;  %v371_v6 = vld [vmem:[%s6282_s13] sm:$0xff] }
  0x8e   : > { %v4398_v4 = vpack.c.bf16 %v376_v2, %v372_v1  ;;  %v375_v7 = vld [vmem:[%s6282_s13 + $0x20] sm:$0xff]  ;;  %v4430_v8 = vpack.c.bf16 %v378_v5, %v374_v3  ;;  %v373_v10 = vld [vmem:[%s6282_s13 + $0x10] sm:$0xff]  ;;  %v380_v12 = vld [vmem:[%s6282_s13 + $0x48] sm:$0xff]  ;;  %s6661_s16 = scalar_select %p362_p8, 7, 0 }
  0x8f   : > { %v4400_v9 = vpack.c.bf16 %v375_v7, %v371_v6  ;;  %v377_v11 = vld [vmem:[%s6282_s13 + $0x30] sm:$0xff]  ;;  %v384_v14 = vld [vmem:[%s6282_s13 + $0x68] sm:$0xff]  ;;  %v382_v15 = vld [vmem:[%s6282_s13 + $0x58] sm:$0xff]  ;;  %s6711_s11 = scalar_select %p362_p8, 6, 1 }
  0x90   : > { %4399 = vmatprep.subr.bf16.mxu0 %v4398_v4  ;;  %v4432_v13 = vpack.c.bf16 %v377_v11, %v373_v10  ;;  %v386_v16 = vld [vmem:[%s6282_s13 + $0x78] sm:$0xff]  ;;  %4431 = vmatprep.subr.bf16.mxu1 %v4430_v8  ;;  %v4402_v17 = vpack.c.bf16 %v384_v14, %v380_v12  ;;  %v379_v19 = vld [vmem:[%s6282_s13 + $0x40] sm:$0xff]  ;;  %v381_v21 = vld [vmem:[%s6282_s13 + $0x50] sm:$0xff]  ;;  %s4390_s27 = sshll.u32 %s6661_s16, 5  ;;  %s7765_s22 = smov (!%p357_p3, %s6087_s22), 3 }
  0x91   : > { %4401 = vmatpush1.bf16.msra.mxu0 %v4400_v9  ;;  %v4434_v18 = vpack.c.bf16 %v386_v16, %v382_v15  ;;  %v383_v20 = vld [vmem:[%s6282_s13 + $0x60] sm:$0xff]  ;;  %v385_v23 = vld [vmem:[%s6282_s13 + $0x70] sm:$0xff]  ;;  %v388_v24 = vld [vmem:[%s6282_s13 + $0x88] sm:$0xff]  ;;  %s782_s24 = scalar_lea.vmem [#allocation2], %s4390_s27  ;;  %s4391_s14 = sshll.u32 %s6711_s11, 5 }
  0x92   : > { %4433 = vmatpush1.bf16.msra.mxu1 %v4432_v13  ;;  %v4404_v22 = vpack.c.bf16 %v383_v20, %v379_v19  ;;  %v392_v25 = vld [vmem:[%s6282_s13 + $0xa8] sm:$0xff]  ;;  %4403 = vmatprep.subr.bf16.mxu0 %v4402_v17  ;;  %v4436_v26 = vpack.c.bf16 %v385_v23, %v381_v21  ;;  %v390_v28 = vld [vmem:[%s6282_s13 + $0x98] sm:$0xff]  ;;  %v387_v30 = vld [vmem:[%s6282_s13 + $0x80] sm:$0xff]  ;;  %s961_s8 = scalar_lea.vmem [#allocation2], %s4391_s14 }
  0x93   : > { %4435 = vmatprep.subr.bf16.mxu1 %v4434_v18  ;;  %v4406_v27 = vpack.c.bf16 %v392_v25, %v388_v24  ;;  %v394_v29 = vld [vmem:[%s6282_s13 + $0xb8] sm:$0xff]  ;;  %v391_v32 = vld [vmem:[%s6282_s13 + $0xa0] sm:$0xff]  ;;  %v389_v33 = vld [vmem:[%s6282_s13 + $0x90] sm:$0xff]  ;;  %s6758_s10 = scalar_select %p362_p8, 5, 2 }
  0x94   : > { %v4438_v31 = vpack.c.bf16 %v394_v29, %v390_v28  ;;  %v393_v34 = vld [vmem:[%s6282_s13 + $0xb0] sm:$0xff]  ;;  %v4408_v35 = vpack.c.bf16 %v391_v32, %v387_v30  ;;  %v396_v36 = vld [vmem:[%s6282_s13 + $0xc8] sm:$0xff]  ;;  %v398_v38 = vld [vmem:[%s6282_s13 + $0xd8] sm:$0xff]  ;;  %s6805_s15 = scalar_select %p362_p8, 4, 3 }
  0x95   : > { %4405 = vmatpush1.bf16.msra.mxu0 %v4404_v22  ;;  %v400_v37 = vld [vmem:[%s6282_s13 + $0xe8] sm:$0xff]  ;;  %v4440_v39 = vpack.c.bf16 %v393_v34, %v389_v33  ;;  %v402_v41 = vld [vmem:[%s6282_s13 + $0xf8] sm:$0xff]  ;;  %v395_v42 = vld [vmem:[%s6282_s13 + $0xc0] sm:$0xff]  ;;  %s4392_s12 = sshll.u32 %s6758_s10, 5 }
  0x96   : > { %4437 = vmatpush1.bf16.msra.mxu1 %v4436_v26  ;;  %4407 = vmatprep.subr.bf16.mxu0 %v4406_v27  ;;  %v4410_v40 = vpack.c.bf16 %v400_v37, %v396_v36  ;;  %v399_v43 = vld [vmem:[%s6282_s13 + $0xe0] sm:$0xff]  ;;  %v4442_v44 = vpack.c.bf16 %v402_v41, %v398_v38  ;;  %v397_v45 = vld [vmem:[%s6282_s13 + $0xd0] sm:$0xff]  ;;  %v404_v47 = vld [vmem:[%s6282_s13 + $0x108] sm:$0xff]  ;;  %s1141_s18 = scalar_lea.vmem [#allocation2], %s4392_s12  ;;  %s4393_s25 = sshll.u32 %s6805_s15, 5 }
  0x97   : > { %4439 = vmatprep.subr.bf16.mxu1 %v4438_v31  ;;  %v401_v46 = vld [vmem:[%s6282_s13 + $0xf0] sm:$0xff]  ;;  %v408_v48 = vld [vmem:[%s6282_s13 + $0x128] sm:$0xff]  ;;  %v406_v49 = vld [vmem:[%s6282_s13 + $0x118] sm:$0xff]  ;;  %v4412_v51 = vpack.c.bf16 %v399_v43, %v395_v42  ;;  %s1321_s21 = scalar_lea.vmem [#allocation2], %s4393_s25 }
  0x98   : > { %v410_v50 = vld [vmem:[%s6282_s13 + $0x138] sm:$0xff]  ;;  %v4444_v52 = vpack.c.bf16 %v401_v46, %v397_v45  ;;  %v4414_v53 = vpack.c.bf16 %v408_v48, %v404_v47  ;;  %v403_v54 = vld [vmem:[%s6282_s13 + $0x100] sm:$0xff]  ;;  %v405_v56 = vld [vmem:[%s6282_s13 + $0x110] sm:$0xff]  ;;  %s6899_s17 = scalar_select %p362_p8, 2, 5 }
  0x99   : > { %4409 = vmatpush1.bf16.msra.mxu0 %v4408_v35  ;;  %v407_v55 = vld [vmem:[%s6282_s13 + $0x120] sm:$0xff]  ;;  %v4446_v57 = vpack.c.bf16 %v410_v50, %v406_v49  ;;  %v409_v58 = vld [vmem:[%s6282_s13 + $0x130] sm:$0xff]  ;;  %v412_v59 = vld [vmem:[%s6282_s13 + $0x148] sm:$0xff] }
  0x9a   : > { %4441 = vmatpush1.bf16.msra.mxu1 %v4440_v39  ;;  %4411 = vmatprep.subr.bf16.mxu0 %v4410_v40  ;;  %v416_v60 = vld [vmem:[%s6282_s13 + $0x168] sm:$0xff]  ;;  %v414_v61 = vld [vmem:[%s6282_s13 + $0x158] sm:$0xff]  ;;  %v4416_v63 = vpack.c.bf16 %v407_v55, %v403_v54  ;;  %v4448_v1 = vpack.c.bf16 %v409_v58, %v405_v56  ;;  %v411_v3 = vld [vmem:[%s6282_s13 + $0x140] sm:$0xff]  ;;  %s4395_s29 = sshll.u32 %s6899_s17, 5 }
  0x9b   : > { %4443 = vmatprep.subr.bf16.mxu1 %v4442_v44  ;;  %v418_v62 = vld [vmem:[%s6282_s13 + $0x178] sm:$0xff]  ;;  %v4418_v2 = vpack.c.bf16 %v416_v60, %v412_v59  ;;  %v415_v4 = vld [vmem:[%s6282_s13 + $0x160] sm:$0xff]  ;;  %v413_v5 = vld [vmem:[%s6282_s13 + $0x150] sm:$0xff]  ;;  %s1681_s27 = scalar_lea.vmem [#allocation2], %s4395_s29 }
  0x9c   : > { %v4450_v6 = vpack.c.bf16 %v418_v62, %v414_v61  ;;  %v417_v7 = vld [vmem:[%s6282_s13 + $0x170] sm:$0xff]  ;;  %v420_v8 = vld [vmem:[%s6282_s13 + $0x188] sm:$0xff]  ;;  %v422_v10 = vld [vmem:[%s6282_s13 + $0x198] sm:$0xff]  ;;  %v4420_v12 = vpack.c.bf16 %v415_v4, %v411_v3 }
  0x9d   : > { %4413 = vmatpush1.bf16.msra.mxu0 %v4412_v51  ;;  %v424_v9 = vld [vmem:[%s6282_s13 + $0x1a8] sm:$0xff]  ;;  %v426_v11 = vld [vmem:[%s6282_s13 + $0x1b8] sm:$0xff]  ;;  %v4452_v13 = vpack.c.bf16 %v417_v7, %v413_v5  ;;  %v419_v15 = vld [vmem:[%s6282_s13 + $0x180] sm:$0xff] }
  0x9e   : > { %4445 = vmatpush1.bf16.msra.mxu1 %v4444_v52  ;;  %4415 = vmatprep.subr.bf16.mxu0 %v4414_v53  ;;  %v4422_v14 = vpack.c.bf16 %v424_v9, %v420_v8  ;;  %v423_v16 = vld [vmem:[%s6282_s13 + $0x1a0] sm:$0xff]  ;;  %v421_v17 = vld [vmem:[%s6282_s13 + $0x190] sm:$0xff]  ;;  %v4454_v18 = vpack.c.bf16 %v426_v11, %v422_v10  ;;  %v428_v20 = vld [vmem:[%s6282_s13 + $0x1c8] sm:$0xff] }
  0x9f   : > { %4447 = vmatprep.subr.bf16.mxu1 %v4446_v57  ;;  %v425_v19 = vld [vmem:[%s6282_s13 + $0x1b0] sm:$0xff]  ;;  %v432_v21 = vld [vmem:[%s6282_s13 + $0x1e8] sm:$0xff]  ;;  %v430_v22 = vld [vmem:[%s6282_s13 + $0x1d8] sm:$0xff]  ;;  %v4424_v24 = vpack.c.bf16 %v423_v16, %v419_v15 }
  0xa0   : > { %v434_v23 = vld [vmem:[%s6282_s13 + $0x1f8] sm:$0xff]  ;;  %v4456_v25 = vpack.c.bf16 %v425_v19, %v421_v17  ;;  %v4426_v26 = vpack.c.bf16 %v432_v21, %v428_v20  ;;  %v427_v27 = vld [vmem:[%s6282_s13 + $0x1c0] sm:$0xff]  ;;  %v429_v29 = vld [vmem:[%s6282_s13 + $0x1d0] sm:$0xff] }
  0xa1   : > { %4417 = vmatpush1.bf16.msra.mxu0 %v4416_v63  ;;  %v431_v28 = vld [vmem:[%s6282_s13 + $0x1e0] sm:$0xff]  ;;  %v4458_v30 = vpack.c.bf16 %v434_v23, %v430_v22  ;;  %v433_v31 = vld [vmem:[%s6282_s13 + $0x1f0] sm:$0xff]  ;;  %v716_v32 = vld [vmem:[%s6295_s7 + $0x8] sm:$0xff]  ;;  %s6852_s13 = scalar_select %p362_p8, 3, 4 }
  0xa2   : > { %4449 = vmatpush1.bf16.msra.mxu1 %v4448_v1  ;;  %4419 = vmatprep.subr.bf16.mxu0 %v4418_v2  ;;  %v720_v33 = vld [vmem:[%s6295_s7 + $0x28] sm:$0xff]  ;;  %v718_v34 = vld [vmem:[%s6295_s7 + $0x18] sm:$0xff]  ;;  %v4428_v36 = vpack.c.bf16 %v431_v28, %v427_v27  ;;  %v4460_v37 = vpack.c.bf16 %v433_v31, %v429_v29  ;;  %v715_v39 = vld [vmem:[%s6295_s7] sm:$0xff] }
  0xa3   : > { %4451 = vmatprep.subr.bf16.mxu1 %v4450_v6  ;;  %v722_v35 = vld [vmem:[%s6295_s7 + $0x38] sm:$0xff]  ;;  %v6373_v38 = vpack.c.bf16 %v720_v33, %v716_v32  ;;  %v719_v40 = vld [vmem:[%s6295_s7 + $0x20] sm:$0xff]  ;;  %v717_v42 = vld [vmem:[%s6295_s7 + $0x10] sm:$0xff]  ;;  %s4394_s6 = sshll.u32 %s6852_s13, 5 }
  0xa4   : > { %v6377_v41 = vpack.c.bf16 %v722_v35, %v718_v34  ;;  %v721_v43 = vld [vmem:[%s6295_s7 + $0x30] sm:$0xff]  ;;  %v724_v44 = vld [vmem:[%s6295_s7 + $0x48] sm:$0xff]  ;;  %v363_v46 = vld [vmem:[%s7694_s0] sm:$0xff]  ;;  %v6389_v49 = vpack.c.bf16 %v719_v40, %v715_v39  ;;  %s1501_s28 = scalar_lea.vmem [#allocation2], %s4394_s6  ;;  %s4354_s6 = sshll.u32 %s6661_s16, 3 }
  0xa5   : > { %4421 = vmatpush1.bf16.msra.mxu0 %v4420_v12  ;;  %v728_v45 = vld [vmem:[%s6295_s7 + $0x68] sm:$0xff]  ;;  %v726_v47 = vld [vmem:[%s6295_s7 + $0x58] sm:$0xff]  ;;  %v6392_v50 = vpack.c.bf16 %v721_v43, %v717_v42  ;;  %v723_v52 = vld [vmem:[%s6295_s7 + $0x40] sm:$0xff] }
  0xa6   : > { %4453 = vmatpush1.bf16.msra.mxu1 %v4452_v13  ;;  %4423 = vmatprep.subr.bf16.mxu0 %v4422_v14  ;;  %v730_v48 = vld [vmem:[%s6295_s7 + $0x78] sm:$0xff]  ;;  %v6394_v51 = vpack.c.bf16 %v728_v45, %v724_v44  ;;  %v727_v53 = vld [vmem:[%s6295_s7 + $0x60] sm:$0xff]  ;;  %v725_v54 = vld [vmem:[%s6295_s7 + $0x50] sm:$0xff] }
  0xa7   : > { %4455 = vmatprep.subr.bf16.mxu1 %v4454_v18  ;;  %v6399_v55 = vpack.c.bf16 %v730_v48, %v726_v47  ;;  %v729_v56 = vld [vmem:[%s6295_s7 + $0x70] sm:$0xff]  ;;  %v732_v57 = vld [vmem:[%s6295_s7 + $0x88] sm:$0xff]  ;;  %v734_v60 = vld [vmem:[%s6295_s7 + $0x98] sm:$0xff]  ;;  %v6412_v62 = vpack.c.bf16 %v727_v53, %v723_v52 }
  0xa8   : > { %v736_v58 = vld [vmem:[%s6295_s7 + $0xa8] sm:$0xff]  ;;  %v738_v61 = vld [vmem:[%s6295_s7 + $0xb8] sm:$0xff]  ;;  %v6416_v63 = vpack.c.bf16 %v729_v56, %v725_v54  ;;  %v731_v2 = vld [vmem:[%s6295_s7 + $0x80] sm:$0xff] }
  0xa9   : > { %4425 = vmatpush1.bf16.msra.mxu0 %v4424_v24  ;;  %v364_v59 = vld [vmem:[%s7694_s0 + $0x8] sm:$0xff]  ;;  %v6418_v1 = vpack.c.bf16 %v736_v58, %v732_v57  ;;  %v735_v3 = vld [vmem:[%s6295_s7 + $0xa0] sm:$0xff]  ;;  %v733_v4 = vld [vmem:[%s6295_s7 + $0x90] sm:$0xff]  ;;  %v6424_v5 = vpack.c.bf16 %v738_v61, %v734_v60 }
  0xaa   : > { %4457 = vmatpush1.bf16.msra.mxu1 %v4456_v25  ;;  %4427 = vmatprep.subr.bf16.mxu0 %v4426_v26  ;;  %v737_v6 = vld [vmem:[%s6295_s7 + $0xb0] sm:$0xff]  ;;  %v740_v7 = vld [vmem:[%s6295_s7 + $0xc8] sm:$0xff]  ;;  %v742_v10 = vld [vmem:[%s6295_s7 + $0xd8] sm:$0xff]  ;;  %v6437_v12 = vpack.c.bf16 %v735_v3, %v731_v2 }
  0xab   : > { %4459 = vmatprep.subr.bf16.mxu1 %v4458_v30  ;;  %v744_v8 = vld [vmem:[%s6295_s7 + $0xe8] sm:$0xff]  ;;  %v365_v9 = vld [vmem:[%s7694_s0 + $0x10] sm:$0xff]  ;;  %v746_v11 = vld [vmem:[%s6295_s7 + $0xf8] sm:$0xff]  ;;  %v6441_v13 = vpack.c.bf16 %v737_v6, %v733_v4 }
  0xac   : > { %v6443_v14 = vpack.c.bf16 %v744_v8, %v740_v7  ;;  %v739_v15 = vld [vmem:[%s6295_s7 + $0xc0] sm:$0xff]  ;;  %v741_v17 = vld [vmem:[%s6295_s7 + $0xd0] sm:$0xff]  ;;  %v6449_v18 = vpack.c.bf16 %v746_v11, %v742_v10  ;;  %v748_v20 = vld [vmem:[%s6295_s7 + $0x108] sm:$0xff] }
  0xad   : > { %4429 = vmatpush1.bf16.msra.mxu0 %v4428_v36  ;;  %v743_v16 = vld [vmem:[%s6295_s7 + $0xe0] sm:$0xff]  ;;  %v745_v19 = vld [vmem:[%s6295_s7 + $0xf0] sm:$0xff]  ;;  %v752_v21 = vld [vmem:[%s6295_s7 + $0x128] sm:$0xff] }
  0xae   : > { %4461 = vmatpush1.bf16.msra.mxu1 %v4460_v37  ;;  %4463 = vmatprep.subr.bf16.mxu0 %v6373_v38  ;;  %v366_v22 = vld [vmem:[%s7694_s0 + $0x18] sm:$0xff]  ;;  %v6462_v25 = vpack.c.bf16 %v743_v16, %v739_v15  ;;  %v6466_v26 = vpack.c.bf16 %v745_v19, %v741_v17  ;;  %v6468_v27 = vpack.c.bf16 %v752_v21, %v748_v20  ;;  %v747_v28 = vld [vmem:[%s6295_s7 + $0x100] sm:$0xff]  ;;  %v749_v30 = vld [vmem:[%s6295_s7 + $0x110] sm:$0xff] }
  0xaf   : > { %4495 = vmatprep.subr.bf16.mxu1 %v6377_v41  ;;  %v750_v23 = vld [vmem:[%s6295_s7 + $0x118] sm:$0xff]  ;;  %v751_v29 = vld [vmem:[%s6295_s7 + $0x120] sm:$0xff]  ;;  %v753_v32 = vld [vmem:[%s6295_s7 + $0x130] sm:$0xff] }
  0xb0   : > { %522 = vmatmul.mubr.f32.vlgmr.msra.gmra.mrb[0].mxu0 %v363_v46  ;;  %v754_v24 = vld [vmem:[%s6295_s7 + $0x138] sm:$0xff]  ;;  %v756_v33 = vld [vmem:[%s6295_s7 + $0x148] sm:$0xff]  ;;  %v367_v35 = vld [vmem:[%s7694_s0 + $0x20] sm:$0xff]  ;;  %v6487_v39 = vpack.c.bf16 %v751_v29, %v747_v28  ;;  %v6491_v40 = vpack.c.bf16 %v753_v32, %v749_v30  ;;  %v437_v29 = vlaneseq }
  0xb1   : > { %635 = vmatmul.mubr.f32.vlgmr.msra.gmra.mrb[0].mxu1 %v363_v46  ;;  %527 = vmatprep.mubr.f32.mxu0 %v7703_v0  ;;  %v6474_v31 = vpack.c.bf16 %v754_v24, %v750_v23  ;;  %v760_v34 = vld [vmem:[%s6295_s7 + $0x168] sm:$0xff]  ;;  %v758_v36 = vld [vmem:[%s6295_s7 + $0x158] sm:$0xff]  ;;  %v755_v43 = vld [vmem:[%s6295_s7 + $0x140] sm:$0xff] }
  0xb2   : > { %640 = vmatprep.mubr.f32.mxu1 %v7703_v0  ;;  %4465 = vmatpush1.bf16.msra.mxu0 %v6389_v49  ;;  %v762_v37 = vld [vmem:[%s6295_s7 + $0x178] sm:$0xff]  ;;  %v6493_v42 = vpack.c.bf16 %v760_v34, %v756_v33  ;;  %v759_v44 = vld [vmem:[%s6295_s7 + $0x160] sm:$0xff]  ;;  %v757_v45 = vld [vmem:[%s6295_s7 + $0x150] sm:$0xff]  ;;  %v6607_v30 = vshrl.u32 %v437_v29, 7 }
  0xb3   : > { %4497 = vmatpush1.bf16.msra.mxu1 %v6392_v50  ;;  %4467 = vmatprep.subr.bf16.mxu0 %v6394_v51  ;;  %v6499_v46 = vpack.c.bf16 %v762_v37, %v758_v36  ;;  %v761_v47 = vld [vmem:[%s6295_s7 + $0x170] sm:$0xff]  ;;  %v764_v48 = vld [vmem:[%s6295_s7 + $0x188] sm:$0xff]  ;;  %v766_v54 = vld [vmem:[%s6295_s7 + $0x198] sm:$0xff]  ;;  %v6512_v57 = vpack.c.bf16 %v759_v44, %v755_v43 }
  0xb4   : > { %528 = vmatmul.mubr.f32.gmra.mrb[2].mxu0 %v364_v59  ;;  %4499 = vmatprep.subr.bf16.mxu1 %v6399_v55  ;;  %v768_v52 = vld [vmem:[%s6295_s7 + $0x1a8] sm:$0xff]  ;;  %v770_v56 = vld [vmem:[%s6295_s7 + $0x1b8] sm:$0xff]  ;;  %v6516_v58 = vpack.c.bf16 %v761_v47, %v757_v45  ;;  %v763_v60 = vld [vmem:[%s6295_s7 + $0x180] sm:$0xff]  ;;  %v439_v32 = vsub.s32 0, %v6607_v30  ;;  %v443_v34 = vsub.s32 1, %v6607_v30  ;;  %v451_v36 = vsub.s32 3, %v6607_v30 }
  0xb5   : > { %641 = vmatmul.mubr.f32.gmra.mrb[2].mxu1 %v364_v59  ;;  %533 = vmatprep.mubr.f32.mxu0 %v7703_v0  ;;  %v368_v53 = vld [vmem:[%s7694_s0 + $0x28] sm:$0xff]  ;;  %v6518_v59 = vpack.c.bf16 %v768_v52, %v764_v48  ;;  %v767_v61 = vld [vmem:[%s6295_s7 + $0x1a0] sm:$0xff]  ;;  %v765_v2 = vld [vmem:[%s6295_s7 + $0x190] sm:$0xff]  ;;  %v6524_v3 = vpack.c.bf16 %v770_v56, %v766_v54 }
  0xb6   : > { %646 = vmatprep.mubr.f32.mxu1 %v7703_v0  ;;  %4469 = vmatpush1.bf16.msra.mxu0 %v6412_v62  ;;  %v769_v4 = vld [vmem:[%s6295_s7 + $0x1b0] sm:$0xff]  ;;  %v772_v6 = vld [vmem:[%s6295_s7 + $0x1c8] sm:$0xff]  ;;  %v778_v10 = vld [vmem:[%s6295_s7 + $0x1f8] sm:$0xff]  ;;  %v6537_v11 = vpack.c.bf16 %v767_v61, %v763_v60 }
  0xb7   : > { %4501 = vmatpush1.bf16.msra.mxu1 %v6416_v63  ;;  %4471 = vmatprep.subr.bf16.mxu0 %v6418_v1  ;;  %v776_v7 = vld [vmem:[%s6295_s7 + $0x1e8] sm:$0xff]  ;;  %v369_v8 = vld [vmem:[%s7694_s0 + $0x30] sm:$0xff]  ;;  %v6541_v15 = vpack.c.bf16 %v769_v4, %v765_v2  ;;  %v771_v17 = vld [vmem:[%s6295_s7 + $0x1c0] sm:$0xff] }
  0xb8   : > { %534 = vmatmul.mubr.f32.gmra.mrb[4].mxu0 %v365_v9  ;;  %4503 = vmatprep.subr.bf16.mxu1 %v6424_v5  ;;  %v6543_v16 = vpack.c.bf16 %v776_v7, %v772_v6  ;;  %v775_v19 = vld [vmem:[%s6295_s7 + $0x1e0] sm:$0xff]  ;;  %v773_v21 = vld [vmem:[%s6295_s7 + $0x1d0] sm:$0xff]  ;;  %v370_v23 = vld [vmem:[%s7694_s0 + $0x38] sm:$0xff] }
  0xb9   : > { %647 = vmatmul.mubr.f32.gmra.mrb[4].mxu1 %v365_v9  ;;  %539 = vmatprep.mubr.f32.mxu0 %v7703_v0  ;;  %v774_v9 = vld [vmem:[%s6295_s7 + $0x1d8] sm:$0xff]  ;;  %v6558_v24 = vpack.c.bf16 %v775_v19, %v771_v17  ;;  %v435_v33 = vld [vmem:[%s6297_s9] sm:$0xf] }
  0xba   : > { %652 = vmatprep.mubr.f32.mxu1 %v7703_v0  ;;  %4473 = vmatpush1.bf16.msra.mxu0 %v6437_v12  ;;  %v6548_v20 = vpack.c.bf16 %v778_v10, %v774_v9  ;;  %v6616_v37 = vrot.slane %v435_v33, %v439_v32  ;;  %v6620_v43 = vrot.slane %v435_v33, %v443_v34 }
  0xbb   : > { %4505 = vmatpush1.bf16.msra.mxu1 %v6441_v13  ;;  %4475 = vmatprep.subr.bf16.mxu0 %v6443_v14  ;;  %v6628_v45 = vrot.slane %v435_v33, %v451_v36 }
  0xbc   : > { %540 = vmatmul.mubr.f32.gmra.mrb[6].mxu0 %v366_v22  ;;  %4507 = vmatprep.subr.bf16.mxu1 %v6449_v18 }
  0xbd   : > { %653 = vmatmul.mubr.f32.gmra.mrb[6].mxu1 %v366_v22  ;;  %545 = vmatprep.mubr.f32.mxu0 %v7703_v0  ;;  %v777_v22 = vld [vmem:[%s6295_s7 + $0x1f0] sm:$0xff] }
  0xbe   : > { %658 = vmatprep.mubr.f32.mxu1 %v7703_v0  ;;  %4477 = vmatpush1.bf16.msra.mxu0 %v6462_v25  ;;  %v6562_v28 = vpack.c.bf16 %v777_v22, %v773_v21 }
  0xbf   : > { %4509 = vmatpush1.bf16.msra.mxu1 %v6466_v26  ;;  %4479 = vmatprep.subr.bf16.mxu0 %v6468_v27 }
  0xc0   : > { %546 = vmatmul.mubr.f32.gmra.mrb[8].mxu0 %v367_v35  ;;  %4511 = vmatprep.subr.bf16.mxu1 %v6474_v31 }
  0xc1   : > { %659 = vmatmul.mubr.f32.gmra.mrb[8].mxu1 %v367_v35  ;;  %551 = vmatprep.mubr.f32.mxu0 %v7703_v0  ;;  %v447_v35 = vsub.s32 2, %v6607_v30 }
  0xc2   : > { %664 = vmatprep.mubr.f32.mxu1 %v7703_v0  ;;  %4481 = vmatpush1.bf16.msra.mxu0 %v6487_v39 }
  0xc3   : > { %4513 = vmatpush1.bf16.msra.mxu1 %v6491_v40  ;;  %4483 = vmatprep.subr.bf16.mxu0 %v6493_v42  ;;  %v6624_v44 = vrot.slane %v435_v33, %v447_v35 }
  0xc4   : > { %552 = vmatmul.mubr.f32.gmra.mrb[10].mxu0 %v368_v53  ;;  %4515 = vmatprep.subr.bf16.mxu1 %v6499_v46 }
  0xc5   : > { %665 = vmatmul.mubr.f32.gmra.mrb[10].mxu1 %v368_v53  ;;  %557 = vmatprep.mubr.f32.mxu0 %v7703_v0 }
  0xc6   : > { %670 = vmatprep.mubr.f32.mxu1 %v7703_v0  ;;  %4485 = vmatpush1.bf16.msra.mxu0 %v6512_v57 }
  0xc7   : > { %4517 = vmatpush1.bf16.msra.mxu1 %v6516_v58  ;;  %4487 = vmatprep.subr.bf16.mxu0 %v6518_v59 }
  0xc8   : > { %558 = vmatmul.mubr.f32.gmra.mrb[12].mxu0 %v369_v8  ;;  %4519 = vmatprep.subr.bf16.mxu1 %v6524_v3 }
  0xc9   : > { %671 = vmatmul.mubr.f32.gmra.mrb[12].mxu1 %v369_v8  ;;  %563 = vmatprep.mubr.f32.mxu0 %v7703_v0 }
  0xca   : > { %676 = vmatprep.mubr.f32.mxu1 %v7703_v0  ;;  %4489 = vmatpush1.bf16.msra.mxu0 %v6537_v11 }
  0xcb   : > { %4521 = vmatpush1.bf16.msra.mxu1 %v6541_v15  ;;  %4491 = vmatprep.subr.bf16.mxu0 %v6543_v16 }
  0xcc   : > { %564 = vmatmul.mubr.f32.gmra.mrb[14].mxu0 %v370_v23  ;;  %4523 = vmatprep.subr.bf16.mxu1 %v6548_v20 }
  0xcd   : > { %677 = vmatmul.mubr.f32.gmra.mrb[14].mxu1 %v370_v23  ;;  %851 = vmatprep.mubr.f32.mxu0 %v7703_v0 }
  0xce   : > { %4493 = vmatpush1.bf16.msra.mxu0 %v6558_v24  ;;  %922 = vmatprep.mubr.f32.mxu1 %v7703_v0 }
  0xcf   : > { %4525 = vmatpush1.bf16.msra.mxu1 %v6562_v28  ;;  %4527 = vmatprep.subr.bf16.mxu0 %v6373_v38 }
  0xd0   : > { %4559 = vmatprep.subr.bf16.mxu1 %v6377_v41 }
  0xd1   : > { %852 = vmatmul.mubr.f32.vlgmr.msra.gmra.mrb[16].mxu0 %v7703_v0 }
  0xd2   : > { %923 = vmatmul.mubr.f32.vlgmr.msra.gmra.mrb[16].mxu1 %v7703_v0  ;;  %4529 = vmatpush1.bf16.msra.mxu0 %v6389_v49 }
  0xd3   : > { %4561 = vmatpush1.bf16.msra.mxu1 %v6392_v50  ;;  %4531 = vmatprep.subr.bf16.mxu0 %v6394_v51 }
  0xd4   : > { %4563 = vmatprep.subr.bf16.mxu1 %v6399_v55  ;;  %1030 = vmatprep.mubr.f32.mxu0 %v7703_v0 }
  0xd5   : > { %1101 = vmatprep.mubr.f32.mxu1 %v7703_v0 }
  0xd6   : > { %4533 = vmatpush1.bf16.msra.mxu0 %v6412_v62 }
  0xd7   : > { %4565 = vmatpush1.bf16.msra.mxu1 %v6416_v63  ;;  %4535 = vmatprep.subr.bf16.mxu0 %v6418_v1 }
  0xd8   : > { %4567 = vmatprep.subr.bf16.mxu1 %v6424_v5 }
  0xda   : > { %4537 = vmatpush1.bf16.msra.mxu0 %v6437_v12 }
  0xdb   : > { %4569 = vmatpush1.bf16.msra.mxu1 %v6441_v13  ;;  %4539 = vmatprep.subr.bf16.mxu0 %v6443_v14 }
  0xdc   : > { %4571 = vmatprep.subr.bf16.mxu1 %v6449_v18 }
  0xde   : > { %4541 = vmatpush1.bf16.msra.mxu0 %v6462_v25 }
  0xdf   : > { %4573 = vmatpush1.bf16.msra.mxu1 %v6466_v26  ;;  %4543 = vmatprep.subr.bf16.mxu0 %v6468_v27 }
  0xe0   : > { %4575 = vmatprep.subr.bf16.mxu1 %v6474_v31 }
  0xe2   : > { %4545 = vmatpush1.bf16.msra.mxu0 %v6487_v39 }
  0xe3   : > { %4577 = vmatpush1.bf16.msra.mxu1 %v6491_v40  ;;  %4547 = vmatprep.subr.bf16.mxu0 %v6493_v42 }
  0xe4   : > { %4579 = vmatprep.subr.bf16.mxu1 %v6499_v46 }
  0xe6   : > { %4549 = vmatpush1.bf16.msra.mxu0 %v6512_v57 }
  0xe7   : > { %4581 = vmatpush1.bf16.msra.mxu1 %v6516_v58  ;;  %4551 = vmatprep.subr.bf16.mxu0 %v6518_v59 }
  0xe8   : > { %4583 = vmatprep.subr.bf16.mxu1 %v6524_v3 }
  0xea   : > { %4553 = vmatpush1.bf16.msra.mxu0 %v6537_v11 }
  0xeb   : > { %4585 = vmatpush1.bf16.msra.mxu1 %v6541_v15  ;;  %4555 = vmatprep.subr.bf16.mxu0 %v6543_v16 }
  0xec   : > { %4587 = vmatprep.subr.bf16.mxu1 %v6548_v20 }
  0xee   : > { %4557 = vmatpush1.bf16.msra.mxu0 %v6558_v24 }
  0xef   : > { %4589 = vmatpush1.bf16.msra.mxu1 %v6562_v28  ;;  %4591 = vmatprep.subr.bf16.mxu0 %v6373_v38 }
  0xf0   : > { %4623 = vmatprep.subr.bf16.mxu1 %v6377_v41 }
 0x183   : > { %v523_v47 = vpop.f32.mrb[0].mxu0 }
 0x184   : > { %v524_v48 = vadd.f32 %v523_v47, %v6616_v37  ;;  %v525_v52 = vpop.f32.mrb[1].mxu0  ;;  %v636_v53 = vpop.f32.mrb[0].mxu1 }
 0x185   : > { %v526_v54 = vadd.f32 %v525_v52, %v6620_v43  ;;  %v637_v56 = vadd.f32 %v636_v53, %v6624_v44  ;;  %v638_v60 = vpop.f32.mrb[1].mxu1 }
 0x186   : > { %683 = vst [vmem:[#allocation2] sm:$0xff] %v524_v48  ;;  %v639_v61 = vadd.f32 %v638_v60, %v6628_v45 }
 0x187   : > { %684 = vst [vmem:[#allocation2 + $0x8] sm:$0xff] %v526_v54  ;;  %v529_v2 = vpop.f32.mrb[2].mxu0  ;;  %685 = vst [vmem:[#allocation2 + $0x10] sm:$0xff] %v637_v56 }
 0x188   : > { %v530_v4 = vadd.f32 %v529_v2, %v6616_v37  ;;  %v531_v6 = vpop.f32.mrb[3].mxu0  ;;  %686 = vst [vmem:[#allocation2 + $0x18] sm:$0xff] %v639_v61  ;;  %v642_v7 = vpop.f32.mrb[2].mxu1 }
 0x189   : > { %v532_v8 = vadd.f32 %v531_v6, %v6620_v43  ;;  %v643_v9 = vadd.f32 %v642_v7, %v6624_v44  ;;  %v644_v10 = vpop.f32.mrb[3].mxu1 }
 0x18a   : > { %687 = vst [vmem:[#allocation2 + $0x20] sm:$0xff] %v530_v4  ;;  %v645_v17 = vadd.f32 %v644_v10, %v6628_v45 }
 0x18b   : > { %688 = vst [vmem:[#allocation2 + $0x28] sm:$0xff] %v532_v8  ;;  %v535_v19 = vpop.f32.mrb[4].mxu0  ;;  %689 = vst [vmem:[#allocation2 + $0x30] sm:$0xff] %v643_v9 }
 0x18c   : > { %v536_v21 = vadd.f32 %v535_v19, %v6616_v37  ;;  %v537_v22 = vpop.f32.mrb[5].mxu0  ;;  %690 = vst [vmem:[#allocation2 + $0x38] sm:$0xff] %v645_v17  ;;  %v648_v23 = vpop.f32.mrb[4].mxu1 }
 0x18d   : > { %v538_v29 = vadd.f32 %v537_v22, %v6620_v43  ;;  %v649_v33 = vadd.f32 %v648_v23, %v6624_v44  ;;  %v650_v47 = vpop.f32.mrb[5].mxu1 }
 0x18e   : > { %691 = vst [vmem:[#allocation2 + $0x40] sm:$0xff] %v536_v21  ;;  %v651_v48 = vadd.f32 %v650_v47, %v6628_v45 }
 0x18f   : > { %692 = vst [vmem:[#allocation2 + $0x48] sm:$0xff] %v538_v29  ;;  %v541_v52 = vpop.f32.mrb[6].mxu0  ;;  %693 = vst [vmem:[#allocation2 + $0x50] sm:$0xff] %v649_v33 }
 0x190   : > { %v542_v53 = vadd.f32 %v541_v52, %v6616_v37  ;;  %v543_v54 = vpop.f32.mrb[7].mxu0  ;;  %694 = vst [vmem:[#allocation2 + $0x58] sm:$0xff] %v651_v48  ;;  %v654_v56 = vpop.f32.mrb[6].mxu1 }
 0x191   : > { %v544_v60 = vadd.f32 %v543_v54, %v6620_v43  ;;  %v655_v61 = vadd.f32 %v654_v56, %v6624_v44  ;;  %v656_v2 = vpop.f32.mrb[7].mxu1 }
 0x192   : > { %695 = vst [vmem:[#allocation2 + $0x60] sm:$0xff] %v542_v53  ;;  %v657_v4 = vadd.f32 %v656_v2, %v6628_v45 }
 0x193   : > { %696 = vst [vmem:[#allocation2 + $0x68] sm:$0xff] %v544_v60  ;;  %v547_v6 = vpop.f32.mrb[8].mxu0  ;;  %697 = vst [vmem:[#allocation2 + $0x70] sm:$0xff] %v655_v61 }
 0x194   : > { %v548_v7 = vadd.f32 %v547_v6, %v6616_v37  ;;  %v549_v8 = vpop.f32.mrb[9].mxu0  ;;  %698 = vst [vmem:[#allocation2 + $0x78] sm:$0xff] %v657_v4  ;;  %v660_v9 = vpop.f32.mrb[8].mxu1 }
 0x195   : > { %v550_v10 = vadd.f32 %v549_v8, %v6620_v43  ;;  %v661_v17 = vadd.f32 %v660_v9, %v6624_v44  ;;  %v662_v19 = vpop.f32.mrb[9].mxu1 }
 0x196   : > { %699 = vst [vmem:[#allocation2 + $0x80] sm:$0xff] %v548_v7  ;;  %v663_v21 = vadd.f32 %v662_v19, %v6628_v45 }
 0x197   : > { %700 = vst [vmem:[#allocation2 + $0x88] sm:$0xff] %v550_v10  ;;  %v553_v22 = vpop.f32.mrb[10].mxu0  ;;  %701 = vst [vmem:[#allocation2 + $0x90] sm:$0xff] %v661_v17 }
 0x198   : > { %v554_v23 = vadd.f32 %v553_v22, %v6616_v37  ;;  %v555_v29 = vpop.f32.mrb[11].mxu0  ;;  %702 = vst [vmem:[#allocation2 + $0x98] sm:$0xff] %v663_v21  ;;  %v666_v33 = vpop.f32.mrb[10].mxu1 }
 0x199   : > { %v556_v47 = vadd.f32 %v555_v29, %v6620_v43  ;;  %v667_v48 = vadd.f32 %v666_v33, %v6624_v44  ;;  %v668_v52 = vpop.f32.mrb[11].mxu1 }
 0x19a   : > { %703 = vst [vmem:[#allocation2 + $0xa0] sm:$0xff] %v554_v23  ;;  %v669_v53 = vadd.f32 %v668_v52, %v6628_v45 }
 0x19b   : > { %704 = vst [vmem:[#allocation2 + $0xa8] sm:$0xff] %v556_v47  ;;  %705 = vst [vmem:[#allocation2 + $0xb0] sm:$0xff] %v667_v48  ;;  %v559_v54 = vpop.f32.mrb[12].mxu0 }
 0x19c   : > { %706 = vst [vmem:[#allocation2 + $0xb8] sm:$0xff] %v669_v53  ;;  %v560_v56 = vadd.f32 %v559_v54, %v6616_v37  ;;  %v672_v60 = vpop.f32.mrb[12].mxu1  ;;  %v561_v61 = vpop.f32.mrb[13].mxu0 }
 0x19d   : > { %v673_v2 = vadd.f32 %v672_v60, %v6624_v44  ;;  %v562_v4 = vadd.f32 %v561_v61, %v6620_v43  ;;  %v674_v6 = vpop.f32.mrb[13].mxu1 }
 0x19e   : > { %707 = vst [vmem:[#allocation2 + $0xc0] sm:$0xff] %v560_v56  ;;  %v675_v7 = vadd.f32 %v674_v6, %v6628_v45 }
 0x19f   : > { %709 = vst [vmem:[#allocation2 + $0xd0] sm:$0xff] %v673_v2  ;;  %708 = vst [vmem:[#allocation2 + $0xc8] sm:$0xff] %v562_v4  ;;  %v565_v8 = vpop.f32.mrb[14].mxu0 }
 0x1a0   : > { %710 = vst [vmem:[#allocation2 + $0xd8] sm:$0xff] %v675_v7  ;;  %v566_v9 = vadd.f32 %v565_v8, %v6616_v37  ;;  %v678_v10 = vpop.f32.mrb[14].mxu1  ;;  %v567_v17 = vpop.f32.mrb[15].mxu0 }
 0x1a1   : > { %v679_v19 = vadd.f32 %v678_v10, %v6624_v44  ;;  %v568_v21 = vadd.f32 %v567_v17, %v6620_v43  ;;  %v680_v22 = vpop.f32.mrb[15].mxu1 }
 0x1a2   : > { %711 = vst [vmem:[#allocation2 + $0xe0] sm:$0xff] %v566_v9  ;;  %v681_v23 = vadd.f32 %v680_v22, %v6628_v45 }
 0x1a3   : > { %713 = vst [vmem:[#allocation2 + $0xf0] sm:$0xff] %v679_v19  ;;  %712 = vst [vmem:[#allocation2 + $0xe8] sm:$0xff] %v568_v21 }
 0x1a4   : > { %714 = vst [vmem:[#allocation2 + $0xf8] sm:$0xff] %v681_v23  ;;  %v853_v29 = vpop.f32.mrb[16].mxu0 }
 0x1a5   : > { %v855_v33 = vpop.f32.mrb[17].mxu0  ;;  %v924_v47 = vpop.f32.mrb[16].mxu1 }
 0x1a6   : > { %v926_v48 = vpop.f32.mrb[17].mxu1 }
 0x1ab   : > { %v783_v37 = vld [vmem:[%s782_s24] sm:$0xff]  ;;  %v784_v53 = vld [vmem:[%s782_s24 + $0x8] sm:$0xff]  ;;  %v786_v43 = vld [vmem:[%s782_s24 + $0x18] sm:$0xff] }
 0x1ac   : > { %v929_v52 = vadd.f32 %v853_v29, %v783_v37  ;;  %v930_v54 = vadd.f32 %v855_v33, %v784_v53  ;;  %v932_v60 = vadd.f32 %v926_v48, %v786_v43  ;;  %v785_v45 = vld [vmem:[%s782_s24 + $0x10] sm:$0xff]  ;;  %v962_v37 = vld [vmem:[%s961_s8] sm:$0xff]  ;;  %s6948_s24 = scalar_select %p362_p8, 1, 6 }
 0x1ad   : > { %v931_v2 = vadd.f32 %v924_v47, %v785_v45 }
 0x1ae   : > { %v4248_v44 = vmul.f32 -1.442695, %v929_v52  ;;  %v4249_v56 = vmul.f32 -1.442695, %v930_v54  ;;  %v4250_v61 = vmul.f32 -1.442695, %v932_v60 }
 0x1af   : > { %s4396_s14 = sshll.u32 %s6948_s24, 5 }
 0x1b0   : > { %5609 = vpow2.f32 %v4248_v44  ;;  %v963_v44 = vld [vmem:[%s961_s8 + $0x8] sm:$0xff] }
 0x1b1   : > { %5611 = vpow2.f32 %v4249_v56 }
 0x1b2   : > { %5613 = vpow2.f32 %v4250_v61 }
 0x1b3   : > { %5615 = vtanh.f32 %v931_v2  ;;  %v965_v2 = vld [vmem:[%s961_s8 + $0x18] sm:$0xff] }
 0x1ba   : > { %v5610_v4 = vpop.eup %5609 }
 0x1bb   : > { %v5612_v6 = vpop.eup %5611  ;;  %v936_v7 = vadd.f32 1.0, %v5610_v4 }
 0x1bc   : > { %v942_v8 = vadd.f32 1.0, %v5612_v6  ;;  %v5614_v9 = vpop.eup %5613  ;;  %v964_v6 = vld [vmem:[%s961_s8 + $0x10] sm:$0xff]  ;;  %s1861_s8 = scalar_lea.vmem [#allocation2], %s4396_s14 }
 0x1bd   : > { %5617 = vrcp.f32 %v936_v7  ;;  %v5616_v10 = vpop.eup %5615  ;;  %v949_v22 = vadd.f32 1.0, %v5614_v9 }
 0x1be   : > { %5619 = vrcp.f32 %v942_v8 }
 0x1bf   : > { %5621 = vrcp.f32 %v949_v22 }
 0x1c7   : > { %v5618_v17 = vpop.eup %5617 }
 0x1c8   : > { %v5620_v19 = vpop.eup %5619  ;;  %v953_v21 = vmul.f32 %v5618_v17, %v5616_v10 }
 0x1c9   : > { %v952_v23 = vmul.f32 0.0, %v5620_v19  ;;  %v5622_v33 = vpop.eup %5621 }
 0x1cb   : > { %v6668_v29 = vadd.f32 %v953_v21, %v952_v23 }
 0x1cd   : > { %5623 = vtanh.f32 %v6668_v29 }
 0x1d7   : > { %v5624_v47 = vpop.eup %5623 }
 0x1d8   : > { %v6671_v48 = vmul.f32 %v5624_v47, %v5622_v33 }
 0x1da   : > { %1031 = vmatmul.mubr.f32.vlgmr.msra.gmra.mrb[18].mxu0 %v6671_v48  ;;  %1102 = vmatmul.mubr.f32.vlgmr.msra.gmra.mrb[18].mxu1 %v6671_v48 }
 0x1db   : > { %4593 = vmatpush1.bf16.msra.mxu0 %v6389_v49  ;;  %4625 = vmatpush1.bf16.msra.mxu1 %v6392_v50 }
 0x1dc   : > { %4595 = vmatprep.subr.bf16.mxu0 %v6394_v51  ;;  %4627 = vmatprep.subr.bf16.mxu1 %v6399_v55 }
 0x1dd   : > { %1210 = vmatprep.mubr.f32.mxu0 %v7703_v0  ;;  %1281 = vmatprep.mubr.f32.mxu1 %v7703_v0 }
 0x1df   : > { %4597 = vmatpush1.bf16.msra.mxu0 %v6412_v62  ;;  %4629 = vmatpush1.bf16.msra.mxu1 %v6416_v63 }
 0x1e0   : > { %4599 = vmatprep.subr.bf16.mxu0 %v6418_v1  ;;  %4631 = vmatprep.subr.bf16.mxu1 %v6424_v5 }
 0x1e3   : > { %4601 = vmatpush1.bf16.msra.mxu0 %v6437_v12  ;;  %4633 = vmatpush1.bf16.msra.mxu1 %v6441_v13 }
 0x1e4   : > { %4603 = vmatprep.subr.bf16.mxu0 %v6443_v14  ;;  %4635 = vmatprep.subr.bf16.mxu1 %v6449_v18 }
 0x1e7   : > { %4605 = vmatpush1.bf16.msra.mxu0 %v6462_v25  ;;  %4637 = vmatpush1.bf16.msra.mxu1 %v6466_v26 }
 0x1e8   : > { %4607 = vmatprep.subr.bf16.mxu0 %v6468_v27  ;;  %4639 = vmatprep.subr.bf16.mxu1 %v6474_v31 }
 0x1eb   : > { %4609 = vmatpush1.bf16.msra.mxu0 %v6487_v39  ;;  %4641 = vmatpush1.bf16.msra.mxu1 %v6491_v40 }
 0x1ec   : > { %4611 = vmatprep.subr.bf16.mxu0 %v6493_v42  ;;  %4643 = vmatprep.subr.bf16.mxu1 %v6499_v46 }
 0x1ef   : > { %4613 = vmatpush1.bf16.msra.mxu0 %v6512_v57  ;;  %4645 = vmatpush1.bf16.msra.mxu1 %v6516_v58 }
 0x1f0   : > { %4615 = vmatprep.subr.bf16.mxu0 %v6518_v59  ;;  %4647 = vmatprep.subr.bf16.mxu1 %v6524_v3 }
 0x1f3   : > { %4617 = vmatpush1.bf16.msra.mxu0 %v6537_v11  ;;  %4649 = vmatpush1.bf16.msra.mxu1 %v6541_v15 }
 0x1f4   : > { %4619 = vmatprep.subr.bf16.mxu0 %v6543_v16  ;;  %4651 = vmatprep.subr.bf16.mxu1 %v6548_v20 }
 0x1f7   : > { %4621 = vmatpush1.bf16.msra.mxu0 %v6558_v24  ;;  %4653 = vmatpush1.bf16.msra.mxu1 %v6562_v28 }
 0x1f8   : > { %4655 = vmatprep.subr.bf16.mxu0 %v6373_v38  ;;  %4687 = vmatprep.subr.bf16.mxu1 %v6377_v41 }
 0x2ad   : > { %v1032_v52 = vpop.f32.mrb[18].mxu0  ;;  %v1103_v53 = vpop.f32.mrb[18].mxu1 }
 0x2ae   : > { %v1108_v54 = vadd.f32 %v1032_v52, %v962_v37  ;;  %v1034_v56 = vpop.f32.mrb[19].mxu0  ;;  %v1105_v43 = vpop.f32.mrb[19].mxu1  ;;  %v1110_v8 = vadd.f32 %v1103_v53, %v964_v6 }
 0x2af   : > { %v1109_v60 = vadd.f32 %v1034_v56, %v963_v44  ;;  %v1111_v4 = vadd.f32 %v1105_v43, %v965_v2 }
 0x2b0   : > { %v4253_v45 = vmul.f32 -1.442695, %v1108_v54 }
 0x2b1   : > { %v4254_v61 = vmul.f32 -1.442695, %v1109_v60  ;;  %v4255_v7 = vmul.f32 -1.442695, %v1111_v4 }
 0x2b2   : > { %5625 = vpow2.f32 %v4253_v45 }
 0x2b3   : > { %5627 = vpow2.f32 %v4254_v61  ;;  %v1143_v61 = vld [vmem:[%s1141_s18 + $0x8] sm:$0xff] }
 0x2b4   : > { %5629 = vpow2.f32 %v4255_v7 }
 0x2b5   : > { %5631 = vtanh.f32 %v1110_v8 }
 0x2bc   : > { %v5626_v9 = vpop.eup %5625 }
 0x2bd   : > { %v5628_v10 = vpop.eup %5627  ;;  %v1115_v17 = vadd.f32 1.0, %v5626_v9  ;;  %v1145_v9 = vld [vmem:[%s1141_s18 + $0x18] sm:$0xff] }
 0x2be   : > { %v1121_v19 = vadd.f32 1.0, %v5628_v10  ;;  %v5630_v21 = vpop.eup %5629 }
 0x2bf   : > { %5633 = vrcp.f32 %v1115_v17  ;;  %v5632_v22 = vpop.eup %5631  ;;  %v1128_v37 = vadd.f32 1.0, %v5630_v21  ;;  %v1144_v17 = vld [vmem:[%s1141_s18 + $0x10] sm:$0xff] }
 0x2c0   : > { %5635 = vrcp.f32 %v1121_v19 }
 0x2c1   : > { %5637 = vrcp.f32 %v1128_v37 }
 0x2c9   : > { %v5634_v23 = vpop.eup %5633 }
 0x2ca   : > { %v5636_v33 = vpop.eup %5635  ;;  %v1132_v47 = vmul.f32 %v5634_v23, %v5632_v22 }
 0x2cb   : > { %v1131_v52 = vmul.f32 %v5636_v33, %v6668_v29  ;;  %v5638_v53 = vpop.eup %5637  ;;  %v1142_v29 = vld [vmem:[%s1141_s18] sm:$0xff] }
 0x2cd   : > { %v6715_v54 = vadd.f32 %v1132_v47, %v1131_v52 }
 0x2cf   : > { %5639 = vtanh.f32 %v6715_v54 }
 0x2d9   : > { %v5640_v44 = vpop.eup %5639 }
 0x2da   : > { %v6718_v56 = vmul.f32 %v5640_v44, %v5638_v53 }
 0x2dc   : > { %1211 = vmatmul.mubr.f32.vlgmr.msra.gmra.mrb[20].mxu0 %v6718_v56  ;;  %1282 = vmatmul.mubr.f32.vlgmr.msra.gmra.mrb[20].mxu1 %v6718_v56 }
 0x2dd   : > { %4657 = vmatpush1.bf16.msra.mxu0 %v6389_v49  ;;  %4689 = vmatpush1.bf16.msra.mxu1 %v6392_v50 }
 0x2de   : > { %4659 = vmatprep.subr.bf16.mxu0 %v6394_v51  ;;  %4691 = vmatprep.subr.bf16.mxu1 %v6399_v55 }
 0x2df   : > { %1390 = vmatprep.mubr.f32.mxu0 %v7703_v0  ;;  %1461 = vmatprep.mubr.f32.mxu1 %v7703_v0 }
 0x2e1   : > { %4661 = vmatpush1.bf16.msra.mxu0 %v6412_v62  ;;  %4693 = vmatpush1.bf16.msra.mxu1 %v6416_v63 }
 0x2e2   : > { %4663 = vmatprep.subr.bf16.mxu0 %v6418_v1  ;;  %4695 = vmatprep.subr.bf16.mxu1 %v6424_v5 }
 0x2e5   : > { %4665 = vmatpush1.bf16.msra.mxu0 %v6437_v12  ;;  %4697 = vmatpush1.bf16.msra.mxu1 %v6441_v13 }
 0x2e6   : > { %4667 = vmatprep.subr.bf16.mxu0 %v6443_v14  ;;  %4699 = vmatprep.subr.bf16.mxu1 %v6449_v18 }
 0x2e9   : > { %4669 = vmatpush1.bf16.msra.mxu0 %v6462_v25  ;;  %4701 = vmatpush1.bf16.msra.mxu1 %v6466_v26 }
 0x2ea   : > { %4671 = vmatprep.subr.bf16.mxu0 %v6468_v27  ;;  %4703 = vmatprep.subr.bf16.mxu1 %v6474_v31 }
 0x2ed   : > { %4673 = vmatpush1.bf16.msra.mxu0 %v6487_v39  ;;  %4705 = vmatpush1.bf16.msra.mxu1 %v6491_v40 }
 0x2ee   : > { %4675 = vmatprep.subr.bf16.mxu0 %v6493_v42  ;;  %4707 = vmatprep.subr.bf16.mxu1 %v6499_v46 }
 0x2f1   : > { %4677 = vmatpush1.bf16.msra.mxu0 %v6512_v57  ;;  %4709 = vmatpush1.bf16.msra.mxu1 %v6516_v58 }
 0x2f2   : > { %4679 = vmatprep.subr.bf16.mxu0 %v6518_v59  ;;  %4711 = vmatprep.subr.bf16.mxu1 %v6524_v3 }
 0x2f5   : > { %4681 = vmatpush1.bf16.msra.mxu0 %v6537_v11  ;;  %4713 = vmatpush1.bf16.msra.mxu1 %v6541_v15 }
 0x2f6   : > { %4683 = vmatprep.subr.bf16.mxu0 %v6543_v16  ;;  %4715 = vmatprep.subr.bf16.mxu1 %v6548_v20 }
 0x2f9   : > { %4685 = vmatpush1.bf16.msra.mxu0 %v6558_v24  ;;  %4717 = vmatpush1.bf16.msra.mxu1 %v6562_v28 }
 0x2fa   : > { %4719 = vmatprep.subr.bf16.mxu0 %v6373_v38  ;;  %4751 = vmatprep.subr.bf16.mxu1 %v6377_v41 }
 0x3af   : > { %v1212_v43 = vpop.f32.mrb[20].mxu0  ;;  %v1283_v60 = vpop.f32.mrb[20].mxu1 }
 0x3b0   : > { %v1288_v45 = vadd.f32 %v1212_v43, %v1142_v29  ;;  %v1214_v2 = vpop.f32.mrb[21].mxu0  ;;  %v1285_v4 = vpop.f32.mrb[21].mxu1  ;;  %v1290_v21 = vadd.f32 %v1283_v60, %v1144_v17 }
 0x3b1   : > { %v1289_v6 = vadd.f32 %v1214_v2, %v1143_v61  ;;  %v1291_v10 = vadd.f32 %v1285_v4, %v1145_v9  ;;  %v1323_v9 = vld [vmem:[%s1321_s21 + $0x8] sm:$0xff] }
 0x3b2   : > { %v4258_v7 = vmul.f32 -1.442695, %v1288_v45 }
 0x3b3   : > { %v4259_v8 = vmul.f32 -1.442695, %v1289_v6  ;;  %v4260_v19 = vmul.f32 -1.442695, %v1291_v10 }
 0x3b4   : > { %5641 = vpow2.f32 %v4258_v7 }
 0x3b5   : > { %5643 = vpow2.f32 %v4259_v8 }
 0x3b6   : > { %5645 = vpow2.f32 %v4260_v19 }
 0x3b7   : > { %5647 = vtanh.f32 %v1290_v21 }
 0x3be   : > { %v5642_v22 = vpop.eup %5641 }
 0x3bf   : > { %v5644_v23 = vpop.eup %5643  ;;  %v1295_v33 = vadd.f32 1.0, %v5642_v22 }
 0x3c0   : > { %v1301_v47 = vadd.f32 1.0, %v5644_v23  ;;  %v5646_v37 = vpop.eup %5645  ;;  %v1325_v23 = vld [vmem:[%s1321_s21 + $0x18] sm:$0xff] }
 0x3c1   : > { %5649 = vrcp.f32 %v1295_v33  ;;  %v5648_v52 = vpop.eup %5647  ;;  %v1308_v43 = vadd.f32 1.0, %v5646_v37 }
 0x3c2   : > { %5651 = vrcp.f32 %v1301_v47  ;;  %v1324_v47 = vld [vmem:[%s1321_s21 + $0x10] sm:$0xff] }
 0x3c3   : > { %5653 = vrcp.f32 %v1308_v43 }
 0x3cb   : > { %v5650_v53 = vpop.eup %5649 }
 0x3cc   : > { %v5652_v44 = vpop.eup %5651  ;;  %v1312_v29 = vmul.f32 %v5650_v53, %v5648_v52 }
 0x3cd   : > { %v1311_v45 = vmul.f32 %v5652_v44, %v6715_v54  ;;  %v5654_v60 = vpop.eup %5653  ;;  %v1322_v54 = vld [vmem:[%s1321_s21] sm:$0xff] }
 0x3cf   : > { %v6762_v61 = vadd.f32 %v1312_v29, %v1311_v45 }
 0x3d1   : > { %5655 = vtanh.f32 %v6762_v61 }
 0x3db   : > { %v5656_v2 = vpop.eup %5655 }
 0x3dc   : > { %v6765_v4 = vmul.f32 %v5656_v2, %v5654_v60 }
 0x3de   : > { %1391 = vmatmul.mubr.f32.vlgmr.msra.gmra.mrb[22].mxu0 %v6765_v4  ;;  %1462 = vmatmul.mubr.f32.vlgmr.msra.gmra.mrb[22].mxu1 %v6765_v4 }
 0x3df   : > { %4721 = vmatpush1.bf16.msra.mxu0 %v6389_v49  ;;  %4753 = vmatpush1.bf16.msra.mxu1 %v6392_v50 }
 0x3e0   : > { %4723 = vmatprep.subr.bf16.mxu0 %v6394_v51  ;;  %4755 = vmatprep.subr.bf16.mxu1 %v6399_v55 }
 0x3e1   : > { %1570 = vmatprep.mubr.f32.mxu0 %v7703_v0  ;;  %1641 = vmatprep.mubr.f32.mxu1 %v7703_v0 }
 0x3e3   : > { %4725 = vmatpush1.bf16.msra.mxu0 %v6412_v62  ;;  %4757 = vmatpush1.bf16.msra.mxu1 %v6416_v63 }
 0x3e4   : > { %4727 = vmatprep.subr.bf16.mxu0 %v6418_v1  ;;  %4759 = vmatprep.subr.bf16.mxu1 %v6424_v5 }
 0x3e7   : > { %4729 = vmatpush1.bf16.msra.mxu0 %v6437_v12  ;;  %4761 = vmatpush1.bf16.msra.mxu1 %v6441_v13 }
 0x3e8   : > { %4731 = vmatprep.subr.bf16.mxu0 %v6443_v14  ;;  %4763 = vmatprep.subr.bf16.mxu1 %v6449_v18 }
 0x3eb   : > { %4733 = vmatpush1.bf16.msra.mxu0 %v6462_v25  ;;  %4765 = vmatpush1.bf16.msra.mxu1 %v6466_v26 }
 0x3ec   : > { %4735 = vmatprep.subr.bf16.mxu0 %v6468_v27  ;;  %4767 = vmatprep.subr.bf16.mxu1 %v6474_v31 }
 0x3ef   : > { %4737 = vmatpush1.bf16.msra.mxu0 %v6487_v39  ;;  %4769 = vmatpush1.bf16.msra.mxu1 %v6491_v40 }
 0x3f0   : > { %4739 = vmatprep.subr.bf16.mxu0 %v6493_v42  ;;  %4771 = vmatprep.subr.bf16.mxu1 %v6499_v46 }
 0x3f3   : > { %4741 = vmatpush1.bf16.msra.mxu0 %v6512_v57  ;;  %4773 = vmatpush1.bf16.msra.mxu1 %v6516_v58 }
 0x3f4   : > { %4743 = vmatprep.subr.bf16.mxu0 %v6518_v59  ;;  %4775 = vmatprep.subr.bf16.mxu1 %v6524_v3 }
 0x3f7   : > { %4745 = vmatpush1.bf16.msra.mxu0 %v6537_v11  ;;  %4777 = vmatpush1.bf16.msra.mxu1 %v6541_v15 }
 0x3f8   : > { %4747 = vmatprep.subr.bf16.mxu0 %v6543_v16  ;;  %4779 = vmatprep.subr.bf16.mxu1 %v6548_v20 }
 0x3fb   : > { %4749 = vmatpush1.bf16.msra.mxu0 %v6558_v24  ;;  %4781 = vmatpush1.bf16.msra.mxu1 %v6562_v28 }
 0x3fc   : > { %4783 = vmatprep.subr.bf16.mxu0 %v6373_v38  ;;  %4815 = vmatprep.subr.bf16.mxu1 %v6377_v41 }
 0x4b1   : > { %v1392_v6 = vpop.f32.mrb[22].mxu0  ;;  %v1463_v7 = vpop.f32.mrb[22].mxu1 }
 0x4b2   : > { %v1468_v8 = vadd.f32 %v1392_v6, %v1322_v54  ;;  %v1394_v10 = vpop.f32.mrb[23].mxu0  ;;  %v1465_v17 = vpop.f32.mrb[23].mxu1  ;;  %v1470_v52 = vadd.f32 %v1463_v7, %v1324_v47 }
 0x4b3   : > { %v1469_v19 = vadd.f32 %v1394_v10, %v1323_v9  ;;  %v1471_v33 = vadd.f32 %v1465_v17, %v1325_v23 }
 0x4b4   : > { %v4263_v21 = vmul.f32 -1.442695, %v1468_v8 }
 0x4b5   : > { %v4264_v22 = vmul.f32 -1.442695, %v1469_v19  ;;  %v4265_v37 = vmul.f32 -1.442695, %v1471_v33  ;;  %v1503_v33 = vld [vmem:[%s1501_s28 + $0x8] sm:$0xff] }
 0x4b6   : > { %5657 = vpow2.f32 %v4263_v21 }
 0x4b7   : > { %5659 = vpow2.f32 %v4264_v22 }
 0x4b8   : > { %5661 = vpow2.f32 %v4265_v37 }
 0x4b9   : > { %5663 = vtanh.f32 %v1470_v52 }
 0x4c0   : > { %v5658_v53 = vpop.eup %5657 }
 0x4c1   : > { %v5660_v44 = vpop.eup %5659  ;;  %v1475_v29 = vadd.f32 1.0, %v5658_v53 }
 0x4c2   : > { %v1481_v43 = vadd.f32 1.0, %v5660_v44  ;;  %v5662_v45 = vpop.eup %5661 }
 0x4c3   : > { %5665 = vrcp.f32 %v1475_v29  ;;  %v5664_v60 = vpop.eup %5663  ;;  %v1488_v8 = vadd.f32 1.0, %v5662_v45  ;;  %v1505_v29 = vld [vmem:[%s1501_s28 + $0x18] sm:$0xff]  ;;  %v1504_v45 = vld [vmem:[%s1501_s28 + $0x10] sm:$0xff] }
 0x4c4   : > { %5667 = vrcp.f32 %v1481_v43 }
 0x4c5   : > { %5669 = vrcp.f32 %v1488_v8 }
 0x4cd   : > { %v5666_v2 = vpop.eup %5665 }
 0x4ce   : > { %v5668_v54 = vpop.eup %5667  ;;  %v1492_v6 = vmul.f32 %v5666_v2, %v5664_v60 }
 0x4cf   : > { %v1491_v9 = vmul.f32 %v5668_v54, %v6762_v61  ;;  %v5670_v7 = vpop.eup %5669  ;;  %v1502_v61 = vld [vmem:[%s1501_s28] sm:$0xff] }
 0x4d1   : > { %v6809_v10 = vadd.f32 %v1492_v6, %v1491_v9 }
 0x4d3   : > { %5671 = vtanh.f32 %v6809_v10 }
 0x4dd   : > { %v5672_v17 = vpop.eup %5671 }
 0x4de   : > { %v6812_v19 = vmul.f32 %v5672_v17, %v5670_v7 }
 0x4e0   : > { %1571 = vmatmul.mubr.f32.vlgmr.msra.gmra.mrb[24].mxu0 %v6812_v19  ;;  %1642 = vmatmul.mubr.f32.vlgmr.msra.gmra.mrb[24].mxu1 %v6812_v19 }
 0x4e1   : > { %4785 = vmatpush1.bf16.msra.mxu0 %v6389_v49  ;;  %4817 = vmatpush1.bf16.msra.mxu1 %v6392_v50 }
 0x4e2   : > { %4787 = vmatprep.subr.bf16.mxu0 %v6394_v51  ;;  %4819 = vmatprep.subr.bf16.mxu1 %v6399_v55 }
 0x4e3   : > { %1750 = vmatprep.mubr.f32.mxu0 %v7703_v0  ;;  %1821 = vmatprep.mubr.f32.mxu1 %v7703_v0 }
 0x4e5   : > { %4789 = vmatpush1.bf16.msra.mxu0 %v6412_v62  ;;  %4821 = vmatpush1.bf16.msra.mxu1 %v6416_v63 }
 0x4e6   : > { %4791 = vmatprep.subr.bf16.mxu0 %v6418_v1  ;;  %4823 = vmatprep.subr.bf16.mxu1 %v6424_v5 }
 0x4e9   : > { %4793 = vmatpush1.bf16.msra.mxu0 %v6437_v12  ;;  %4825 = vmatpush1.bf16.msra.mxu1 %v6441_v13 }
 0x4ea   : > { %4795 = vmatprep.subr.bf16.mxu0 %v6443_v14  ;;  %4827 = vmatprep.subr.bf16.mxu1 %v6449_v18 }
 0x4ed   : > { %4797 = vmatpush1.bf16.msra.mxu0 %v6462_v25  ;;  %4829 = vmatpush1.bf16.msra.mxu1 %v6466_v26 }
 0x4ee   : > { %4799 = vmatprep.subr.bf16.mxu0 %v6468_v27  ;;  %4831 = vmatprep.subr.bf16.mxu1 %v6474_v31 }
 0x4f1   : > { %4801 = vmatpush1.bf16.msra.mxu0 %v6487_v39  ;;  %4833 = vmatpush1.bf16.msra.mxu1 %v6491_v40 }
 0x4f2   : > { %4803 = vmatprep.subr.bf16.mxu0 %v6493_v42  ;;  %4835 = vmatprep.subr.bf16.mxu1 %v6499_v46 }
 0x4f5   : > { %4805 = vmatpush1.bf16.msra.mxu0 %v6512_v57  ;;  %4837 = vmatpush1.bf16.msra.mxu1 %v6516_v58 }
 0x4f6   : > { %4807 = vmatprep.subr.bf16.mxu0 %v6518_v59  ;;  %4839 = vmatprep.subr.bf16.mxu1 %v6524_v3 }
 0x4f9   : > { %4809 = vmatpush1.bf16.msra.mxu0 %v6537_v11  ;;  %4841 = vmatpush1.bf16.msra.mxu1 %v6541_v15 }
 0x4fa   : > { %4811 = vmatprep.subr.bf16.mxu0 %v6543_v16  ;;  %4843 = vmatprep.subr.bf16.mxu1 %v6548_v20 }
 0x4fd   : > { %4813 = vmatpush1.bf16.msra.mxu0 %v6558_v24  ;;  %4845 = vmatpush1.bf16.msra.mxu1 %v6562_v28 }
 0x4fe   : > { %4847 = vmatprep.subr.bf16.mxu0 %v6373_v38  ;;  %4879 = vmatprep.subr.bf16.mxu1 %v6377_v41 }
 0x5b3   : > { %v1572_v21 = vpop.f32.mrb[24].mxu0  ;;  %v1643_v22 = vpop.f32.mrb[24].mxu1 }
 0x5b4   : > { %v1648_v23 = vadd.f32 %v1572_v21, %v1502_v61  ;;  %v1574_v47 = vpop.f32.mrb[25].mxu0  ;;  %v1645_v37 = vpop.f32.mrb[25].mxu1  ;;  %v1650_v2 = vadd.f32 %v1643_v22, %v1504_v45  ;;  %v1683_v45 = vld [vmem:[%s1681_s27 + $0x8] sm:$0xff] }
 0x5b5   : > { %v1649_v52 = vadd.f32 %v1574_v47, %v1503_v33  ;;  %v1651_v43 = vadd.f32 %v1645_v37, %v1505_v29 }
 0x5b6   : > { %v4268_v53 = vmul.f32 -1.442695, %v1648_v23 }
 0x5b7   : > { %v4269_v44 = vmul.f32 -1.442695, %v1649_v52  ;;  %v4270_v60 = vmul.f32 -1.442695, %v1651_v43 }
 0x5b8   : > { %5673 = vpow2.f32 %v4268_v53 }
 0x5b9   : > { %5675 = vpow2.f32 %v4269_v44 }
 0x5ba   : > { %5677 = vpow2.f32 %v4270_v60 }
 0x5bb   : > { %5679 = vtanh.f32 %v1650_v2 }
 0x5c2   : > { %v5674_v54 = vpop.eup %5673 }
 0x5c3   : > { %v5676_v6 = vpop.eup %5675  ;;  %v1655_v8 = vadd.f32 1.0, %v5674_v54 }
 0x5c4   : > { %v1661_v9 = vadd.f32 1.0, %v5676_v6  ;;  %v5678_v7 = vpop.eup %5677 }
 0x5c5   : > { %5681 = vrcp.f32 %v1655_v8  ;;  %v5680_v17 = vpop.eup %5679  ;;  %v1668_v33 = vadd.f32 1.0, %v5678_v7 }
 0x5c6   : > { %5683 = vrcp.f32 %v1661_v9  ;;  %v1684_v9 = vld [vmem:[%s1681_s27 + $0x10] sm:$0xff] }
 0x5c7   : > { %5685 = vrcp.f32 %v1668_v33 }
 0x5cf   : > { %v5682_v61 = vpop.eup %5681 }
 0x5d0   : > { %v5684_v21 = vpop.eup %5683  ;;  %v1672_v23 = vmul.f32 %v5682_v61, %v5680_v17 }
 0x5d1   : > { %v1671_v47 = vmul.f32 %v5684_v21, %v6809_v10  ;;  %v5686_v22 = vpop.eup %5685  ;;  %v1682_v10 = vld [vmem:[%s1681_s27] sm:$0xff] }
 0x5d3   : > { %v6856_v37 = vadd.f32 %v1672_v23, %v1671_v47 }
 0x5d5   : > { %5687 = vtanh.f32 %v6856_v37 }
 0x5df   : > { %v5688_v52 = vpop.eup %5687 }
 0x5e0   : > { %v6859_v53 = vmul.f32 %v5688_v52, %v5686_v22 }
 0x5e2   : > { %1751 = vmatmul.mubr.f32.vlgmr.msra.gmra.mrb[26].mxu0 %v6859_v53  ;;  %1822 = vmatmul.mubr.f32.vlgmr.msra.gmra.mrb[26].mxu1 %v6859_v53 }
 0x5e3   : > { %4849 = vmatpush1.bf16.msra.mxu0 %v6389_v49  ;;  %4881 = vmatpush1.bf16.msra.mxu1 %v6392_v50 }
 0x5e4   : > { %4851 = vmatprep.subr.bf16.mxu0 %v6394_v51  ;;  %4883 = vmatprep.subr.bf16.mxu1 %v6399_v55 }
 0x5e5   : > { %1930 = vmatprep.mubr.f32.mxu0 %v7703_v0  ;;  %2001 = vmatprep.mubr.f32.mxu1 %v7703_v0 }
 0x5e7   : > { %4853 = vmatpush1.bf16.msra.mxu0 %v6412_v62  ;;  %4885 = vmatpush1.bf16.msra.mxu1 %v6416_v63 }
 0x5e8   : > { %4855 = vmatprep.subr.bf16.mxu0 %v6418_v1  ;;  %4887 = vmatprep.subr.bf16.mxu1 %v6424_v5 }
 0x5eb   : > { %4857 = vmatpush1.bf16.msra.mxu0 %v6437_v12  ;;  %4889 = vmatpush1.bf16.msra.mxu1 %v6441_v13 }
 0x5ec   : > { %4859 = vmatprep.subr.bf16.mxu0 %v6443_v14  ;;  %4891 = vmatprep.subr.bf16.mxu1 %v6449_v18 }
 0x5ef   : > { %4861 = vmatpush1.bf16.msra.mxu0 %v6462_v25  ;;  %4893 = vmatpush1.bf16.msra.mxu1 %v6466_v26 }
 0x5f0   : > { %4863 = vmatprep.subr.bf16.mxu0 %v6468_v27  ;;  %4895 = vmatprep.subr.bf16.mxu1 %v6474_v31 }
 0x5f3   : > { %4865 = vmatpush1.bf16.msra.mxu0 %v6487_v39  ;;  %4897 = vmatpush1.bf16.msra.mxu1 %v6491_v40 }
 0x5f4   : > { %4867 = vmatprep.subr.bf16.mxu0 %v6493_v42  ;;  %4899 = vmatprep.subr.bf16.mxu1 %v6499_v46 }
 0x5f7   : > { %4869 = vmatpush1.bf16.msra.mxu0 %v6512_v57  ;;  %4901 = vmatpush1.bf16.msra.mxu1 %v6516_v58 }
 0x5f8   : > { %4871 = vmatprep.subr.bf16.mxu0 %v6518_v59  ;;  %4903 = vmatprep.subr.bf16.mxu1 %v6524_v3 }
 0x5fb   : > { %4873 = vmatpush1.bf16.msra.mxu0 %v6537_v11  ;;  %4905 = vmatpush1.bf16.msra.mxu1 %v6541_v15 }
 0x5fc   : > { %4875 = vmatprep.subr.bf16.mxu0 %v6543_v16  ;;  %4907 = vmatprep.subr.bf16.mxu1 %v6548_v20 }
 0x5ff   : > { %4877 = vmatpush1.bf16.msra.mxu0 %v6558_v24  ;;  %4909 = vmatpush1.bf16.msra.mxu1 %v6562_v28 }
 0x600   : > { %4911 = vmatprep.subr.bf16.mxu0 %v6373_v38  ;;  %4943 = vmatprep.subr.bf16.mxu1 %v6377_v41  ;;  %v1685_v38 = vld [vmem:[%s1681_s27 + $0x18] sm:$0xff] }
 0x6b5   : > { %v1752_v44 = vpop.f32.mrb[26].mxu0  ;;  %v1823_v29 = vpop.f32.mrb[26].mxu1 }
 0x6b6   : > { %v1828_v43 = vadd.f32 %v1752_v44, %v1682_v10  ;;  %v1754_v60 = vpop.f32.mrb[27].mxu0  ;;  %v1825_v2 = vpop.f32.mrb[27].mxu1  ;;  %v1830_v17 = vadd.f32 %v1823_v29, %v1684_v9  ;;  %v2228_v9 = vld [vmem:[%s6289_s30 + $0x10] sm:$0xff] }
 0x6b7   : > { %v1829_v54 = vadd.f32 %v1754_v60, %v1683_v45  ;;  %v1831_v41 = vadd.f32 %v1825_v2, %v1685_v38  ;;  %v2226_v38 = vld [vmem:[%s6289_s30] sm:$0xff] }
 0x6b8   : > { %v4273_v6 = vmul.f32 -1.442695, %v1828_v43 }
 0x6b9   : > { %v4274_v8 = vmul.f32 -1.442695, %v1829_v54  ;;  %v4275_v7 = vmul.f32 -1.442695, %v1831_v41  ;;  %v2230_v41 = vld [vmem:[%s6289_s30 + $0x20] sm:$0xff] }
 0x6ba   : > { %5689 = vpow2.f32 %v4273_v6 }
 0x6bb   : > { %5691 = vpow2.f32 %v4274_v8 }
 0x6bc   : > { %5693 = vpow2.f32 %v4275_v7  ;;  %v2232_v7 = vld [vmem:[%s6289_s30 + $0x30] sm:$0xff] }
 0x6bd   : > { %5695 = vtanh.f32 %v1830_v17  ;;  %v2235_v17 = vld [vmem:[%s6289_s30 + $0x48] sm:$0xff] }
 0x6c4   : > { %v5690_v61 = vpop.eup %5689 }
 0x6c5   : > { %v5692_v21 = vpop.eup %5691  ;;  %v1835_v23 = vadd.f32 1.0, %v5690_v61  ;;  %v2239_v61 = vld [vmem:[%s6289_s30 + $0x68] sm:$0xff] }
 0x6c6   : > { %v1841_v33 = vadd.f32 1.0, %v5692_v21  ;;  %v5694_v47 = vpop.eup %5693  ;;  %v2237_v21 = vld [vmem:[%s6289_s30 + $0x58] sm:$0xff] }
 0x6c7   : > { %5697 = vrcp.f32 %v1835_v23  ;;  %v5696_v22 = vpop.eup %5695  ;;  %v1848_v43 = vadd.f32 1.0, %v5694_v47  ;;  %v2241_v23 = vld [vmem:[%s6289_s30 + $0x78] sm:$0xff] }
 0x6c8   : > { %5699 = vrcp.f32 %v1841_v33 }
 0x6c9   : > { %5701 = vrcp.f32 %v1848_v43 }
 0x6d1   : > { %v5698_v52 = vpop.eup %5697 }
 0x6d2   : > { %v5700_v10 = vpop.eup %5699  ;;  %v1852_v44 = vmul.f32 %v5698_v52, %v5696_v22  ;;  %v4976_v22 = vpack.c.bf16 %v2230_v41, %v2226_v38  ;;  %v5008_v52 = vpack.c.bf16 %v2232_v7, %v2228_v9  ;;  %v2260_v9 = vld [vmem:[%s6289_s30 + $0x110] sm:$0xff] }
 0x6d3   : > { %v1851_v45 = vmul.f32 %v5700_v10, %v6856_v37  ;;  %v5702_v29 = vpop.eup %5701  ;;  %v2234_v10 = vld [vmem:[%s6289_s30 + $0x40] sm:$0xff]  ;;  %v2264_v7 = vld [vmem:[%s6289_s30 + $0x130] sm:$0xff] }
 0x6d5   : > { %v6903_v60 = vadd.f32 %v1852_v44, %v1851_v45  ;;  %v2238_v44 = vld [vmem:[%s6289_s30 + $0x60] sm:$0xff]  ;;  %v4978_v45 = vpack.c.bf16 %v2239_v61, %v2235_v17  ;;  %v2267_v17 = vld [vmem:[%s6289_s30 + $0x148] sm:$0xff] }
 0x6d6   : > { %v2271_v61 = vld [vmem:[%s6289_s30 + $0x168] sm:$0xff] }
 0x6d7   : > { %5703 = vtanh.f32 %v6903_v60 }
 0x6e1   : > { %v5704_v2 = vpop.eup %5703 }
 0x6e2   : > { %v6906_v54 = vmul.f32 %v5704_v2, %v5702_v29  ;;  %v2236_v29 = vld [vmem:[%s6289_s30 + $0x50] sm:$0xff] }
 0x6e3   : > { %v2240_v2 = vld [vmem:[%s6289_s30 + $0x70] sm:$0xff] }
 0x6e4   : > { %1931 = vmatmul.mubr.f32.vlgmr.msra.gmra.mrb[28].mxu0 %v6906_v54  ;;  %2002 = vmatmul.mubr.f32.vlgmr.msra.gmra.mrb[28].mxu1 %v6906_v54 }
 0x6e5   : > { %4913 = vmatpush1.bf16.msra.mxu0 %v6389_v49  ;;  %4945 = vmatpush1.bf16.msra.mxu1 %v6392_v50  ;;  %v2227_v49 = vld [vmem:[%s6289_s30 + $0x8] sm:$0xff] }
 0x6e6   : > { %4915 = vmatprep.subr.bf16.mxu0 %v6394_v51  ;;  %4947 = vmatprep.subr.bf16.mxu1 %v6399_v55  ;;  %v2231_v50 = vld [vmem:[%s6289_s30 + $0x28] sm:$0xff]  ;;  %v2229_v51 = vld [vmem:[%s6289_s30 + $0x18] sm:$0xff] }
 0x6e7   : > { %2110 = vmatprep.mubr.f32.mxu0 %v7703_v0  ;;  %2181 = vmatprep.mubr.f32.mxu1 %v7703_v0  ;;  %v4974_v55 = vpack.c.bf16 %v2231_v50, %v2227_v49  ;;  %v2243_v49 = vld [vmem:[%s6289_s30 + $0x88] sm:$0xff] }
 0x6e8   : > { %v2247_v50 = vld [vmem:[%s6289_s30 + $0xa8] sm:$0xff] }
 0x6e9   : > { %4917 = vmatpush1.bf16.msra.mxu0 %v6412_v62  ;;  %4949 = vmatpush1.bf16.msra.mxu1 %v6416_v63  ;;  %v2233_v62 = vld [vmem:[%s6289_s30 + $0x38] sm:$0xff] }
 0x6ea   : > { %4919 = vmatprep.subr.bf16.mxu0 %v6418_v1  ;;  %4951 = vmatprep.subr.bf16.mxu1 %v6424_v5  ;;  %v5006_v63 = vpack.c.bf16 %v2233_v62, %v2229_v51  ;;  %v1862_v1 = vld [vmem:[%s1861_s8] sm:$0xff]  ;;  %v2245_v51 = vld [vmem:[%s6289_s30 + $0x98] sm:$0xff]  ;;  %v4980_v62 = vpack.c.bf16 %v2238_v44, %v2234_v10  ;;  %v4994_v10 = vpack.c.bf16 %v2271_v61, %v2267_v17 }
 0x6ed   : > { %4921 = vmatpush1.bf16.msra.mxu0 %v6437_v12  ;;  %4953 = vmatpush1.bf16.msra.mxu1 %v6441_v13 }
 0x6ee   : > { %4923 = vmatprep.subr.bf16.mxu0 %v6443_v14  ;;  %4955 = vmatprep.subr.bf16.mxu1 %v6449_v18  ;;  %v1863_v14 = vld [vmem:[%s1861_s8 + $0x8] sm:$0xff] }
 0x6f1   : > { %4925 = vmatpush1.bf16.msra.mxu0 %v6462_v25  ;;  %4957 = vmatpush1.bf16.msra.mxu1 %v6466_v26 }
 0x6f2   : > { %4927 = vmatprep.subr.bf16.mxu0 %v6468_v27  ;;  %4959 = vmatprep.subr.bf16.mxu1 %v6474_v31 }
 0x6f5   : > { %4929 = vmatpush1.bf16.msra.mxu0 %v6487_v39  ;;  %4961 = vmatpush1.bf16.msra.mxu1 %v6491_v40  ;;  %v1865_v39 = vld [vmem:[%s1861_s8 + $0x18] sm:$0xff] }
 0x6f6   : > { %4931 = vmatprep.subr.bf16.mxu0 %v6493_v42  ;;  %4963 = vmatprep.subr.bf16.mxu1 %v6499_v46  ;;  %v1864_v42 = vld [vmem:[%s1861_s8 + $0x10] sm:$0xff] }
 0x6f9   : > { %4933 = vmatpush1.bf16.msra.mxu0 %v6512_v57  ;;  %4965 = vmatpush1.bf16.msra.mxu1 %v6516_v58 }
 0x6fa   : > { %4935 = vmatprep.subr.bf16.mxu0 %v6518_v59  ;;  %4967 = vmatprep.subr.bf16.mxu1 %v6524_v3 }
 0x6fd   : > { %4937 = vmatpush1.bf16.msra.mxu0 %v6537_v11  ;;  %4969 = vmatpush1.bf16.msra.mxu1 %v6541_v15 }
 0x6fe   : > { %4939 = vmatprep.subr.bf16.mxu0 %v6543_v16  ;;  %4971 = vmatprep.subr.bf16.mxu1 %v6548_v20 }
 0x701   : > { %4941 = vmatpush1.bf16.msra.mxu0 %v6558_v24  ;;  %4973 = vmatpush1.bf16.msra.mxu1 %v6562_v28 }
 0x702   : > { %4975 = vmatprep.subr.bf16.mxu0 %v4974_v55  ;;  %5007 = vmatprep.subr.bf16.mxu1 %v5006_v63  ;;  %v2249_v55 = vld [vmem:[%s6289_s30 + $0xb8] sm:$0xff]  ;;  %v5012_v63 = vpack.c.bf16 %v2240_v2, %v2236_v29  ;;  %v2275_v29 = vld [vmem:[%s6289_s30 + $0x188] sm:$0xff] }
 0x703   : > { %v2279_v2 = vld [vmem:[%s6289_s30 + $0x1a8] sm:$0xff] }
 0x7b7   : > { %v1932_v5 = vpop.f32.mrb[28].mxu0  ;;  %v2003_v12 = vpop.f32.mrb[28].mxu1 }
 0x7b8   : > { %v2008_v13 = vadd.f32 %v1932_v5, %v1862_v1  ;;  %v1934_v18 = vpop.f32.mrb[29].mxu0  ;;  %v2005_v25 = vpop.f32.mrb[29].mxu1  ;;  %v2010_v57 = vadd.f32 %v2003_v12, %v1864_v42  ;;  %v2242_v1 = vld [vmem:[%s6289_s30 + $0x80] sm:$0xff]  ;;  %v4982_v12 = vpack.c.bf16 %v2247_v50, %v2243_v49  ;;  %v2277_v49 = vld [vmem:[%s6289_s30 + $0x198] sm:$0xff] }
 0x7b9   : > { %v2009_v26 = vadd.f32 %v1934_v18, %v1863_v14  ;;  %v2011_v40 = vadd.f32 %v2005_v25, %v1865_v39  ;;  %v2246_v5 = vld [vmem:[%s6289_s30 + $0xa0] sm:$0xff]  ;;  %v2244_v14 = vld [vmem:[%s6289_s30 + $0x90] sm:$0xff]  ;;  %v2251_v25 = vld [vmem:[%s6289_s30 + $0xc8] sm:$0xff] }
 0x7ba   : > { %v4278_v27 = vmul.f32 -1.442695, %v2008_v13  ;;  %v5014_v13 = vpack.c.bf16 %v2249_v55, %v2245_v51  ;;  %v2248_v18 = vld [vmem:[%s6289_s30 + $0xb0] sm:$0xff]  ;;  %v4984_v39 = vpack.c.bf16 %v2246_v5, %v2242_v1  ;;  %v2250_v42 = vld [vmem:[%s6289_s30 + $0xc0] sm:$0xff]  ;;  %v2281_v50 = vld [vmem:[%s6289_s30 + $0x1b8] sm:$0xff]  ;;  %v4998_v1 = vpack.c.bf16 %v2279_v2, %v2275_v29 }
 0x7bb   : > { %v4279_v31 = vmul.f32 -1.442695, %v2009_v26  ;;  %v4280_v46 = vmul.f32 -1.442695, %v2011_v40  ;;  %v2255_v26 = vld [vmem:[%s6289_s30 + $0xe8] sm:$0xff]  ;;  %v5016_v40 = vpack.c.bf16 %v2248_v18, %v2244_v14  ;;  %v5030_v5 = vpack.c.bf16 %v2281_v50, %v2277_v49  ;;  %v4305_v49 = vld [vmem:[%s6295_s7 + $0x290] sm:$0xff] }
 0x7bc   : > { %5705 = vpow2.f32 %v4278_v27  ;;  %v2253_v27 = vld [vmem:[%s6289_s30 + $0xd8] sm:$0xff]  ;;  %v2283_v14 = vld [vmem:[%s6289_s30 + $0x1c8] sm:$0xff]  ;;  %v4309_v50 = vld [vmem:[%s6295_s7 + $0x2b0] sm:$0xff] }
 0x7bd   : > { %5707 = vpow2.f32 %v4279_v31  ;;  %v2257_v31 = vld [vmem:[%s6289_s30 + $0xf8] sm:$0xff]  ;;  %v2287_v18 = vld [vmem:[%s6289_s30 + $0x1e8] sm:$0xff] }
 0x7be   : > { %5709 = vpow2.f32 %v4280_v46  ;;  %v2254_v46 = vld [vmem:[%s6289_s30 + $0xe0] sm:$0xff] }
 0x7bf   : > { %5711 = vtanh.f32 %v2010_v57  ;;  %v4986_v57 = vpack.c.bf16 %v2255_v26, %v2251_v25  ;;  %v2285_v25 = vld [vmem:[%s6289_s30 + $0x1d8] sm:$0xff] }
 0x7c0   : > { %v2289_v26 = vld [vmem:[%s6289_s30 + $0x1f8] sm:$0xff] }
 0x7c6   : > { %v5706_v58 = vpop.eup %5705 }
 0x7c7   : > { %v5708_v59 = vpop.eup %5707  ;;  %v2015_v3 = vadd.f32 1.0, %v5706_v58  ;;  %v5018_v58 = vpack.c.bf16 %v2257_v31, %v2253_v27 }
 0x7c8   : > { %v2021_v11 = vadd.f32 1.0, %v5708_v59  ;;  %v5710_v15 = vpop.eup %5709  ;;  %v2252_v59 = vld [vmem:[%s6289_s30 + $0xd0] sm:$0xff] }
 0x7c9   : > { %5713 = vrcp.f32 %v2015_v3  ;;  %v5712_v16 = vpop.eup %5711  ;;  %v2028_v37 = vadd.f32 1.0, %v5710_v15  ;;  %v2256_v3 = vld [vmem:[%s6289_s30 + $0xf0] sm:$0xff]  ;;  %v2263_v15 = vld [vmem:[%s6289_s30 + $0x128] sm:$0xff] }
 0x7ca   : > { %5715 = vrcp.f32 %v2021_v11  ;;  %v2259_v11 = vld [vmem:[%s6289_s30 + $0x108] sm:$0xff] }
 0x7cb   : > { %5717 = vrcp.f32 %v2028_v37  ;;  %v2258_v37 = vld [vmem:[%s6289_s30 + $0x100] sm:$0xff]  ;;  %v4990_v38 = vpack.c.bf16 %v2263_v15, %v2259_v11  ;;  %v4294_v11 = vld [vmem:[%s6295_s7 + $0x238] sm:$0xff] }
 0x7d3   : > { %v5714_v20 = vpop.eup %5713 }
 0x7d4   : > { %v5716_v24 = vpop.eup %5715  ;;  %v2032_v28 = vmul.f32 %v5714_v20, %v5712_v16  ;;  %v2261_v16 = vld [vmem:[%s6289_s30 + $0x118] sm:$0xff] }
 0x7d5   : > { %v2031_v6 = vmul.f32 %v5716_v24, %v6903_v60  ;;  %v5718_v33 = vpop.eup %5717  ;;  %v5010_v60 = vpack.c.bf16 %v2241_v23, %v2237_v21  ;;  %v2265_v20 = vld [vmem:[%s6289_s30 + $0x138] sm:$0xff]  ;;  %v4988_v24 = vpack.c.bf16 %v2254_v46, %v2250_v42  ;;  %v5034_v42 = vpack.c.bf16 %v2289_v26, %v2285_v25  ;;  %v2286_v46 = vld [vmem:[%s6289_s30 + $0x1e0] sm:$0xff]  ;;  %v4317_v25 = vld [vmem:[%s6295_s7 + $0x2f0] sm:$0xff] }
 0x7d6   : > { %v5022_v41 = vpack.c.bf16 %v2265_v20, %v2261_v16  ;;  %v2269_v21 = vld [vmem:[%s6289_s30 + $0x158] sm:$0xff]  ;;  %v4289_v16 = vld [vmem:[%s6295_s7 + $0x210] sm:$0xff] }
 0x7d7   : > { %v6952_v8 = vadd.f32 %v2032_v28, %v2031_v6  ;;  %v5020_v28 = vpack.c.bf16 %v2256_v3, %v2252_v59  ;;  %v2262_v6 = vld [vmem:[%s6289_s30 + $0x120] sm:$0xff]  ;;  %v2273_v23 = vld [vmem:[%s6289_s30 + $0x178] sm:$0xff]  ;;  %v4293_v20 = vld [vmem:[%s6295_s7 + $0x230] sm:$0xff] }
 0x7d8   : > { %v5026_v44 = vpack.c.bf16 %v2273_v23, %v2269_v21  ;;  %v4297_v21 = vld [vmem:[%s6295_s7 + $0x250] sm:$0xff] }
 0x7d9   : > { %5719 = vtanh.f32 %v6952_v8  ;;  %v4301_v23 = vld [vmem:[%s6295_s7 + $0x270] sm:$0xff] }
 0x7e3   : > { %v5720_v47 = vpop.eup %5719 }
 0x7e4   : > { %v6965_v43 = vmul.f32 %v5720_v47, %v5718_v33  ;;  %v4992_v33 = vpack.c.bf16 %v2262_v6, %v2258_v37  ;;  %v5024_v47 = vpack.c.bf16 %v2264_v7, %v2260_v9  ;;  %v4300_v37 = vld [vmem:[%s6295_s7 + $0x268] sm:$0xff]  ;;  %v4298_v6 = vld [vmem:[%s6295_s7 + $0x258] sm:$0xff]  ;;  %v4299_v9 = vld [vmem:[%s6295_s7 + $0x260] sm:$0xff] }
 0x7e5   : > { %v4302_v7 = vld [vmem:[%s6295_s7 + $0x278] sm:$0xff] }
 0x7e6   : > { %2111 = vmatmul.mubr.f32.vlgmr.msra.gmra.mrb[30].mxu0 %v6965_v43  ;;  %2182 = vmatmul.mubr.f32.vlgmr.msra.gmra.mrb[30].mxu1 %v6965_v43  ;;  %v7079_v61 = vpack.c.bf16 %v4302_v7, %v4298_v6  ;;  %v4333_v7 = vld [vmem:[%s6295_s7 + $0x370] sm:$0xff] }
 0x7e7   : > { %4977 = vmatpush1.bf16.msra.mxu0 %v4976_v22  ;;  %5009 = vmatpush1.bf16.msra.mxu1 %v5008_v52  ;;  %v2266_v22 = vld [vmem:[%s6289_s30 + $0x140] sm:$0xff] }
 0x7e8   : > { %4979 = vmatprep.subr.bf16.mxu0 %v4978_v45  ;;  %5011 = vmatprep.subr.bf16.mxu1 %v5010_v60  ;;  %v2270_v52 = vld [vmem:[%s6289_s30 + $0x160] sm:$0xff]  ;;  %v2268_v45 = vld [vmem:[%s6289_s30 + $0x150] sm:$0xff] }
 0x7e9   : > { %2377 = vmatprep.mubr.f32.mxu0 %v7703_v0  ;;  %2490 = vmatprep.mubr.f32.mxu1 %v7703_v0  ;;  %v2272_v60 = vld [vmem:[%s6289_s30 + $0x170] sm:$0xff]  ;;  %v4996_v51 = vpack.c.bf16 %v2270_v52, %v2266_v22  ;;  %v4308_v22 = vld [vmem:[%s6295_s7 + $0x2a8] sm:$0xff]  ;;  %v4306_v52 = vld [vmem:[%s6295_s7 + $0x298] sm:$0xff] }
 0x7ea   : > { %v5028_v55 = vpack.c.bf16 %v2272_v60, %v2268_v45  ;;  %v4307_v45 = vld [vmem:[%s6295_s7 + $0x2a0] sm:$0xff]  ;;  %v4310_v60 = vld [vmem:[%s6295_s7 + $0x2b8] sm:$0xff] }
 0x7eb   : > { %4981 = vmatpush1.bf16.msra.mxu0 %v4980_v62  ;;  %5013 = vmatpush1.bf16.msra.mxu1 %v5012_v63  ;;  %v2274_v62 = vld [vmem:[%s6289_s30 + $0x180] sm:$0xff]  ;;  %v7099_v2 = vpack.c.bf16 %v4310_v60, %v4306_v52  ;;  %v4342_v60 = vld [vmem:[%s6295_s7 + $0x3b8] sm:$0xff] }
 0x7ec   : > { %4983 = vmatprep.subr.bf16.mxu0 %v4982_v12  ;;  %5015 = vmatprep.subr.bf16.mxu1 %v5014_v13  ;;  %v2278_v63 = vld [vmem:[%s6289_s30 + $0x1a0] sm:$0xff]  ;;  %v2276_v12 = vld [vmem:[%s6289_s30 + $0x190] sm:$0xff] }
 0x7ed   : > { %v2280_v13 = vld [vmem:[%s6289_s30 + $0x1b0] sm:$0xff]  ;;  %v5000_v27 = vpack.c.bf16 %v2278_v63, %v2274_v62  ;;  %v4316_v62 = vld [vmem:[%s6295_s7 + $0x2e8] sm:$0xff]  ;;  %v4314_v63 = vld [vmem:[%s6295_s7 + $0x2d8] sm:$0xff] }
 0x7ee   : > { %v5032_v31 = vpack.c.bf16 %v2280_v13, %v2276_v12  ;;  %v4315_v12 = vld [vmem:[%s6295_s7 + $0x2e0] sm:$0xff] }
 0x7ef   : > { %4985 = vmatpush1.bf16.msra.mxu0 %v4984_v39  ;;  %5017 = vmatpush1.bf16.msra.mxu1 %v5016_v40  ;;  %v2282_v39 = vld [vmem:[%s6289_s30 + $0x1c0] sm:$0xff]  ;;  %v5002_v40 = vpack.c.bf16 %v2287_v18, %v2283_v14  ;;  %v4318_v14 = vld [vmem:[%s6295_s7 + $0x2f8] sm:$0xff]  ;;  %v4313_v18 = vld [vmem:[%s6295_s7 + $0x2d0] sm:$0xff] }
 0x7f0   : > { %4987 = vmatprep.subr.bf16.mxu0 %v4986_v57  ;;  %5019 = vmatprep.subr.bf16.mxu1 %v5018_v58  ;;  %v2284_v57 = vld [vmem:[%s6289_s30 + $0x1d0] sm:$0xff]  ;;  %v5004_v59 = vpack.c.bf16 %v2286_v46, %v2282_v39  ;;  %v7122_v26 = vpack.c.bf16 %v4318_v14, %v4314_v63  ;;  %v4324_v39 = vld [vmem:[%s6295_s7 + $0x328] sm:$0xff]  ;;  %v4319_v46 = vld [vmem:[%s6295_s7 + $0x300] sm:$0xff] }
 0x7f1   : > { %v2288_v58 = vld [vmem:[%s6289_s30 + $0x1f0] sm:$0xff]  ;;  %v4346_v14 = vld [vmem:[%s6295_s7 + $0x3d8] sm:$0xff]  ;;  %s7213_s30 = scalar_select %p362_p8, 0, 7 }
 0x7f2   : > { %v5036_v3 = vpack.c.bf16 %v2288_v58, %v2284_v57  ;;  %v4323_v57 = vld [vmem:[%s6295_s7 + $0x320] sm:$0xff]  ;;  %v4326_v58 = vld [vmem:[%s6295_s7 + $0x338] sm:$0xff] }
 0x7f3   : > { %4989 = vmatpush1.bf16.msra.mxu0 %v4988_v24  ;;  %5021 = vmatpush1.bf16.msra.mxu1 %v5020_v28  ;;  %v7064_v24 = vpack.c.bf16 %v4293_v20, %v4289_v16  ;;  %v4296_v28 = vld [vmem:[%s6295_s7 + $0x248] sm:$0xff]  ;;  %v4327_v20 = vld [vmem:[%s6295_s7 + $0x340] sm:$0xff]  ;;  %s4397_s12 = sshll.u32 %s7213_s30, 5 }
 0x7f4   : > { %4991 = vmatprep.subr.bf16.mxu0 %v4990_v38  ;;  %5023 = vmatprep.subr.bf16.mxu1 %v5022_v41  ;;  %v7072_v38 = vpack.c.bf16 %v4300_v37, %v4296_v28  ;;  %v4295_v41 = vld [vmem:[%s6295_s7 + $0x240] sm:$0xff]  ;;  %v4334_v37 = vld [vmem:[%s6295_s7 + $0x378] sm:$0xff] }
 0x7f5   : > { %v7077_v17 = vpack.c.bf16 %v4299_v9, %v4295_v41  ;;  %v4331_v28 = vld [vmem:[%s6295_s7 + $0x360] sm:$0xff]  ;;  %v4329_v9 = vld [vmem:[%s6295_s7 + $0x350] sm:$0xff] }
 0x7f6   : > { %v7157_v6 = vpack.c.bf16 %v4331_v28, %v4327_v20 }
 0x7f7   : > { %4993 = vmatpush1.bf16.msra.mxu0 %v4992_v33  ;;  %5025 = vmatpush1.bf16.msra.mxu1 %v5024_v47  ;;  %v7084_v33 = vpack.c.bf16 %v4301_v23, %v4297_v21  ;;  %v4304_v47 = vld [vmem:[%s6295_s7 + $0x288] sm:$0xff]  ;;  %v7164_v21 = vpack.c.bf16 %v4333_v7, %v4329_v9 }
 0x7f8   : > { %4995 = vmatprep.subr.bf16.mxu0 %v4994_v10  ;;  %5027 = vmatprep.subr.bf16.mxu1 %v5026_v44  ;;  %v7092_v10 = vpack.c.bf16 %v4308_v22, %v4304_v47  ;;  %v4303_v44 = vld [vmem:[%s6295_s7 + $0x280] sm:$0xff]  ;;  %v4336_v23 = vld [vmem:[%s6295_s7 + $0x388] sm:$0xff]  ;;  %v4338_v22 = vld [vmem:[%s6295_s7 + $0x398] sm:$0xff] }
 0x7f9   : > { %v7097_v29 = vpack.c.bf16 %v4307_v45, %v4303_v44  ;;  %v4340_v47 = vld [vmem:[%s6295_s7 + $0x3a8] sm:$0xff]  ;;  %v4335_v44 = vld [vmem:[%s6295_s7 + $0x380] sm:$0xff] }
 0x7fa   : > { %v7171_v52 = vpack.c.bf16 %v4340_v47, %v4336_v23  ;;  %v4339_v45 = vld [vmem:[%s6295_s7 + $0x3a0] sm:$0xff] }
 0x7fb   : > { %4997 = vmatpush1.bf16.msra.mxu0 %v4996_v51  ;;  %5029 = vmatpush1.bf16.msra.mxu1 %v5028_v55  ;;  %v7104_v51 = vpack.c.bf16 %v4309_v50, %v4305_v49  ;;  %v4312_v55 = vld [vmem:[%s6295_s7 + $0x2c8] sm:$0xff]  ;;  %v7177_v49 = vpack.c.bf16 %v4339_v45, %v4335_v44  ;;  %v7179_v50 = vpack.c.bf16 %v4342_v60, %v4338_v22 }
 0x7fc   : > { %4999 = vmatprep.subr.bf16.mxu0 %v4998_v1  ;;  %5031 = vmatprep.subr.bf16.mxu1 %v5030_v5  ;;  %v7112_v1 = vpack.c.bf16 %v4316_v62, %v4312_v55  ;;  %v4311_v5 = vld [vmem:[%s6295_s7 + $0x2c0] sm:$0xff]  ;;  %v4337_v55 = vld [vmem:[%s6295_s7 + $0x390] sm:$0xff] }
 0x7fd   : > { %v7116_v13 = vpack.c.bf16 %v4315_v12, %v4311_v5  ;;  %v4341_v62 = vld [vmem:[%s6295_s7 + $0x3b0] sm:$0xff]  ;;  %v4344_v5 = vld [vmem:[%s6295_s7 + $0x3c8] sm:$0xff] }
 0x7fe   : > { %v7184_v63 = vpack.c.bf16 %v4341_v62, %v4337_v55  ;;  %v4348_v12 = vld [vmem:[%s6295_s7 + $0x3e8] sm:$0xff] }
 0x7ff   : > { %5001 = vmatpush1.bf16.msra.mxu0 %v5000_v27  ;;  %5033 = vmatpush1.bf16.msra.mxu1 %v5032_v31  ;;  %v7124_v27 = vpack.c.bf16 %v4317_v25, %v4313_v18  ;;  %v4320_v31 = vld [vmem:[%s6295_s7 + $0x308] sm:$0xff]  ;;  %v7191_v18 = vpack.c.bf16 %v4348_v12, %v4344_v5  ;;  %v4343_v25 = vld [vmem:[%s6295_s7 + $0x3c0] sm:$0xff] }
 0x800   : > { %5003 = vmatprep.subr.bf16.mxu0 %v5002_v40  ;;  %5035 = vmatprep.subr.bf16.mxu1 %v5034_v42  ;;  %v4322_v40 = vld [vmem:[%s6295_s7 + $0x318] sm:$0xff]  ;;  %v7131_v42 = vpack.c.bf16 %v4324_v39, %v4320_v31  ;;  %v4347_v31 = vld [vmem:[%s6295_s7 + $0x3e0] sm:$0xff] }
 0x801   : > { %v4350_v39 = vld [vmem:[%s6295_s7 + $0x3f8] sm:$0xff] }
 0x803   : > { %5005 = vmatpush1.bf16.msra.mxu0 %v5004_v59  ;;  %5037 = vmatpush1.bf16.msra.mxu1 %v5036_v3  ;;  %v7137_v59 = vpack.c.bf16 %v4323_v57, %v4319_v46  ;;  %v7139_v3 = vpack.c.bf16 %v4326_v58, %v4322_v40  ;;  %v7197_v40 = vpack.c.bf16 %v4347_v31, %v4343_v25  ;;  %v4345_v57 = vld [vmem:[%s6295_s7 + $0x3d0] sm:$0xff]  ;;  %v4286_v25 = vld [vmem:[%s6297_s9 + $0x4] sm:$0xf]  ;;  %s4389_s9 = sshll.u32 %s7765_s22, 6  ;;  %s4358_s22 = sshll.u32 %s6711_s11, 3 }
 0x804   : > { %v7199_v46 = vpack.c.bf16 %v4350_v39, %v4346_v14  ;;  %v4349_v58 = vld [vmem:[%s6295_s7 + $0x3f0] sm:$0xff]  ;;  %s7412_s21 = scalar_lea.vmem %s7699_s5, %s4389_s9  ;;  %s4362_s11 = sshll.u32 %s6758_s10, 3 }
 0x805   : > { %s2811_s28 = scalar_lea.vmem %s7412_s21, %s4354_s6  ;;  %s2989_s16 = scalar_lea.vmem %s7412_s21, %s4358_s22 }
 0x806   : > { %2378 = vmatmul.mubr.f32.vlgmr.msra.gmra.mrb[32].mxu0 %v6671_v48  ;;  %2491 = vmatmul.mubr.f32.vlgmr.msra.gmra.mrb[32].mxu1 %v6671_v48  ;;  %v4288_v48 = vld [vmem:[%s6295_s7 + $0x208] sm:$0xff]  ;;  %s3167_s29 = scalar_lea.vmem %s7412_s21, %s4362_s11  ;;  %s4366_s10 = sshll.u32 %s6805_s15, 3 }
 0x807   : > { %2383 = vmatprep.mubr.f32.mxu0 %v7703_v0  ;;  %2496 = vmatprep.mubr.f32.mxu1 %v7703_v0  ;;  %s3345_s27 = scalar_lea.vmem %s7412_s21, %s4366_s10  ;;  %s4370_s15 = sshll.u32 %s6852_s13, 3 }
 0x808   : > { %s3523_s14 = scalar_lea.vmem %s7412_s21, %s4370_s15  ;;  %s4374_s13 = sshll.u32 %s6899_s17, 3 }
 0x809   : > { %s3701_s8 = scalar_lea.vmem %s7412_s21, %s4374_s13  ;;  %s4378_s17 = sshll.u32 %s6948_s24, 3 }
 0x80a   : > { %2384 = vmatmul.mubr.f32.gmra.mrb[34].mxu0 %v6718_v56  ;;  %2497 = vmatmul.mubr.f32.gmra.mrb[34].mxu1 %v6718_v56  ;;  %v4292_v56 = vld [vmem:[%s6295_s7 + $0x228] sm:$0xff]  ;;  %s4382_s24 = sshll.u32 %s7213_s30, 3 }
 0x80b   : > { %2389 = vmatprep.mubr.f32.mxu0 %v7703_v0  ;;  %2502 = vmatprep.mubr.f32.mxu1 %v7703_v0 }
 0x80e   : > { %2390 = vmatmul.mubr.f32.gmra.mrb[36].mxu0 %v6765_v4  ;;  %2503 = vmatmul.mubr.f32.gmra.mrb[36].mxu1 %v6765_v4  ;;  %v4290_v4 = vld [vmem:[%s6295_s7 + $0x218] sm:$0xff] }
 0x80f   : > { %2395 = vmatprep.mubr.f32.mxu0 %v7703_v0  ;;  %2508 = vmatprep.mubr.f32.mxu1 %v7703_v0 }
 0x812   : > { %2396 = vmatmul.mubr.f32.gmra.mrb[38].mxu0 %v6812_v19  ;;  %2509 = vmatmul.mubr.f32.gmra.mrb[38].mxu1 %v6812_v19  ;;  %v7052_v19 = vpack.c.bf16 %v4292_v56, %v4288_v48  ;;  %v4321_v48 = vld [vmem:[%s6295_s7 + $0x310] sm:$0xff] }
 0x813   : > { %2401 = vmatprep.mubr.f32.mxu0 %v7703_v0  ;;  %2514 = vmatprep.mubr.f32.mxu1 %v7703_v0  ;;  %v4325_v56 = vld [vmem:[%s6295_s7 + $0x330] sm:$0xff] }
 0x814   : > { %5039 = vmatprep.subr.bf16.mxu0 %v7052_v19 }
 0x816   : > { %2402 = vmatmul.mubr.f32.gmra.mrb[40].mxu0 %v6859_v53  ;;  %2515 = vmatmul.mubr.f32.gmra.mrb[40].mxu1 %v6859_v53  ;;  %v4287_v53 = vld [vmem:[%s6295_s7 + $0x200] sm:$0xff] }
 0x817   : > { %2407 = vmatprep.mubr.f32.mxu0 %v7703_v0  ;;  %2520 = vmatprep.mubr.f32.mxu1 %v7703_v0 }
 0x81a   : > { %2408 = vmatmul.mubr.f32.gmra.mrb[42].mxu0 %v6906_v54  ;;  %2521 = vmatmul.mubr.f32.gmra.mrb[42].mxu1 %v6906_v54  ;;  %v4291_v54 = vld [vmem:[%s6295_s7 + $0x220] sm:$0xff] }
 0x81b   : > { %2413 = vmatprep.mubr.f32.mxu0 %v7703_v0  ;;  %2526 = vmatprep.mubr.f32.mxu1 %v7703_v0  ;;  %v7057_v15 = vpack.c.bf16 %v4291_v54, %v4287_v53  ;;  %v4328_v53 = vld [vmem:[%s6295_s7 + $0x348] sm:$0xff] }
 0x81c   : > { %v4332_v54 = vld [vmem:[%s6295_s7 + $0x368] sm:$0xff] }
 0x81d   : > { %5041 = vmatpush1.bf16.msra.mxu0 %v7057_v15  ;;  %v7151_v16 = vpack.c.bf16 %v4332_v54, %v4328_v53 }
 0x81e   : > { %2414 = vmatmul.mubr.f32.gmra.mrb[44].mxu0 %v6965_v43  ;;  %2527 = vmatmul.mubr.f32.gmra.mrb[44].mxu1 %v6965_v43  ;;  %v7059_v43 = vpack.c.bf16 %v4294_v11, %v4290_v4  ;;  %v7144_v4 = vpack.c.bf16 %v4325_v56, %v4321_v48  ;;  %v4330_v11 = vld [vmem:[%s6295_s7 + $0x358] sm:$0xff]  ;;  %v7204_v48 = vpack.c.bf16 %v4349_v58, %v4345_v57  ;;  %s2041_s7 = scalar_lea.vmem [#allocation2], %s4397_s12  ;;  %s3879_s12 = scalar_lea.vmem %s7412_s21, %s4378_s17 }
 0x81f   : > { %2419 = vmatprep.mubr.f32.mxu0 %v7703_v0  ;;  %2532 = vmatprep.mubr.f32.mxu1 %v7703_v0  ;;  %v7159_v41 = vpack.c.bf16 %v4334_v37, %v4330_v11  ;;  %v2042_v56 = vld [vmem:[%s2041_s7] sm:$0xff]  ;;  %v2043_v20 = vld [vmem:[%s2041_s7 + $0x8] sm:$0xff]  ;;  %v2045_v47 = vld [vmem:[%s2041_s7 + $0x18] sm:$0xff] }
 0x820   : > { %5071 = vmatprep.subr.bf16.mxu1 %v7059_v43  ;;  %5043 = vmatprep.subr.bf16.mxu0 %v7072_v38  ;;  %v2044_v44 = vld [vmem:[%s2041_s7 + $0x10] sm:$0xff]  ;;  %s4057_s7 = scalar_lea.vmem %s7412_s21, %s4382_s24 }
 0x821   : > { %5073 = vmatpush1.bf16.msra.mxu1 %v7064_v24  ;;  %5045 = vmatpush1.bf16.msra.mxu0 %v7077_v17 }
 0x822   : > { %5075 = vmatprep.subr.bf16.mxu1 %v7079_v61  ;;  %5047 = vmatprep.subr.bf16.mxu0 %v7092_v10 }
 0x825   : > { %5077 = vmatpush1.bf16.msra.mxu1 %v7084_v33  ;;  %5049 = vmatpush1.bf16.msra.mxu0 %v7097_v29 }
 0x826   : > { %5079 = vmatprep.subr.bf16.mxu1 %v7099_v2  ;;  %5051 = vmatprep.subr.bf16.mxu0 %v7112_v1 }
 0x829   : > { %5081 = vmatpush1.bf16.msra.mxu1 %v7104_v51  ;;  %5053 = vmatpush1.bf16.msra.mxu0 %v7116_v13 }
 0x82a   : > { %5083 = vmatprep.subr.bf16.mxu1 %v7122_v26  ;;  %5055 = vmatprep.subr.bf16.mxu0 %v7131_v42 }
 0x82d   : > { %5085 = vmatpush1.bf16.msra.mxu1 %v7124_v27  ;;  %5057 = vmatpush1.bf16.msra.mxu0 %v7137_v59 }
 0x82e   : > { %5087 = vmatprep.subr.bf16.mxu1 %v7139_v3  ;;  %5059 = vmatprep.subr.bf16.mxu0 %v7151_v16 }
 0x831   : > { %5089 = vmatpush1.bf16.msra.mxu1 %v7144_v4  ;;  %5061 = vmatpush1.bf16.msra.mxu0 %v7157_v6 }
 0x832   : > { %5091 = vmatprep.subr.bf16.mxu1 %v7159_v41  ;;  %5063 = vmatprep.subr.bf16.mxu0 %v7171_v52 }
 0x835   : > { %5093 = vmatpush1.bf16.msra.mxu1 %v7164_v21  ;;  %5065 = vmatpush1.bf16.msra.mxu0 %v7177_v49 }
 0x836   : > { %5095 = vmatprep.subr.bf16.mxu1 %v7179_v50  ;;  %5067 = vmatprep.subr.bf16.mxu0 %v7191_v18 }
 0x839   : > { %5097 = vmatpush1.bf16.msra.mxu1 %v7184_v63  ;;  %5069 = vmatpush1.bf16.msra.mxu0 %v7197_v40 }
 0x83a   : > { %5099 = vmatprep.subr.bf16.mxu1 %v7199_v46  ;;  %5103 = vmatprep.subr.bf16.mxu0 %v7052_v19 }
 0x83d   : > { %5101 = vmatpush1.bf16.msra.mxu1 %v7204_v48 }
 0x83e   : > { %5135 = vmatprep.subr.bf16.mxu1 %v7059_v43 }
 0x8b9   : > { %v2112_v53 = vpop.f32.mrb[30].mxu0  ;;  %v2183_v54 = vpop.f32.mrb[30].mxu1 }
 0x8ba   : > { %v2188_v11 = vadd.f32 %v2112_v53, %v2042_v56  ;;  %v2114_v28 = vpop.f32.mrb[31].mxu0  ;;  %v2185_v37 = vpop.f32.mrb[31].mxu1  ;;  %v2190_v60 = vadd.f32 %v2183_v54, %v2044_v44  ;;  %v7219_v53 = vrot.slane %v4286_v25, %v439_v32  ;;  %v7223_v54 = vrot.slane %v4286_v25, %v447_v35 }
 0x8bb   : > { %v2189_v9 = vadd.f32 %v2114_v28, %v2043_v20  ;;  %v2191_v22 = vadd.f32 %v2185_v37, %v2045_v47  ;;  %v7228_v20 = vrot.slane %v4286_v25, %v443_v34  ;;  %v7232_v28 = vrot.slane %v4286_v25, %v451_v36 }
 0x8bc   : > { %v4283_v7 = vmul.f32 -1.442695, %v2188_v11 }
 0x8bd   : > { %v4284_v23 = vmul.f32 -1.442695, %v2189_v9  ;;  %v4285_v45 = vmul.f32 -1.442695, %v2191_v22 }
 0x8be   : > { %5721 = vpow2.f32 %v4283_v7 }
 0x8bf   : > { %5723 = vpow2.f32 %v4284_v23 }
 0x8c0   : > { %5725 = vpow2.f32 %v4285_v45 }
 0x8c1   : > { %5727 = vtanh.f32 %v2190_v60 }
 0x8c8   : > { %v5722_v55 = vpop.eup %5721 }
 0x8c9   : > { %v5724_v62 = vpop.eup %5723  ;;  %v2195_v5 = vadd.f32 1.0, %v5722_v55 }
 0x8ca   : > { %v2201_v12 = vadd.f32 1.0, %v5724_v62  ;;  %v5726_v14 = vpop.eup %5725 }
 0x8cb   : > { %5729 = vrcp.f32 %v2195_v5  ;;  %v5728_v31 = vpop.eup %5727  ;;  %v2208_v56 = vadd.f32 1.0, %v5726_v14 }
 0x8cc   : > { %5731 = vrcp.f32 %v2201_v12 }
 0x8cd   : > { %5733 = vrcp.f32 %v2208_v56 }
 0x8d5   : > { %v5730_v39 = vpop.eup %5729 }
 0x8d6   : > { %v5732_v57 = vpop.eup %5731  ;;  %v2212_v58 = vmul.f32 %v5730_v39, %v5728_v31 }
 0x8d7   : > { %v2211_v11 = vmul.f32 %v5732_v57, %v6952_v8  ;;  %v5734_v56 = vpop.eup %5733 }
 0x8d9   : > { %v2379_v37 = vpop.f32.mrb[32].mxu0  ;;  %v2492_v9 = vpop.f32.mrb[32].mxu1  ;;  %v2213_v7 = vadd.f32 %v2212_v58, %v2211_v11 }
 0x8da   : > { %v7235_v32 = vadd.f32 %v2379_v37, %v7219_v53  ;;  %v7238_v35 = vadd.f32 %v2492_v9, %v7223_v54  ;;  %v2381_v23 = vpop.f32.mrb[33].mxu0  ;;  %v2494_v8 = vpop.f32.mrb[33].mxu1 }
 0x8db   : > { %v7241_v47 = vadd.f32 %v2381_v23, %v7228_v20  ;;  %v7244_v34 = vadd.f32 %v2494_v8, %v7232_v28  ;;  %5735 = vtanh.f32 %v2213_v7 }
 0x8dc   : > { %2539 = vst [vmem:[#allocation2] sm:$0xff] %v7235_v32  ;;  %2541 = vst [vmem:[#allocation2 + $0x10] sm:$0xff] %v7238_v35 }
 0x8dd   : > { %2540 = vst [vmem:[#allocation2 + $0x8] sm:$0xff] %v7241_v47  ;;  %2542 = vst [vmem:[#allocation2 + $0x18] sm:$0xff] %v7244_v34  ;;  %v2385_v30 = vpop.f32.mrb[34].mxu0  ;;  %v2498_v36 = vpop.f32.mrb[34].mxu1 }
 0x8de   : > { %v7251_v22 = vadd.f32 %v2385_v30, %v7219_v53  ;;  %v7254_v44 = vadd.f32 %v2498_v36, %v7223_v54  ;;  %v2387_v45 = vpop.f32.mrb[35].mxu0  ;;  %v2500_v60 = vpop.f32.mrb[35].mxu1 }
 0x8df   : > { %v7257_v55 = vadd.f32 %v2387_v45, %v7228_v20  ;;  %v7260_v62 = vadd.f32 %v2500_v60, %v7232_v28 }
 0x8e0   : > { %2543 = vst [vmem:[#allocation2 + $0x20] sm:$0xff] %v7251_v22  ;;  %2545 = vst [vmem:[#allocation2 + $0x30] sm:$0xff] %v7254_v44 }
 0x8e1   : > { %2544 = vst [vmem:[#allocation2 + $0x28] sm:$0xff] %v7257_v55  ;;  %2546 = vst [vmem:[#allocation2 + $0x38] sm:$0xff] %v7260_v62  ;;  %v2391_v5 = vpop.f32.mrb[36].mxu0  ;;  %v2504_v12 = vpop.f32.mrb[36].mxu1 }
 0x8e2   : > { %v7267_v14 = vadd.f32 %v2391_v5, %v7219_v53  ;;  %v7270_v25 = vadd.f32 %v2504_v12, %v7223_v54  ;;  %v2393_v31 = vpop.f32.mrb[37].mxu0  ;;  %v2506_v39 = vpop.f32.mrb[37].mxu1 }
 0x8e3   : > { %v7273_v57 = vadd.f32 %v2393_v31, %v7228_v20  ;;  %v7276_v58 = vadd.f32 %v2506_v39, %v7232_v28 }
 0x8e4   : > { %2547 = vst [vmem:[#allocation2 + $0x40] sm:$0xff] %v7267_v14  ;;  %2549 = vst [vmem:[#allocation2 + $0x50] sm:$0xff] %v7270_v25 }
 0x8e5   : > { %v5736_v11 = vpop.eup %5735  ;;  %2548 = vst [vmem:[#allocation2 + $0x48] sm:$0xff] %v7273_v57  ;;  %2550 = vst [vmem:[#allocation2 + $0x58] sm:$0xff] %v7276_v58  ;;  %v2397_v37 = vpop.f32.mrb[38].mxu0 }
 0x8e6   : > { %v2510_v9 = vpop.f32.mrb[38].mxu1  ;;  %v7283_v7 = vadd.f32 %v2397_v37, %v7219_v53  ;;  %v2399_v8 = vpop.f32.mrb[39].mxu0  ;;  %v2215_v36 = vmul.f32 %v5736_v11, %v5734_v56 }
 0x8e7   : > { %v7286_v23 = vadd.f32 %v2510_v9, %v7223_v54  ;;  %v2512_v30 = vpop.f32.mrb[39].mxu1  ;;  %v7289_v45 = vadd.f32 %v2399_v8, %v7228_v20 }
 0x8e8   : > { %v7292_v60 = vadd.f32 %v2512_v30, %v7232_v28  ;;  %2551 = vst [vmem:[#allocation2 + $0x60] sm:$0xff] %v7283_v7  ;;  %2420 = vmatmul.mubr.f32.gmra.mrb[46].mxu0 %v2215_v36  ;;  %2533 = vmatmul.mubr.f32.gmra.mrb[46].mxu1 %v2215_v36 }
 0x8e9   : > { %2553 = vst [vmem:[#allocation2 + $0x70] sm:$0xff] %v7286_v23  ;;  %2552 = vst [vmem:[#allocation2 + $0x68] sm:$0xff] %v7289_v45  ;;  %v2403_v5 = vpop.f32.mrb[40].mxu0  ;;  %v2516_v12 = vpop.f32.mrb[40].mxu1  ;;  %2704 = vmatprep.mubr.f32.mxu0 %v7703_v0  ;;  %2775 = vmatprep.mubr.f32.mxu1 %v7703_v0 }
 0x8ea   : > { %2554 = vst [vmem:[#allocation2 + $0x78] sm:$0xff] %v7292_v60  ;;  %v7301_v31 = vadd.f32 %v2403_v5, %v7219_v53  ;;  %v7304_v39 = vadd.f32 %v2516_v12, %v7223_v54  ;;  %v2405_v56 = vpop.f32.mrb[41].mxu0  ;;  %v2518_v11 = vpop.f32.mrb[41].mxu1 }
 0x8eb   : > { %v7307_v37 = vadd.f32 %v2405_v56, %v7228_v20  ;;  %v7310_v9 = vadd.f32 %v2518_v11, %v7232_v28 }
 0x8ec   : > { %7729 = vst [vmem:[#allocation14_spill] sm:$0xff] %v7304_v39  ;;  %2555 = vst [vmem:[#allocation2 + $0x80] sm:$0xff] %v7301_v31  ;;  %2705 = vmatmul.mubr.f32.vlgmr.msra.gmra.mrb[48].mxu0 %v7703_v0  ;;  %2776 = vmatmul.mubr.f32.vlgmr.msra.gmra.mrb[48].mxu1 %v7703_v0 }
 0x8ed   : > { %7730 = vst [vmem:[#allocation15_spill] sm:$0xff] %v7307_v37  ;;  %7731 = vst [vmem:[#allocation16_spill] sm:$0xff] %v7310_v9  ;;  %v2409_v8 = vpop.f32.mrb[42].mxu0  ;;  %v2522_v30 = vpop.f32.mrb[42].mxu1  ;;  %5105 = vmatpush1.bf16.msra.mxu0 %v7057_v15  ;;  %5137 = vmatpush1.bf16.msra.mxu1 %v7064_v24 }
 0x8ee   : > { %2557 = vst [vmem:[#allocation2 + $0x90] sm:$0xff] %v7304_v39  ;;  %2556 = vst [vmem:[#allocation2 + $0x88] sm:$0xff] %v7307_v37  ;;  %v7321_v36 = vadd.f32 %v2409_v8, %v7219_v53  ;;  %v7324_v5 = vadd.f32 %v2522_v30, %v7223_v54  ;;  %v2411_v12 = vpop.f32.mrb[43].mxu0  ;;  %v2524_v56 = vpop.f32.mrb[43].mxu1  ;;  %5107 = vmatprep.subr.bf16.mxu0 %v7072_v38  ;;  %5139 = vmatprep.subr.bf16.mxu1 %v7079_v61  ;;  %v7736_v39 = vmov 0.0  }
 0x8ef   : > { %2558 = vst [vmem:[#allocation2 + $0x98] sm:$0xff] %v7310_v9  ;;  %v7329_v11 = vadd.f32 %v2411_v12, %v7228_v20  ;;  %v7332_v0 = vadd.f32 %v2524_v56, %v7232_v28  ;;  %2882 = vmatprep.mubr.f32.mxu0 %v7736_v39  ;;  %2953 = vmatprep.mubr.f32.mxu1 %v7736_v39 }
 0x8f0   : > { %7732 = vst [vmem:[#allocation17_spill] sm:$0xff] %v7321_v36  ;;  %7733 = vst [vmem:[#allocation18_spill] sm:$0xff] %v7324_v5 }
 0x8f1   : > { %7734 = vst [vmem:[#allocation19_spill] sm:$0xff] %v7329_v11  ;;  %7735 = vst [vmem:[#allocation20_spill] sm:$0xff] %v7332_v0  ;;  %v2415_v8 = vpop.f32.mrb[44].mxu0  ;;  %v2528_v30 = vpop.f32.mrb[44].mxu1  ;;  %5109 = vmatpush1.bf16.msra.mxu0 %v7077_v17  ;;  %5141 = vmatpush1.bf16.msra.mxu1 %v7084_v33 }
 0x8f2   : > { %2559 = vst [vmem:[#allocation2 + $0xa0] sm:$0xff] %v7321_v36  ;;  %2561 = vst [vmem:[#allocation2 + $0xb0] sm:$0xff] %v7324_v5  ;;  %v7343_v12 = vadd.f32 %v2415_v8, %v7219_v53  ;;  %v7346_v56 = vadd.f32 %v2528_v30, %v7223_v54  ;;  %v2417_v9 = vpop.f32.mrb[45].mxu0  ;;  %v2530_v36 = vpop.f32.mrb[45].mxu1  ;;  %5111 = vmatprep.subr.bf16.mxu0 %v7092_v10  ;;  %5143 = vmatprep.subr.bf16.mxu1 %v7099_v2 }
 0x8f3   : > { %2560 = vst [vmem:[#allocation2 + $0xa8] sm:$0xff] %v7329_v11  ;;  %2562 = vst [vmem:[#allocation2 + $0xb8] sm:$0xff] %v7332_v0  ;;  %v7351_v5 = vadd.f32 %v2417_v9, %v7228_v20  ;;  %v7354_v0 = vadd.f32 %v2530_v36, %v7232_v28 }
 0x8f4   : > { %7737 = vst [vmem:[#allocation21_spill] sm:$0xff] %v7343_v12  ;;  %7738 = vst [vmem:[#allocation22_spill] sm:$0xff] %v7346_v56 }
 0x8f5   : > { %7739 = vst [vmem:[#allocation23_spill] sm:$0xff] %v7351_v5  ;;  %7740 = vst [vmem:[#allocation24_spill] sm:$0xff] %v7354_v0  ;;  %5113 = vmatpush1.bf16.msra.mxu0 %v7097_v29  ;;  %5145 = vmatpush1.bf16.msra.mxu1 %v7104_v51 }
 0x8f6   : > { %2563 = vst [vmem:[#allocation2 + $0xc0] sm:$0xff] %v7343_v12  ;;  %2565 = vst [vmem:[#allocation2 + $0xd0] sm:$0xff] %v7346_v56  ;;  %5115 = vmatprep.subr.bf16.mxu0 %v7112_v1  ;;  %5147 = vmatprep.subr.bf16.mxu1 %v7122_v26 }
 0x8f7   : > { %2564 = vst [vmem:[#allocation2 + $0xc8] sm:$0xff] %v7351_v5  ;;  %2566 = vst [vmem:[#allocation2 + $0xd8] sm:$0xff] %v7354_v0 }
 0x8f9   : > { %5117 = vmatpush1.bf16.msra.mxu0 %v7116_v13  ;;  %5149 = vmatpush1.bf16.msra.mxu1 %v7124_v27 }
 0x8fa   : > { %5119 = vmatprep.subr.bf16.mxu0 %v7131_v42  ;;  %5151 = vmatprep.subr.bf16.mxu1 %v7139_v3 }
 0x8fd   : > { %5121 = vmatpush1.bf16.msra.mxu0 %v7137_v59  ;;  %5153 = vmatpush1.bf16.msra.mxu1 %v7144_v4 }
 0x8fe   : > { %5123 = vmatprep.subr.bf16.mxu0 %v7151_v16  ;;  %5155 = vmatprep.subr.bf16.mxu1 %v7159_v41 }
 0x901   : > { %5125 = vmatpush1.bf16.msra.mxu0 %v7157_v6  ;;  %5157 = vmatpush1.bf16.msra.mxu1 %v7164_v21 }
 0x902   : > { %5127 = vmatprep.subr.bf16.mxu0 %v7171_v52  ;;  %5159 = vmatprep.subr.bf16.mxu1 %v7179_v50 }
 0x905   : > { %5129 = vmatpush1.bf16.msra.mxu0 %v7177_v49  ;;  %5161 = vmatpush1.bf16.msra.mxu1 %v7184_v63 }
 0x906   : > { %5131 = vmatprep.subr.bf16.mxu0 %v7191_v18  ;;  %5163 = vmatprep.subr.bf16.mxu1 %v7199_v46 }
 0x909   : > { %5133 = vmatpush1.bf16.msra.mxu0 %v7197_v40  ;;  %5165 = vmatpush1.bf16.msra.mxu1 %v7204_v48 }
 0x90a   : > { %5167 = vmatprep.subr.bf16.mxu0 %v7052_v19  ;;  %5199 = vmatprep.subr.bf16.mxu1 %v7059_v43 }
 0x9bb   : > { %v2421_v9 = vpop.f32.mrb[46].mxu0  ;;  %v2534_v36 = vpop.f32.mrb[46].mxu1 }
 0x9bc   : > { %v7385_v8 = vadd.f32 %v2421_v9, %v7219_v53  ;;  %v7388_v30 = vadd.f32 %v2534_v36, %v7223_v54  ;;  %v2423_v56 = vpop.f32.mrb[47].mxu0  ;;  %v2536_v0 = vpop.f32.mrb[47].mxu1 }
 0x9bd   : > { %v7391_v5 = vadd.f32 %v2423_v56, %v7228_v20  ;;  %v7394_v12 = vadd.f32 %v2536_v0, %v7232_v28 }
 0x9be   : > { %7741 = vst [vmem:[#allocation25_spill] sm:$0xff] %v7385_v8  ;;  %7742 = vst [vmem:[#allocation26_spill] sm:$0xff] %v7388_v30 }
 0x9bf   : > { %7743 = vst [vmem:[#allocation27_spill] sm:$0xff] %v7391_v5  ;;  %7744 = vst [vmem:[#allocation28_spill] sm:$0xff] %v7394_v12  ;;  %v2706_v53 = vpop.f32.mrb[48].mxu0  ;;  %v2777_v9 = vpop.f32.mrb[48].mxu1 }
 0x9c0   : > { %2567 = vst [vmem:[#allocation2 + $0xe0] sm:$0xff] %v7385_v8  ;;  %2569 = vst [vmem:[#allocation2 + $0xf0] sm:$0xff] %v7388_v30  ;;  %v2782_v54 = vadd.f32 %v2706_v53, %v7235_v32  ;;  %v2708_v36 = vpop.f32.mrb[49].mxu0  ;;  %v2779_v11 = vpop.f32.mrb[49].mxu1  ;;  %v2784_v30 = vadd.f32 %v2777_v9, %v7238_v35 }
 0x9c1   : > { %2568 = vst [vmem:[#allocation2 + $0xe8] sm:$0xff] %v7391_v5  ;;  %2570 = vst [vmem:[#allocation2 + $0xf8] sm:$0xff] %v7394_v12  ;;  %v2783_v20 = vadd.f32 %v2708_v36, %v7241_v47  ;;  %v2785_v0 = vadd.f32 %v2779_v11, %v7244_v34 }
 0x9c2   : > { %v4351_v56 = vmul.f32 -1.442695, %v2782_v54 }
 0x9c3   : > { %v4352_v37 = vmul.f32 -1.442695, %v2783_v20  ;;  %v4353_v28 = vmul.f32 -1.442695, %v2785_v0 }
 0x9c4   : > { %5737 = vpow2.f32 %v4351_v56 }
 0x9c5   : > { %5739 = vpow2.f32 %v4352_v37 }
 0x9c6   : > { %5741 = vpow2.f32 %v4353_v28 }
 0x9c7   : > { %5743 = vtanh.f32 %v2784_v30 }
 0x9ce   : > { %v5738_v5 = vpop.eup %5737 }
 0x9cf   : > { %v5740_v12 = vpop.eup %5739  ;;  %v2789_v8 = vadd.f32 1.0, %v5738_v5 }
 0x9d0   : > { %v2795_v32 = vadd.f32 1.0, %v5740_v12  ;;  %v5742_v47 = vpop.eup %5741 }
 0x9d1   : > { %5745 = vrcp.f32 %v2789_v8  ;;  %v5744_v53 = vpop.eup %5743  ;;  %v2802_v34 = vadd.f32 1.0, %v5742_v47 }
 0x9d2   : > { %5747 = vrcp.f32 %v2795_v32 }
 0x9d3   : > { %5749 = vrcp.f32 %v2802_v34 }
 0x9db   : > { %v5746_v54 = vpop.eup %5745 }
 0x9dc   : > { %v5748_v37 = vpop.eup %5747  ;;  %v2806_v36 = vmul.f32 %v5746_v54, %v5744_v53 }
 0x9dd   : > { %v2805_v11 = vmul.f32 0.0, %v5748_v37  ;;  %v5750_v35 = vpop.eup %5749 }
 0x9df   : > { %v7405_v20 = vadd.f32 %v2806_v36, %v2805_v11 }
 0x9e1   : > { %5751 = vtanh.f32 %v7405_v20 }
 0x9eb   : > { %v5752_v5 = vpop.eup %5751 }
 0x9ec   : > { %v2809_v12 = vmul.f32 %v5752_v5, %v5750_v35 }
 0x9ee   : > { %2812 = vst [vmem:[%s2811_s28] sm:$0xff] %v2809_v12  ;;  %2883 = vmatmul.mubr.f32.vlgmr.msra.gmra.mrb[50].mxu0 %v2809_v12  ;;  %2954 = vmatmul.mubr.f32.vlgmr.msra.gmra.mrb[50].mxu1 %v2809_v12 }
 0x9ef   : > { %5169 = vmatpush1.bf16.msra.mxu0 %v7057_v15  ;;  %5201 = vmatpush1.bf16.msra.mxu1 %v7064_v24 }
 0x9f0   : > { %5171 = vmatprep.subr.bf16.mxu0 %v7072_v38  ;;  %5203 = vmatprep.subr.bf16.mxu1 %v7079_v61 }
 0x9f1   : > { %3060 = vmatprep.mubr.f32.mxu0 %v7736_v39  ;;  %3131 = vmatprep.mubr.f32.mxu1 %v7736_v39 }
 0x9f3   : > { %5173 = vmatpush1.bf16.msra.mxu0 %v7077_v17  ;;  %5205 = vmatpush1.bf16.msra.mxu1 %v7084_v33 }
 0x9f4   : > { %5175 = vmatprep.subr.bf16.mxu0 %v7092_v10  ;;  %5207 = vmatprep.subr.bf16.mxu1 %v7099_v2 }
 0x9f7   : > { %5177 = vmatpush1.bf16.msra.mxu0 %v7097_v29  ;;  %5209 = vmatpush1.bf16.msra.mxu1 %v7104_v51 }
 0x9f8   : > { %5179 = vmatprep.subr.bf16.mxu0 %v7112_v1  ;;  %5211 = vmatprep.subr.bf16.mxu1 %v7122_v26 }
 0x9fb   : > { %5181 = vmatpush1.bf16.msra.mxu0 %v7116_v13  ;;  %5213 = vmatpush1.bf16.msra.mxu1 %v7124_v27 }
 0x9fc   : > { %5183 = vmatprep.subr.bf16.mxu0 %v7131_v42  ;;  %5215 = vmatprep.subr.bf16.mxu1 %v7139_v3 }
 0x9ff   : > { %5185 = vmatpush1.bf16.msra.mxu0 %v7137_v59  ;;  %5217 = vmatpush1.bf16.msra.mxu1 %v7144_v4 }
 0xa00   : > { %5187 = vmatprep.subr.bf16.mxu0 %v7151_v16  ;;  %5219 = vmatprep.subr.bf16.mxu1 %v7159_v41 }
 0xa03   : > { %5189 = vmatpush1.bf16.msra.mxu0 %v7157_v6  ;;  %5221 = vmatpush1.bf16.msra.mxu1 %v7164_v21 }
 0xa04   : > { %5191 = vmatprep.subr.bf16.mxu0 %v7171_v52  ;;  %5223 = vmatprep.subr.bf16.mxu1 %v7179_v50 }
 0xa07   : > { %5193 = vmatpush1.bf16.msra.mxu0 %v7177_v49  ;;  %5225 = vmatpush1.bf16.msra.mxu1 %v7184_v63 }
 0xa08   : > { %5195 = vmatprep.subr.bf16.mxu0 %v7191_v18  ;;  %5227 = vmatprep.subr.bf16.mxu1 %v7199_v46 }
 0xa0b   : > { %5197 = vmatpush1.bf16.msra.mxu0 %v7197_v40  ;;  %5229 = vmatpush1.bf16.msra.mxu1 %v7204_v48 }
 0xa0c   : > { %5231 = vmatprep.subr.bf16.mxu0 %v7052_v19  ;;  %5263 = vmatprep.subr.bf16.mxu1 %v7059_v43 }
 0xac1   : > { %v2884_v8 = vpop.f32.mrb[50].mxu0  ;;  %v2955_v30 = vpop.f32.mrb[50].mxu1 }
 0xac2   : > { %v2960_v9 = vadd.f32 %v2884_v8, %v7251_v22  ;;  %v2886_v56 = vpop.f32.mrb[51].mxu0  ;;  %v2957_v0 = vpop.f32.mrb[51].mxu1  ;;  %v2962_v37 = vadd.f32 %v2955_v30, %v7254_v44 }
 0xac3   : > { %v2961_v28 = vadd.f32 %v2886_v56, %v7257_v55  ;;  %v2963_v53 = vadd.f32 %v2957_v0, %v7260_v62 }
 0xac4   : > { %v4355_v32 = vmul.f32 -1.442695, %v2960_v9 }
 0xac5   : > { %v4356_v47 = vmul.f32 -1.442695, %v2961_v28  ;;  %v4357_v54 = vmul.f32 -1.442695, %v2963_v53 }
 0xac6   : > { %5753 = vpow2.f32 %v4355_v32 }
 0xac7   : > { %5755 = vpow2.f32 %v4356_v47 }
 0xac8   : > { %5757 = vpow2.f32 %v4357_v54 }
 0xac9   : > { %5759 = vtanh.f32 %v2962_v37 }
 0xad0   : > { %v5754_v36 = vpop.eup %5753 }
 0xad1   : > { %v5756_v34 = vpop.eup %5755  ;;  %v2967_v11 = vadd.f32 1.0, %v5754_v36 }
 0xad2   : > { %v2973_v22 = vadd.f32 1.0, %v5756_v34  ;;  %v5758_v55 = vpop.eup %5757 }
 0xad3   : > { %5761 = vrcp.f32 %v2967_v11  ;;  %v5760_v35 = vpop.eup %5759  ;;  %v2980_v9 = vadd.f32 1.0, %v5758_v55 }
 0xad4   : > { %5763 = vrcp.f32 %v2973_v22 }
 0xad5   : > { %5765 = vrcp.f32 %v2980_v9 }
 0xadd   : > { %v5762_v5 = vpop.eup %5761 }
 0xade   : > { %v5764_v12 = vpop.eup %5763  ;;  %v2984_v8 = vmul.f32 %v5762_v5, %v5760_v35 }
 0xadf   : > { %v2983_v62 = vmul.f32 %v5764_v12, %v7405_v20  ;;  %v5766_v44 = vpop.eup %5765 }
 0xae1   : > { %v7455_v56 = vadd.f32 %v2984_v8, %v2983_v62 }
 0xae3   : > { %5767 = vtanh.f32 %v7455_v56 }
 0xaed   : > { %v5768_v30 = vpop.eup %5767 }
 0xaee   : > { %v2987_v0 = vmul.f32 %v5768_v30, %v5766_v44 }
 0xaf0   : > { %2990 = vst [vmem:[%s2989_s16] sm:$0xff] %v2987_v0  ;;  %3061 = vmatmul.mubr.f32.vlgmr.msra.gmra.mrb[52].mxu0 %v2987_v0  ;;  %3132 = vmatmul.mubr.f32.vlgmr.msra.gmra.mrb[52].mxu1 %v2987_v0 }
 0xaf1   : > { %5233 = vmatpush1.bf16.msra.mxu0 %v7057_v15  ;;  %5265 = vmatpush1.bf16.msra.mxu1 %v7064_v24 }
 0xaf2   : > { %5235 = vmatprep.subr.bf16.mxu0 %v7072_v38  ;;  %5267 = vmatprep.subr.bf16.mxu1 %v7079_v61 }
 0xaf3   : > { %3238 = vmatprep.mubr.f32.mxu0 %v7736_v39  ;;  %3309 = vmatprep.mubr.f32.mxu1 %v7736_v39 }
 0xaf5   : > { %5237 = vmatpush1.bf16.msra.mxu0 %v7077_v17  ;;  %5269 = vmatpush1.bf16.msra.mxu1 %v7084_v33 }
 0xaf6   : > { %5239 = vmatprep.subr.bf16.mxu0 %v7092_v10  ;;  %5271 = vmatprep.subr.bf16.mxu1 %v7099_v2 }
 0xaf9   : > { %5241 = vmatpush1.bf16.msra.mxu0 %v7097_v29  ;;  %5273 = vmatpush1.bf16.msra.mxu1 %v7104_v51 }
 0xafa   : > { %5243 = vmatprep.subr.bf16.mxu0 %v7112_v1  ;;  %5275 = vmatprep.subr.bf16.mxu1 %v7122_v26 }
 0xafd   : > { %5245 = vmatpush1.bf16.msra.mxu0 %v7116_v13  ;;  %5277 = vmatpush1.bf16.msra.mxu1 %v7124_v27 }
 0xafe   : > { %5247 = vmatprep.subr.bf16.mxu0 %v7131_v42  ;;  %5279 = vmatprep.subr.bf16.mxu1 %v7139_v3 }
 0xb01   : > { %5249 = vmatpush1.bf16.msra.mxu0 %v7137_v59  ;;  %5281 = vmatpush1.bf16.msra.mxu1 %v7144_v4 }
 0xb02   : > { %5251 = vmatprep.subr.bf16.mxu0 %v7151_v16  ;;  %5283 = vmatprep.subr.bf16.mxu1 %v7159_v41 }
 0xb05   : > { %5253 = vmatpush1.bf16.msra.mxu0 %v7157_v6  ;;  %5285 = vmatpush1.bf16.msra.mxu1 %v7164_v21 }
 0xb06   : > { %5255 = vmatprep.subr.bf16.mxu0 %v7171_v52  ;;  %5287 = vmatprep.subr.bf16.mxu1 %v7179_v50 }
 0xb09   : > { %5257 = vmatpush1.bf16.msra.mxu0 %v7177_v49  ;;  %5289 = vmatpush1.bf16.msra.mxu1 %v7184_v63 }
 0xb0a   : > { %5259 = vmatprep.subr.bf16.mxu0 %v7191_v18  ;;  %5291 = vmatprep.subr.bf16.mxu1 %v7199_v46 }
 0xb0d   : > { %5261 = vmatpush1.bf16.msra.mxu0 %v7197_v40  ;;  %5293 = vmatpush1.bf16.msra.mxu1 %v7204_v48 }
 0xb0e   : > { %5295 = vmatprep.subr.bf16.mxu0 %v7052_v19  ;;  %5327 = vmatprep.subr.bf16.mxu1 %v7059_v43 }
 0xbc3   : > { %v3062_v20 = vpop.f32.mrb[52].mxu0  ;;  %v3133_v28 = vpop.f32.mrb[52].mxu1 }
 0xbc4   : > { %v3138_v32 = vadd.f32 %v3062_v20, %v7267_v14  ;;  %v3064_v47 = vpop.f32.mrb[53].mxu0  ;;  %v3135_v53 = vpop.f32.mrb[53].mxu1  ;;  %v3140_v22 = vadd.f32 %v3133_v28, %v7270_v25 }
 0xbc5   : > { %v3139_v54 = vadd.f32 %v3064_v47, %v7273_v57  ;;  %v3141_v34 = vadd.f32 %v3135_v53, %v7276_v58 }
 0xbc6   : > { %v4359_v37 = vmul.f32 -1.442695, %v3138_v32 }
 0xbc7   : > { %v4360_v36 = vmul.f32 -1.442695, %v3139_v54  ;;  %v4361_v11 = vmul.f32 -1.442695, %v3141_v34 }
 0xbc8   : > { %5769 = vpow2.f32 %v4359_v37 }
 0xbc9   : > { %5771 = vpow2.f32 %v4360_v36 }
 0xbca   : > { %5773 = vpow2.f32 %v4361_v11 }
 0xbcb   : > { %5775 = vtanh.f32 %v3140_v22 }
 0xbd2   : > { %v5770_v55 = vpop.eup %5769 }
 0xbd3   : > { %v5772_v35 = vpop.eup %5771  ;;  %v3145_v5 = vadd.f32 1.0, %v5770_v55 }
 0xbd4   : > { %v3151_v14 = vadd.f32 1.0, %v5772_v35  ;;  %v5774_v57 = vpop.eup %5773 }
 0xbd5   : > { %5777 = vrcp.f32 %v3145_v5  ;;  %v5776_v12 = vpop.eup %5775  ;;  %v3158_v44 = vadd.f32 1.0, %v5774_v57 }
 0xbd6   : > { %5779 = vrcp.f32 %v3151_v14 }
 0xbd7   : > { %5781 = vrcp.f32 %v3158_v44 }
 0xbdf   : > { %v5778_v8 = vpop.eup %5777 }
 0xbe0   : > { %v5780_v9 = vpop.eup %5779  ;;  %v3162_v62 = vmul.f32 %v5778_v8, %v5776_v12 }
 0xbe1   : > { %v3161_v58 = vmul.f32 %v5780_v9, %v7455_v56  ;;  %v5782_v25 = vpop.eup %5781 }
 0xbe3   : > { %v7499_v30 = vadd.f32 %v3162_v62, %v3161_v58 }
 0xbe5   : > { %5783 = vtanh.f32 %v7499_v30 }
 0xbef   : > { %v5784_v0 = vpop.eup %5783 }
 0xbf0   : > { %v3165_v20 = vmul.f32 %v5784_v0, %v5782_v25 }
 0xbf2   : > { %3168 = vst [vmem:[%s3167_s29] sm:$0xff] %v3165_v20  ;;  %3239 = vmatmul.mubr.f32.vlgmr.msra.gmra.mrb[54].mxu0 %v3165_v20  ;;  %3310 = vmatmul.mubr.f32.vlgmr.msra.gmra.mrb[54].mxu1 %v3165_v20 }
 0xbf3   : > { %5297 = vmatpush1.bf16.msra.mxu0 %v7057_v15  ;;  %5329 = vmatpush1.bf16.msra.mxu1 %v7064_v24 }
 0xbf4   : > { %5299 = vmatprep.subr.bf16.mxu0 %v7072_v38  ;;  %5331 = vmatprep.subr.bf16.mxu1 %v7079_v61 }
 0xbf5   : > { %3416 = vmatprep.mubr.f32.mxu0 %v7736_v39  ;;  %3487 = vmatprep.mubr.f32.mxu1 %v7736_v39 }
 0xbf7   : > { %5301 = vmatpush1.bf16.msra.mxu0 %v7077_v17  ;;  %5333 = vmatpush1.bf16.msra.mxu1 %v7084_v33 }
 0xbf8   : > { %5303 = vmatprep.subr.bf16.mxu0 %v7092_v10  ;;  %5335 = vmatprep.subr.bf16.mxu1 %v7099_v2 }
 0xbfb   : > { %5305 = vmatpush1.bf16.msra.mxu0 %v7097_v29  ;;  %5337 = vmatpush1.bf16.msra.mxu1 %v7104_v51 }
 0xbfc   : > { %5307 = vmatprep.subr.bf16.mxu0 %v7112_v1  ;;  %5339 = vmatprep.subr.bf16.mxu1 %v7122_v26 }
 0xbff   : > { %5309 = vmatpush1.bf16.msra.mxu0 %v7116_v13  ;;  %5341 = vmatpush1.bf16.msra.mxu1 %v7124_v27 }
 0xc00   : > { %5311 = vmatprep.subr.bf16.mxu0 %v7131_v42  ;;  %5343 = vmatprep.subr.bf16.mxu1 %v7139_v3 }
 0xc03   : > { %5313 = vmatpush1.bf16.msra.mxu0 %v7137_v59  ;;  %5345 = vmatpush1.bf16.msra.mxu1 %v7144_v4 }
 0xc04   : > { %5315 = vmatprep.subr.bf16.mxu0 %v7151_v16  ;;  %5347 = vmatprep.subr.bf16.mxu1 %v7159_v41 }
 0xc07   : > { %5317 = vmatpush1.bf16.msra.mxu0 %v7157_v6  ;;  %5349 = vmatpush1.bf16.msra.mxu1 %v7164_v21 }
 0xc08   : > { %5319 = vmatprep.subr.bf16.mxu0 %v7171_v52  ;;  %5351 = vmatprep.subr.bf16.mxu1 %v7179_v50 }
 0xc0b   : > { %5321 = vmatpush1.bf16.msra.mxu0 %v7177_v49  ;;  %5353 = vmatpush1.bf16.msra.mxu1 %v7184_v63 }
 0xc0c   : > { %5323 = vmatprep.subr.bf16.mxu0 %v7191_v18  ;;  %5355 = vmatprep.subr.bf16.mxu1 %v7199_v46 }
 0xc0f   : > { %5325 = vmatpush1.bf16.msra.mxu0 %v7197_v40  ;;  %5357 = vmatpush1.bf16.msra.mxu1 %v7204_v48 }
 0xc10   : > { %5359 = vmatprep.subr.bf16.mxu0 %v7052_v19  ;;  %5391 = vmatprep.subr.bf16.mxu1 %v7059_v43 }
 0xcc5   : > { %v3240_v56 = vpop.f32.mrb[54].mxu0  ;;  %v3311_v28 = vpop.f32.mrb[54].mxu1 }
 0xcc6   : > { %v3316_v32 = vadd.f32 %v3240_v56, %v7283_v7  ;;  %v3242_v47 = vpop.f32.mrb[55].mxu0  ;;  %v3313_v53 = vpop.f32.mrb[55].mxu1  ;;  %v3318_v22 = vadd.f32 %v3311_v28, %v7286_v23  ;;  %v7745_v28 = vld [vmem:[#allocation15_spill] sm:$0xff] }
 0xcc7   : > { %v3317_v54 = vadd.f32 %v3242_v47, %v7289_v45  ;;  %v3319_v34 = vadd.f32 %v3313_v53, %v7292_v60 }
 0xcc8   : > { %v4363_v37 = vmul.f32 -1.442695, %v3316_v32 }
 0xcc9   : > { %v4364_v36 = vmul.f32 -1.442695, %v3317_v54  ;;  %v4365_v11 = vmul.f32 -1.442695, %v3319_v34  ;;  %v7746_v54 = vld [vmem:[#allocation16_spill] sm:$0xff]  ;;  %v7747_v34 = vld [vmem:[#allocation14_spill] sm:$0xff] }
 0xcca   : > { %5785 = vpow2.f32 %v4363_v37 }
 0xccb   : > { %5787 = vpow2.f32 %v4364_v36 }
 0xccc   : > { %5789 = vpow2.f32 %v4365_v11 }
 0xccd   : > { %5791 = vtanh.f32 %v3318_v22 }
 0xcd4   : > { %v5786_v55 = vpop.eup %5785 }
 0xcd5   : > { %v5788_v35 = vpop.eup %5787  ;;  %v3323_v5 = vadd.f32 1.0, %v5786_v55 }
 0xcd6   : > { %v3329_v7 = vadd.f32 1.0, %v5788_v35  ;;  %v5790_v45 = vpop.eup %5789 }
 0xcd7   : > { %5793 = vrcp.f32 %v3323_v5  ;;  %v5792_v14 = vpop.eup %5791  ;;  %v3336_v9 = vadd.f32 1.0, %v5790_v45 }
 0xcd8   : > { %5795 = vrcp.f32 %v3329_v7 }
 0xcd9   : > { %5797 = vrcp.f32 %v3336_v9 }
 0xce1   : > { %v5794_v57 = vpop.eup %5793 }
 0xce2   : > { %v5796_v12 = vpop.eup %5795  ;;  %v3340_v8 = vmul.f32 %v5794_v57, %v5792_v14 }
 0xce3   : > { %v3339_v60 = vmul.f32 %v5796_v12, %v7499_v30  ;;  %v5798_v23 = vpop.eup %5797 }
 0xce5   : > { %v7543_v62 = vadd.f32 %v3340_v8, %v3339_v60 }
 0xce7   : > { %5799 = vtanh.f32 %v7543_v62 }
 0xcf1   : > { %v5800_v44 = vpop.eup %5799 }
 0xcf2   : > { %v3343_v58 = vmul.f32 %v5800_v44, %v5798_v23 }
 0xcf4   : > { %3346 = vst [vmem:[%s3345_s27] sm:$0xff] %v3343_v58  ;;  %3417 = vmatmul.mubr.f32.vlgmr.msra.gmra.mrb[56].mxu0 %v3343_v58  ;;  %3488 = vmatmul.mubr.f32.vlgmr.msra.gmra.mrb[56].mxu1 %v3343_v58 }
 0xcf5   : > { %5361 = vmatpush1.bf16.msra.mxu0 %v7057_v15  ;;  %5393 = vmatpush1.bf16.msra.mxu1 %v7064_v24 }
 0xcf6   : > { %5363 = vmatprep.subr.bf16.mxu0 %v7072_v38  ;;  %5395 = vmatprep.subr.bf16.mxu1 %v7079_v61 }
 0xcf7   : > { %3594 = vmatprep.mubr.f32.mxu0 %v7736_v39  ;;  %3665 = vmatprep.mubr.f32.mxu1 %v7736_v39 }
 0xcf9   : > { %5365 = vmatpush1.bf16.msra.mxu0 %v7077_v17  ;;  %5397 = vmatpush1.bf16.msra.mxu1 %v7084_v33 }
 0xcfa   : > { %5367 = vmatprep.subr.bf16.mxu0 %v7092_v10  ;;  %5399 = vmatprep.subr.bf16.mxu1 %v7099_v2 }
 0xcfd   : > { %5369 = vmatpush1.bf16.msra.mxu0 %v7097_v29  ;;  %5401 = vmatpush1.bf16.msra.mxu1 %v7104_v51 }
 0xcfe   : > { %5371 = vmatprep.subr.bf16.mxu0 %v7112_v1  ;;  %5403 = vmatprep.subr.bf16.mxu1 %v7122_v26 }
 0xd01   : > { %5373 = vmatpush1.bf16.msra.mxu0 %v7116_v13  ;;  %5405 = vmatpush1.bf16.msra.mxu1 %v7124_v27 }
 0xd02   : > { %5375 = vmatprep.subr.bf16.mxu0 %v7131_v42  ;;  %5407 = vmatprep.subr.bf16.mxu1 %v7139_v3 }
 0xd05   : > { %5377 = vmatpush1.bf16.msra.mxu0 %v7137_v59  ;;  %5409 = vmatpush1.bf16.msra.mxu1 %v7144_v4 }
 0xd06   : > { %5379 = vmatprep.subr.bf16.mxu0 %v7151_v16  ;;  %5411 = vmatprep.subr.bf16.mxu1 %v7159_v41 }
 0xd09   : > { %5381 = vmatpush1.bf16.msra.mxu0 %v7157_v6  ;;  %5413 = vmatpush1.bf16.msra.mxu1 %v7164_v21 }
 0xd0a   : > { %5383 = vmatprep.subr.bf16.mxu0 %v7171_v52  ;;  %5415 = vmatprep.subr.bf16.mxu1 %v7179_v50 }
 0xd0d   : > { %5385 = vmatpush1.bf16.msra.mxu0 %v7177_v49  ;;  %5417 = vmatpush1.bf16.msra.mxu1 %v7184_v63 }
 0xd0e   : > { %5387 = vmatprep.subr.bf16.mxu0 %v7191_v18  ;;  %5419 = vmatprep.subr.bf16.mxu1 %v7199_v46 }
 0xd11   : > { %5389 = vmatpush1.bf16.msra.mxu0 %v7197_v40  ;;  %5421 = vmatpush1.bf16.msra.mxu1 %v7204_v48 }
 0xd12   : > { %5423 = vmatprep.subr.bf16.mxu0 %v7052_v19  ;;  %5455 = vmatprep.subr.bf16.mxu1 %v7059_v43 }
 0xdc7   : > { %v3418_v30 = vpop.f32.mrb[56].mxu0  ;;  %v3489_v25 = vpop.f32.mrb[56].mxu1 }
 0xdc8   : > { %v3494_v0 = vadd.f32 %v3418_v30, %v7301_v31  ;;  %v3420_v20 = vpop.f32.mrb[57].mxu0  ;;  %v3491_v56 = vpop.f32.mrb[57].mxu1  ;;  %v3496_v11 = vadd.f32 %v3489_v25, %v7747_v34  ;;  %v7748_v30 = vld [vmem:[#allocation17_spill] sm:$0xff] }
 0xdc9   : > { %v3495_v32 = vadd.f32 %v3420_v20, %v7745_v28  ;;  %v3497_v37 = vadd.f32 %v3491_v56, %v7746_v54  ;;  %v7749_v56 = vld [vmem:[#allocation19_spill] sm:$0xff] }
 0xdca   : > { %v4367_v47 = vmul.f32 -1.442695, %v3494_v0 }
 0xdcb   : > { %v4368_v53 = vmul.f32 -1.442695, %v3495_v32  ;;  %v4369_v36 = vmul.f32 -1.442695, %v3497_v37 }
 0xdcc   : > { %5801 = vpow2.f32 %v4367_v47 }
 0xdcd   : > { %5803 = vpow2.f32 %v4368_v53  ;;  %v7750_v53 = vld [vmem:[#allocation20_spill] sm:$0xff] }
 0xdce   : > { %5805 = vpow2.f32 %v4369_v36  ;;  %v7751_v36 = vld [vmem:[#allocation18_spill] sm:$0xff] }
 0xdcf   : > { %5807 = vtanh.f32 %v3496_v11 }
 0xdd6   : > { %v5802_v22 = vpop.eup %5801 }
 0xdd7   : > { %v5804_v55 = vpop.eup %5803  ;;  %v3501_v35 = vadd.f32 1.0, %v5802_v22 }
 0xdd8   : > { %v3507_v31 = vadd.f32 1.0, %v5804_v55  ;;  %v5806_v5 = vpop.eup %5805 }
 0xdd9   : > { %5809 = vrcp.f32 %v3501_v35  ;;  %v5808_v7 = vpop.eup %5807  ;;  %v3514_v12 = vadd.f32 1.0, %v5806_v5 }
 0xdda   : > { %5811 = vrcp.f32 %v3507_v31 }
 0xddb   : > { %5813 = vrcp.f32 %v3514_v12 }
 0xde3   : > { %v5810_v45 = vpop.eup %5809 }
 0xde4   : > { %v5812_v14 = vpop.eup %5811  ;;  %v3518_v57 = vmul.f32 %v5810_v45, %v5808_v7 }
 0xde5   : > { %v3517_v8 = vmul.f32 %v5812_v14, %v7543_v62  ;;  %v5814_v60 = vpop.eup %5813 }
 0xde7   : > { %v7587_v9 = vadd.f32 %v3518_v57, %v3517_v8 }
 0xde9   : > { %5815 = vtanh.f32 %v7587_v9 }
 0xdf3   : > { %v5816_v23 = vpop.eup %5815 }
 0xdf4   : > { %v3521_v44 = vmul.f32 %v5816_v23, %v5814_v60  ;;  %v7756_v23 = vld [vmem:[#allocation25_spill] sm:$0xff] }
 0xdf6   : > { %3524 = vst [vmem:[%s3523_s14] sm:$0xff] %v3521_v44  ;;  %3595 = vmatmul.mubr.f32.vlgmr.msra.gmra.mrb[58].mxu0 %v3521_v44  ;;  %3666 = vmatmul.mubr.f32.vlgmr.msra.gmra.mrb[58].mxu1 %v3521_v44 }
 0xdf7   : > { %5425 = vmatpush1.bf16.msra.mxu0 %v7057_v15  ;;  %5457 = vmatpush1.bf16.msra.mxu1 %v7064_v24 }
 0xdf8   : > { %5427 = vmatprep.subr.bf16.mxu0 %v7072_v38  ;;  %5459 = vmatprep.subr.bf16.mxu1 %v7079_v61 }
 0xdf9   : > { %3772 = vmatprep.mubr.f32.mxu0 %v7736_v39  ;;  %3843 = vmatprep.mubr.f32.mxu1 %v7736_v39 }
 0xdfb   : > { %5429 = vmatpush1.bf16.msra.mxu0 %v7077_v17  ;;  %5461 = vmatpush1.bf16.msra.mxu1 %v7084_v33 }
 0xdfc   : > { %5431 = vmatprep.subr.bf16.mxu0 %v7092_v10  ;;  %5463 = vmatprep.subr.bf16.mxu1 %v7099_v2 }
 0xdff   : > { %5433 = vmatpush1.bf16.msra.mxu0 %v7097_v29  ;;  %5465 = vmatpush1.bf16.msra.mxu1 %v7104_v51 }
 0xe00   : > { %5435 = vmatprep.subr.bf16.mxu0 %v7112_v1  ;;  %5467 = vmatprep.subr.bf16.mxu1 %v7122_v26 }
 0xe03   : > { %5437 = vmatpush1.bf16.msra.mxu0 %v7116_v13  ;;  %5469 = vmatpush1.bf16.msra.mxu1 %v7124_v27 }
 0xe04   : > { %5439 = vmatprep.subr.bf16.mxu0 %v7131_v42  ;;  %5471 = vmatprep.subr.bf16.mxu1 %v7139_v3 }
 0xe07   : > { %5441 = vmatpush1.bf16.msra.mxu0 %v7137_v59  ;;  %5473 = vmatpush1.bf16.msra.mxu1 %v7144_v4 }
 0xe08   : > { %5443 = vmatprep.subr.bf16.mxu0 %v7151_v16  ;;  %5475 = vmatprep.subr.bf16.mxu1 %v7159_v41 }
 0xe0b   : > { %5445 = vmatpush1.bf16.msra.mxu0 %v7157_v6  ;;  %5477 = vmatpush1.bf16.msra.mxu1 %v7164_v21 }
 0xe0c   : > { %5447 = vmatprep.subr.bf16.mxu0 %v7171_v52  ;;  %5479 = vmatprep.subr.bf16.mxu1 %v7179_v50 }
 0xe0f   : > { %5449 = vmatpush1.bf16.msra.mxu0 %v7177_v49  ;;  %5481 = vmatpush1.bf16.msra.mxu1 %v7184_v63 }
 0xe10   : > { %5451 = vmatprep.subr.bf16.mxu0 %v7191_v18  ;;  %5483 = vmatprep.subr.bf16.mxu1 %v7199_v46 }
 0xe13   : > { %5453 = vmatpush1.bf16.msra.mxu0 %v7197_v40  ;;  %5485 = vmatpush1.bf16.msra.mxu1 %v7204_v48 }
 0xe14   : > { %5487 = vmatprep.subr.bf16.mxu0 %v7052_v19  ;;  %5519 = vmatprep.subr.bf16.mxu1 %v7059_v43 }
 0xec9   : > { %v3596_v62 = vpop.f32.mrb[58].mxu0  ;;  %v3667_v58 = vpop.f32.mrb[58].mxu1 }
 0xeca   : > { %v3672_v25 = vadd.f32 %v3596_v62, %v7748_v30  ;;  %v3598_v0 = vpop.f32.mrb[59].mxu0  ;;  %v3669_v20 = vpop.f32.mrb[59].mxu1  ;;  %v3674_v34 = vadd.f32 %v3667_v58, %v7751_v36  ;;  %v7757_v30 = vld [vmem:[#allocation27_spill] sm:$0xff] }
 0xecb   : > { %v3673_v28 = vadd.f32 %v3598_v0, %v7749_v56  ;;  %v3675_v54 = vadd.f32 %v3669_v20, %v7750_v53  ;;  %v7758_v56 = vld [vmem:[#allocation28_spill] sm:$0xff] }
 0xecc   : > { %v4371_v32 = vmul.f32 -1.442695, %v3672_v25 }
 0xecd   : > { %v4372_v47 = vmul.f32 -1.442695, %v3673_v28  ;;  %v4373_v37 = vmul.f32 -1.442695, %v3675_v54 }
 0xece   : > { %5817 = vpow2.f32 %v4371_v32 }
 0xecf   : > { %5819 = vpow2.f32 %v4372_v47  ;;  %v7759_v47 = vld [vmem:[#allocation26_spill] sm:$0xff] }
 0xed0   : > { %5821 = vpow2.f32 %v4373_v37 }
 0xed1   : > { %5823 = vtanh.f32 %v3674_v34 }
 0xed8   : > { %v5818_v19 = vpop.eup %5817 }
 0xed9   : > { %v5820_v11 = vpop.eup %5819  ;;  %v3679_v43 = vadd.f32 1.0, %v5818_v19 }
 0xeda   : > { %v3685_v22 = vadd.f32 1.0, %v5820_v11  ;;  %v5822_v55 = vpop.eup %5821 }
 0xedb   : > { %5825 = vrcp.f32 %v3679_v43  ;;  %v5824_v35 = vpop.eup %5823  ;;  %v3692_v45 = vadd.f32 1.0, %v5822_v55 }
 0xedc   : > { %5827 = vrcp.f32 %v3685_v22 }
 0xedd   : > { %5829 = vrcp.f32 %v3692_v45 }
 0xee5   : > { %v5826_v31 = vpop.eup %5825 }
 0xee6   : > { %v5828_v5 = vpop.eup %5827  ;;  %v3696_v7 = vmul.f32 %v5826_v31, %v5824_v35 }
 0xee7   : > { %v3695_v14 = vmul.f32 %v5828_v5, %v7587_v9  ;;  %v5830_v12 = vpop.eup %5829 }
 0xee9   : > { %v7631_v57 = vadd.f32 %v3696_v7, %v3695_v14 }
 0xeeb   : > { %5831 = vtanh.f32 %v7631_v57 }
 0xef5   : > { %v5832_v8 = vpop.eup %5831 }
 0xef6   : > { %v3699_v60 = vmul.f32 %v5832_v8, %v5830_v12 }
 0xef8   : > { %3702 = vst [vmem:[%s3701_s8] sm:$0xff] %v3699_v60  ;;  %3773 = vmatmul.mubr.f32.vlgmr.msra.gmra.mrb[60].mxu0 %v3699_v60  ;;  %3844 = vmatmul.mubr.f32.vlgmr.msra.gmra.mrb[60].mxu1 %v3699_v60 }
 0xef9   : > { %5489 = vmatpush1.bf16.msra.mxu0 %v7057_v15  ;;  %5521 = vmatpush1.bf16.msra.mxu1 %v7064_v24 }
 0xefa   : > { %5491 = vmatprep.subr.bf16.mxu0 %v7072_v38  ;;  %5523 = vmatprep.subr.bf16.mxu1 %v7079_v61  ;;  %v7752_v38 = vld [vmem:[#allocation21_spill] sm:$0xff] }
 0xefb   : > { %3950 = vmatprep.mubr.f32.mxu0 %v7736_v39  ;;  %4021 = vmatprep.mubr.f32.mxu1 %v7736_v39 }
 0xefd   : > { %5493 = vmatpush1.bf16.msra.mxu0 %v7077_v17  ;;  %5525 = vmatpush1.bf16.msra.mxu1 %v7084_v33 }
 0xefe   : > { %5495 = vmatprep.subr.bf16.mxu0 %v7092_v10  ;;  %5527 = vmatprep.subr.bf16.mxu1 %v7099_v2  ;;  %v7753_v10 = vld [vmem:[#allocation23_spill] sm:$0xff] }
 0xf01   : > { %5497 = vmatpush1.bf16.msra.mxu0 %v7097_v29  ;;  %5529 = vmatpush1.bf16.msra.mxu1 %v7104_v51 }
 0xf02   : > { %5499 = vmatprep.subr.bf16.mxu0 %v7112_v1  ;;  %5531 = vmatprep.subr.bf16.mxu1 %v7122_v26  ;;  %v7754_v1 = vld [vmem:[#allocation24_spill] sm:$0xff] }
 0xf05   : > { %5501 = vmatpush1.bf16.msra.mxu0 %v7116_v13  ;;  %5533 = vmatpush1.bf16.msra.mxu1 %v7124_v27  ;;  %v7755_v27 = vld [vmem:[#allocation22_spill] sm:$0xff] }
 0xf06   : > { %5503 = vmatprep.subr.bf16.mxu0 %v7131_v42  ;;  %5535 = vmatprep.subr.bf16.mxu1 %v7139_v3 }
 0xf09   : > { %5505 = vmatpush1.bf16.msra.mxu0 %v7137_v59  ;;  %5537 = vmatpush1.bf16.msra.mxu1 %v7144_v4 }
 0xf0a   : > { %5507 = vmatprep.subr.bf16.mxu0 %v7151_v16  ;;  %5539 = vmatprep.subr.bf16.mxu1 %v7159_v41 }
 0xf0d   : > { %5509 = vmatpush1.bf16.msra.mxu0 %v7157_v6  ;;  %5541 = vmatpush1.bf16.msra.mxu1 %v7164_v21 }
 0xf0e   : > { %5511 = vmatprep.subr.bf16.mxu0 %v7171_v52  ;;  %5543 = vmatprep.subr.bf16.mxu1 %v7179_v50 }
 0xf11   : > { %5513 = vmatpush1.bf16.msra.mxu0 %v7177_v49  ;;  %5545 = vmatpush1.bf16.msra.mxu1 %v7184_v63 }
 0xf12   : > { %5515 = vmatprep.subr.bf16.mxu0 %v7191_v18  ;;  %5547 = vmatprep.subr.bf16.mxu1 %v7199_v46 }
 0xf15   : > { %5517 = vmatpush1.bf16.msra.mxu0 %v7197_v40  ;;  %5549 = vmatpush1.bf16.msra.mxu1 %v7204_v48 }
 0xfcb   : > { %v3774_v15 = vpop.f32.mrb[60].mxu0  ;;  %v3845_v24 = vpop.f32.mrb[60].mxu1 }
 0xfcc   : > { %v3850_v17 = vadd.f32 %v3774_v15, %v7752_v38  ;;  %v3776_v61 = vpop.f32.mrb[61].mxu0  ;;  %v3847_v33 = vpop.f32.mrb[61].mxu1  ;;  %v3852_v42 = vadd.f32 %v3845_v24, %v7755_v27 }
 0xfcd   : > { %v3851_v29 = vadd.f32 %v3776_v61, %v7753_v10  ;;  %v3853_v13 = vadd.f32 %v3847_v33, %v7754_v1 }
 0xfce   : > { %v4375_v2 = vmul.f32 -1.442695, %v3850_v17 }
 0xfcf   : > { %v4376_v51 = vmul.f32 -1.442695, %v3851_v29  ;;  %v4377_v26 = vmul.f32 -1.442695, %v3853_v13 }
 0xfd0   : > { %5833 = vpow2.f32 %v4375_v2 }
 0xfd1   : > { %5835 = vpow2.f32 %v4376_v51 }
 0xfd2   : > { %5837 = vpow2.f32 %v4377_v26 }
 0xfd3   : > { %5839 = vtanh.f32 %v3852_v42 }
 0xfda   : > { %v5834_v59 = vpop.eup %5833 }
 0xfdb   : > { %v5836_v3 = vpop.eup %5835  ;;  %v3857_v4 = vadd.f32 1.0, %v5834_v59 }
 0xfdc   : > { %v3863_v16 = vadd.f32 1.0, %v5836_v3  ;;  %v5838_v6 = vpop.eup %5837 }
 0xfdd   : > { %5841 = vrcp.f32 %v3857_v4  ;;  %v5840_v41 = vpop.eup %5839  ;;  %v3870_v50 = vadd.f32 1.0, %v5838_v6 }
 0xfde   : > { %5843 = vrcp.f32 %v3863_v16 }
 0xfdf   : > { %5845 = vrcp.f32 %v3870_v50 }
 0xfe7   : > { %v5842_v21 = vpop.eup %5841 }
 0xfe8   : > { %v5844_v52 = vpop.eup %5843  ;;  %v3874_v49 = vmul.f32 %v5842_v21, %v5840_v41 }
 0xfe9   : > { %v3873_v63 = vmul.f32 %v5844_v52, %v7631_v57  ;;  %v5846_v40 = vpop.eup %5845 }
 0xfeb   : > { %v3875_v18 = vadd.f32 %v3874_v49, %v3873_v63 }
 0xfed   : > { %5847 = vtanh.f32 %v3875_v18 }
 0xff7   : > { %v5848_v46 = vpop.eup %5847 }
 0xff8   : > { %v3877_v48 = vmul.f32 %v5848_v46, %v5846_v40 }
 0xffa   : > { %3880 = vst [vmem:[%s3879_s12] sm:$0xff] %v3877_v48  ;;  %3951 = vmatmul.mubr.f32.vlgmr.msra.gmra.mrb[62].mxu0 %v3877_v48  ;;  %4022 = vmatmul.mubr.f32.vlgmr.msra.gmra.mrb[62].mxu1 %v3877_v48 }
0x10cd   : > { %v3952_v39 = vpop.f32.mrb[62].mxu0  ;;  %v4023_v9 = vpop.f32.mrb[62].mxu1 }
0x10ce   : > { %v4028_v44 = vadd.f32 %v3952_v39, %v7756_v23  ;;  %v3954_v62 = vpop.f32.mrb[63].mxu0  ;;  %v4025_v58 = vpop.f32.mrb[63].mxu1  ;;  %v4030_v53 = vadd.f32 %v4023_v9, %v7759_v47 }
0x10cf   : > { %v4029_v25 = vadd.f32 %v3954_v62, %v7757_v30  ;;  %v4031_v28 = vadd.f32 %v4025_v58, %v7758_v56 }
0x10d0   : > { %v4379_v0 = vmul.f32 -1.442695, %v4028_v44 }
0x10d1   : > { %v4380_v20 = vmul.f32 -1.442695, %v4029_v25  ;;  %v4381_v32 = vmul.f32 -1.442695, %v4031_v28 }
0x10d2   : > { %5849 = vpow2.f32 %v4379_v0 }
0x10d3   : > { %5851 = vpow2.f32 %v4380_v20 }
0x10d4   : > { %5853 = vpow2.f32 %v4381_v32 }
0x10d5   : > { %5855 = vtanh.f32 %v4030_v53 }
0x10dc   : > { %v5850_v54 = vpop.eup %5849 }
0x10dd   : > { %v5852_v37 = vpop.eup %5851  ;;  %v4035_v36 = vadd.f32 1.0, %v5850_v54 }
0x10de   : > { %v4041_v34 = vadd.f32 1.0, %v5852_v37  ;;  %v5854_v19 = vpop.eup %5853 }
0x10df   : > { %5857 = vrcp.f32 %v4035_v36  ;;  %v5856_v11 = vpop.eup %5855  ;;  %v4048_v35 = vadd.f32 1.0, %v5854_v19 }
0x10e0   : > { %5859 = vrcp.f32 %v4041_v34 }
0x10e1   : > { %5861 = vrcp.f32 %v4048_v35 }
0x10e9   : > { %v5858_v43 = vpop.eup %5857 }
0x10ea   : > { %v5860_v22 = vpop.eup %5859  ;;  %v4052_v55 = vmul.f32 %v5858_v43, %v5856_v11 }
0x10eb   : > { %v4051_v31 = vmul.f32 %v5860_v22, %v3875_v18  ;;  %v5862_v7 = vpop.eup %5861 }
0x10ed   : > { %v4053_v5 = vadd.f32 %v4052_v55, %v4051_v31 }
0x10ef   : > { %5863 = vtanh.f32 %v4053_v5 }
0x10f9   : > { %v5864_v45 = vpop.eup %5863 }
0x10fa   : > { %v4055_v14 = vmul.f32 %v5864_v45, %v5862_v7 }
0x10fc   : > { %4058 = vst [vmem:[%s4057_s7] sm:$0xff] %v4055_v14 }
0x10fd PF: > { %p21_p5 = scmp.ge.s32.totalorder %s6090_s23, 6   ;;  %s7760_s18 = smov %s6019_s19 }
0x10fe   : > { %s7761_s19 = smov %s6023_s20  ;;  %s7762_s20 = smov %s6100_s26 }
0x10ff   : > { %s7763_s21 = smov %s6090_s23  ;;  %23 = sbr.rel (!%p21_p5) target bundleno = 7 (0x7), region = 149 }
0x1106   :  { %4080 = vsyncpa [#allocation5], 1 }
0x1107   :  { %4082 = vsyncpa [#allocation5 + $0x1], 1 }
0x1108   :  { %4083 = vsyncpa [#allocation7], 1 }
0x1109   :  { %4085 = vsyncpa [#allocation7 + $0x1], 1 }
0x110a   :  { %4086 = vsyncpa [#allocation10], 1 }
0x110b   :  { %4088 = vsyncpa [#allocation10 + $0x1], 1 }

// kernel: channelwise_lstm_forward.3
= control target key start
LH: loop header
LB: loop body
LE: loop exit
PB: predicated region body
PF: predicated region fallthrough
CT: control target
= control target key end

     0   :  { %v6993_v3 = vmov 0.0   ;;  %vm6995_vm0 = vmmov 0   ;;  %s9493_s1 = inlined_call_operand.vmem [shape: f32[4,128,512], index: 1, kind: input, shape index: {}]   ;;  %s9494_s0 = inlined_call_operand.vmem [shape: f32[4,8,8,128], index: 0, kind: input, shape index: {}]   ;;  %s9495_s3 = inlined_call_operand.vmem [shape: f32[2,128,512], index: 3, kind: input, shape index: {}]   ;;  %s9496_s4 = inlined_call_operand.vmem [shape: f32[2,1,512], index: 4, kind: input, shape index: {}]   ;;  %s9497_s2 = inlined_call_operand.vmem [shape: f32[1,128,512], index: 2, kind: input, shape index: {}]   ;;  %s9498_s5 = inlined_call_operand.vmem [shape: f32[128,128], index: 5, kind: input, shape index: {}]   ;;  %s9499_s6 = inlined_call_operand.vmem [shape: f32[1,128], index: 6, kind: input, shape index: {}]   ;;  %s9500_s7 = inlined_call_operand.vmem [shape: f32[8,128], index: 7, kind: output, shape index: {}]  }
   0x1   :  { %v4769_v0 = vld [vmem:[%s9493_s1 + $0x208] sm:$0xff]  ;;  %v4771_v2 = vld [vmem:[%s9493_s1 + $0x218] sm:$0xff]  ;;  %236 = vmatprep.mubr.f32.mxu0 %v6993_v3  ;;  %349 = vmatprep.mubr.f32.mxu1 %v6993_v3  ;;  %v4768_v6 = vld [vmem:[%s9493_s1 + $0x200] sm:$0xff] }
   0x2   :  { %v4773_v1 = vld [vmem:[%s9493_s1 + $0x228] sm:$0xff]  ;;  %v4775_v5 = vld [vmem:[%s9493_s1 + $0x238] sm:$0xff]  ;;  %v4772_v7 = vld [vmem:[%s9493_s1 + $0x220] sm:$0xff] }
   0x3   :  { %v5142_v4 = vpack.c.bf16 %v4773_v1, %v4769_v0  ;;  %v5174_v8 = vpack.c.bf16 %v4775_v5, %v4771_v2  ;;  %v5144_v9 = vpack.c.bf16 %v4772_v7, %v4768_v6  ;;  %v4770_v10 = vld [vmem:[%s9493_s1 + $0x210] sm:$0xff]  ;;  %v4777_v12 = vld [vmem:[%s9493_s1 + $0x248] sm:$0xff]  ;;  %v4779_v15 = vld [vmem:[%s9493_s1 + $0x258] sm:$0xff] }
   0x4   :  { %v4774_v11 = vld [vmem:[%s9493_s1 + $0x230] sm:$0xff]  ;;  %v4781_v14 = vld [vmem:[%s9493_s1 + $0x268] sm:$0xff]  ;;  %v4783_v16 = vld [vmem:[%s9493_s1 + $0x278] sm:$0xff] }
   0x5   :  { %5143 = vmatprep.subr.bf16.mxu0 %v5142_v4  ;;  %v5176_v13 = vpack.c.bf16 %v4774_v11, %v4770_v10  ;;  %5175 = vmatprep.subr.bf16.mxu1 %v5174_v8  ;;  %v5146_v17 = vpack.c.bf16 %v4781_v14, %v4777_v12  ;;  %v5178_v18 = vpack.c.bf16 %v4783_v16, %v4779_v15  ;;  %v4776_v19 = vld [vmem:[%s9493_s1 + $0x240] sm:$0xff]  ;;  %v4778_v21 = vld [vmem:[%s9493_s1 + $0x250] sm:$0xff]  ;;  %v4785_v24 = vld [vmem:[%s9493_s1 + $0x288] sm:$0xff] }
   0x6   :  { %5145 = vmatpush1.bf16.msra.mxu0 %v5144_v9  ;;  %v4780_v20 = vld [vmem:[%s9493_s1 + $0x260] sm:$0xff]  ;;  %v4782_v23 = vld [vmem:[%s9493_s1 + $0x270] sm:$0xff]  ;;  %v4789_v25 = vld [vmem:[%s9493_s1 + $0x2a8] sm:$0xff] }
   0x7   :  { %5177 = vmatpush1.bf16.msra.mxu1 %v5176_v13  ;;  %v5148_v22 = vpack.c.bf16 %v4780_v20, %v4776_v19  ;;  %5147 = vmatprep.subr.bf16.mxu0 %v5146_v17  ;;  %v5180_v26 = vpack.c.bf16 %v4782_v23, %v4778_v21  ;;  %v5150_v27 = vpack.c.bf16 %v4789_v25, %v4785_v24  ;;  %v4787_v28 = vld [vmem:[%s9493_s1 + $0x298] sm:$0xff]  ;;  %v4784_v30 = vld [vmem:[%s9493_s1 + $0x280] sm:$0xff]  ;;  %v4786_v33 = vld [vmem:[%s9493_s1 + $0x290] sm:$0xff] }
   0x8   :  { %5179 = vmatprep.subr.bf16.mxu1 %v5178_v18  ;;  %v4791_v29 = vld [vmem:[%s9493_s1 + $0x2b8] sm:$0xff]  ;;  %v4788_v32 = vld [vmem:[%s9493_s1 + $0x2a0] sm:$0xff]  ;;  %v4790_v34 = vld [vmem:[%s9493_s1 + $0x2b0] sm:$0xff] }
   0x9   :  { %v5182_v31 = vpack.c.bf16 %v4791_v29, %v4787_v28  ;;  %v5152_v35 = vpack.c.bf16 %v4788_v32, %v4784_v30  ;;  %v4793_v36 = vld [vmem:[%s9493_s1 + $0x2c8] sm:$0xff]  ;;  %v4795_v38 = vld [vmem:[%s9493_s1 + $0x2d8] sm:$0xff]  ;;  %v5184_v39 = vpack.c.bf16 %v4790_v34, %v4786_v33  ;;  %v4792_v42 = vld [vmem:[%s9493_s1 + $0x2c0] sm:$0xff] }
   0xa   :  { %5149 = vmatpush1.bf16.msra.mxu0 %v5148_v22  ;;  %v4797_v37 = vld [vmem:[%s9493_s1 + $0x2e8] sm:$0xff]  ;;  %v4799_v41 = vld [vmem:[%s9493_s1 + $0x2f8] sm:$0xff]  ;;  %v4796_v43 = vld [vmem:[%s9493_s1 + $0x2e0] sm:$0xff] }
   0xb   :  { %5181 = vmatpush1.bf16.msra.mxu1 %v5180_v26  ;;  %5151 = vmatprep.subr.bf16.mxu0 %v5150_v27  ;;  %v5154_v40 = vpack.c.bf16 %v4797_v37, %v4793_v36  ;;  %v5186_v44 = vpack.c.bf16 %v4799_v41, %v4795_v38  ;;  %v4794_v45 = vld [vmem:[%s9493_s1 + $0x2d0] sm:$0xff]  ;;  %v4801_v47 = vld [vmem:[%s9493_s1 + $0x308] sm:$0xff]  ;;  %v4803_v49 = vld [vmem:[%s9493_s1 + $0x318] sm:$0xff]  ;;  %v5156_v51 = vpack.c.bf16 %v4796_v43, %v4792_v42 }
   0xc   :  { %5183 = vmatprep.subr.bf16.mxu1 %v5182_v31  ;;  %v4798_v46 = vld [vmem:[%s9493_s1 + $0x2f0] sm:$0xff]  ;;  %v4805_v48 = vld [vmem:[%s9493_s1 + $0x328] sm:$0xff]  ;;  %v4807_v50 = vld [vmem:[%s9493_s1 + $0x338] sm:$0xff] }
   0xd   :  { %v5188_v52 = vpack.c.bf16 %v4798_v46, %v4794_v45  ;;  %v5158_v53 = vpack.c.bf16 %v4805_v48, %v4801_v47  ;;  %v4800_v54 = vld [vmem:[%s9493_s1 + $0x300] sm:$0xff]  ;;  %v4802_v56 = vld [vmem:[%s9493_s1 + $0x310] sm:$0xff]  ;;  %v5190_v57 = vpack.c.bf16 %v4807_v50, %v4803_v49  ;;  %v4809_v59 = vld [vmem:[%s9493_s1 + $0x348] sm:$0xff] }
   0xe   :  { %5153 = vmatpush1.bf16.msra.mxu0 %v5152_v35  ;;  %v4804_v55 = vld [vmem:[%s9493_s1 + $0x320] sm:$0xff]  ;;  %v4806_v58 = vld [vmem:[%s9493_s1 + $0x330] sm:$0xff]  ;;  %v4813_v60 = vld [vmem:[%s9493_s1 + $0x368] sm:$0xff] }
   0xf   :  { %5185 = vmatpush1.bf16.msra.mxu1 %v5184_v39  ;;  %5155 = vmatprep.subr.bf16.mxu0 %v5154_v40  ;;  %v4811_v61 = vld [vmem:[%s9493_s1 + $0x358] sm:$0xff]  ;;  %v5160_v63 = vpack.c.bf16 %v4804_v55, %v4800_v54  ;;  %v5192_v0 = vpack.c.bf16 %v4806_v58, %v4802_v56  ;;  %v5162_v1 = vpack.c.bf16 %v4813_v60, %v4809_v59  ;;  %v4808_v2 = vld [vmem:[%s9493_s1 + $0x340] sm:$0xff]  ;;  %v4810_v5 = vld [vmem:[%s9493_s1 + $0x350] sm:$0xff] }
  0x10   :  { %5187 = vmatprep.subr.bf16.mxu1 %v5186_v44  ;;  %v4815_v62 = vld [vmem:[%s9493_s1 + $0x378] sm:$0xff]  ;;  %v4812_v4 = vld [vmem:[%s9493_s1 + $0x360] sm:$0xff]  ;;  %v4814_v7 = vld [vmem:[%s9493_s1 + $0x370] sm:$0xff] }
  0x11   :  { %v5194_v6 = vpack.c.bf16 %v4815_v62, %v4811_v61  ;;  %v4817_v8 = vld [vmem:[%s9493_s1 + $0x388] sm:$0xff]  ;;  %v4819_v10 = vld [vmem:[%s9493_s1 + $0x398] sm:$0xff]  ;;  %v5164_v12 = vpack.c.bf16 %v4812_v4, %v4808_v2  ;;  %v5196_v13 = vpack.c.bf16 %v4814_v7, %v4810_v5  ;;  %v4816_v15 = vld [vmem:[%s9493_s1 + $0x380] sm:$0xff] }
  0x12   :  { %5157 = vmatpush1.bf16.msra.mxu0 %v5156_v51  ;;  %v4821_v9 = vld [vmem:[%s9493_s1 + $0x3a8] sm:$0xff]  ;;  %v4823_v11 = vld [vmem:[%s9493_s1 + $0x3b8] sm:$0xff]  ;;  %v4820_v16 = vld [vmem:[%s9493_s1 + $0x3a0] sm:$0xff] }
  0x13   :  { %5189 = vmatpush1.bf16.msra.mxu1 %v5188_v52  ;;  %5159 = vmatprep.subr.bf16.mxu0 %v5158_v53  ;;  %v5166_v14 = vpack.c.bf16 %v4821_v9, %v4817_v8  ;;  %v4818_v17 = vld [vmem:[%s9493_s1 + $0x390] sm:$0xff]  ;;  %v5198_v18 = vpack.c.bf16 %v4823_v11, %v4819_v10  ;;  %v4825_v20 = vld [vmem:[%s9493_s1 + $0x3c8] sm:$0xff]  ;;  %v4827_v22 = vld [vmem:[%s9493_s1 + $0x3d8] sm:$0xff]  ;;  %v5168_v24 = vpack.c.bf16 %v4820_v16, %v4816_v15 }
  0x14   :  { %5191 = vmatprep.subr.bf16.mxu1 %v5190_v57  ;;  %v4822_v19 = vld [vmem:[%s9493_s1 + $0x3b0] sm:$0xff]  ;;  %v4829_v21 = vld [vmem:[%s9493_s1 + $0x3e8] sm:$0xff]  ;;  %v4831_v23 = vld [vmem:[%s9493_s1 + $0x3f8] sm:$0xff] }
  0x15   :  { %v5200_v25 = vpack.c.bf16 %v4822_v19, %v4818_v17  ;;  %v5170_v26 = vpack.c.bf16 %v4829_v21, %v4825_v20  ;;  %v4824_v27 = vld [vmem:[%s9493_s1 + $0x3c0] sm:$0xff]  ;;  %v4826_v29 = vld [vmem:[%s9493_s1 + $0x3d0] sm:$0xff]  ;;  %v5202_v30 = vpack.c.bf16 %v4831_v23, %v4827_v22  ;;  %v35_v32 = vld [vmem:[%s9493_s1 + $0x8] sm:$0xff] }
  0x16   :  { %5161 = vmatpush1.bf16.msra.mxu0 %v5160_v63  ;;  %v4828_v28 = vld [vmem:[%s9493_s1 + $0x3e0] sm:$0xff]  ;;  %v4830_v31 = vld [vmem:[%s9493_s1 + $0x3f0] sm:$0xff]  ;;  %v39_v33 = vld [vmem:[%s9493_s1 + $0x28] sm:$0xff] }
  0x17   :  { %5193 = vmatpush1.bf16.msra.mxu1 %v5192_v0  ;;  %5163 = vmatprep.subr.bf16.mxu0 %v5162_v1  ;;  %v37_v34 = vld [vmem:[%s9493_s1 + $0x18] sm:$0xff]  ;;  %v5172_v36 = vpack.c.bf16 %v4828_v28, %v4824_v27  ;;  %v5204_v37 = vpack.c.bf16 %v4830_v31, %v4826_v29  ;;  %v5206_v38 = vpack.c.bf16 %v39_v33, %v35_v32  ;;  %v34_v39 = vld [vmem:[%s9493_s1] sm:$0xff]  ;;  %v36_v42 = vld [vmem:[%s9493_s1 + $0x10] sm:$0xff] }
  0x18   :  { %5195 = vmatprep.subr.bf16.mxu1 %v5194_v6  ;;  %v41_v35 = vld [vmem:[%s9493_s1 + $0x38] sm:$0xff]  ;;  %v38_v40 = vld [vmem:[%s9493_s1 + $0x20] sm:$0xff]  ;;  %v40_v43 = vld [vmem:[%s9493_s1 + $0x30] sm:$0xff] }
  0x19   :  { %v5238_v41 = vpack.c.bf16 %v41_v35, %v37_v34  ;;  %v43_v44 = vld [vmem:[%s9493_s1 + $0x48] sm:$0xff]  ;;  %v4760_v46 = vld [vmem:[%s9494_s0 + $0x40] sm:$0xff]  ;;  %v5208_v47 = vpack.c.bf16 %v38_v40, %v34_v39  ;;  %v45_v48 = vld [vmem:[%s9493_s1 + $0x58] sm:$0xff]  ;;  %v5240_v50 = vpack.c.bf16 %v40_v43, %v36_v42 }
  0x1a   :  { %5165 = vmatpush1.bf16.msra.mxu0 %v5164_v12  ;;  %v47_v45 = vld [vmem:[%s9493_s1 + $0x68] sm:$0xff]  ;;  %v49_v49 = vld [vmem:[%s9493_s1 + $0x78] sm:$0xff]  ;;  %v42_v51 = vld [vmem:[%s9493_s1 + $0x40] sm:$0xff] }
  0x1b   :  { %5197 = vmatpush1.bf16.msra.mxu1 %v5196_v13  ;;  %5167 = vmatprep.subr.bf16.mxu0 %v5166_v14  ;;  %v46_v52 = vld [vmem:[%s9493_s1 + $0x60] sm:$0xff]  ;;  %v5210_v53 = vpack.c.bf16 %v47_v45, %v43_v44  ;;  %v44_v54 = vld [vmem:[%s9493_s1 + $0x50] sm:$0xff]  ;;  %v5242_v56 = vpack.c.bf16 %v49_v49, %v45_v48  ;;  %v51_v57 = vld [vmem:[%s9493_s1 + $0x88] sm:$0xff] }
  0x1c   :  { %5199 = vmatprep.subr.bf16.mxu1 %v5198_v18  ;;  %v48_v55 = vld [vmem:[%s9493_s1 + $0x70] sm:$0xff]  ;;  %v55_v58 = vld [vmem:[%s9493_s1 + $0xa8] sm:$0xff]  ;;  %v5212_v60 = vpack.c.bf16 %v46_v52, %v42_v51  ;;  %v53_v61 = vld [vmem:[%s9493_s1 + $0x98] sm:$0xff] }
  0x1d   :  { %v4761_v59 = vld [vmem:[%s9494_s0 + $0x48] sm:$0xff]  ;;  %v57_v62 = vld [vmem:[%s9493_s1 + $0xb8] sm:$0xff]  ;;  %v5244_v63 = vpack.c.bf16 %v48_v55, %v44_v54  ;;  %v50_v0 = vld [vmem:[%s9493_s1 + $0x80] sm:$0xff]  ;;  %v5214_v2 = vpack.c.bf16 %v55_v58, %v51_v57 }
  0x1e   :  { %5169 = vmatpush1.bf16.msra.mxu0 %v5168_v24  ;;  %v54_v1 = vld [vmem:[%s9493_s1 + $0xa0] sm:$0xff]  ;;  %v52_v4 = vld [vmem:[%s9493_s1 + $0x90] sm:$0xff]  ;;  %v5246_v6 = vpack.c.bf16 %v57_v62, %v53_v61  ;;  %v59_v7 = vld [vmem:[%s9493_s1 + $0xc8] sm:$0xff] }
  0x1f   :  { %5201 = vmatpush1.bf16.msra.mxu1 %v5200_v25  ;;  %5171 = vmatprep.subr.bf16.mxu0 %v5170_v26  ;;  %v56_v5 = vld [vmem:[%s9493_s1 + $0xb0] sm:$0xff]  ;;  %v63_v8 = vld [vmem:[%s9493_s1 + $0xe8] sm:$0xff]  ;;  %v5216_v10 = vpack.c.bf16 %v54_v1, %v50_v0  ;;  %v61_v11 = vld [vmem:[%s9493_s1 + $0xd8] sm:$0xff] }
  0x20   :  { %5203 = vmatprep.subr.bf16.mxu1 %v5202_v30  ;;  %v4762_v9 = vld [vmem:[%s9494_s0 + $0x50] sm:$0xff]  ;;  %v65_v12 = vld [vmem:[%s9493_s1 + $0xf8] sm:$0xff]  ;;  %v5248_v13 = vpack.c.bf16 %v56_v5, %v52_v4  ;;  %v58_v14 = vld [vmem:[%s9493_s1 + $0xc0] sm:$0xff]  ;;  %v5218_v16 = vpack.c.bf16 %v63_v8, %v59_v7 }
  0x21   :  { %v62_v15 = vld [vmem:[%s9493_s1 + $0xe0] sm:$0xff]  ;;  %v60_v17 = vld [vmem:[%s9493_s1 + $0xd0] sm:$0xff]  ;;  %v5250_v19 = vpack.c.bf16 %v65_v12, %v61_v11  ;;  %v67_v20 = vld [vmem:[%s9493_s1 + $0x108] sm:$0xff] }
  0x22   :  { %5173 = vmatpush1.bf16.msra.mxu0 %v5172_v36  ;;  %v64_v18 = vld [vmem:[%s9493_s1 + $0xf0] sm:$0xff]  ;;  %v71_v21 = vld [vmem:[%s9493_s1 + $0x128] sm:$0xff]  ;;  %v4763_v22 = vld [vmem:[%s9494_s0 + $0x58] sm:$0xff]  ;;  %v5220_v23 = vpack.c.bf16 %v62_v15, %v58_v14 }
  0x23   :  { %5205 = vmatpush1.bf16.msra.mxu1 %v5204_v37  ;;  %5207 = vmatprep.subr.bf16.mxu0 %v5206_v38  ;;  %v69_v24 = vld [vmem:[%s9493_s1 + $0x118] sm:$0xff]  ;;  %v5252_v26 = vpack.c.bf16 %v64_v18, %v60_v17  ;;  %v66_v27 = vld [vmem:[%s9493_s1 + $0x100] sm:$0xff]  ;;  %v5222_v29 = vpack.c.bf16 %v71_v21, %v67_v20  ;;  %v68_v30 = vld [vmem:[%s9493_s1 + $0x110] sm:$0xff] }
  0x24   :  { %5239 = vmatprep.subr.bf16.mxu1 %v5238_v41  ;;  %v73_v25 = vld [vmem:[%s9493_s1 + $0x138] sm:$0xff]  ;;  %v70_v28 = vld [vmem:[%s9493_s1 + $0x120] sm:$0xff]  ;;  %v72_v31 = vld [vmem:[%s9493_s1 + $0x130] sm:$0xff] }
  0x25   :  { %237 = vmatmul.mubr.f32.vlgmr.msra.gmra.mrb[0].mxu0 %v4760_v46  ;;  %v5254_v32 = vpack.c.bf16 %v73_v25, %v69_v24  ;;  %v75_v33 = vld [vmem:[%s9493_s1 + $0x148] sm:$0xff]  ;;  %v4764_v35 = vld [vmem:[%s9494_s0 + $0x60] sm:$0xff]  ;;  %v5224_v36 = vpack.c.bf16 %v70_v28, %v66_v27  ;;  %v77_v37 = vld [vmem:[%s9493_s1 + $0x158] sm:$0xff]  ;;  %v5256_v39 = vpack.c.bf16 %v72_v31, %v68_v30 }
  0x26   :  { %350 = vmatmul.mubr.f32.vlgmr.msra.gmra.mrb[0].mxu1 %v4760_v46  ;;  %5209 = vmatpush1.bf16.msra.mxu0 %v5208_v47  ;;  %v79_v34 = vld [vmem:[%s9493_s1 + $0x168] sm:$0xff]  ;;  %v81_v38 = vld [vmem:[%s9493_s1 + $0x178] sm:$0xff]  ;;  %v74_v40 = vld [vmem:[%s9493_s1 + $0x140] sm:$0xff] }
  0x27   :  { %5241 = vmatpush1.bf16.msra.mxu1 %v5240_v50  ;;  %242 = vmatprep.mubr.f32.mxu0 %v6993_v3  ;;  %v78_v41 = vld [vmem:[%s9493_s1 + $0x160] sm:$0xff]  ;;  %v5226_v42 = vpack.c.bf16 %v79_v34, %v75_v33  ;;  %v76_v43 = vld [vmem:[%s9493_s1 + $0x150] sm:$0xff]  ;;  %v5258_v45 = vpack.c.bf16 %v81_v38, %v77_v37  ;;  %v83_v46 = vld [vmem:[%s9493_s1 + $0x188] sm:$0xff] }
  0x28   :  { %355 = vmatprep.mubr.f32.mxu1 %v6993_v3  ;;  %5211 = vmatprep.subr.bf16.mxu0 %v5210_v53  ;;  %v80_v44 = vld [vmem:[%s9493_s1 + $0x170] sm:$0xff]  ;;  %v87_v47 = vld [vmem:[%s9493_s1 + $0x1a8] sm:$0xff]  ;;  %v5228_v49 = vpack.c.bf16 %v78_v41, %v74_v40  ;;  %v85_v50 = vld [vmem:[%s9493_s1 + $0x198] sm:$0xff] }
  0x29   :  { %243 = vmatmul.mubr.f32.gmra.mrb[2].mxu0 %v4761_v59  ;;  %5243 = vmatprep.subr.bf16.mxu1 %v5242_v56  ;;  %v4765_v48 = vld [vmem:[%s9494_s0 + $0x68] sm:$0xff]  ;;  %v89_v51 = vld [vmem:[%s9493_s1 + $0x1b8] sm:$0xff]  ;;  %v5260_v52 = vpack.c.bf16 %v80_v44, %v76_v43  ;;  %v82_v53 = vld [vmem:[%s9493_s1 + $0x180] sm:$0xff]  ;;  %v5230_v55 = vpack.c.bf16 %v87_v47, %v83_v46 }
  0x2a   :  { %356 = vmatmul.mubr.f32.gmra.mrb[2].mxu1 %v4761_v59  ;;  %5213 = vmatpush1.bf16.msra.mxu0 %v5212_v60  ;;  %v86_v54 = vld [vmem:[%s9493_s1 + $0x1a0] sm:$0xff]  ;;  %v84_v56 = vld [vmem:[%s9493_s1 + $0x190] sm:$0xff]  ;;  %v5262_v58 = vpack.c.bf16 %v89_v51, %v85_v50  ;;  %v91_v59 = vld [vmem:[%s9493_s1 + $0x1c8] sm:$0xff] }
  0x2b   :  { %5245 = vmatpush1.bf16.msra.mxu1 %v5244_v63  ;;  %248 = vmatprep.mubr.f32.mxu0 %v6993_v3  ;;  %v88_v57 = vld [vmem:[%s9493_s1 + $0x1b0] sm:$0xff]  ;;  %v95_v60 = vld [vmem:[%s9493_s1 + $0x1e8] sm:$0xff]  ;;  %v5232_v62 = vpack.c.bf16 %v86_v54, %v82_v53  ;;  %v93_v63 = vld [vmem:[%s9493_s1 + $0x1d8] sm:$0xff] }
  0x2c   :  { %361 = vmatprep.mubr.f32.mxu1 %v6993_v3  ;;  %5215 = vmatprep.subr.bf16.mxu0 %v5214_v2  ;;  %v4766_v61 = vld [vmem:[%s9494_s0 + $0x70] sm:$0xff]  ;;  %v97_v0 = vld [vmem:[%s9493_s1 + $0x1f8] sm:$0xff]  ;;  %v5264_v1 = vpack.c.bf16 %v88_v57, %v84_v56  ;;  %v90_v2 = vld [vmem:[%s9493_s1 + $0x1c0] sm:$0xff]  ;;  %v5234_v5 = vpack.c.bf16 %v95_v60, %v91_v59 }
  0x2d   :  { %249 = vmatmul.mubr.f32.gmra.mrb[4].mxu0 %v4762_v9  ;;  %5247 = vmatprep.subr.bf16.mxu1 %v5246_v6  ;;  %v94_v4 = vld [vmem:[%s9493_s1 + $0x1e0] sm:$0xff]  ;;  %v92_v6 = vld [vmem:[%s9493_s1 + $0x1d0] sm:$0xff]  ;;  %v5266_v8 = vpack.c.bf16 %v97_v0, %v93_v63  ;;  %v4767_v11 = vld [vmem:[%s9494_s0 + $0x78] sm:$0xff] }
  0x2e   :  { %362 = vmatmul.mubr.f32.gmra.mrb[4].mxu1 %v4762_v9  ;;  %5217 = vmatpush1.bf16.msra.mxu0 %v5216_v10  ;;  %v96_v7 = vld [vmem:[%s9493_s1 + $0x1f0] sm:$0xff]  ;;  %v4841_v9 = vld [vmem:[%s9493_s1 + $0x408] sm:$0xff]  ;;  %v5236_v12 = vpack.c.bf16 %v94_v4, %v90_v2  ;;  %v4847_v14 = vld [vmem:[%s9493_s1 + $0x438] sm:$0xff] }
  0x2f   :  { %5249 = vmatpush1.bf16.msra.mxu1 %v5248_v13  ;;  %254 = vmatprep.mubr.f32.mxu0 %v6993_v3  ;;  %v4845_v10 = vld [vmem:[%s9493_s1 + $0x428] sm:$0xff]  ;;  %v4843_v13 = vld [vmem:[%s9493_s1 + $0x418] sm:$0xff]  ;;  %v5268_v15 = vpack.c.bf16 %v96_v7, %v92_v6  ;;  %v4844_v17 = vld [vmem:[%s9493_s1 + $0x420] sm:$0xff] }
  0x30   :  { %367 = vmatprep.mubr.f32.mxu1 %v6993_v3  ;;  %5219 = vmatprep.subr.bf16.mxu0 %v5218_v16  ;;  %v4840_v16 = vld [vmem:[%s9493_s1 + $0x400] sm:$0xff]  ;;  %v5270_v18 = vpack.c.bf16 %v4845_v10, %v4841_v9  ;;  %v4846_v20 = vld [vmem:[%s9493_s1 + $0x430] sm:$0xff]  ;;  %v5302_v21 = vpack.c.bf16 %v4847_v14, %v4843_v13  ;;  %v4855_v27 = vld [vmem:[%s9493_s1 + $0x478] sm:$0xff] }
  0x31   :  { %255 = vmatmul.mubr.f32.gmra.mrb[6].mxu0 %v4763_v22  ;;  %5251 = vmatprep.subr.bf16.mxu1 %v5250_v19  ;;  %v4842_v19 = vld [vmem:[%s9493_s1 + $0x410] sm:$0xff]  ;;  %v26_v24 = vld [vmem:[%s9494_s0] sm:$0xff]  ;;  %v5272_v25 = vpack.c.bf16 %v4844_v17, %v4840_v16  ;;  %v27_v37 = vld [vmem:[%s9494_s0 + $0x8] sm:$0xff] }
  0x32   :  { %368 = vmatmul.mubr.f32.gmra.mrb[6].mxu1 %v4763_v22  ;;  %5221 = vmatpush1.bf16.msra.mxu0 %v5220_v23  ;;  %v4849_v22 = vld [vmem:[%s9493_s1 + $0x448] sm:$0xff]  ;;  %v5304_v28 = vpack.c.bf16 %v4846_v20, %v4842_v19  ;;  %v4852_v30 = vld [vmem:[%s9493_s1 + $0x460] sm:$0xff]  ;;  %v4854_v33 = vld [vmem:[%s9493_s1 + $0x470] sm:$0xff] }
  0x33   :  { %5253 = vmatpush1.bf16.msra.mxu1 %v5252_v26  ;;  %260 = vmatprep.mubr.f32.mxu0 %v6993_v3  ;;  %v4853_v23 = vld [vmem:[%s9493_s1 + $0x468] sm:$0xff]  ;;  %v4851_v26 = vld [vmem:[%s9493_s1 + $0x458] sm:$0xff]  ;;  %v4860_v43 = vld [vmem:[%s9493_s1 + $0x4a0] sm:$0xff] }
  0x34   :  { %373 = vmatprep.mubr.f32.mxu1 %v6993_v3  ;;  %5223 = vmatprep.subr.bf16.mxu0 %v5222_v29  ;;  %v4848_v29 = vld [vmem:[%s9493_s1 + $0x440] sm:$0xff]  ;;  %v5274_v31 = vpack.c.bf16 %v4853_v23, %v4849_v22  ;;  %v5306_v34 = vpack.c.bf16 %v4855_v27, %v4851_v26  ;;  %v4863_v40 = vld [vmem:[%s9493_s1 + $0x4b8] sm:$0xff]  ;;  %v4862_v46 = vld [vmem:[%s9493_s1 + $0x4b0] sm:$0xff] }
  0x35   :  { %261 = vmatmul.mubr.f32.gmra.mrb[8].mxu0 %v4764_v35  ;;  %5255 = vmatprep.subr.bf16.mxu1 %v5254_v32  ;;  %v4850_v32 = vld [vmem:[%s9493_s1 + $0x450] sm:$0xff]  ;;  %v5276_v38 = vpack.c.bf16 %v4852_v30, %v4848_v29  ;;  %v4871_v53 = vld [vmem:[%s9493_s1 + $0x4f8] sm:$0xff]  ;;  %v4868_v56 = vld [vmem:[%s9493_s1 + $0x4e0] sm:$0xff] }
  0x36   :  { %374 = vmatmul.mubr.f32.gmra.mrb[8].mxu1 %v4764_v35  ;;  %5225 = vmatpush1.bf16.msra.mxu0 %v5224_v36  ;;  %v4857_v35 = vld [vmem:[%s9493_s1 + $0x488] sm:$0xff]  ;;  %v5308_v41 = vpack.c.bf16 %v4854_v33, %v4850_v32  ;;  %v28_v50 = vld [vmem:[%s9494_s0 + $0x10] sm:$0xff]  ;;  %v29_v63 = vld [vmem:[%s9494_s0 + $0x18] sm:$0xff] }
  0x37   :  { %5257 = vmatpush1.bf16.msra.mxu1 %v5256_v39  ;;  %266 = vmatprep.mubr.f32.mxu0 %v6993_v3  ;;  %v4861_v36 = vld [vmem:[%s9493_s1 + $0x4a8] sm:$0xff]  ;;  %v4859_v39 = vld [vmem:[%s9493_s1 + $0x498] sm:$0xff]  ;;  %v4870_v59 = vld [vmem:[%s9493_s1 + $0x4f0] sm:$0xff] }
  0x38   :  { %379 = vmatprep.mubr.f32.mxu1 %v6993_v3  ;;  %5227 = vmatprep.subr.bf16.mxu0 %v5226_v42  ;;  %v4856_v42 = vld [vmem:[%s9493_s1 + $0x480] sm:$0xff]  ;;  %v5278_v44 = vpack.c.bf16 %v4861_v36, %v4857_v35  ;;  %v5310_v47 = vpack.c.bf16 %v4863_v40, %v4859_v39  ;;  %v4879_v2 = vld [vmem:[%s9493_s1 + $0x538] sm:$0xff]  ;;  %v4878_v9 = vld [vmem:[%s9493_s1 + $0x530] sm:$0xff] }
  0x39   :  { %267 = vmatmul.mubr.f32.gmra.mrb[10].mxu0 %v4765_v48  ;;  %5259 = vmatprep.subr.bf16.mxu1 %v5258_v45  ;;  %v4858_v45 = vld [vmem:[%s9493_s1 + $0x490] sm:$0xff]  ;;  %v5280_v51 = vpack.c.bf16 %v4860_v43, %v4856_v42  ;;  %v4876_v6 = vld [vmem:[%s9493_s1 + $0x520] sm:$0xff]  ;;  %v4887_v16 = vld [vmem:[%s9493_s1 + $0x578] sm:$0xff] }
  0x3a   :  { %380 = vmatmul.mubr.f32.gmra.mrb[10].mxu1 %v4765_v48  ;;  %5229 = vmatpush1.bf16.msra.mxu0 %v5228_v49  ;;  %v4865_v48 = vld [vmem:[%s9493_s1 + $0x4c8] sm:$0xff]  ;;  %v5312_v54 = vpack.c.bf16 %v4862_v46, %v4858_v45  ;;  %v30_v13 = vld [vmem:[%s9494_s0 + $0x20] sm:$0xff]  ;;  %v4886_v22 = vld [vmem:[%s9493_s1 + $0x570] sm:$0xff] }
  0x3b   :  { %5261 = vmatpush1.bf16.msra.mxu1 %v5260_v52  ;;  %272 = vmatprep.mubr.f32.mxu0 %v6993_v3  ;;  %v4869_v49 = vld [vmem:[%s9493_s1 + $0x4e8] sm:$0xff]  ;;  %v4867_v52 = vld [vmem:[%s9493_s1 + $0x4d8] sm:$0xff]  ;;  %v4884_v19 = vld [vmem:[%s9493_s1 + $0x560] sm:$0xff] }
  0x3c   :  { %385 = vmatprep.mubr.f32.mxu1 %v6993_v3  ;;  %5231 = vmatprep.subr.bf16.mxu0 %v5230_v55  ;;  %v4864_v55 = vld [vmem:[%s9493_s1 + $0x4c0] sm:$0xff]  ;;  %v5282_v57 = vpack.c.bf16 %v4869_v49, %v4865_v48  ;;  %v5314_v60 = vpack.c.bf16 %v4871_v53, %v4867_v52  ;;  %v31_v26 = vld [vmem:[%s9494_s0 + $0x28] sm:$0xff]  ;;  %v4895_v29 = vld [vmem:[%s9493_s1 + $0x5b8] sm:$0xff] }
  0x3d   :  { %273 = vmatmul.mubr.f32.gmra.mrb[12].mxu0 %v4766_v61  ;;  %5263 = vmatprep.subr.bf16.mxu1 %v5262_v58  ;;  %v4866_v58 = vld [vmem:[%s9493_s1 + $0x4d0] sm:$0xff]  ;;  %v5284_v0 = vpack.c.bf16 %v4868_v56, %v4864_v55  ;;  %v4892_v32 = vld [vmem:[%s9493_s1 + $0x5a0] sm:$0xff]  ;;  %v4903_v42 = vld [vmem:[%s9493_s1 + $0x5f8] sm:$0xff] }
  0x3e   :  { %386 = vmatmul.mubr.f32.gmra.mrb[12].mxu1 %v4766_v61  ;;  %5233 = vmatpush1.bf16.msra.mxu0 %v5232_v62  ;;  %v4873_v61 = vld [vmem:[%s9493_s1 + $0x508] sm:$0xff]  ;;  %v5316_v4 = vpack.c.bf16 %v4870_v59, %v4866_v58  ;;  %v4894_v35 = vld [vmem:[%s9493_s1 + $0x5b0] sm:$0xff]  ;;  %v4900_v45 = vld [vmem:[%s9493_s1 + $0x5e0] sm:$0xff] }
  0x3f   :  { %5265 = vmatpush1.bf16.msra.mxu1 %v5264_v1  ;;  %278 = vmatprep.mubr.f32.mxu0 %v6993_v3  ;;  %v4877_v62 = vld [vmem:[%s9493_s1 + $0x528] sm:$0xff]  ;;  %v4875_v1 = vld [vmem:[%s9493_s1 + $0x518] sm:$0xff]  ;;  %v32_v39 = vld [vmem:[%s9494_s0 + $0x30] sm:$0xff] }
  0x40   :  { %391 = vmatprep.mubr.f32.mxu1 %v6993_v3  ;;  %5235 = vmatprep.subr.bf16.mxu0 %v5234_v5  ;;  %v4872_v5 = vld [vmem:[%s9493_s1 + $0x500] sm:$0xff]  ;;  %v5286_v7 = vpack.c.bf16 %v4877_v62, %v4873_v61  ;;  %v5318_v10 = vpack.c.bf16 %v4879_v2, %v4875_v1  ;;  %v4902_v48 = vld [vmem:[%s9493_s1 + $0x5f0] sm:$0xff]  ;;  %v33_v52 = vld [vmem:[%s9494_s0 + $0x38] sm:$0xff] }
  0x41   :  { %279 = vmatmul.mubr.f32.gmra.mrb[14].mxu0 %v4767_v11  ;;  %5267 = vmatprep.subr.bf16.mxu1 %v5266_v8  ;;  %v4874_v8 = vld [vmem:[%s9493_s1 + $0x510] sm:$0xff]  ;;  %v5288_v14 = vpack.c.bf16 %v4876_v6, %v4872_v5  ;;  %v4919_v55 = vld [vmem:[%s9493_s1 + $0x638] sm:$0xff]  ;;  %v4916_v58 = vld [vmem:[%s9493_s1 + $0x620] sm:$0xff] }
  0x42   :  { %392 = vmatmul.mubr.f32.gmra.mrb[14].mxu1 %v4767_v11  ;;  %5237 = vmatpush1.bf16.msra.mxu0 %v5236_v12  ;;  %v4881_v11 = vld [vmem:[%s9493_s1 + $0x548] sm:$0xff]  ;;  %v5320_v17 = vpack.c.bf16 %v4878_v9, %v4874_v8  ;;  %v4918_v61 = vld [vmem:[%s9493_s1 + $0x630] sm:$0xff]  ;;  %v4832_v1 = vld [vmem:[%s9494_s0 + $0x80] sm:$0xff] }
  0x43   :  { %5269 = vmatpush1.bf16.msra.mxu1 %v5268_v15  ;;  %462 = vmatprep.mubr.f32.mxu0 %v6993_v3  ;;  %v4885_v12 = vld [vmem:[%s9493_s1 + $0x568] sm:$0xff]  ;;  %v4883_v15 = vld [vmem:[%s9493_s1 + $0x558] sm:$0xff]  ;;  %v4924_v8 = vld [vmem:[%s9493_s1 + $0x660] sm:$0xff] }
  0x44   :  { %575 = vmatprep.mubr.f32.mxu1 %v6993_v3  ;;  %5271 = vmatprep.subr.bf16.mxu0 %v5270_v18  ;;  %v4880_v18 = vld [vmem:[%s9493_s1 + $0x540] sm:$0xff]  ;;  %v5290_v20 = vpack.c.bf16 %v4885_v12, %v4881_v11  ;;  %v5322_v23 = vpack.c.bf16 %v4887_v16, %v4883_v15  ;;  %v4927_v5 = vld [vmem:[%s9493_s1 + $0x678] sm:$0xff]  ;;  %v4926_v11 = vld [vmem:[%s9493_s1 + $0x670] sm:$0xff] }
  0x45   :  { %463 = vmatmul.mubr.f32.vlgmr.msra.gmra.mrb[0].mxu0 %v26_v24  ;;  %5303 = vmatprep.subr.bf16.mxu1 %v5302_v21  ;;  %v4882_v21 = vld [vmem:[%s9493_s1 + $0x550] sm:$0xff]  ;;  %v5292_v27 = vpack.c.bf16 %v4884_v19, %v4880_v18  ;;  %v4833_v15 = vld [vmem:[%s9494_s0 + $0x88] sm:$0xff]  ;;  %v4935_v18 = vld [vmem:[%s9493_s1 + $0x6b8] sm:$0xff] }
  0x46   :  { %576 = vmatmul.mubr.f32.vlgmr.msra.gmra.mrb[0].mxu1 %v26_v24  ;;  %5273 = vmatpush1.bf16.msra.mxu0 %v5272_v25  ;;  %v4889_v24 = vld [vmem:[%s9493_s1 + $0x588] sm:$0xff]  ;;  %v5324_v30 = vpack.c.bf16 %v4886_v22, %v4882_v21  ;;  %v4932_v21 = vld [vmem:[%s9493_s1 + $0x6a0] sm:$0xff] }
  0x47   :  { %5305 = vmatpush1.bf16.msra.mxu1 %v5304_v28  ;;  %468 = vmatprep.mubr.f32.mxu0 %v6993_v3  ;;  %v4893_v25 = vld [vmem:[%s9493_s1 + $0x5a8] sm:$0xff]  ;;  %v4891_v28 = vld [vmem:[%s9493_s1 + $0x598] sm:$0xff] }
  0x48   :  { %581 = vmatprep.mubr.f32.mxu1 %v6993_v3  ;;  %5275 = vmatprep.subr.bf16.mxu0 %v5274_v31  ;;  %v4888_v31 = vld [vmem:[%s9493_s1 + $0x580] sm:$0xff]  ;;  %v5294_v33 = vpack.c.bf16 %v4893_v25, %v4889_v24  ;;  %v5326_v36 = vpack.c.bf16 %v4895_v29, %v4891_v28  ;;  %v4934_v24 = vld [vmem:[%s9493_s1 + $0x6b0] sm:$0xff] }
  0x49   :  { %469 = vmatmul.mubr.f32.gmra.mrb[2].mxu0 %v27_v37  ;;  %5307 = vmatprep.subr.bf16.mxu1 %v5306_v34  ;;  %v4890_v34 = vld [vmem:[%s9493_s1 + $0x590] sm:$0xff]  ;;  %v5296_v40 = vpack.c.bf16 %v4892_v32, %v4888_v31  ;;  %v4943_v31 = vld [vmem:[%s9493_s1 + $0x6f8] sm:$0xff] }
  0x4a   :  { %582 = vmatmul.mubr.f32.gmra.mrb[2].mxu1 %v27_v37  ;;  %5277 = vmatpush1.bf16.msra.mxu0 %v5276_v38  ;;  %v4897_v37 = vld [vmem:[%s9493_s1 + $0x5c8] sm:$0xff]  ;;  %v5328_v43 = vpack.c.bf16 %v4894_v35, %v4890_v34  ;;  %v4834_v28 = vld [vmem:[%s9494_s0 + $0x90] sm:$0xff]  ;;  %v4940_v34 = vld [vmem:[%s9493_s1 + $0x6e0] sm:$0xff] }
  0x4b   :  { %5309 = vmatpush1.bf16.msra.mxu1 %v5308_v41  ;;  %474 = vmatprep.mubr.f32.mxu0 %v6993_v3  ;;  %v4901_v38 = vld [vmem:[%s9493_s1 + $0x5e8] sm:$0xff]  ;;  %v4899_v41 = vld [vmem:[%s9493_s1 + $0x5d8] sm:$0xff] }
  0x4c   :  { %587 = vmatprep.mubr.f32.mxu1 %v6993_v3  ;;  %5279 = vmatprep.subr.bf16.mxu0 %v5278_v44  ;;  %v4896_v44 = vld [vmem:[%s9493_s1 + $0x5c0] sm:$0xff]  ;;  %v5298_v46 = vpack.c.bf16 %v4901_v38, %v4897_v37  ;;  %v5330_v49 = vpack.c.bf16 %v4903_v42, %v4899_v41  ;;  %v4942_v37 = vld [vmem:[%s9493_s1 + $0x6f0] sm:$0xff]  ;;  %v4835_v41 = vld [vmem:[%s9494_s0 + $0x98] sm:$0xff] }
  0x4d   :  { %475 = vmatmul.mubr.f32.gmra.mrb[4].mxu0 %v28_v50  ;;  %5311 = vmatprep.subr.bf16.mxu1 %v5310_v47  ;;  %v4898_v47 = vld [vmem:[%s9493_s1 + $0x5d0] sm:$0xff]  ;;  %v5300_v53 = vpack.c.bf16 %v4900_v45, %v4896_v44  ;;  %v4951_v44 = vld [vmem:[%s9493_s1 + $0x738] sm:$0xff] }
  0x4e   :  { %588 = vmatmul.mubr.f32.gmra.mrb[4].mxu1 %v28_v50  ;;  %5281 = vmatpush1.bf16.msra.mxu0 %v5280_v51  ;;  %v4913_v50 = vld [vmem:[%s9493_s1 + $0x608] sm:$0xff]  ;;  %v5332_v56 = vpack.c.bf16 %v4902_v48, %v4898_v47  ;;  %v4948_v47 = vld [vmem:[%s9493_s1 + $0x720] sm:$0xff] }
  0x4f   :  { %5313 = vmatpush1.bf16.msra.mxu1 %v5312_v54  ;;  %480 = vmatprep.mubr.f32.mxu0 %v6993_v3  ;;  %v4917_v51 = vld [vmem:[%s9493_s1 + $0x628] sm:$0xff]  ;;  %v4915_v54 = vld [vmem:[%s9493_s1 + $0x618] sm:$0xff] }
  0x50   :  { %593 = vmatprep.mubr.f32.mxu1 %v6993_v3  ;;  %5283 = vmatprep.subr.bf16.mxu0 %v5282_v57  ;;  %v4912_v57 = vld [vmem:[%s9493_s1 + $0x600] sm:$0xff]  ;;  %v5334_v59 = vpack.c.bf16 %v4917_v51, %v4913_v50  ;;  %v5366_v62 = vpack.c.bf16 %v4919_v55, %v4915_v54  ;;  %v4950_v50 = vld [vmem:[%s9493_s1 + $0x730] sm:$0xff] }
  0x51   :  { %481 = vmatmul.mubr.f32.gmra.mrb[6].mxu0 %v29_v63  ;;  %5315 = vmatprep.subr.bf16.mxu1 %v5314_v60  ;;  %v4914_v60 = vld [vmem:[%s9493_s1 + $0x610] sm:$0xff]  ;;  %v5336_v2 = vpack.c.bf16 %v4916_v58, %v4912_v57  ;;  %v4836_v54 = vld [vmem:[%s9494_s0 + $0xa0] sm:$0xff]  ;;  %v4959_v57 = vld [vmem:[%s9493_s1 + $0x778] sm:$0xff] }
  0x52   :  { %594 = vmatmul.mubr.f32.gmra.mrb[6].mxu1 %v29_v63  ;;  %5285 = vmatpush1.bf16.msra.mxu0 %v5284_v0  ;;  %v4921_v63 = vld [vmem:[%s9493_s1 + $0x648] sm:$0xff]  ;;  %v5368_v6 = vpack.c.bf16 %v4918_v61, %v4914_v60  ;;  %v4956_v60 = vld [vmem:[%s9493_s1 + $0x760] sm:$0xff] }
  0x53   :  { %5317 = vmatpush1.bf16.msra.mxu1 %v5316_v4  ;;  %486 = vmatprep.mubr.f32.mxu0 %v6993_v3  ;;  %v4925_v0 = vld [vmem:[%s9493_s1 + $0x668] sm:$0xff]  ;;  %v4923_v4 = vld [vmem:[%s9493_s1 + $0x658] sm:$0xff] }
  0x54   :  { %599 = vmatprep.mubr.f32.mxu1 %v6993_v3  ;;  %5287 = vmatprep.subr.bf16.mxu0 %v5286_v7  ;;  %v4920_v7 = vld [vmem:[%s9493_s1 + $0x640] sm:$0xff]  ;;  %v5338_v9 = vpack.c.bf16 %v4925_v0, %v4921_v63  ;;  %v5370_v12 = vpack.c.bf16 %v4927_v5, %v4923_v4  ;;  %v4958_v63 = vld [vmem:[%s9493_s1 + $0x770] sm:$0xff]  ;;  %v4837_v4 = vld [vmem:[%s9494_s0 + $0xa8] sm:$0xff] }
  0x55   :  { %487 = vmatmul.mubr.f32.gmra.mrb[8].mxu0 %v30_v13  ;;  %5319 = vmatprep.subr.bf16.mxu1 %v5318_v10  ;;  %v4922_v10 = vld [vmem:[%s9493_s1 + $0x650] sm:$0xff]  ;;  %v5340_v16 = vpack.c.bf16 %v4924_v8, %v4920_v7  ;;  %v4967_v7 = vld [vmem:[%s9493_s1 + $0x7b8] sm:$0xff] }
  0x56   :  { %600 = vmatmul.mubr.f32.gmra.mrb[8].mxu1 %v30_v13  ;;  %5289 = vmatpush1.bf16.msra.mxu0 %v5288_v14  ;;  %v4929_v13 = vld [vmem:[%s9493_s1 + $0x688] sm:$0xff]  ;;  %v5372_v19 = vpack.c.bf16 %v4926_v11, %v4922_v10  ;;  %v4964_v10 = vld [vmem:[%s9493_s1 + $0x7a0] sm:$0xff] }
  0x57   :  { %5321 = vmatpush1.bf16.msra.mxu1 %v5320_v17  ;;  %492 = vmatprep.mubr.f32.mxu0 %v6993_v3  ;;  %v4933_v14 = vld [vmem:[%s9493_s1 + $0x6a8] sm:$0xff]  ;;  %v4931_v17 = vld [vmem:[%s9493_s1 + $0x698] sm:$0xff] }
  0x58   :  { %605 = vmatprep.mubr.f32.mxu1 %v6993_v3  ;;  %5291 = vmatprep.subr.bf16.mxu0 %v5290_v20  ;;  %v4928_v20 = vld [vmem:[%s9493_s1 + $0x680] sm:$0xff]  ;;  %v5342_v22 = vpack.c.bf16 %v4933_v14, %v4929_v13  ;;  %v5374_v25 = vpack.c.bf16 %v4935_v18, %v4931_v17  ;;  %v4966_v13 = vld [vmem:[%s9493_s1 + $0x7b0] sm:$0xff] }
  0x59   :  { %493 = vmatmul.mubr.f32.gmra.mrb[10].mxu0 %v31_v26  ;;  %5323 = vmatprep.subr.bf16.mxu1 %v5322_v23  ;;  %v4930_v23 = vld [vmem:[%s9493_s1 + $0x690] sm:$0xff]  ;;  %v5344_v29 = vpack.c.bf16 %v4932_v21, %v4928_v20  ;;  %v4975_v20 = vld [vmem:[%s9493_s1 + $0x7f8] sm:$0xff] }
  0x5a   :  { %606 = vmatmul.mubr.f32.gmra.mrb[10].mxu1 %v31_v26  ;;  %5293 = vmatpush1.bf16.msra.mxu0 %v5292_v27  ;;  %v4937_v26 = vld [vmem:[%s9493_s1 + $0x6c8] sm:$0xff]  ;;  %v5376_v32 = vpack.c.bf16 %v4934_v24, %v4930_v23  ;;  %v4838_v17 = vld [vmem:[%s9494_s0 + $0xb0] sm:$0xff]  ;;  %v4972_v23 = vld [vmem:[%s9493_s1 + $0x7e0] sm:$0xff] }
  0x5b   :  { %5325 = vmatpush1.bf16.msra.mxu1 %v5324_v30  ;;  %498 = vmatprep.mubr.f32.mxu0 %v6993_v3  ;;  %v4941_v27 = vld [vmem:[%s9493_s1 + $0x6e8] sm:$0xff]  ;;  %v4939_v30 = vld [vmem:[%s9493_s1 + $0x6d8] sm:$0xff] }
  0x5c   :  { %611 = vmatprep.mubr.f32.mxu1 %v6993_v3  ;;  %5295 = vmatprep.subr.bf16.mxu0 %v5294_v33  ;;  %v4936_v33 = vld [vmem:[%s9493_s1 + $0x6c0] sm:$0xff]  ;;  %v5346_v35 = vpack.c.bf16 %v4941_v27, %v4937_v26  ;;  %v5378_v38 = vpack.c.bf16 %v4943_v31, %v4939_v30  ;;  %v4974_v26 = vld [vmem:[%s9493_s1 + $0x7f0] sm:$0xff]  ;;  %v4839_v30 = vld [vmem:[%s9494_s0 + $0xb8] sm:$0xff] }
  0x5d   :  { %499 = vmatmul.mubr.f32.gmra.mrb[12].mxu0 %v32_v39  ;;  %5327 = vmatprep.subr.bf16.mxu1 %v5326_v36  ;;  %v4938_v36 = vld [vmem:[%s9493_s1 + $0x6d0] sm:$0xff]  ;;  %v5348_v42 = vpack.c.bf16 %v4940_v34, %v4936_v33  ;;  %v1381_v33 = vld [vmem:[%s9495_s3 + $0x38] sm:$0xff] }
  0x5e   :  { %612 = vmatmul.mubr.f32.gmra.mrb[12].mxu1 %v32_v39  ;;  %5297 = vmatpush1.bf16.msra.mxu0 %v5296_v40  ;;  %v4945_v39 = vld [vmem:[%s9493_s1 + $0x708] sm:$0xff]  ;;  %v5380_v45 = vpack.c.bf16 %v4942_v37, %v4938_v36  ;;  %v1378_v36 = vld [vmem:[%s9495_s3 + $0x20] sm:$0xff] }
  0x5f   :  { %5329 = vmatpush1.bf16.msra.mxu1 %v5328_v43  ;;  %504 = vmatprep.mubr.f32.mxu0 %v6993_v3  ;;  %v4949_v40 = vld [vmem:[%s9493_s1 + $0x728] sm:$0xff]  ;;  %v4947_v43 = vld [vmem:[%s9493_s1 + $0x718] sm:$0xff] }
  0x60   :  { %617 = vmatprep.mubr.f32.mxu1 %v6993_v3  ;;  %5299 = vmatprep.subr.bf16.mxu0 %v5298_v46  ;;  %v4944_v46 = vld [vmem:[%s9493_s1 + $0x700] sm:$0xff]  ;;  %v5350_v48 = vpack.c.bf16 %v4949_v40, %v4945_v39  ;;  %v5382_v51 = vpack.c.bf16 %v4951_v44, %v4947_v43  ;;  %v1380_v39 = vld [vmem:[%s9495_s3 + $0x30] sm:$0xff] }
  0x61   :  { %505 = vmatmul.mubr.f32.gmra.mrb[14].mxu0 %v33_v52  ;;  %5331 = vmatprep.subr.bf16.mxu1 %v5330_v49  ;;  %v4946_v49 = vld [vmem:[%s9493_s1 + $0x710] sm:$0xff]  ;;  %v5352_v55 = vpack.c.bf16 %v4948_v47, %v4944_v46  ;;  %v4904_v43 = vld [vmem:[%s9494_s0 + $0xc0] sm:$0xff]  ;;  %v1389_v46 = vld [vmem:[%s9495_s3 + $0x78] sm:$0xff] }
  0x62   :  { %618 = vmatmul.mubr.f32.gmra.mrb[14].mxu1 %v33_v52  ;;  %5301 = vmatpush1.bf16.msra.mxu0 %v5300_v53  ;;  %v4953_v52 = vld [vmem:[%s9493_s1 + $0x748] sm:$0xff]  ;;  %v5384_v58 = vpack.c.bf16 %v4950_v50, %v4946_v49  ;;  %v1386_v49 = vld [vmem:[%s9495_s3 + $0x60] sm:$0xff] }
  0x63   :  { %5333 = vmatpush1.bf16.msra.mxu1 %v5332_v56  ;;  %762 = vmatprep.mubr.f32.mxu0 %v6993_v3  ;;  %v4957_v53 = vld [vmem:[%s9493_s1 + $0x768] sm:$0xff]  ;;  %v4955_v56 = vld [vmem:[%s9493_s1 + $0x758] sm:$0xff] }
  0x64   :  { %875 = vmatprep.mubr.f32.mxu1 %v6993_v3  ;;  %5335 = vmatprep.subr.bf16.mxu0 %v5334_v59  ;;  %v4952_v59 = vld [vmem:[%s9493_s1 + $0x740] sm:$0xff]  ;;  %v5354_v61 = vpack.c.bf16 %v4957_v53, %v4953_v52  ;;  %v5386_v0 = vpack.c.bf16 %v4959_v57, %v4955_v56  ;;  %v1388_v52 = vld [vmem:[%s9495_s3 + $0x70] sm:$0xff]  ;;  %v4905_v56 = vld [vmem:[%s9494_s0 + $0xc8] sm:$0xff] }
  0x65   :  { %763 = vmatmul.mubr.f32.vlgmr.msra.gmra.mrb[0].mxu0 %v4832_v1  ;;  %5367 = vmatprep.subr.bf16.mxu1 %v5366_v62  ;;  %v4954_v62 = vld [vmem:[%s9493_s1 + $0x750] sm:$0xff]  ;;  %v5356_v5 = vpack.c.bf16 %v4956_v60, %v4952_v59  ;;  %v1397_v59 = vld [vmem:[%s9495_s3 + $0xb8] sm:$0xff] }
  0x66   :  { %876 = vmatmul.mubr.f32.vlgmr.msra.gmra.mrb[0].mxu1 %v4832_v1  ;;  %5337 = vmatpush1.bf16.msra.mxu0 %v5336_v2  ;;  %v4961_v1 = vld [vmem:[%s9493_s1 + $0x788] sm:$0xff]  ;;  %v5388_v8 = vpack.c.bf16 %v4958_v63, %v4954_v62  ;;  %v1394_v62 = vld [vmem:[%s9495_s3 + $0xa0] sm:$0xff] }
  0x67   :  { %5369 = vmatpush1.bf16.msra.mxu1 %v5368_v6  ;;  %768 = vmatprep.mubr.f32.mxu0 %v6993_v3  ;;  %v4965_v2 = vld [vmem:[%s9493_s1 + $0x7a8] sm:$0xff]  ;;  %v4963_v6 = vld [vmem:[%s9493_s1 + $0x798] sm:$0xff] }
  0x68   :  { %881 = vmatprep.mubr.f32.mxu1 %v6993_v3  ;;  %5339 = vmatprep.subr.bf16.mxu0 %v5338_v9  ;;  %v4960_v9 = vld [vmem:[%s9493_s1 + $0x780] sm:$0xff]  ;;  %v5358_v11 = vpack.c.bf16 %v4965_v2, %v4961_v1  ;;  %v5390_v14 = vpack.c.bf16 %v4967_v7, %v4963_v6  ;;  %v1396_v1 = vld [vmem:[%s9495_s3 + $0xb0] sm:$0xff] }
  0x69   :  { %769 = vmatmul.mubr.f32.gmra.mrb[2].mxu0 %v4833_v15  ;;  %5371 = vmatprep.subr.bf16.mxu1 %v5370_v12  ;;  %v4962_v12 = vld [vmem:[%s9493_s1 + $0x790] sm:$0xff]  ;;  %v5360_v18 = vpack.c.bf16 %v4964_v10, %v4960_v9  ;;  %v1405_v9 = vld [vmem:[%s9495_s3 + $0xf8] sm:$0xff] }
  0x6a   :  { %882 = vmatmul.mubr.f32.gmra.mrb[2].mxu1 %v4833_v15  ;;  %5341 = vmatpush1.bf16.msra.mxu0 %v5340_v16  ;;  %v4969_v15 = vld [vmem:[%s9493_s1 + $0x7c8] sm:$0xff]  ;;  %v5392_v21 = vpack.c.bf16 %v4966_v13, %v4962_v12  ;;  %v4906_v6 = vld [vmem:[%s9494_s0 + $0xd0] sm:$0xff]  ;;  %v1402_v12 = vld [vmem:[%s9495_s3 + $0xe0] sm:$0xff] }
  0x6b   :  { %5373 = vmatpush1.bf16.msra.mxu1 %v5372_v19  ;;  %774 = vmatprep.mubr.f32.mxu0 %v6993_v3  ;;  %v4973_v16 = vld [vmem:[%s9493_s1 + $0x7e8] sm:$0xff]  ;;  %v4971_v19 = vld [vmem:[%s9493_s1 + $0x7d8] sm:$0xff] }
  0x6c   :  { %887 = vmatprep.mubr.f32.mxu1 %v6993_v3  ;;  %5343 = vmatprep.subr.bf16.mxu0 %v5342_v22  ;;  %v4968_v22 = vld [vmem:[%s9493_s1 + $0x7c0] sm:$0xff]  ;;  %v5362_v24 = vpack.c.bf16 %v4973_v16, %v4969_v15  ;;  %v5394_v27 = vpack.c.bf16 %v4975_v20, %v4971_v19  ;;  %v1404_v15 = vld [vmem:[%s9495_s3 + $0xf0] sm:$0xff]  ;;  %v4907_v19 = vld [vmem:[%s9494_s0 + $0xd8] sm:$0xff] }
  0x6d   :  { %775 = vmatmul.mubr.f32.gmra.mrb[4].mxu0 %v4834_v28  ;;  %5375 = vmatprep.subr.bf16.mxu1 %v5374_v25  ;;  %v4970_v25 = vld [vmem:[%s9493_s1 + $0x7d0] sm:$0xff]  ;;  %v5364_v31 = vpack.c.bf16 %v4972_v23, %v4968_v22  ;;  %v1413_v22 = vld [vmem:[%s9495_s3 + $0x138] sm:$0xff] }
  0x6e   :  { %888 = vmatmul.mubr.f32.gmra.mrb[4].mxu1 %v4834_v28  ;;  %5345 = vmatpush1.bf16.msra.mxu0 %v5344_v29  ;;  %v1375_v28 = vld [vmem:[%s9495_s3 + $0x8] sm:$0xff]  ;;  %v5396_v34 = vpack.c.bf16 %v4974_v26, %v4970_v25  ;;  %v1410_v25 = vld [vmem:[%s9495_s3 + $0x120] sm:$0xff] }
  0x6f   :  { %5377 = vmatpush1.bf16.msra.mxu1 %v5376_v32  ;;  %780 = vmatprep.mubr.f32.mxu0 %v6993_v3  ;;  %v1379_v29 = vld [vmem:[%s9495_s3 + $0x28] sm:$0xff]  ;;  %v1377_v32 = vld [vmem:[%s9495_s3 + $0x18] sm:$0xff] }
  0x70   :  { %893 = vmatprep.mubr.f32.mxu1 %v6993_v3  ;;  %5347 = vmatprep.subr.bf16.mxu0 %v5346_v35  ;;  %v1374_v35 = vld [vmem:[%s9495_s3] sm:$0xff]  ;;  %v7942_v37 = vpack.c.bf16 %v1379_v29, %v1375_v28  ;;  %v7950_v40 = vpack.c.bf16 %v1381_v33, %v1377_v32  ;;  %v1412_v28 = vld [vmem:[%s9495_s3 + $0x130] sm:$0xff] }
  0x71   :  { %781 = vmatmul.mubr.f32.gmra.mrb[6].mxu0 %v4835_v41  ;;  %5379 = vmatprep.subr.bf16.mxu1 %v5378_v38  ;;  %v1376_v38 = vld [vmem:[%s9495_s3 + $0x10] sm:$0xff]  ;;  %v7961_v44 = vpack.c.bf16 %v1378_v36, %v1374_v35  ;;  %v4908_v32 = vld [vmem:[%s9494_s0 + $0xe0] sm:$0xff]  ;;  %v1421_v35 = vld [vmem:[%s9495_s3 + $0x178] sm:$0xff] }
  0x72   :  { %894 = vmatmul.mubr.f32.gmra.mrb[6].mxu1 %v4835_v41  ;;  %5349 = vmatpush1.bf16.msra.mxu0 %v5348_v42  ;;  %v1383_v41 = vld [vmem:[%s9495_s3 + $0x48] sm:$0xff]  ;;  %v7970_v47 = vpack.c.bf16 %v1380_v39, %v1376_v38  ;;  %v1414_v38 = vld [vmem:[%s9495_s3 + $0x140] sm:$0xff] }
  0x73   :  { %5381 = vmatpush1.bf16.msra.mxu1 %v5380_v45  ;;  %786 = vmatprep.mubr.f32.mxu0 %v6993_v3  ;;  %v1387_v42 = vld [vmem:[%s9495_s3 + $0x68] sm:$0xff]  ;;  %v1385_v45 = vld [vmem:[%s9495_s3 + $0x58] sm:$0xff]  ;;  %v1418_v39 = vld [vmem:[%s9495_s3 + $0x160] sm:$0xff] }
  0x74   :  { %899 = vmatprep.mubr.f32.mxu1 %v6993_v3  ;;  %5351 = vmatprep.subr.bf16.mxu0 %v5350_v48  ;;  %v1382_v48 = vld [vmem:[%s9495_s3 + $0x40] sm:$0xff]  ;;  %v7980_v50 = vpack.c.bf16 %v1387_v42, %v1383_v41  ;;  %v7989_v53 = vpack.c.bf16 %v1389_v46, %v1385_v45  ;;  %v1416_v42 = vld [vmem:[%s9495_s3 + $0x150] sm:$0xff]  ;;  %v1423_v46 = vld [vmem:[%s9495_s3 + $0x188] sm:$0xff] }
  0x75   :  { %787 = vmatmul.mubr.f32.gmra.mrb[8].mxu0 %v4836_v54  ;;  %5383 = vmatprep.subr.bf16.mxu1 %v5382_v51  ;;  %v1384_v51 = vld [vmem:[%s9495_s3 + $0x50] sm:$0xff]  ;;  %v8001_v57 = vpack.c.bf16 %v1386_v49, %v1382_v48  ;;  %v1427_v48 = vld [vmem:[%s9495_s3 + $0x1a8] sm:$0xff] }
  0x76   :  { %900 = vmatmul.mubr.f32.gmra.mrb[8].mxu1 %v4836_v54  ;;  %5353 = vmatpush1.bf16.msra.mxu0 %v5352_v55  ;;  %v1391_v54 = vld [vmem:[%s9495_s3 + $0x88] sm:$0xff]  ;;  %v8011_v60 = vpack.c.bf16 %v1388_v52, %v1384_v51  ;;  %v8165_v51 = vpack.c.bf16 %v1418_v39, %v1414_v38  ;;  %v1425_v52 = vld [vmem:[%s9495_s3 + $0x198] sm:$0xff] }
  0x77   :  { %5385 = vmatpush1.bf16.msra.mxu1 %v5384_v58  ;;  %792 = vmatprep.mubr.f32.mxu0 %v6993_v3  ;;  %v1395_v55 = vld [vmem:[%s9495_s3 + $0xa8] sm:$0xff]  ;;  %v1393_v58 = vld [vmem:[%s9495_s3 + $0x98] sm:$0xff] }
  0x78   :  { %905 = vmatprep.mubr.f32.mxu1 %v6993_v3  ;;  %5355 = vmatprep.subr.bf16.mxu0 %v5354_v61  ;;  %v1390_v61 = vld [vmem:[%s9495_s3 + $0x80] sm:$0xff]  ;;  %v8021_v63 = vpack.c.bf16 %v1395_v55, %v1391_v54  ;;  %v8030_v2 = vpack.c.bf16 %v1397_v59, %v1393_v58  ;;  %v4909_v49 = vld [vmem:[%s9494_s0 + $0xe8] sm:$0xff]  ;;  %v1429_v54 = vld [vmem:[%s9495_s3 + $0x1b8] sm:$0xff]  ;;  %v8185_v59 = vpack.c.bf16 %v1427_v48, %v1423_v46 }
  0x79   :  { %793 = vmatmul.mubr.f32.gmra.mrb[10].mxu0 %v4837_v4  ;;  %5387 = vmatprep.subr.bf16.mxu1 %v5386_v0  ;;  %v1392_v0 = vld [vmem:[%s9495_s3 + $0x90] sm:$0xff]  ;;  %v8042_v7 = vpack.c.bf16 %v1394_v62, %v1390_v61  ;;  %v1426_v58 = vld [vmem:[%s9495_s3 + $0x1a0] sm:$0xff] }
  0x7a   :  { %906 = vmatmul.mubr.f32.gmra.mrb[10].mxu1 %v4837_v4  ;;  %5357 = vmatpush1.bf16.msra.mxu0 %v5356_v5  ;;  %v1399_v4 = vld [vmem:[%s9495_s3 + $0xc8] sm:$0xff]  ;;  %v8052_v10 = vpack.c.bf16 %v1396_v1, %v1392_v0  ;;  %v1424_v61 = vld [vmem:[%s9495_s3 + $0x190] sm:$0xff]  ;;  %v8194_v0 = vpack.c.bf16 %v1429_v54, %v1425_v52 }
  0x7b   :  { %5389 = vmatpush1.bf16.msra.mxu1 %v5388_v8  ;;  %798 = vmatprep.mubr.f32.mxu0 %v6993_v3  ;;  %v1403_v5 = vld [vmem:[%s9495_s3 + $0xe8] sm:$0xff]  ;;  %v1401_v8 = vld [vmem:[%s9495_s3 + $0xd8] sm:$0xff]  ;;  %v1428_v62 = vld [vmem:[%s9495_s3 + $0x1b0] sm:$0xff] }
  0x7c   :  { %911 = vmatprep.mubr.f32.mxu1 %v6993_v3  ;;  %5359 = vmatprep.subr.bf16.mxu0 %v5358_v11  ;;  %v1398_v11 = vld [vmem:[%s9495_s3 + $0xc0] sm:$0xff]  ;;  %v8062_v13 = vpack.c.bf16 %v1403_v5, %v1399_v4  ;;  %v8071_v16 = vpack.c.bf16 %v1405_v9, %v1401_v8  ;;  %v1431_v1 = vld [vmem:[%s9495_s3 + $0x1c8] sm:$0xff]  ;;  %v4910_v5 = vld [vmem:[%s9494_s0 + $0xf0] sm:$0xff] }
  0x7d   :  { %799 = vmatmul.mubr.f32.gmra.mrb[12].mxu0 %v4838_v17  ;;  %5391 = vmatprep.subr.bf16.mxu1 %v5390_v14  ;;  %v1400_v14 = vld [vmem:[%s9495_s3 + $0xd0] sm:$0xff]  ;;  %v8083_v20 = vpack.c.bf16 %v1402_v12, %v1398_v11  ;;  %v1435_v4 = vld [vmem:[%s9495_s3 + $0x1e8] sm:$0xff]  ;;  %v1433_v8 = vld [vmem:[%s9495_s3 + $0x1d8] sm:$0xff]  ;;  %v8216_v11 = vpack.c.bf16 %v1428_v62, %v1424_v61 }
  0x7e   :  { %912 = vmatmul.mubr.f32.gmra.mrb[12].mxu1 %v4838_v17  ;;  %5361 = vmatpush1.bf16.msra.mxu0 %v5360_v18  ;;  %v1407_v17 = vld [vmem:[%s9495_s3 + $0x108] sm:$0xff]  ;;  %v8093_v23 = vpack.c.bf16 %v1404_v15, %v1400_v14  ;;  %v1437_v9 = vld [vmem:[%s9495_s3 + $0x1f8] sm:$0xff]  ;;  %v1430_v12 = vld [vmem:[%s9495_s3 + $0x1c0] sm:$0xff]  ;;  %v8226_v15 = vpack.c.bf16 %v1435_v4, %v1431_v1 }
  0x7f   :  { %5393 = vmatpush1.bf16.msra.mxu1 %v5392_v21  ;;  %804 = vmatprep.mubr.f32.mxu0 %v6993_v3  ;;  %v1411_v18 = vld [vmem:[%s9495_s3 + $0x128] sm:$0xff]  ;;  %v1409_v21 = vld [vmem:[%s9495_s3 + $0x118] sm:$0xff]  ;;  %v1434_v14 = vld [vmem:[%s9495_s3 + $0x1e0] sm:$0xff] }
  0x80   :  { %917 = vmatprep.mubr.f32.mxu1 %v6993_v3  ;;  %5363 = vmatprep.subr.bf16.mxu0 %v5362_v24  ;;  %v1406_v24 = vld [vmem:[%s9495_s3 + $0x100] sm:$0xff]  ;;  %v8103_v26 = vpack.c.bf16 %v1411_v18, %v1407_v17  ;;  %v8112_v29 = vpack.c.bf16 %v1413_v22, %v1409_v21  ;;  %v1432_v17 = vld [vmem:[%s9495_s3 + $0x1d0] sm:$0xff]  ;;  %v4911_v21 = vld [vmem:[%s9494_s0 + $0xf8] sm:$0xff]  ;;  %v8241_v22 = vpack.c.bf16 %v1434_v14, %v1430_v12 }
  0x81   :  { %805 = vmatmul.mubr.f32.gmra.mrb[14].mxu0 %v4839_v30  ;;  %5395 = vmatprep.subr.bf16.mxu1 %v5394_v27  ;;  %v1408_v27 = vld [vmem:[%s9495_s3 + $0x110] sm:$0xff]  ;;  %v8124_v33 = vpack.c.bf16 %v1410_v25, %v1406_v24  ;;  %v1290_v25 = vlaneseq }
  0x82   :  { %918 = vmatmul.mubr.f32.gmra.mrb[14].mxu1 %v4839_v30  ;;  %5365 = vmatpush1.bf16.msra.mxu0 %v5364_v31  ;;  %v1415_v30 = vld [vmem:[%s9495_s3 + $0x148] sm:$0xff]  ;;  %v8134_v36 = vpack.c.bf16 %v1412_v28, %v1408_v27  ;;  %v1436_v18 = vld [vmem:[%s9495_s3 + $0x1f0] sm:$0xff] }
  0x83   :  { %5397 = vmatpush1.bf16.msra.mxu1 %v5396_v34  ;;  %1094 = vmatprep.mubr.f32.mxu0 %v6993_v3  ;;  %v1419_v31 = vld [vmem:[%s9495_s3 + $0x168] sm:$0xff]  ;;  %v1417_v34 = vld [vmem:[%s9495_s3 + $0x158] sm:$0xff]  ;;  %v8245_v24 = vpack.c.bf16 %v1436_v18, %v1432_v17  ;;  %v8292_v27 = vshrl.u32 %v1290_v25, 7 }
  0x84   :  { %1207 = vmatprep.mubr.f32.mxu1 %v6993_v3  ;;  %5399 = vmatprep.subr.bf16.mxu0 %v7942_v37  ;;  %v8144_v41 = vpack.c.bf16 %v1419_v31, %v1415_v30  ;;  %v8153_v45 = vpack.c.bf16 %v1421_v35, %v1417_v34  ;;  %v1288_v30 = vld [vmem:[%s9496_s4] sm:$0xf] }
  0x85   :  { %1095 = vmatmul.mubr.f32.vlgmr.msra.gmra.mrb[0].mxu0 %v4904_v43  ;;  %5431 = vmatprep.subr.bf16.mxu1 %v7950_v40  ;;  %v1292_v28 = vsub.s32 0, %v8292_v27  ;;  %v1296_v31 = vsub.s32 1, %v8292_v27  ;;  %v1304_v38 = vsub.s32 3, %v8292_v27 }
  0x86   :  { %1208 = vmatmul.mubr.f32.vlgmr.msra.gmra.mrb[0].mxu1 %v4904_v43  ;;  %5401 = vmatpush1.bf16.msra.mxu0 %v7961_v44  ;;  %v1420_v43 = vld [vmem:[%s9495_s3 + $0x170] sm:$0xff] }
  0x87   :  { %5433 = vmatpush1.bf16.msra.mxu1 %v7970_v47  ;;  %1100 = vmatprep.mubr.f32.mxu0 %v6993_v3  ;;  %v8175_v55 = vpack.c.bf16 %v1420_v43, %v1416_v42  ;;  %v8305_v34 = vrot.slane %v1288_v30, %v1296_v31  ;;  %v8312_v54 = vrot.slane %v1288_v30, %v1304_v38 }
  0x88   :  { %1213 = vmatprep.mubr.f32.mxu1 %v6993_v3  ;;  %5403 = vmatprep.subr.bf16.mxu0 %v7980_v50 }
  0x89   :  { %1101 = vmatmul.mubr.f32.gmra.mrb[2].mxu0 %v4905_v56  ;;  %5435 = vmatprep.subr.bf16.mxu1 %v7989_v53 }
  0x8a   :  { %1214 = vmatmul.mubr.f32.gmra.mrb[2].mxu1 %v4905_v56  ;;  %5405 = vmatpush1.bf16.msra.mxu0 %v8001_v57  ;;  %v1422_v56 = vld [vmem:[%s9495_s3 + $0x180] sm:$0xff] }
  0x8b   :  { %5437 = vmatpush1.bf16.msra.mxu1 %v8011_v60  ;;  %1106 = vmatprep.mubr.f32.mxu0 %v6993_v3 }
  0x8c   :  { %1219 = vmatprep.mubr.f32.mxu1 %v6993_v3  ;;  %5407 = vmatprep.subr.bf16.mxu0 %v8021_v63 }
  0x8d   :  { %1107 = vmatmul.mubr.f32.gmra.mrb[4].mxu0 %v4906_v6  ;;  %5439 = vmatprep.subr.bf16.mxu1 %v8030_v2 }
  0x8e   :  { %1220 = vmatmul.mubr.f32.gmra.mrb[4].mxu1 %v4906_v6  ;;  %5409 = vmatpush1.bf16.msra.mxu0 %v8042_v7  ;;  %v8206_v6 = vpack.c.bf16 %v1426_v58, %v1422_v56  ;;  %v1300_v56 = vsub.s32 2, %v8292_v27 }
  0x8f   :  { %5441 = vmatpush1.bf16.msra.mxu1 %v8052_v10  ;;  %1112 = vmatprep.mubr.f32.mxu0 %v6993_v3 }
  0x90   :  { %1225 = vmatprep.mubr.f32.mxu1 %v6993_v3  ;;  %5411 = vmatprep.subr.bf16.mxu0 %v8062_v13  ;;  %v8318_v61 = vrot.slane %v1288_v30, %v1300_v56 }
  0x91   :  { %1113 = vmatmul.mubr.f32.gmra.mrb[6].mxu0 %v4907_v19  ;;  %5443 = vmatprep.subr.bf16.mxu1 %v8071_v16 }
  0x92   :  { %1226 = vmatmul.mubr.f32.gmra.mrb[6].mxu1 %v4907_v19  ;;  %5413 = vmatpush1.bf16.msra.mxu0 %v8083_v20  ;;  %v8235_v19 = vpack.c.bf16 %v1437_v9, %v1433_v8 }
  0x93   :  { %5445 = vmatpush1.bf16.msra.mxu1 %v8093_v23  ;;  %1118 = vmatprep.mubr.f32.mxu0 %v6993_v3 }
  0x94   :  { %1231 = vmatprep.mubr.f32.mxu1 %v6993_v3  ;;  %5415 = vmatprep.subr.bf16.mxu0 %v8103_v26 }
  0x95   :  { %1119 = vmatmul.mubr.f32.gmra.mrb[8].mxu0 %v4908_v32  ;;  %5447 = vmatprep.subr.bf16.mxu1 %v8112_v29 }
  0x96   :  { %1232 = vmatmul.mubr.f32.gmra.mrb[8].mxu1 %v4908_v32  ;;  %5417 = vmatpush1.bf16.msra.mxu0 %v8124_v33  ;;  %v8301_v32 = vrot.slane %v1288_v30, %v1292_v28 }
  0x97   :  { %5449 = vmatpush1.bf16.msra.mxu1 %v8134_v36  ;;  %1124 = vmatprep.mubr.f32.mxu0 %v6993_v3 }
  0x98   :  { %1237 = vmatprep.mubr.f32.mxu1 %v6993_v3  ;;  %5419 = vmatprep.subr.bf16.mxu0 %v8144_v41 }
  0x99   :  { %1125 = vmatmul.mubr.f32.gmra.mrb[10].mxu0 %v4909_v49  ;;  %5451 = vmatprep.subr.bf16.mxu1 %v8153_v45 }
  0x9a   :  { %1238 = vmatmul.mubr.f32.gmra.mrb[10].mxu1 %v4909_v49  ;;  %5421 = vmatpush1.bf16.msra.mxu0 %v8165_v51 }
  0x9b   :  { %5453 = vmatpush1.bf16.msra.mxu1 %v8175_v55  ;;  %1130 = vmatprep.mubr.f32.mxu0 %v6993_v3 }
  0x9c   :  { %1243 = vmatprep.mubr.f32.mxu1 %v6993_v3  ;;  %5423 = vmatprep.subr.bf16.mxu0 %v8185_v59 }
  0x9d   :  { %1131 = vmatmul.mubr.f32.gmra.mrb[12].mxu0 %v4910_v5  ;;  %5455 = vmatprep.subr.bf16.mxu1 %v8194_v0 }
  0x9e   :  { %1244 = vmatmul.mubr.f32.gmra.mrb[12].mxu1 %v4910_v5  ;;  %5425 = vmatpush1.bf16.msra.mxu0 %v8206_v6 }
  0x9f   :  { %5457 = vmatpush1.bf16.msra.mxu1 %v8216_v11  ;;  %1136 = vmatprep.mubr.f32.mxu0 %v6993_v3 }
  0xa0   :  { %1249 = vmatprep.mubr.f32.mxu1 %v6993_v3  ;;  %5427 = vmatprep.subr.bf16.mxu0 %v8226_v15 }
  0xa1   :  { %1137 = vmatmul.mubr.f32.gmra.mrb[14].mxu0 %v4911_v21  ;;  %5459 = vmatprep.subr.bf16.mxu1 %v8235_v19 }
  0xa2   :  { %1250 = vmatmul.mubr.f32.gmra.mrb[14].mxu1 %v4911_v21  ;;  %5429 = vmatpush1.bf16.msra.mxu0 %v8241_v22 }
  0xa3   :  { %5461 = vmatpush1.bf16.msra.mxu1 %v8245_v24  ;;  %1506 = vmatprep.mubr.f32.mxu0 %v6993_v3 }
  0xa4   :  { %1577 = vmatprep.mubr.f32.mxu1 %v6993_v3  ;;  %5463 = vmatprep.subr.bf16.mxu0 %v7942_v37 }
  0xa5   :  { %1507 = vmatmul.mubr.f32.vlgmr.msra.gmra.mrb[0].mxu0 %v6993_v3  ;;  %5495 = vmatprep.subr.bf16.mxu1 %v7950_v40 }
  0xa6   :  { %1578 = vmatmul.mubr.f32.vlgmr.msra.gmra.mrb[0].mxu1 %v6993_v3  ;;  %5465 = vmatpush1.bf16.msra.mxu0 %v7961_v44 }
  0xa7   :  { %5497 = vmatpush1.bf16.msra.mxu1 %v7970_v47  ;;  %5467 = vmatprep.subr.bf16.mxu0 %v7980_v50 }
  0xa8   :  { %5499 = vmatprep.subr.bf16.mxu1 %v7989_v53  ;;  %1682 = vmatprep.mubr.f32.mxu0 %v6993_v3 }
  0xa9   :  { %1753 = vmatprep.mubr.f32.mxu1 %v6993_v3 }
  0xaa   :  { %5469 = vmatpush1.bf16.msra.mxu0 %v8001_v57 }
  0xab   :  { %5501 = vmatpush1.bf16.msra.mxu1 %v8011_v60  ;;  %5471 = vmatprep.subr.bf16.mxu0 %v8021_v63 }
  0xac   :  { %5503 = vmatprep.subr.bf16.mxu1 %v8030_v2 }
  0xae   :  { %5473 = vmatpush1.bf16.msra.mxu0 %v8042_v7 }
  0xaf   :  { %5505 = vmatpush1.bf16.msra.mxu1 %v8052_v10  ;;  %5475 = vmatprep.subr.bf16.mxu0 %v8062_v13 }
  0xb0   :  { %5507 = vmatprep.subr.bf16.mxu1 %v8071_v16 }
  0xb2   :  { %5477 = vmatpush1.bf16.msra.mxu0 %v8083_v20 }
  0xb3   :  { %5509 = vmatpush1.bf16.msra.mxu1 %v8093_v23  ;;  %5479 = vmatprep.subr.bf16.mxu0 %v8103_v26 }
  0xb4   :  { %5511 = vmatprep.subr.bf16.mxu1 %v8112_v29 }
  0xb6   :  { %5481 = vmatpush1.bf16.msra.mxu0 %v8124_v33 }
  0xb7   :  { %5513 = vmatpush1.bf16.msra.mxu1 %v8134_v36  ;;  %5483 = vmatprep.subr.bf16.mxu0 %v8144_v41 }
  0xb8   :  { %5515 = vmatprep.subr.bf16.mxu1 %v8153_v45 }
  0xba   :  { %5485 = vmatpush1.bf16.msra.mxu0 %v8165_v51 }
  0xbb   :  { %5517 = vmatpush1.bf16.msra.mxu1 %v8175_v55  ;;  %5487 = vmatprep.subr.bf16.mxu0 %v8185_v59 }
  0xbc   :  { %5519 = vmatprep.subr.bf16.mxu1 %v8194_v0 }
  0xbe   :  { %5489 = vmatpush1.bf16.msra.mxu0 %v8206_v6 }
  0xbf   :  { %5521 = vmatpush1.bf16.msra.mxu1 %v8216_v11  ;;  %5491 = vmatprep.subr.bf16.mxu0 %v8226_v15 }
  0xc0   :  { %5523 = vmatprep.subr.bf16.mxu1 %v8235_v19 }
  0xc2   :  { %5493 = vmatpush1.bf16.msra.mxu0 %v8241_v22 }
  0xc3   :  { %5525 = vmatpush1.bf16.msra.mxu1 %v8245_v24  ;;  %5527 = vmatprep.subr.bf16.mxu0 %v7942_v37 }
  0xc4   :  { %5559 = vmatprep.subr.bf16.mxu1 %v7950_v40 }
 0x178   :  { %v1508_v35 = vpop.f32.mrb[0].mxu0 }
 0x179   :  { %v6510_v39 = vadd.f32 %v1508_v35, %v8301_v32  ;;  %v1579_v42 = vpop.f32.mrb[0].mxu1  ;;  %v1510_v43 = vpop.f32.mrb[1].mxu0 }
 0x17a   :  { %v6511_v46 = vadd.f32 %v1510_v43, %v8305_v34  ;;  %v1581_v48 = vpop.f32.mrb[1].mxu1  ;;  %v6526_v1 = vadd.f32 %v1579_v42, %v8318_v61 }
 0x17b   :  { %v4976_v49 = vmul.f32 -1.442695, %v6510_v39  ;;  %v6527_v58 = vadd.f32 %v1581_v48, %v8312_v54 }
 0x17c   :  { %v4977_v52 = vmul.f32 -1.442695, %v6511_v46 }
 0x17d   :  { %6737 = vpow2.f32 %v4976_v49  ;;  %v4978_v62 = vmul.f32 -1.442695, %v6527_v58 }
 0x17e   :  { %6739 = vpow2.f32 %v4977_v52 }
 0x17f   :  { %6741 = vpow2.f32 %v4978_v62 }
 0x180   :  { %6743 = vtanh.f32 %v6526_v1 }
 0x187   :  { %v6738_v4 = vpop.eup %6737 }
 0x188   :  { %v6740_v5 = vpop.eup %6739  ;;  %v1591_v8 = vadd.f32 1.0, %v6738_v4 }
 0x189   :  { %v1597_v9 = vadd.f32 1.0, %v6740_v5  ;;  %v6742_v12 = vpop.eup %6741 }
 0x18a   :  { %6745 = vrcp.f32 %v1591_v8  ;;  %v6744_v14 = vpop.eup %6743  ;;  %v1604_v25 = vadd.f32 1.0, %v6742_v12 }
 0x18b   :  { %6747 = vrcp.f32 %v1597_v9 }
 0x18c   :  { %6749 = vrcp.f32 %v1604_v25 }
 0x194   :  { %v6746_v17 = vpop.eup %6745 }
 0x195   :  { %v6748_v18 = vpop.eup %6747  ;;  %v1608_v21 = vmul.f32 %v6746_v17, %v6744_v14 }
 0x196   :  { %v1607_v35 = vmul.f32 0.0, %v6748_v18  ;;  %v6750_v39 = vpop.eup %6749 }
 0x198   :  { %v8321_v30 = vadd.f32 %v1608_v21, %v1607_v35 }
 0x19a   :  { %6751 = vtanh.f32 %v8321_v30 }
 0x1a4   :  { %v6752_v42 = vpop.eup %6751 }
 0x1a5   :  { %v8324_v43 = vmul.f32 %v6752_v42, %v6750_v39 }
 0x1a7   :  { %1683 = vmatmul.mubr.f32.vlgmr.msra.gmra.mrb[2].mxu0 %v8324_v43  ;;  %1754 = vmatmul.mubr.f32.vlgmr.msra.gmra.mrb[2].mxu1 %v8324_v43 }
 0x1a8   :  { %5529 = vmatpush1.bf16.msra.mxu0 %v7961_v44  ;;  %5561 = vmatpush1.bf16.msra.mxu1 %v7970_v47 }
 0x1a9   :  { %5531 = vmatprep.subr.bf16.mxu0 %v7980_v50  ;;  %5563 = vmatprep.subr.bf16.mxu1 %v7989_v53 }
 0x1aa   :  { %1859 = vmatprep.mubr.f32.mxu0 %v6993_v3  ;;  %1930 = vmatprep.mubr.f32.mxu1 %v6993_v3 }
 0x1ac   :  { %5533 = vmatpush1.bf16.msra.mxu0 %v8001_v57  ;;  %5565 = vmatpush1.bf16.msra.mxu1 %v8011_v60 }
 0x1ad   :  { %5535 = vmatprep.subr.bf16.mxu0 %v8021_v63  ;;  %5567 = vmatprep.subr.bf16.mxu1 %v8030_v2 }
 0x1b0   :  { %5537 = vmatpush1.bf16.msra.mxu0 %v8042_v7  ;;  %5569 = vmatpush1.bf16.msra.mxu1 %v8052_v10 }
 0x1b1   :  { %5539 = vmatprep.subr.bf16.mxu0 %v8062_v13  ;;  %5571 = vmatprep.subr.bf16.mxu1 %v8071_v16 }
 0x1b4   :  { %5541 = vmatpush1.bf16.msra.mxu0 %v8083_v20  ;;  %5573 = vmatpush1.bf16.msra.mxu1 %v8093_v23 }
 0x1b5   :  { %5543 = vmatprep.subr.bf16.mxu0 %v8103_v26  ;;  %5575 = vmatprep.subr.bf16.mxu1 %v8112_v29 }
 0x1b8   :  { %5545 = vmatpush1.bf16.msra.mxu0 %v8124_v33  ;;  %5577 = vmatpush1.bf16.msra.mxu1 %v8134_v36 }
 0x1b9   :  { %5547 = vmatprep.subr.bf16.mxu0 %v8144_v41  ;;  %5579 = vmatprep.subr.bf16.mxu1 %v8153_v45 }
 0x1bc   :  { %5549 = vmatpush1.bf16.msra.mxu0 %v8165_v51  ;;  %5581 = vmatpush1.bf16.msra.mxu1 %v8175_v55 }
 0x1bd   :  { %5551 = vmatprep.subr.bf16.mxu0 %v8185_v59  ;;  %5583 = vmatprep.subr.bf16.mxu1 %v8194_v0 }
 0x1c0   :  { %5553 = vmatpush1.bf16.msra.mxu0 %v8206_v6  ;;  %5585 = vmatpush1.bf16.msra.mxu1 %v8216_v11 }
 0x1c1   :  { %5555 = vmatprep.subr.bf16.mxu0 %v8226_v15  ;;  %5587 = vmatprep.subr.bf16.mxu1 %v8235_v19 }
 0x1c4   :  { %5557 = vmatpush1.bf16.msra.mxu0 %v8241_v22  ;;  %5589 = vmatpush1.bf16.msra.mxu1 %v8245_v24 }
 0x1c5   :  { %5591 = vmatprep.subr.bf16.mxu0 %v7942_v37  ;;  %5623 = vmatprep.subr.bf16.mxu1 %v7950_v40 }
 0x27a   :  { %v1684_v46 = vpop.f32.mrb[2].mxu0  ;;  %v1755_v48 = vpop.f32.mrb[2].mxu1 }
 0x27b   :  { %v6512_v49 = vadd.f32 %v1684_v46, %v8301_v32  ;;  %v1686_v52 = vpop.f32.mrb[3].mxu0  ;;  %v1757_v58 = vpop.f32.mrb[3].mxu1  ;;  %v6528_v9 = vadd.f32 %v1755_v48, %v8318_v61 }
 0x27c   :  { %v6513_v62 = vadd.f32 %v1686_v52, %v8305_v34  ;;  %v6529_v5 = vadd.f32 %v1757_v58, %v8312_v54 }
 0x27d   :  { %v4979_v1 = vmul.f32 -1.442695, %v6512_v49 }
 0x27e   :  { %v4980_v4 = vmul.f32 -1.442695, %v6513_v62  ;;  %v4981_v8 = vmul.f32 -1.442695, %v6529_v5 }
 0x27f   :  { %6753 = vpow2.f32 %v4979_v1 }
 0x280   :  { %6755 = vpow2.f32 %v4980_v4 }
 0x281   :  { %6757 = vpow2.f32 %v4981_v8 }
 0x282   :  { %6759 = vtanh.f32 %v6528_v9 }
 0x289   :  { %v6754_v12 = vpop.eup %6753 }
 0x28a   :  { %v6756_v14 = vpop.eup %6755  ;;  %v1767_v17 = vadd.f32 1.0, %v6754_v12 }
 0x28b   :  { %v1773_v18 = vadd.f32 1.0, %v6756_v14  ;;  %v6758_v21 = vpop.eup %6757 }
 0x28c   :  { %6761 = vrcp.f32 %v1767_v17  ;;  %v6760_v25 = vpop.eup %6759  ;;  %v1780_v46 = vadd.f32 1.0, %v6758_v21 }
 0x28d   :  { %6763 = vrcp.f32 %v1773_v18 }
 0x28e   :  { %6765 = vrcp.f32 %v1780_v46 }
 0x296   :  { %v6762_v35 = vpop.eup %6761 }
 0x297   :  { %v6764_v39 = vpop.eup %6763  ;;  %v1784_v42 = vmul.f32 %v6762_v35, %v6760_v25 }
 0x298   :  { %v1783_v49 = vmul.f32 %v6764_v39, %v8321_v30  ;;  %v6766_v48 = vpop.eup %6765 }
 0x29a   :  { %v8367_v52 = vadd.f32 %v1784_v42, %v1783_v49 }
 0x29c   :  { %6767 = vtanh.f32 %v8367_v52 }
 0x2a6   :  { %v6768_v58 = vpop.eup %6767 }
 0x2a7   :  { %v8370_v62 = vmul.f32 %v6768_v58, %v6766_v48 }
 0x2a9   :  { %1860 = vmatmul.mubr.f32.vlgmr.msra.gmra.mrb[4].mxu0 %v8370_v62  ;;  %1931 = vmatmul.mubr.f32.vlgmr.msra.gmra.mrb[4].mxu1 %v8370_v62 }
 0x2aa   :  { %5593 = vmatpush1.bf16.msra.mxu0 %v7961_v44  ;;  %5625 = vmatpush1.bf16.msra.mxu1 %v7970_v47 }
 0x2ab   :  { %5595 = vmatprep.subr.bf16.mxu0 %v7980_v50  ;;  %5627 = vmatprep.subr.bf16.mxu1 %v7989_v53 }
 0x2ac   :  { %2036 = vmatprep.mubr.f32.mxu0 %v6993_v3  ;;  %2107 = vmatprep.mubr.f32.mxu1 %v6993_v3 }
 0x2ae   :  { %5597 = vmatpush1.bf16.msra.mxu0 %v8001_v57  ;;  %5629 = vmatpush1.bf16.msra.mxu1 %v8011_v60 }
 0x2af   :  { %5599 = vmatprep.subr.bf16.mxu0 %v8021_v63  ;;  %5631 = vmatprep.subr.bf16.mxu1 %v8030_v2 }
 0x2b2   :  { %5601 = vmatpush1.bf16.msra.mxu0 %v8042_v7  ;;  %5633 = vmatpush1.bf16.msra.mxu1 %v8052_v10 }
 0x2b3   :  { %5603 = vmatprep.subr.bf16.mxu0 %v8062_v13  ;;  %5635 = vmatprep.subr.bf16.mxu1 %v8071_v16 }
 0x2b6   :  { %5605 = vmatpush1.bf16.msra.mxu0 %v8083_v20  ;;  %5637 = vmatpush1.bf16.msra.mxu1 %v8093_v23 }
 0x2b7   :  { %5607 = vmatprep.subr.bf16.mxu0 %v8103_v26  ;;  %5639 = vmatprep.subr.bf16.mxu1 %v8112_v29 }
 0x2ba   :  { %5609 = vmatpush1.bf16.msra.mxu0 %v8124_v33  ;;  %5641 = vmatpush1.bf16.msra.mxu1 %v8134_v36 }
 0x2bb   :  { %5611 = vmatprep.subr.bf16.mxu0 %v8144_v41  ;;  %5643 = vmatprep.subr.bf16.mxu1 %v8153_v45 }
 0x2be   :  { %5613 = vmatpush1.bf16.msra.mxu0 %v8165_v51  ;;  %5645 = vmatpush1.bf16.msra.mxu1 %v8175_v55 }
 0x2bf   :  { %5615 = vmatprep.subr.bf16.mxu0 %v8185_v59  ;;  %5647 = vmatprep.subr.bf16.mxu1 %v8194_v0 }
 0x2c2   :  { %5617 = vmatpush1.bf16.msra.mxu0 %v8206_v6  ;;  %5649 = vmatpush1.bf16.msra.mxu1 %v8216_v11 }
 0x2c3   :  { %5619 = vmatprep.subr.bf16.mxu0 %v8226_v15  ;;  %5651 = vmatprep.subr.bf16.mxu1 %v8235_v19 }
 0x2c6   :  { %5621 = vmatpush1.bf16.msra.mxu0 %v8241_v22  ;;  %5653 = vmatpush1.bf16.msra.mxu1 %v8245_v24 }
 0x2c7   :  { %5655 = vmatprep.subr.bf16.mxu0 %v7942_v37  ;;  %5687 = vmatprep.subr.bf16.mxu1 %v7950_v40 }
 0x37c   :  { %v1861_v30 = vpop.f32.mrb[4].mxu0  ;;  %v1932_v1 = vpop.f32.mrb[4].mxu1 }
 0x37d   :  { %v6514_v4 = vadd.f32 %v1861_v30, %v8301_v32  ;;  %v1863_v5 = vpop.f32.mrb[5].mxu0  ;;  %v1934_v8 = vpop.f32.mrb[5].mxu1  ;;  %v6530_v21 = vadd.f32 %v1932_v1, %v8318_v61 }
 0x37e   :  { %v6515_v9 = vadd.f32 %v1863_v5, %v8305_v34  ;;  %v6531_v17 = vadd.f32 %v1934_v8, %v8312_v54 }
 0x37f   :  { %v4982_v12 = vmul.f32 -1.442695, %v6514_v4 }
 0x380   :  { %v4983_v14 = vmul.f32 -1.442695, %v6515_v9  ;;  %v4984_v18 = vmul.f32 -1.442695, %v6531_v17 }
 0x381   :  { %6769 = vpow2.f32 %v4982_v12 }
 0x382   :  { %6771 = vpow2.f32 %v4983_v14 }
 0x383   :  { %6773 = vpow2.f32 %v4984_v18 }
 0x384   :  { %6775 = vtanh.f32 %v6530_v21 }
 0x38b   :  { %v6770_v25 = vpop.eup %6769 }
 0x38c   :  { %v6772_v35 = vpop.eup %6771  ;;  %v1944_v39 = vadd.f32 1.0, %v6770_v25 }
 0x38d   :  { %v1950_v42 = vadd.f32 1.0, %v6772_v35  ;;  %v6774_v46 = vpop.eup %6773 }
 0x38e   :  { %6777 = vrcp.f32 %v1944_v39  ;;  %v6776_v49 = vpop.eup %6775  ;;  %v1957_v4 = vadd.f32 1.0, %v6774_v46 }
 0x38f   :  { %6779 = vrcp.f32 %v1950_v42 }
 0x390   :  { %6781 = vrcp.f32 %v1957_v4 }
 0x398   :  { %v6778_v48 = vpop.eup %6777 }
 0x399   :  { %v6780_v58 = vpop.eup %6779  ;;  %v1961_v30 = vmul.f32 %v6778_v48, %v6776_v49 }
 0x39a   :  { %v1960_v5 = vmul.f32 %v6780_v58, %v8367_v52  ;;  %v6782_v1 = vpop.eup %6781 }
 0x39c   :  { %v8413_v8 = vadd.f32 %v1961_v30, %v1960_v5 }
 0x39e   :  { %6783 = vtanh.f32 %v8413_v8 }
 0x3a8   :  { %v6784_v9 = vpop.eup %6783 }
 0x3a9   :  { %v8416_v12 = vmul.f32 %v6784_v9, %v6782_v1 }
 0x3ab   :  { %2037 = vmatmul.mubr.f32.vlgmr.msra.gmra.mrb[6].mxu0 %v8416_v12  ;;  %2108 = vmatmul.mubr.f32.vlgmr.msra.gmra.mrb[6].mxu1 %v8416_v12 }
 0x3ac   :  { %5657 = vmatpush1.bf16.msra.mxu0 %v7961_v44  ;;  %5689 = vmatpush1.bf16.msra.mxu1 %v7970_v47 }
 0x3ad   :  { %5659 = vmatprep.subr.bf16.mxu0 %v7980_v50  ;;  %5691 = vmatprep.subr.bf16.mxu1 %v7989_v53 }
 0x3ae   :  { %2213 = vmatprep.mubr.f32.mxu0 %v6993_v3  ;;  %2284 = vmatprep.mubr.f32.mxu1 %v6993_v3 }
 0x3b0   :  { %5661 = vmatpush1.bf16.msra.mxu0 %v8001_v57  ;;  %5693 = vmatpush1.bf16.msra.mxu1 %v8011_v60 }
 0x3b1   :  { %5663 = vmatprep.subr.bf16.mxu0 %v8021_v63  ;;  %5695 = vmatprep.subr.bf16.mxu1 %v8030_v2 }
 0x3b4   :  { %5665 = vmatpush1.bf16.msra.mxu0 %v8042_v7  ;;  %5697 = vmatpush1.bf16.msra.mxu1 %v8052_v10 }
 0x3b5   :  { %5667 = vmatprep.subr.bf16.mxu0 %v8062_v13  ;;  %5699 = vmatprep.subr.bf16.mxu1 %v8071_v16 }
 0x3b8   :  { %5669 = vmatpush1.bf16.msra.mxu0 %v8083_v20  ;;  %5701 = vmatpush1.bf16.msra.mxu1 %v8093_v23 }
 0x3b9   :  { %5671 = vmatprep.subr.bf16.mxu0 %v8103_v26  ;;  %5703 = vmatprep.subr.bf16.mxu1 %v8112_v29 }
 0x3bc   :  { %5673 = vmatpush1.bf16.msra.mxu0 %v8124_v33  ;;  %5705 = vmatpush1.bf16.msra.mxu1 %v8134_v36 }
 0x3bd   :  { %5675 = vmatprep.subr.bf16.mxu0 %v8144_v41  ;;  %5707 = vmatprep.subr.bf16.mxu1 %v8153_v45 }
 0x3c0   :  { %5677 = vmatpush1.bf16.msra.mxu0 %v8165_v51  ;;  %5709 = vmatpush1.bf16.msra.mxu1 %v8175_v55 }
 0x3c1   :  { %5679 = vmatprep.subr.bf16.mxu0 %v8185_v59  ;;  %5711 = vmatprep.subr.bf16.mxu1 %v8194_v0 }
 0x3c4   :  { %5681 = vmatpush1.bf16.msra.mxu0 %v8206_v6  ;;  %5713 = vmatpush1.bf16.msra.mxu1 %v8216_v11 }
 0x3c5   :  { %5683 = vmatprep.subr.bf16.mxu0 %v8226_v15  ;;  %5715 = vmatprep.subr.bf16.mxu1 %v8235_v19 }
 0x3c8   :  { %5685 = vmatpush1.bf16.msra.mxu0 %v8241_v22  ;;  %5717 = vmatpush1.bf16.msra.mxu1 %v8245_v24 }
 0x3c9   :  { %5719 = vmatprep.subr.bf16.mxu0 %v7942_v37  ;;  %5751 = vmatprep.subr.bf16.mxu1 %v7950_v40 }
 0x47e   :  { %v2038_v52 = vpop.f32.mrb[6].mxu0  ;;  %v2109_v14 = vpop.f32.mrb[6].mxu1 }
 0x47f   :  { %v6516_v17 = vadd.f32 %v2038_v52, %v8301_v32  ;;  %v2040_v18 = vpop.f32.mrb[7].mxu0  ;;  %v2111_v21 = vpop.f32.mrb[7].mxu1  ;;  %v6532_v49 = vadd.f32 %v2109_v14, %v8318_v61 }
 0x480   :  { %v6517_v25 = vadd.f32 %v2040_v18, %v8305_v34  ;;  %v6533_v42 = vadd.f32 %v2111_v21, %v8312_v54 }
 0x481   :  { %v4985_v35 = vmul.f32 -1.442695, %v6516_v17 }
 0x482   :  { %v4986_v39 = vmul.f32 -1.442695, %v6517_v25  ;;  %v4987_v46 = vmul.f32 -1.442695, %v6533_v42 }
 0x483   :  { %6785 = vpow2.f32 %v4985_v35 }
 0x484   :  { %6787 = vpow2.f32 %v4986_v39 }
 0x485   :  { %6789 = vpow2.f32 %v4987_v46 }
 0x486   :  { %6791 = vtanh.f32 %v6532_v49 }
 0x48d   :  { %v6786_v48 = vpop.eup %6785 }
 0x48e   :  { %v6788_v58 = vpop.eup %6787  ;;  %v2121_v30 = vadd.f32 1.0, %v6786_v48 }
 0x48f   :  { %v2127_v4 = vadd.f32 1.0, %v6788_v58  ;;  %v6790_v5 = vpop.eup %6789 }
 0x490   :  { %6793 = vrcp.f32 %v2121_v30  ;;  %v6792_v1 = vpop.eup %6791  ;;  %v2134_v18 = vadd.f32 1.0, %v6790_v5 }
 0x491   :  { %6795 = vrcp.f32 %v2127_v4 }
 0x492   :  { %6797 = vrcp.f32 %v2134_v18 }
 0x49a   :  { %v6794_v9 = vpop.eup %6793 }
 0x49b   :  { %v6796_v52 = vpop.eup %6795  ;;  %v2138_v17 = vmul.f32 %v6794_v9, %v6792_v1 }
 0x49c   :  { %v2137_v25 = vmul.f32 %v6796_v52, %v8413_v8  ;;  %v6798_v14 = vpop.eup %6797 }
 0x49e   :  { %v8459_v21 = vadd.f32 %v2138_v17, %v2137_v25 }
 0x4a0   :  { %6799 = vtanh.f32 %v8459_v21 }
 0x4aa   :  { %v6800_v35 = vpop.eup %6799 }
 0x4ab   :  { %v8462_v39 = vmul.f32 %v6800_v35, %v6798_v14 }
 0x4ad   :  { %2214 = vmatmul.mubr.f32.vlgmr.msra.gmra.mrb[8].mxu0 %v8462_v39  ;;  %2285 = vmatmul.mubr.f32.vlgmr.msra.gmra.mrb[8].mxu1 %v8462_v39 }
 0x4ae   :  { %5721 = vmatpush1.bf16.msra.mxu0 %v7961_v44  ;;  %5753 = vmatpush1.bf16.msra.mxu1 %v7970_v47 }
 0x4af   :  { %5723 = vmatprep.subr.bf16.mxu0 %v7980_v50  ;;  %5755 = vmatprep.subr.bf16.mxu1 %v7989_v53 }
 0x4b0   :  { %2390 = vmatprep.mubr.f32.mxu0 %v6993_v3  ;;  %2461 = vmatprep.mubr.f32.mxu1 %v6993_v3 }
 0x4b2   :  { %5725 = vmatpush1.bf16.msra.mxu0 %v8001_v57  ;;  %5757 = vmatpush1.bf16.msra.mxu1 %v8011_v60 }
 0x4b3   :  { %5727 = vmatprep.subr.bf16.mxu0 %v8021_v63  ;;  %5759 = vmatprep.subr.bf16.mxu1 %v8030_v2 }
 0x4b6   :  { %5729 = vmatpush1.bf16.msra.mxu0 %v8042_v7  ;;  %5761 = vmatpush1.bf16.msra.mxu1 %v8052_v10 }
 0x4b7   :  { %5731 = vmatprep.subr.bf16.mxu0 %v8062_v13  ;;  %5763 = vmatprep.subr.bf16.mxu1 %v8071_v16 }
 0x4ba   :  { %5733 = vmatpush1.bf16.msra.mxu0 %v8083_v20  ;;  %5765 = vmatpush1.bf16.msra.mxu1 %v8093_v23 }
 0x4bb   :  { %5735 = vmatprep.subr.bf16.mxu0 %v8103_v26  ;;  %5767 = vmatprep.subr.bf16.mxu1 %v8112_v29 }
 0x4be   :  { %5737 = vmatpush1.bf16.msra.mxu0 %v8124_v33  ;;  %5769 = vmatpush1.bf16.msra.mxu1 %v8134_v36 }
 0x4bf   :  { %5739 = vmatprep.subr.bf16.mxu0 %v8144_v41  ;;  %5771 = vmatprep.subr.bf16.mxu1 %v8153_v45 }
 0x4c2   :  { %5741 = vmatpush1.bf16.msra.mxu0 %v8165_v51  ;;  %5773 = vmatpush1.bf16.msra.mxu1 %v8175_v55 }
 0x4c3   :  { %5743 = vmatprep.subr.bf16.mxu0 %v8185_v59  ;;  %5775 = vmatprep.subr.bf16.mxu1 %v8194_v0 }
 0x4c6   :  { %5745 = vmatpush1.bf16.msra.mxu0 %v8206_v6  ;;  %5777 = vmatpush1.bf16.msra.mxu1 %v8216_v11 }
 0x4c7   :  { %5747 = vmatprep.subr.bf16.mxu0 %v8226_v15  ;;  %5779 = vmatprep.subr.bf16.mxu1 %v8235_v19 }
 0x4ca   :  { %5749 = vmatpush1.bf16.msra.mxu0 %v8241_v22  ;;  %5781 = vmatpush1.bf16.msra.mxu1 %v8245_v24 }
 0x4cb   :  { %5783 = vmatprep.subr.bf16.mxu0 %v7942_v37  ;;  %5815 = vmatprep.subr.bf16.mxu1 %v7950_v40 }
 0x580   :  { %v2215_v8 = vpop.f32.mrb[8].mxu0  ;;  %v2286_v42 = vpop.f32.mrb[8].mxu1 }
 0x581   :  { %v6518_v46 = vadd.f32 %v2215_v8, %v8301_v32  ;;  %v2217_v49 = vpop.f32.mrb[9].mxu0  ;;  %v2288_v48 = vpop.f32.mrb[9].mxu1  ;;  %v6534_v9 = vadd.f32 %v2286_v42, %v8318_v61 }
 0x582   :  { %v6519_v58 = vadd.f32 %v2217_v49, %v8305_v34  ;;  %v6535_v5 = vadd.f32 %v2288_v48, %v8312_v54 }
 0x583   :  { %v4988_v30 = vmul.f32 -1.442695, %v6518_v46 }
 0x584   :  { %v4989_v4 = vmul.f32 -1.442695, %v6519_v58  ;;  %v4990_v1 = vmul.f32 -1.442695, %v6535_v5 }
 0x585   :  { %6801 = vpow2.f32 %v4988_v30 }
 0x586   :  { %6803 = vpow2.f32 %v4989_v4 }
 0x587   :  { %6805 = vpow2.f32 %v4990_v1 }
 0x588   :  { %6807 = vtanh.f32 %v6534_v9 }
 0x58f   :  { %v6802_v52 = vpop.eup %6801 }
 0x590   :  { %v6804_v17 = vpop.eup %6803  ;;  %v2298_v18 = vadd.f32 1.0, %v6802_v52 }
 0x591   :  { %v2304_v25 = vadd.f32 1.0, %v6804_v17  ;;  %v6806_v14 = vpop.eup %6805 }
 0x592   :  { %6809 = vrcp.f32 %v2298_v18  ;;  %v6808_v35 = vpop.eup %6807  ;;  %v2311_v58 = vadd.f32 1.0, %v6806_v14 }
 0x593   :  { %6811 = vrcp.f32 %v2304_v25 }
 0x594   :  { %6813 = vrcp.f32 %v2311_v58 }
 0x59c   :  { %v6810_v8 = vpop.eup %6809 }
 0x59d   :  { %v6812_v46 = vpop.eup %6811  ;;  %v2315_v49 = vmul.f32 %v6810_v8, %v6808_v35 }
 0x59e   :  { %v2314_v30 = vmul.f32 %v6812_v46, %v8459_v21  ;;  %v6814_v42 = vpop.eup %6813 }
 0x5a0   :  { %v8505_v48 = vadd.f32 %v2315_v49, %v2314_v30 }
 0x5a2   :  { %6815 = vtanh.f32 %v8505_v48 }
 0x5ac   :  { %v6816_v4 = vpop.eup %6815 }
 0x5ad   :  { %v8508_v5 = vmul.f32 %v6816_v4, %v6814_v42 }
 0x5af   :  { %2391 = vmatmul.mubr.f32.vlgmr.msra.gmra.mrb[10].mxu0 %v8508_v5  ;;  %2462 = vmatmul.mubr.f32.vlgmr.msra.gmra.mrb[10].mxu1 %v8508_v5 }
 0x5b0   :  { %5785 = vmatpush1.bf16.msra.mxu0 %v7961_v44  ;;  %5817 = vmatpush1.bf16.msra.mxu1 %v7970_v47 }
 0x5b1   :  { %5787 = vmatprep.subr.bf16.mxu0 %v7980_v50  ;;  %5819 = vmatprep.subr.bf16.mxu1 %v7989_v53 }
 0x5b2   :  { %2567 = vmatprep.mubr.f32.mxu0 %v6993_v3  ;;  %2638 = vmatprep.mubr.f32.mxu1 %v6993_v3 }
 0x5b4   :  { %5789 = vmatpush1.bf16.msra.mxu0 %v8001_v57  ;;  %5821 = vmatpush1.bf16.msra.mxu1 %v8011_v60 }
 0x5b5   :  { %5791 = vmatprep.subr.bf16.mxu0 %v8021_v63  ;;  %5823 = vmatprep.subr.bf16.mxu1 %v8030_v2 }
 0x5b8   :  { %5793 = vmatpush1.bf16.msra.mxu0 %v8042_v7  ;;  %5825 = vmatpush1.bf16.msra.mxu1 %v8052_v10 }
 0x5b9   :  { %5795 = vmatprep.subr.bf16.mxu0 %v8062_v13  ;;  %5827 = vmatprep.subr.bf16.mxu1 %v8071_v16 }
 0x5bc   :  { %5797 = vmatpush1.bf16.msra.mxu0 %v8083_v20  ;;  %5829 = vmatpush1.bf16.msra.mxu1 %v8093_v23 }
 0x5bd   :  { %5799 = vmatprep.subr.bf16.mxu0 %v8103_v26  ;;  %5831 = vmatprep.subr.bf16.mxu1 %v8112_v29 }
 0x5c0   :  { %5801 = vmatpush1.bf16.msra.mxu0 %v8124_v33  ;;  %5833 = vmatpush1.bf16.msra.mxu1 %v8134_v36 }
 0x5c1   :  { %5803 = vmatprep.subr.bf16.mxu0 %v8144_v41  ;;  %5835 = vmatprep.subr.bf16.mxu1 %v8153_v45 }
 0x5c4   :  { %5805 = vmatpush1.bf16.msra.mxu0 %v8165_v51  ;;  %5837 = vmatpush1.bf16.msra.mxu1 %v8175_v55 }
 0x5c5   :  { %5807 = vmatprep.subr.bf16.mxu0 %v8185_v59  ;;  %5839 = vmatprep.subr.bf16.mxu1 %v8194_v0 }
 0x5c8   :  { %5809 = vmatpush1.bf16.msra.mxu0 %v8206_v6  ;;  %5841 = vmatpush1.bf16.msra.mxu1 %v8216_v11 }
 0x5c9   :  { %5811 = vmatprep.subr.bf16.mxu0 %v8226_v15  ;;  %5843 = vmatprep.subr.bf16.mxu1 %v8235_v19 }
 0x5cc   :  { %5813 = vmatpush1.bf16.msra.mxu0 %v8241_v22  ;;  %5845 = vmatpush1.bf16.msra.mxu1 %v8245_v24 }
 0x5cd   :  { %5847 = vmatprep.subr.bf16.mxu0 %v7942_v37  ;;  %5879 = vmatprep.subr.bf16.mxu1 %v7950_v40 }
 0x682   :  { %v2392_v21 = vpop.f32.mrb[10].mxu0  ;;  %v2463_v1 = vpop.f32.mrb[10].mxu1 }
 0x683   :  { %v6520_v9 = vadd.f32 %v2392_v21, %v8301_v32  ;;  %v2394_v52 = vpop.f32.mrb[11].mxu0  ;;  %v2465_v17 = vpop.f32.mrb[11].mxu1  ;;  %v6536_v46 = vadd.f32 %v2463_v1, %v8318_v61 }
 0x684   :  { %v6521_v18 = vadd.f32 %v2394_v52, %v8305_v34  ;;  %v6537_v35 = vadd.f32 %v2465_v17, %v8312_v54 }
 0x685   :  { %v4991_v25 = vmul.f32 -1.442695, %v6520_v9 }
 0x686   :  { %v4992_v14 = vmul.f32 -1.442695, %v6521_v18  ;;  %v4993_v8 = vmul.f32 -1.442695, %v6537_v35  ;;  %v2862_v35 = vld [vmem:[%s9497_s2 + $0x10] sm:$0xff] }
 0x687   :  { %6817 = vpow2.f32 %v4991_v25 }
 0x688   :  { %6819 = vpow2.f32 %v4992_v14 }
 0x689   :  { %6821 = vpow2.f32 %v4993_v8  ;;  %v2866_v8 = vld [vmem:[%s9497_s2 + $0x30] sm:$0xff] }
 0x68a   :  { %6823 = vtanh.f32 %v6536_v46  ;;  %v2869_v46 = vld [vmem:[%s9497_s2 + $0x48] sm:$0xff] }
 0x691   :  { %v6818_v37 = vpop.eup %6817 }
 0x692   :  { %v6820_v49 = vpop.eup %6819  ;;  %v2475_v40 = vadd.f32 1.0, %v6818_v37  ;;  %v2873_v37 = vld [vmem:[%s9497_s2 + $0x68] sm:$0xff] }
 0x693   :  { %v2481_v58 = vadd.f32 1.0, %v6820_v49  ;;  %v6822_v30 = vpop.eup %6821  ;;  %v2871_v49 = vld [vmem:[%s9497_s2 + $0x58] sm:$0xff] }
 0x694   :  { %6825 = vrcp.f32 %v2475_v40  ;;  %v6824_v42 = vpop.eup %6823  ;;  %v2488_v52 = vadd.f32 1.0, %v6822_v30  ;;  %v2875_v40 = vld [vmem:[%s9497_s2 + $0x78] sm:$0xff] }
 0x695   :  { %6827 = vrcp.f32 %v2481_v58 }
 0x696   :  { %6829 = vrcp.f32 %v2488_v52 }
 0x69e   :  { %v6826_v4 = vpop.eup %6825 }
 0x69f   :  { %v6828_v21 = vpop.eup %6827  ;;  %v2492_v9 = vmul.f32 %v6826_v4, %v6824_v42  ;;  %v5944_v4 = vpack.c.bf16 %v2866_v8, %v2862_v35  ;;  %v2892_v35 = vld [vmem:[%s9497_s2 + $0x100] sm:$0xff] }
 0x6a0   :  { %v2491_v18 = vmul.f32 %v6828_v21, %v8505_v48  ;;  %v6830_v1 = vpop.eup %6829  ;;  %v2864_v48 = vld [vmem:[%s9497_s2 + $0x20] sm:$0xff] }
 0x6a1   :  { %v2868_v21 = vld [vmem:[%s9497_s2 + $0x40] sm:$0xff] }
 0x6a2   :  { %v8551_v17 = vadd.f32 %v2492_v9, %v2491_v18  ;;  %v2872_v9 = vld [vmem:[%s9497_s2 + $0x60] sm:$0xff]  ;;  %v5914_v18 = vpack.c.bf16 %v2873_v37, %v2869_v46 }
 0x6a3   :  { %v2896_v8 = vld [vmem:[%s9497_s2 + $0x120] sm:$0xff] }
 0x6a4   :  { %6831 = vtanh.f32 %v8551_v17 }
 0x6ae   :  { %v6832_v25 = vpop.eup %6831 }
 0x6af   :  { %v8554_v14 = vmul.f32 %v6832_v25, %v6830_v1  ;;  %v2870_v1 = vld [vmem:[%s9497_s2 + $0x50] sm:$0xff] }
 0x6b0   :  { %v2874_v25 = vld [vmem:[%s9497_s2 + $0x70] sm:$0xff] }
 0x6b1   :  { %2568 = vmatmul.mubr.f32.vlgmr.msra.gmra.mrb[12].mxu0 %v8554_v14  ;;  %2639 = vmatmul.mubr.f32.vlgmr.msra.gmra.mrb[12].mxu1 %v8554_v14 }
 0x6b2   :  { %5849 = vmatpush1.bf16.msra.mxu0 %v7961_v44  ;;  %5881 = vmatpush1.bf16.msra.mxu1 %v7970_v47  ;;  %v2861_v44 = vld [vmem:[%s9497_s2 + $0x8] sm:$0xff] }
 0x6b3   :  { %5851 = vmatprep.subr.bf16.mxu0 %v7980_v50  ;;  %5883 = vmatprep.subr.bf16.mxu1 %v7989_v53  ;;  %v2865_v47 = vld [vmem:[%s9497_s2 + $0x28] sm:$0xff]  ;;  %v2863_v50 = vld [vmem:[%s9497_s2 + $0x18] sm:$0xff] }
 0x6b4   :  { %2744 = vmatprep.mubr.f32.mxu0 %v6993_v3  ;;  %2815 = vmatprep.mubr.f32.mxu1 %v6993_v3  ;;  %v5910_v53 = vpack.c.bf16 %v2865_v47, %v2861_v44  ;;  %v2877_v44 = vld [vmem:[%s9497_s2 + $0x88] sm:$0xff] }
 0x6b5   :  { %v2881_v47 = vld [vmem:[%s9497_s2 + $0xa8] sm:$0xff] }
 0x6b6   :  { %5853 = vmatpush1.bf16.msra.mxu0 %v8001_v57  ;;  %5885 = vmatpush1.bf16.msra.mxu1 %v8011_v60  ;;  %v2867_v57 = vld [vmem:[%s9497_s2 + $0x38] sm:$0xff] }
 0x6b7   :  { %5855 = vmatprep.subr.bf16.mxu0 %v8021_v63  ;;  %5887 = vmatprep.subr.bf16.mxu1 %v8030_v2  ;;  %v5942_v60 = vpack.c.bf16 %v2867_v57, %v2863_v50  ;;  %v2879_v50 = vld [vmem:[%s9497_s2 + $0x98] sm:$0xff]  ;;  %v5916_v57 = vpack.c.bf16 %v2872_v9, %v2868_v21  ;;  %v5928_v21 = vpack.c.bf16 %v2896_v8, %v2892_v35  ;;  %v5003_v35 = vld [vmem:[%s9495_s3 + $0x210] sm:$0xff] }
 0x6b8   :  { %v5007_v8 = vld [vmem:[%s9495_s3 + $0x230] sm:$0xff] }
 0x6ba   :  { %5857 = vmatpush1.bf16.msra.mxu0 %v8042_v7  ;;  %5889 = vmatpush1.bf16.msra.mxu1 %v8052_v10 }
 0x6bb   :  { %5859 = vmatprep.subr.bf16.mxu0 %v8062_v13  ;;  %5891 = vmatprep.subr.bf16.mxu1 %v8071_v16 }
 0x6be   :  { %5861 = vmatpush1.bf16.msra.mxu0 %v8083_v20  ;;  %5893 = vmatpush1.bf16.msra.mxu1 %v8093_v23 }
 0x6bf   :  { %5863 = vmatprep.subr.bf16.mxu0 %v8103_v26  ;;  %5895 = vmatprep.subr.bf16.mxu1 %v8112_v29 }
 0x6c2   :  { %5865 = vmatpush1.bf16.msra.mxu0 %v8124_v33  ;;  %5897 = vmatpush1.bf16.msra.mxu1 %v8134_v36 }
 0x6c3   :  { %5867 = vmatprep.subr.bf16.mxu0 %v8144_v41  ;;  %5899 = vmatprep.subr.bf16.mxu1 %v8153_v45 }
 0x6c6   :  { %5869 = vmatpush1.bf16.msra.mxu0 %v8165_v51  ;;  %5901 = vmatpush1.bf16.msra.mxu1 %v8175_v55 }
 0x6c7   :  { %5871 = vmatprep.subr.bf16.mxu0 %v8185_v59  ;;  %5903 = vmatprep.subr.bf16.mxu1 %v8194_v0 }
 0x6ca   :  { %5873 = vmatpush1.bf16.msra.mxu0 %v8206_v6  ;;  %5905 = vmatpush1.bf16.msra.mxu1 %v8216_v11 }
 0x6cb   :  { %5875 = vmatprep.subr.bf16.mxu0 %v8226_v15  ;;  %5907 = vmatprep.subr.bf16.mxu1 %v8235_v19 }
 0x6ce   :  { %5877 = vmatpush1.bf16.msra.mxu0 %v8241_v22  ;;  %5909 = vmatpush1.bf16.msra.mxu1 %v8245_v24  ;;  %v2860_v24 = vld [vmem:[%s9497_s2] sm:$0xff] }
 0x6cf   :  { %5911 = vmatprep.subr.bf16.mxu0 %v5910_v53  ;;  %5943 = vmatprep.subr.bf16.mxu1 %v5942_v60  ;;  %v5912_v42 = vpack.c.bf16 %v2864_v48, %v2860_v24  ;;  %v2883_v53 = vld [vmem:[%s9497_s2 + $0xb8] sm:$0xff]  ;;  %v5948_v60 = vpack.c.bf16 %v2874_v25, %v2870_v1 }
 0x784   :  { %v2569_v63 = vpop.f32.mrb[12].mxu0  ;;  %v2640_v2 = vpop.f32.mrb[12].mxu1 }
 0x785   :  { %v6522_v7 = vadd.f32 %v2569_v63, %v8301_v32  ;;  %v2571_v10 = vpop.f32.mrb[13].mxu0  ;;  %v2642_v13 = vpop.f32.mrb[13].mxu1  ;;  %v6538_v33 = vadd.f32 %v2640_v2, %v8318_v61  ;;  %v2876_v63 = vld [vmem:[%s9497_s2 + $0x80] sm:$0xff] }
 0x786   :  { %v6523_v16 = vadd.f32 %v2571_v10, %v8305_v34  ;;  %v6539_v26 = vadd.f32 %v2642_v13, %v8312_v54  ;;  %v2880_v2 = vld [vmem:[%s9497_s2 + $0xa0] sm:$0xff]  ;;  %v5950_v10 = vpack.c.bf16 %v2883_v53, %v2879_v50  ;;  %v2878_v13 = vld [vmem:[%s9497_s2 + $0x90] sm:$0xff]  ;;  %v2909_v50 = vld [vmem:[%s9497_s2 + $0x188] sm:$0xff] }
 0x787   :  { %v4994_v20 = vmul.f32 -1.442695, %v6522_v7  ;;  %v5918_v7 = vpack.c.bf16 %v2881_v47, %v2877_v44  ;;  %v2902_v44 = vld [vmem:[%s9497_s2 + $0x150] sm:$0xff]  ;;  %v2913_v53 = vld [vmem:[%s9497_s2 + $0x1a8] sm:$0xff] }
 0x788   :  { %v4995_v23 = vmul.f32 -1.442695, %v6523_v16  ;;  %v4996_v29 = vmul.f32 -1.442695, %v6539_v26  ;;  %v2882_v16 = vld [vmem:[%s9497_s2 + $0xb0] sm:$0xff]  ;;  %v2887_v26 = vld [vmem:[%s9497_s2 + $0xd8] sm:$0xff] }
 0x789   :  { %6833 = vpow2.f32 %v4994_v20  ;;  %v2885_v20 = vld [vmem:[%s9497_s2 + $0xc8] sm:$0xff]  ;;  %v2906_v47 = vld [vmem:[%s9497_s2 + $0x170] sm:$0xff] }
 0x78a   :  { %6835 = vpow2.f32 %v4995_v23  ;;  %v2889_v23 = vld [vmem:[%s9497_s2 + $0xe8] sm:$0xff] }
 0x78b   :  { %6837 = vpow2.f32 %v4996_v29  ;;  %v2891_v29 = vld [vmem:[%s9497_s2 + $0xf8] sm:$0xff] }
 0x78c   :  { %6839 = vtanh.f32 %v6538_v33  ;;  %v5920_v33 = vpack.c.bf16 %v2880_v2, %v2876_v63  ;;  %v5964_v2 = vpack.c.bf16 %v2906_v47, %v2902_v44  ;;  %v5022_v44 = vld [vmem:[%s9495_s3 + $0x2a8] sm:$0xff]  ;;  %v5020_v47 = vld [vmem:[%s9495_s3 + $0x298] sm:$0xff] }
 0x793   :  { %v6834_v36 = vpop.eup %6833 }
 0x794   :  { %v6836_v41 = vpop.eup %6835  ;;  %v2652_v45 = vadd.f32 1.0, %v6834_v36  ;;  %v5952_v36 = vpack.c.bf16 %v2882_v16, %v2878_v13  ;;  %v5934_v13 = vpack.c.bf16 %v2913_v53, %v2909_v50  ;;  %v5024_v53 = vld [vmem:[%s9495_s3 + $0x2b8] sm:$0xff] }
 0x795   :  { %v2658_v51 = vadd.f32 1.0, %v6836_v41  ;;  %v6838_v55 = vpop.eup %6837  ;;  %v2884_v41 = vld [vmem:[%s9497_s2 + $0xc0] sm:$0xff] }
 0x796   :  { %6841 = vrcp.f32 %v2652_v45  ;;  %v6840_v59 = vpop.eup %6839  ;;  %v2665_v15 = vadd.f32 1.0, %v6838_v55  ;;  %v2888_v45 = vld [vmem:[%s9497_s2 + $0xe0] sm:$0xff]  ;;  %v5954_v55 = vpack.c.bf16 %v2891_v29, %v2887_v26  ;;  %v2917_v26 = vld [vmem:[%s9497_s2 + $0x1c8] sm:$0xff] }
 0x797   :  { %6843 = vrcp.f32 %v2658_v51  ;;  %v5922_v51 = vpack.c.bf16 %v2889_v23, %v2885_v20  ;;  %v5924_v24 = vpack.c.bf16 %v2888_v45, %v2884_v41  ;;  %v2910_v20 = vld [vmem:[%s9497_s2 + $0x190] sm:$0xff]  ;;  %v2921_v29 = vld [vmem:[%s9497_s2 + $0x1e8] sm:$0xff] }
 0x798   :  { %6845 = vrcp.f32 %v2665_v15  ;;  %v2895_v15 = vld [vmem:[%s9497_s2 + $0x118] sm:$0xff]  ;;  %v2914_v23 = vld [vmem:[%s9497_s2 + $0x1b0] sm:$0xff] }
 0x799   :  { %v5968_v45 = vpack.c.bf16 %v2914_v23, %v2910_v20  ;;  %v5030_v20 = vld [vmem:[%s9495_s3 + $0x2e8] sm:$0xff]  ;;  %v5028_v23 = vld [vmem:[%s9495_s3 + $0x2d8] sm:$0xff] }
 0x7a0   :  { %v6842_v0 = vpop.eup %6841 }
 0x7a1   :  { %v6844_v6 = vpop.eup %6843  ;;  %v2669_v11 = vmul.f32 %v6842_v0, %v6840_v59  ;;  %v2886_v59 = vld [vmem:[%s9497_s2 + $0xd0] sm:$0xff] }
 0x7a2   :  { %v2668_v19 = vmul.f32 %v6844_v6, %v8551_v17  ;;  %v6846_v58 = vpop.eup %6845  ;;  %v5946_v17 = vpack.c.bf16 %v2875_v40, %v2871_v49  ;;  %v2890_v0 = vld [vmem:[%s9497_s2 + $0xf0] sm:$0xff]  ;;  %v2893_v6 = vld [vmem:[%s9497_s2 + $0x108] sm:$0xff] }
 0x7a3   :  { %v5956_v48 = vpack.c.bf16 %v2890_v0, %v2886_v59  ;;  %v2894_v49 = vld [vmem:[%s9497_s2 + $0x110] sm:$0xff]  ;;  %v2920_v0 = vld [vmem:[%s9497_s2 + $0x1e0] sm:$0xff] }
 0x7a4   :  { %v8607_v22 = vadd.f32 %v2669_v11, %v2668_v19  ;;  %v2897_v11 = vld [vmem:[%s9497_s2 + $0x128] sm:$0xff]  ;;  %v2899_v19 = vld [vmem:[%s9497_s2 + $0x138] sm:$0xff]  ;;  %v2898_v40 = vld [vmem:[%s9497_s2 + $0x130] sm:$0xff] }
 0x7a5   :  { %v5926_v46 = vpack.c.bf16 %v2897_v11, %v2893_v6  ;;  %v5958_v37 = vpack.c.bf16 %v2899_v19, %v2895_v15  ;;  %v5960_v9 = vpack.c.bf16 %v2898_v40, %v2894_v49  ;;  %v2918_v6 = vld [vmem:[%s9497_s2 + $0x1d0] sm:$0xff]  ;;  %v5014_v49 = vld [vmem:[%s9495_s3 + $0x268] sm:$0xff]  ;;  %v5012_v40 = vld [vmem:[%s9495_s3 + $0x258] sm:$0xff] }
 0x7a6   :  { %6847 = vtanh.f32 %v8607_v22  ;;  %v2922_v11 = vld [vmem:[%s9497_s2 + $0x1f0] sm:$0xff] }
 0x7a7   :  { %v5972_v19 = vpack.c.bf16 %v2922_v11, %v2918_v6  ;;  %v5038_v6 = vld [vmem:[%s9495_s3 + $0x328] sm:$0xff]  ;;  %v5036_v11 = vld [vmem:[%s9495_s3 + $0x318] sm:$0xff] }
 0x7b0   :  { %v6848_v30 = vpop.eup %6847 }
 0x7b1   :  { %v8640_v52 = vmul.f32 %v6848_v30, %v6846_v58  ;;  %v2901_v58 = vld [vmem:[%s9497_s2 + $0x148] sm:$0xff] }
 0x7b2   :  { %v2905_v30 = vld [vmem:[%s9497_s2 + $0x168] sm:$0xff] }
 0x7b3   :  { %2745 = vmatmul.mubr.f32.vlgmr.msra.gmra.mrb[14].mxu0 %v8640_v52  ;;  %2816 = vmatmul.mubr.f32.vlgmr.msra.gmra.mrb[14].mxu1 %v8640_v52  ;;  %v5930_v1 = vpack.c.bf16 %v2905_v30, %v2901_v58  ;;  %v5016_v30 = vld [vmem:[%s9495_s3 + $0x278] sm:$0xff] }
 0x7b4   :  { %5913 = vmatpush1.bf16.msra.mxu0 %v5912_v42  ;;  %5945 = vmatpush1.bf16.msra.mxu1 %v5944_v4  ;;  %v2903_v42 = vld [vmem:[%s9497_s2 + $0x158] sm:$0xff] }
 0x7b5   :  { %5915 = vmatprep.subr.bf16.mxu0 %v5914_v18  ;;  %5947 = vmatprep.subr.bf16.mxu1 %v5946_v17  ;;  %v2907_v4 = vld [vmem:[%s9497_s2 + $0x178] sm:$0xff]  ;;  %v2900_v18 = vld [vmem:[%s9497_s2 + $0x140] sm:$0xff] }
 0x7b6   :  { %3011 = vmatprep.mubr.f32.mxu0 %v6993_v3  ;;  %3124 = vmatprep.mubr.f32.mxu1 %v6993_v3  ;;  %v2904_v17 = vld [vmem:[%s9497_s2 + $0x160] sm:$0xff]  ;;  %v5962_v25 = vpack.c.bf16 %v2907_v4, %v2903_v42 }
 0x7b7   :  { %v5932_v63 = vpack.c.bf16 %v2904_v17, %v2900_v18  ;;  %v5009_v42 = vld [vmem:[%s9495_s3 + $0x240] sm:$0xff]  ;;  %v5011_v18 = vld [vmem:[%s9495_s3 + $0x250] sm:$0xff] }
 0x7b8   :  { %5917 = vmatpush1.bf16.msra.mxu0 %v5916_v57  ;;  %5949 = vmatpush1.bf16.msra.mxu1 %v5948_v60  ;;  %v2911_v57 = vld [vmem:[%s9497_s2 + $0x198] sm:$0xff]  ;;  %v5013_v4 = vld [vmem:[%s9495_s3 + $0x260] sm:$0xff]  ;;  %v5015_v17 = vld [vmem:[%s9495_s3 + $0x270] sm:$0xff] }
 0x7b9   :  { %5919 = vmatprep.subr.bf16.mxu0 %v5918_v7  ;;  %5951 = vmatprep.subr.bf16.mxu1 %v5950_v10  ;;  %v2915_v60 = vld [vmem:[%s9497_s2 + $0x1b8] sm:$0xff]  ;;  %v2908_v7 = vld [vmem:[%s9497_s2 + $0x180] sm:$0xff] }
 0x7ba   :  { %v2912_v10 = vld [vmem:[%s9497_s2 + $0x1a0] sm:$0xff]  ;;  %v5966_v16 = vpack.c.bf16 %v2915_v60, %v2911_v57 }
 0x7bb   :  { %v5936_v41 = vpack.c.bf16 %v2912_v10, %v2908_v7  ;;  %v5017_v57 = vld [vmem:[%s9495_s3 + $0x280] sm:$0xff]  ;;  %v5019_v7 = vld [vmem:[%s9495_s3 + $0x290] sm:$0xff] }
 0x7bc   :  { %5921 = vmatpush1.bf16.msra.mxu0 %v5920_v33  ;;  %5953 = vmatpush1.bf16.msra.mxu1 %v5952_v36  ;;  %v2919_v33 = vld [vmem:[%s9497_s2 + $0x1d8] sm:$0xff]  ;;  %v5021_v60 = vld [vmem:[%s9495_s3 + $0x2a0] sm:$0xff]  ;;  %v5023_v10 = vld [vmem:[%s9495_s3 + $0x2b0] sm:$0xff] }
 0x7bd   :  { %5923 = vmatprep.subr.bf16.mxu0 %v5922_v51  ;;  %5955 = vmatprep.subr.bf16.mxu1 %v5954_v55  ;;  %v2923_v36 = vld [vmem:[%s9497_s2 + $0x1f8] sm:$0xff]  ;;  %v2916_v51 = vld [vmem:[%s9497_s2 + $0x1c0] sm:$0xff]  ;;  %v5938_v55 = vpack.c.bf16 %v2921_v29, %v2917_v26 }
 0x7be   :  { %v5970_v59 = vpack.c.bf16 %v2923_v36, %v2919_v33  ;;  %v5940_v15 = vpack.c.bf16 %v2920_v0, %v2916_v51  ;;  %v5032_v29 = vld [vmem:[%s9495_s3 + $0x2f8] sm:$0xff]  ;;  %v5025_v33 = vld [vmem:[%s9495_s3 + $0x2c0] sm:$0xff]  ;;  %v5027_v51 = vld [vmem:[%s9495_s3 + $0x2d0] sm:$0xff] }
 0x7bf   :  { %v5029_v36 = vld [vmem:[%s9495_s3 + $0x2e0] sm:$0xff] }
 0x7c0   :  { %5925 = vmatpush1.bf16.msra.mxu0 %v5924_v24  ;;  %5957 = vmatpush1.bf16.msra.mxu1 %v5956_v48 }
 0x7c1   :  { %5927 = vmatprep.subr.bf16.mxu0 %v5926_v46  ;;  %5959 = vmatprep.subr.bf16.mxu1 %v5958_v37  ;;  %v8855_v46 = vpack.c.bf16 %v5007_v8, %v5003_v35  ;;  %v5010_v37 = vld [vmem:[%s9495_s3 + $0x248] sm:$0xff] }
 0x7c2   :  { %v8869_v58 = vpack.c.bf16 %v5014_v49, %v5010_v37  ;;  %v5042_v35 = vld [vmem:[%s9495_s3 + $0x348] sm:$0xff] }
 0x7c3   :  { %v5046_v8 = vld [vmem:[%s9495_s3 + $0x368] sm:$0xff] }
 0x7c4   :  { %5929 = vmatpush1.bf16.msra.mxu0 %v5928_v21  ;;  %5961 = vmatpush1.bf16.msra.mxu1 %v5960_v9  ;;  %v8880_v21 = vpack.c.bf16 %v5016_v30, %v5012_v40  ;;  %v8882_v9 = vpack.c.bf16 %v5013_v4, %v5009_v42  ;;  %v9008_v49 = vpack.c.bf16 %v5046_v8, %v5042_v35  ;;  %v5044_v40 = vld [vmem:[%s9495_s3 + $0x358] sm:$0xff]  ;;  %v5041_v42 = vld [vmem:[%s9495_s3 + $0x340] sm:$0xff]  ;;  %v5059_v35 = vld [vmem:[%s9495_s3 + $0x3d0] sm:$0xff] }
 0x7c5   :  { %5931 = vmatprep.subr.bf16.mxu0 %v5930_v1  ;;  %5963 = vmatprep.subr.bf16.mxu1 %v5962_v25  ;;  %v8891_v1 = vpack.c.bf16 %v5015_v17, %v5011_v18  ;;  %v5018_v25 = vld [vmem:[%s9495_s3 + $0x288] sm:$0xff]  ;;  %v5048_v30 = vld [vmem:[%s9495_s3 + $0x378] sm:$0xff]  ;;  %v5045_v18 = vld [vmem:[%s9495_s3 + $0x360] sm:$0xff] }
 0x7c6   :  { %v8905_v50 = vpack.c.bf16 %v5022_v44, %v5018_v25  ;;  %v9019_v4 = vpack.c.bf16 %v5048_v30, %v5044_v40  ;;  %v5043_v17 = vld [vmem:[%s9495_s3 + $0x350] sm:$0xff]  ;;  %v9031_v44 = vpack.c.bf16 %v5045_v18, %v5041_v42 }
 0x7c7   :  { %v5047_v25 = vld [vmem:[%s9495_s3 + $0x370] sm:$0xff] }
 0x7c8   :  { %5933 = vmatpush1.bf16.msra.mxu0 %v5932_v63  ;;  %5965 = vmatpush1.bf16.msra.mxu1 %v5964_v2  ;;  %v8916_v63 = vpack.c.bf16 %v5024_v53, %v5020_v47  ;;  %v8918_v2 = vpack.c.bf16 %v5021_v60, %v5017_v57  ;;  %v5050_v47 = vld [vmem:[%s9495_s3 + $0x388] sm:$0xff]  ;;  %v5052_v57 = vld [vmem:[%s9495_s3 + $0x398] sm:$0xff]  ;;  %v9044_v60 = vpack.c.bf16 %v5047_v25, %v5043_v17  ;;  %v5063_v8 = vld [vmem:[%s9495_s3 + $0x3f0] sm:$0xff] }
 0x7c9   :  { %5935 = vmatprep.subr.bf16.mxu0 %v5934_v13  ;;  %5967 = vmatprep.subr.bf16.mxu1 %v5966_v16  ;;  %v8927_v13 = vpack.c.bf16 %v5023_v10, %v5019_v7  ;;  %v5026_v16 = vld [vmem:[%s9495_s3 + $0x2c8] sm:$0xff]  ;;  %v5056_v10 = vld [vmem:[%s9495_s3 + $0x3b8] sm:$0xff]  ;;  %v9107_v40 = vpack.c.bf16 %v5063_v8, %v5059_v35 }
 0x7ca   :  { %v8941_v26 = vpack.c.bf16 %v5030_v20, %v5026_v16  ;;  %v5054_v53 = vld [vmem:[%s9495_s3 + $0x3a8] sm:$0xff]  ;;  %v5049_v16 = vld [vmem:[%s9495_s3 + $0x380] sm:$0xff] }
 0x7cb   :  { %v9046_v7 = vpack.c.bf16 %v5054_v53, %v5050_v47  ;;  %v5053_v20 = vld [vmem:[%s9495_s3 + $0x3a0] sm:$0xff] }
 0x7cc   :  { %5937 = vmatpush1.bf16.msra.mxu0 %v5936_v41  ;;  %5969 = vmatpush1.bf16.msra.mxu1 %v5968_v45  ;;  %v8952_v41 = vpack.c.bf16 %v5032_v29, %v5028_v23  ;;  %v8954_v45 = vpack.c.bf16 %v5029_v36, %v5025_v33  ;;  %v9058_v23 = vpack.c.bf16 %v5056_v10, %v5052_v57  ;;  %v5051_v29 = vld [vmem:[%s9495_s3 + $0x390] sm:$0xff] }
 0x7cd   :  { %5939 = vmatprep.subr.bf16.mxu0 %v5938_v55  ;;  %5971 = vmatprep.subr.bf16.mxu1 %v5970_v59  ;;  %v5031_v55 = vld [vmem:[%s9495_s3 + $0x2f0] sm:$0xff]  ;;  %v5034_v59 = vld [vmem:[%s9495_s3 + $0x308] sm:$0xff]  ;;  %v9067_v36 = vpack.c.bf16 %v5053_v20, %v5049_v16 }
 0x7ce   :  { %v8966_v0 = vpack.c.bf16 %v5031_v55, %v5027_v51  ;;  %v5055_v33 = vld [vmem:[%s9495_s3 + $0x3b0] sm:$0xff]  ;;  %v5058_v55 = vld [vmem:[%s9495_s3 + $0x3c8] sm:$0xff] }
 0x7cf   :  { %v9071_v51 = vpack.c.bf16 %v5055_v33, %v5051_v29 }
 0x7d0   :  { %5941 = vmatpush1.bf16.msra.mxu0 %v5940_v15  ;;  %5973 = vmatpush1.bf16.msra.mxu1 %v5972_v19  ;;  %v5040_v15 = vld [vmem:[%s9495_s3 + $0x338] sm:$0xff]  ;;  %v8979_v19 = vpack.c.bf16 %v5038_v6, %v5034_v59  ;;  %v5062_v59 = vld [vmem:[%s9495_s3 + $0x3e8] sm:$0xff] }
 0x7d1   :  { %v5060_v6 = vld [vmem:[%s9495_s3 + $0x3d8] sm:$0xff] }
 0x7d3   :  { %3012 = vmatmul.mubr.f32.vlgmr.msra.gmra.mrb[16].mxu0 %v8324_v43  ;;  %3125 = vmatmul.mubr.f32.vlgmr.msra.gmra.mrb[16].mxu1 %v8324_v43  ;;  %v5002_v43 = vld [vmem:[%s9495_s3 + $0x208] sm:$0xff] }
 0x7d4   :  { %3017 = vmatprep.mubr.f32.mxu0 %v6993_v3  ;;  %3130 = vmatprep.mubr.f32.mxu1 %v6993_v3 }
 0x7d7   :  { %3018 = vmatmul.mubr.f32.gmra.mrb[18].mxu0 %v8370_v62  ;;  %3131 = vmatmul.mubr.f32.gmra.mrb[18].mxu1 %v8370_v62  ;;  %v5006_v62 = vld [vmem:[%s9495_s3 + $0x228] sm:$0xff] }
 0x7d8   :  { %3023 = vmatprep.mubr.f32.mxu0 %v6993_v3  ;;  %3136 = vmatprep.mubr.f32.mxu1 %v6993_v3 }
 0x7db   :  { %3024 = vmatmul.mubr.f32.gmra.mrb[20].mxu0 %v8416_v12  ;;  %3137 = vmatmul.mubr.f32.gmra.mrb[20].mxu1 %v8416_v12  ;;  %v5004_v12 = vld [vmem:[%s9495_s3 + $0x218] sm:$0xff] }
 0x7dc   :  { %3029 = vmatprep.mubr.f32.mxu0 %v6993_v3  ;;  %3142 = vmatprep.mubr.f32.mxu1 %v6993_v3 }
 0x7df   :  { %3030 = vmatmul.mubr.f32.gmra.mrb[22].mxu0 %v8462_v39  ;;  %3143 = vmatmul.mubr.f32.gmra.mrb[22].mxu1 %v8462_v39  ;;  %v8833_v39 = vpack.c.bf16 %v5006_v62, %v5002_v43  ;;  %v8981_v43 = vpack.c.bf16 %v5040_v15, %v5036_v11  ;;  %v5033_v62 = vld [vmem:[%s9495_s3 + $0x300] sm:$0xff]  ;;  %v9085_v11 = vpack.c.bf16 %v5062_v59, %v5058_v55  ;;  %v5064_v15 = vld [vmem:[%s9495_s3 + $0x3f8] sm:$0xff] }
 0x7e0   :  { %3035 = vmatprep.mubr.f32.mxu0 %v6993_v3  ;;  %3148 = vmatprep.mubr.f32.mxu1 %v6993_v3 }
 0x7e1   :  { %5975 = vmatprep.subr.bf16.mxu0 %v8833_v39 }
 0x7e3   :  { %3036 = vmatmul.mubr.f32.gmra.mrb[24].mxu0 %v8508_v5  ;;  %3149 = vmatmul.mubr.f32.gmra.mrb[24].mxu1 %v8508_v5  ;;  %v5008_v5 = vld [vmem:[%s9495_s3 + $0x238] sm:$0xff] }
 0x7e4   :  { %3041 = vmatprep.mubr.f32.mxu0 %v6993_v3  ;;  %3154 = vmatprep.mubr.f32.mxu1 %v6993_v3  ;;  %v8844_v24 = vpack.c.bf16 %v5008_v5, %v5004_v12  ;;  %v5037_v12 = vld [vmem:[%s9495_s3 + $0x320] sm:$0xff]  ;;  %v5035_v5 = vld [vmem:[%s9495_s3 + $0x310] sm:$0xff] }
 0x7e6   :  { %6007 = vmatprep.subr.bf16.mxu1 %v8844_v24 }
 0x7e7   :  { %3042 = vmatmul.mubr.f32.gmra.mrb[26].mxu0 %v8554_v14  ;;  %3155 = vmatmul.mubr.f32.gmra.mrb[26].mxu1 %v8554_v14  ;;  %v5001_v14 = vld [vmem:[%s9495_s3 + $0x200] sm:$0xff] }
 0x7e8   :  { %3047 = vmatprep.mubr.f32.mxu0 %v6993_v3  ;;  %3160 = vmatprep.mubr.f32.mxu1 %v6993_v3 }
 0x7e9   :  { %6009 = vmatpush1.bf16.msra.mxu1 %v8855_v46 }
 0x7ea   :  { %6011 = vmatprep.subr.bf16.mxu1 %v8880_v21 }
 0x7eb   :  { %3048 = vmatmul.mubr.f32.gmra.mrb[28].mxu0 %v8640_v52  ;;  %3161 = vmatmul.mubr.f32.gmra.mrb[28].mxu1 %v8640_v52  ;;  %v5005_v52 = vld [vmem:[%s9495_s3 + $0x220] sm:$0xff] }
 0x7ec   :  { %3053 = vmatprep.mubr.f32.mxu0 %v6993_v3  ;;  %3166 = vmatprep.mubr.f32.mxu1 %v6993_v3  ;;  %v8846_v48 = vpack.c.bf16 %v5005_v52, %v5001_v14  ;;  %v8993_v14 = vpack.c.bf16 %v5037_v12, %v5033_v62  ;;  %v5039_v52 = vld [vmem:[%s9495_s3 + $0x330] sm:$0xff]  ;;  %v5057_v62 = vld [vmem:[%s9495_s3 + $0x3c0] sm:$0xff] }
 0x7ed   :  { %6013 = vmatpush1.bf16.msra.mxu1 %v8891_v1  ;;  %v9006_v37 = vpack.c.bf16 %v5039_v52, %v5035_v5  ;;  %v5061_v12 = vld [vmem:[%s9495_s3 + $0x3e0] sm:$0xff]  ;;  %v9096_v5 = vpack.c.bf16 %v5064_v15, %v5060_v6 }
 0x7ee   :  { %5977 = vmatpush1.bf16.msra.mxu0 %v8846_v48  ;;  %6015 = vmatprep.subr.bf16.mxu1 %v8916_v63  ;;  %v9098_v52 = vpack.c.bf16 %v5061_v12, %v5057_v62 }
 0x7ef   :  { %5979 = vmatprep.subr.bf16.mxu0 %v8869_v58 }
 0x7f1   :  { %6017 = vmatpush1.bf16.msra.mxu1 %v8927_v13 }
 0x7f2   :  { %5981 = vmatpush1.bf16.msra.mxu0 %v8882_v9  ;;  %6019 = vmatprep.subr.bf16.mxu1 %v8952_v41 }
 0x7f3   :  { %5983 = vmatprep.subr.bf16.mxu0 %v8905_v50 }
 0x7f5   :  { %6021 = vmatpush1.bf16.msra.mxu1 %v8966_v0 }
 0x7f6   :  { %5985 = vmatpush1.bf16.msra.mxu0 %v8918_v2  ;;  %6023 = vmatprep.subr.bf16.mxu1 %v8981_v43 }
 0x7f7   :  { %5987 = vmatprep.subr.bf16.mxu0 %v8941_v26 }
 0x7f9   :  { %6025 = vmatpush1.bf16.msra.mxu1 %v9006_v37 }
 0x7fa   :  { %5989 = vmatpush1.bf16.msra.mxu0 %v8954_v45  ;;  %6027 = vmatprep.subr.bf16.mxu1 %v9019_v4 }
 0x7fb   :  { %5991 = vmatprep.subr.bf16.mxu0 %v8979_v19 }
 0x7fd   :  { %6029 = vmatpush1.bf16.msra.mxu1 %v9044_v60 }
 0x7fe   :  { %5993 = vmatpush1.bf16.msra.mxu0 %v8993_v14  ;;  %6031 = vmatprep.subr.bf16.mxu1 %v9058_v23 }
 0x7ff   :  { %5995 = vmatprep.subr.bf16.mxu0 %v9008_v49 }
 0x801   :  { %6033 = vmatpush1.bf16.msra.mxu1 %v9071_v51 }
 0x802   :  { %5997 = vmatpush1.bf16.msra.mxu0 %v9031_v44  ;;  %6035 = vmatprep.subr.bf16.mxu1 %v9096_v5 }
 0x803   :  { %5999 = vmatprep.subr.bf16.mxu0 %v9046_v7 }
 0x805   :  { %6037 = vmatpush1.bf16.msra.mxu1 %v9107_v40 }
 0x806   :  { %6001 = vmatpush1.bf16.msra.mxu0 %v9067_v36  ;;  %6071 = vmatprep.subr.bf16.mxu1 %v8844_v24 }
 0x807   :  { %6003 = vmatprep.subr.bf16.mxu0 %v9085_v11 }
 0x80a   :  { %6005 = vmatpush1.bf16.msra.mxu0 %v9098_v52 }
 0x80b   :  { %6039 = vmatprep.subr.bf16.mxu0 %v8833_v39 }
 0x886   :  { %v2746_v30 = vpop.f32.mrb[14].mxu0  ;;  %v2817_v42 = vpop.f32.mrb[14].mxu1 }
 0x887   :  { %v6524_v18 = vadd.f32 %v2746_v30, %v8301_v32  ;;  %v2748_v17 = vpop.f32.mrb[15].mxu0  ;;  %v2819_v25 = vpop.f32.mrb[15].mxu1  ;;  %v6540_v20 = vadd.f32 %v2817_v42, %v8318_v61 }
 0x888   :  { %v6525_v47 = vadd.f32 %v2748_v17, %v8305_v34  ;;  %v6541_v10 = vadd.f32 %v2819_v25, %v8312_v54 }
 0x889   :  { %v4997_v53 = vmul.f32 -1.442695, %v6524_v18 }
 0x88a   :  { %v4998_v57 = vmul.f32 -1.442695, %v6525_v47  ;;  %v4999_v16 = vmul.f32 -1.442695, %v6541_v10 }
 0x88b   :  { %6849 = vpow2.f32 %v4997_v53 }
 0x88c   :  { %6851 = vpow2.f32 %v4998_v57 }
 0x88d   :  { %6853 = vpow2.f32 %v4999_v16 }
 0x88e   :  { %6855 = vtanh.f32 %v6540_v20 }
 0x895   :  { %v6850_v29 = vpop.eup %6849 }
 0x896   :  { %v6852_v33 = vpop.eup %6851  ;;  %v2829_v55 = vadd.f32 1.0, %v6850_v29 }
 0x897   :  { %v2835_v59 = vadd.f32 1.0, %v6852_v33  ;;  %v6854_v32 = vpop.eup %6853 }
 0x898   :  { %6857 = vrcp.f32 %v2829_v55  ;;  %v6856_v6 = vpop.eup %6855  ;;  %v2842_v12 = vadd.f32 1.0, %v6854_v32 }
 0x899   :  { %6859 = vrcp.f32 %v2835_v59 }
 0x89a   :  { %6861 = vrcp.f32 %v2842_v12 }
 0x8a2   :  { %v6858_v34 = vpop.eup %6857 }
 0x8a3   :  { %v6860_v15 = vpop.eup %6859  ;;  %v2846_v62 = vmul.f32 %v6858_v34, %v6856_v6 }
 0x8a4   :  { %v2845_v35 = vmul.f32 %v6860_v15, %v8607_v22  ;;  %v6862_v61 = vpop.eup %6861  ;;  %v5000_v22 = vld [vmem:[%s9496_s4 + $0x4] sm:$0xf] }
 0x8a5   :  { %v9162_v42 = vrot.slane %v5000_v22, %v1292_v28  ;;  %v9166_v18 = vrot.slane %v5000_v22, %v1296_v31  ;;  %v9172_v29 = vrot.slane %v5000_v22, %v1304_v38  ;;  %v9177_v31 = vrot.slane %v5000_v22, %v1300_v56 }
 0x8a6   :  { %v2847_v54 = vadd.f32 %v2846_v62, %v2845_v35 }
 0x8a8   :  { %6863 = vtanh.f32 %v2847_v54 }
 0x8b2   :  { %v6864_v8 = vpop.eup %6863 }
 0x8b3   :  { %v2849_v30 = vmul.f32 %v6864_v8, %v6862_v61 }
 0x8b5   :  { %3054 = vmatmul.mubr.f32.gmra.mrb[30].mxu0 %v2849_v30  ;;  %3167 = vmatmul.mubr.f32.gmra.mrb[30].mxu1 %v2849_v30 }
 0x8b6   :  { %3338 = vmatprep.mubr.f32.mxu0 %v6993_v3  ;;  %3409 = vmatprep.mubr.f32.mxu1 %v6993_v3 }
 0x8b9   :  { %3339 = vmatmul.mubr.f32.vlgmr.msra.gmra.mrb[16].mxu0 %v6993_v3  ;;  %3410 = vmatmul.mubr.f32.vlgmr.msra.gmra.mrb[16].mxu1 %v6993_v3 }
 0x8ba   :  { %6041 = vmatpush1.bf16.msra.mxu0 %v8846_v48  ;;  %6073 = vmatpush1.bf16.msra.mxu1 %v8855_v46 }
 0x8bb   :  { %6043 = vmatprep.subr.bf16.mxu0 %v8869_v58  ;;  %6075 = vmatprep.subr.bf16.mxu1 %v8880_v21 }
 0x8bc   :  { %3512 = vmatprep.mubr.f32.mxu0 %v6993_v3  ;;  %3583 = vmatprep.mubr.f32.mxu1 %v6993_v3 }
 0x8be   :  { %6045 = vmatpush1.bf16.msra.mxu0 %v8882_v9  ;;  %6077 = vmatpush1.bf16.msra.mxu1 %v8891_v1 }
 0x8bf   :  { %6047 = vmatprep.subr.bf16.mxu0 %v8905_v50  ;;  %6079 = vmatprep.subr.bf16.mxu1 %v8916_v63 }
 0x8c2   :  { %6049 = vmatpush1.bf16.msra.mxu0 %v8918_v2  ;;  %6081 = vmatpush1.bf16.msra.mxu1 %v8927_v13 }
 0x8c3   :  { %6051 = vmatprep.subr.bf16.mxu0 %v8941_v26  ;;  %6083 = vmatprep.subr.bf16.mxu1 %v8952_v41 }
 0x8c6   :  { %6053 = vmatpush1.bf16.msra.mxu0 %v8954_v45  ;;  %6085 = vmatpush1.bf16.msra.mxu1 %v8966_v0 }
 0x8c7   :  { %6055 = vmatprep.subr.bf16.mxu0 %v8979_v19  ;;  %6087 = vmatprep.subr.bf16.mxu1 %v8981_v43 }
 0x8ca   :  { %6057 = vmatpush1.bf16.msra.mxu0 %v8993_v14  ;;  %6089 = vmatpush1.bf16.msra.mxu1 %v9006_v37 }
 0x8cb   :  { %6059 = vmatprep.subr.bf16.mxu0 %v9008_v49  ;;  %6091 = vmatprep.subr.bf16.mxu1 %v9019_v4 }
 0x8ce   :  { %6061 = vmatpush1.bf16.msra.mxu0 %v9031_v44  ;;  %6093 = vmatpush1.bf16.msra.mxu1 %v9044_v60 }
 0x8cf   :  { %6063 = vmatprep.subr.bf16.mxu0 %v9046_v7  ;;  %6095 = vmatprep.subr.bf16.mxu1 %v9058_v23 }
 0x8d2   :  { %6065 = vmatpush1.bf16.msra.mxu0 %v9067_v36  ;;  %6097 = vmatpush1.bf16.msra.mxu1 %v9071_v51 }
 0x8d3   :  { %6067 = vmatprep.subr.bf16.mxu0 %v9085_v11  ;;  %6099 = vmatprep.subr.bf16.mxu1 %v9096_v5 }
 0x8d6   :  { %6069 = vmatpush1.bf16.msra.mxu0 %v9098_v52  ;;  %6101 = vmatpush1.bf16.msra.mxu1 %v9107_v40 }
 0x8d7   :  { %6103 = vmatprep.subr.bf16.mxu0 %v8833_v39  ;;  %6135 = vmatprep.subr.bf16.mxu1 %v8844_v24 }
 0x98c   :  { %v3340_v17 = vpop.f32.mrb[16].mxu0  ;;  %v3411_v25 = vpop.f32.mrb[16].mxu1 }
 0x98d   :  { %v6542_v47 = vadd.f32 %v3340_v17, %v9162_v42  ;;  %v3342_v53 = vpop.f32.mrb[17].mxu0  ;;  %v3413_v57 = vpop.f32.mrb[17].mxu1  ;;  %v6558_v55 = vadd.f32 %v3411_v25, %v9177_v31 }
 0x98e   :  { %v6543_v10 = vadd.f32 %v3342_v53, %v9166_v18  ;;  %v6559_v28 = vadd.f32 %v3413_v57, %v9172_v29 }
 0x98f   :  { %v5065_v16 = vmul.f32 -1.442695, %v6542_v47 }
 0x990   :  { %v5066_v20 = vmul.f32 -1.442695, %v6543_v10  ;;  %v5067_v33 = vmul.f32 -1.442695, %v6559_v28 }
 0x991   :  { %6865 = vpow2.f32 %v5065_v16 }
 0x992   :  { %6867 = vpow2.f32 %v5066_v20 }
 0x993   :  { %6869 = vpow2.f32 %v5067_v33 }
 0x994   :  { %6871 = vtanh.f32 %v6558_v55 }
 0x99b   :  { %v6866_v59 = vpop.eup %6865 }
 0x99c   :  { %v6868_v32 = vpop.eup %6867  ;;  %v3423_v6 = vadd.f32 1.0, %v6866_v59 }
 0x99d   :  { %v3429_v34 = vadd.f32 1.0, %v6868_v32  ;;  %v6870_v38 = vpop.eup %6869 }
 0x99e   :  { %6873 = vrcp.f32 %v3423_v6  ;;  %v6872_v15 = vpop.eup %6871  ;;  %v3436_v54 = vadd.f32 1.0, %v6870_v38 }
 0x99f   :  { %6875 = vrcp.f32 %v3429_v34 }
 0x9a0   :  { %6877 = vrcp.f32 %v3436_v54 }
 0x9a8   :  { %v6874_v62 = vpop.eup %6873 }
 0x9a9   :  { %v6876_v12 = vpop.eup %6875  ;;  %v3440_v35 = vmul.f32 %v6874_v62, %v6872_v15 }
 0x9aa   :  { %v3439_v27 = vmul.f32 0.0, %v6876_v12  ;;  %v6878_v61 = vpop.eup %6877 }
 0x9ac   :  { %v9180_v56 = vadd.f32 %v3440_v35, %v3439_v27 }
 0x9ae   :  { %6879 = vtanh.f32 %v9180_v56 }
 0x9b8   :  { %v6880_v8 = vpop.eup %6879 }
 0x9b9   :  { %v3443_v30 = vmul.f32 %v6880_v8, %v6878_v61 }
 0x9bb   :  { %3513 = vmatmul.mubr.f32.vlgmr.msra.gmra.mrb[18].mxu0 %v3443_v30  ;;  %3584 = vmatmul.mubr.f32.vlgmr.msra.gmra.mrb[18].mxu1 %v3443_v30 }
 0x9bc   :  { %6105 = vmatpush1.bf16.msra.mxu0 %v8846_v48  ;;  %6137 = vmatpush1.bf16.msra.mxu1 %v8855_v46 }
 0x9bd   :  { %6107 = vmatprep.subr.bf16.mxu0 %v8869_v58  ;;  %6139 = vmatprep.subr.bf16.mxu1 %v8880_v21 }
 0x9be   :  { %3686 = vmatprep.mubr.f32.mxu0 %v6993_v3  ;;  %3757 = vmatprep.mubr.f32.mxu1 %v6993_v3 }
 0x9c0   :  { %6109 = vmatpush1.bf16.msra.mxu0 %v8882_v9  ;;  %6141 = vmatpush1.bf16.msra.mxu1 %v8891_v1 }
 0x9c1   :  { %6111 = vmatprep.subr.bf16.mxu0 %v8905_v50  ;;  %6143 = vmatprep.subr.bf16.mxu1 %v8916_v63 }
 0x9c4   :  { %6113 = vmatpush1.bf16.msra.mxu0 %v8918_v2  ;;  %6145 = vmatpush1.bf16.msra.mxu1 %v8927_v13 }
 0x9c5   :  { %6115 = vmatprep.subr.bf16.mxu0 %v8941_v26  ;;  %6147 = vmatprep.subr.bf16.mxu1 %v8952_v41 }
 0x9c8   :  { %6117 = vmatpush1.bf16.msra.mxu0 %v8954_v45  ;;  %6149 = vmatpush1.bf16.msra.mxu1 %v8966_v0 }
 0x9c9   :  { %6119 = vmatprep.subr.bf16.mxu0 %v8979_v19  ;;  %6151 = vmatprep.subr.bf16.mxu1 %v8981_v43 }
 0x9cc   :  { %6121 = vmatpush1.bf16.msra.mxu0 %v8993_v14  ;;  %6153 = vmatpush1.bf16.msra.mxu1 %v9006_v37 }
 0x9cd   :  { %6123 = vmatprep.subr.bf16.mxu0 %v9008_v49  ;;  %6155 = vmatprep.subr.bf16.mxu1 %v9019_v4 }
 0x9d0   :  { %6125 = vmatpush1.bf16.msra.mxu0 %v9031_v44  ;;  %6157 = vmatpush1.bf16.msra.mxu1 %v9044_v60 }
 0x9d1   :  { %6127 = vmatprep.subr.bf16.mxu0 %v9046_v7  ;;  %6159 = vmatprep.subr.bf16.mxu1 %v9058_v23 }
 0x9d4   :  { %6129 = vmatpush1.bf16.msra.mxu0 %v9067_v36  ;;  %6161 = vmatpush1.bf16.msra.mxu1 %v9071_v51 }
 0x9d5   :  { %6131 = vmatprep.subr.bf16.mxu0 %v9085_v11  ;;  %6163 = vmatprep.subr.bf16.mxu1 %v9096_v5 }
 0x9d8   :  { %6133 = vmatpush1.bf16.msra.mxu0 %v9098_v52  ;;  %6165 = vmatpush1.bf16.msra.mxu1 %v9107_v40 }
 0x9d9   :  { %6167 = vmatprep.subr.bf16.mxu0 %v8833_v39  ;;  %6199 = vmatprep.subr.bf16.mxu1 %v8844_v24 }
 0xa8e   :  { %v3514_v22 = vpop.f32.mrb[18].mxu0  ;;  %v3585_v17 = vpop.f32.mrb[18].mxu1 }
 0xa8f   :  { %v6544_v25 = vadd.f32 %v3514_v22, %v9162_v42  ;;  %v3516_v47 = vpop.f32.mrb[19].mxu0  ;;  %v3587_v53 = vpop.f32.mrb[19].mxu1  ;;  %v6560_v33 = vadd.f32 %v3585_v17, %v9177_v31 }
 0xa90   :  { %v6545_v57 = vadd.f32 %v3516_v47, %v9166_v18  ;;  %v6561_v20 = vadd.f32 %v3587_v53, %v9172_v29 }
 0xa91   :  { %v5068_v10 = vmul.f32 -1.442695, %v6544_v25 }
 0xa92   :  { %v5069_v16 = vmul.f32 -1.442695, %v6545_v57  ;;  %v5070_v28 = vmul.f32 -1.442695, %v6561_v20 }
 0xa93   :  { %6881 = vpow2.f32 %v5068_v10 }
 0xa94   :  { %6883 = vpow2.f32 %v5069_v16 }
 0xa95   :  { %6885 = vpow2.f32 %v5070_v28 }
 0xa96   :  { %6887 = vtanh.f32 %v6560_v33 }
 0xa9d   :  { %v6882_v55 = vpop.eup %6881 }
 0xa9e   :  { %v6884_v59 = vpop.eup %6883  ;;  %v3597_v32 = vadd.f32 1.0, %v6882_v55 }
 0xa9f   :  { %v3603_v6 = vadd.f32 1.0, %v6884_v59  ;;  %v6886_v34 = vpop.eup %6885 }
 0xaa0   :  { %6889 = vrcp.f32 %v3597_v32  ;;  %v6888_v38 = vpop.eup %6887  ;;  %v3610_v35 = vadd.f32 1.0, %v6886_v34 }
 0xaa1   :  { %6891 = vrcp.f32 %v3603_v6 }
 0xaa2   :  { %6893 = vrcp.f32 %v3610_v35 }
 0xaaa   :  { %v6890_v15 = vpop.eup %6889 }
 0xaab   :  { %v6892_v62 = vpop.eup %6891  ;;  %v3614_v12 = vmul.f32 %v6890_v15, %v6888_v38 }
 0xaac   :  { %v3613_v54 = vmul.f32 %v6892_v62, %v9180_v56  ;;  %v6894_v61 = vpop.eup %6893 }
 0xaae   :  { %v9222_v27 = vadd.f32 %v3614_v12, %v3613_v54 }
 0xab0   :  { %6895 = vtanh.f32 %v9222_v27 }
 0xaba   :  { %v6896_v8 = vpop.eup %6895 }
 0xabb   :  { %v3617_v30 = vmul.f32 %v6896_v8, %v6894_v61 }
 0xabd   :  { %3687 = vmatmul.mubr.f32.vlgmr.msra.gmra.mrb[20].mxu0 %v3617_v30  ;;  %3758 = vmatmul.mubr.f32.vlgmr.msra.gmra.mrb[20].mxu1 %v3617_v30 }
 0xabe   :  { %6169 = vmatpush1.bf16.msra.mxu0 %v8846_v48  ;;  %6201 = vmatpush1.bf16.msra.mxu1 %v8855_v46 }
 0xabf   :  { %6171 = vmatprep.subr.bf16.mxu0 %v8869_v58  ;;  %6203 = vmatprep.subr.bf16.mxu1 %v8880_v21 }
 0xac0   :  { %3860 = vmatprep.mubr.f32.mxu0 %v6993_v3  ;;  %3931 = vmatprep.mubr.f32.mxu1 %v6993_v3 }
 0xac2   :  { %6173 = vmatpush1.bf16.msra.mxu0 %v8882_v9  ;;  %6205 = vmatpush1.bf16.msra.mxu1 %v8891_v1 }
 0xac3   :  { %6175 = vmatprep.subr.bf16.mxu0 %v8905_v50  ;;  %6207 = vmatprep.subr.bf16.mxu1 %v8916_v63 }
 0xac6   :  { %6177 = vmatpush1.bf16.msra.mxu0 %v8918_v2  ;;  %6209 = vmatpush1.bf16.msra.mxu1 %v8927_v13 }
 0xac7   :  { %6179 = vmatprep.subr.bf16.mxu0 %v8941_v26  ;;  %6211 = vmatprep.subr.bf16.mxu1 %v8952_v41 }
 0xaca   :  { %6181 = vmatpush1.bf16.msra.mxu0 %v8954_v45  ;;  %6213 = vmatpush1.bf16.msra.mxu1 %v8966_v0 }
 0xacb   :  { %6183 = vmatprep.subr.bf16.mxu0 %v8979_v19  ;;  %6215 = vmatprep.subr.bf16.mxu1 %v8981_v43 }
 0xace   :  { %6185 = vmatpush1.bf16.msra.mxu0 %v8993_v14  ;;  %6217 = vmatpush1.bf16.msra.mxu1 %v9006_v37 }
 0xacf   :  { %6187 = vmatprep.subr.bf16.mxu0 %v9008_v49  ;;  %6219 = vmatprep.subr.bf16.mxu1 %v9019_v4 }
 0xad2   :  { %6189 = vmatpush1.bf16.msra.mxu0 %v9031_v44  ;;  %6221 = vmatpush1.bf16.msra.mxu1 %v9044_v60 }
 0xad3   :  { %6191 = vmatprep.subr.bf16.mxu0 %v9046_v7  ;;  %6223 = vmatprep.subr.bf16.mxu1 %v9058_v23 }
 0xad6   :  { %6193 = vmatpush1.bf16.msra.mxu0 %v9067_v36  ;;  %6225 = vmatpush1.bf16.msra.mxu1 %v9071_v51 }
 0xad7   :  { %6195 = vmatprep.subr.bf16.mxu0 %v9085_v11  ;;  %6227 = vmatprep.subr.bf16.mxu1 %v9096_v5 }
 0xada   :  { %6197 = vmatpush1.bf16.msra.mxu0 %v9098_v52  ;;  %6229 = vmatpush1.bf16.msra.mxu1 %v9107_v40 }
 0xadb   :  { %6231 = vmatprep.subr.bf16.mxu0 %v8833_v39  ;;  %6263 = vmatprep.subr.bf16.mxu1 %v8844_v24 }
 0xb90   :  { %v3688_v56 = vpop.f32.mrb[20].mxu0  ;;  %v3759_v22 = vpop.f32.mrb[20].mxu1 }
 0xb91   :  { %v6546_v17 = vadd.f32 %v3688_v56, %v9162_v42  ;;  %v3690_v25 = vpop.f32.mrb[21].mxu0  ;;  %v3761_v47 = vpop.f32.mrb[21].mxu1  ;;  %v6562_v28 = vadd.f32 %v3759_v22, %v9177_v31 }
 0xb92   :  { %v6547_v53 = vadd.f32 %v3690_v25, %v9166_v18  ;;  %v6563_v16 = vadd.f32 %v3761_v47, %v9172_v29 }
 0xb93   :  { %v5071_v57 = vmul.f32 -1.442695, %v6546_v17 }
 0xb94   :  { %v5072_v10 = vmul.f32 -1.442695, %v6547_v53  ;;  %v5073_v20 = vmul.f32 -1.442695, %v6563_v16 }
 0xb95   :  { %6897 = vpow2.f32 %v5071_v57 }
 0xb96   :  { %6899 = vpow2.f32 %v5072_v10 }
 0xb97   :  { %6901 = vpow2.f32 %v5073_v20 }
 0xb98   :  { %6903 = vtanh.f32 %v6562_v28 }
 0xb9f   :  { %v6898_v33 = vpop.eup %6897 }
 0xba0   :  { %v6900_v55 = vpop.eup %6899  ;;  %v3771_v59 = vadd.f32 1.0, %v6898_v33 }
 0xba1   :  { %v3777_v32 = vadd.f32 1.0, %v6900_v55  ;;  %v6902_v6 = vpop.eup %6901 }
 0xba2   :  { %6905 = vrcp.f32 %v3771_v59  ;;  %v6904_v34 = vpop.eup %6903  ;;  %v3784_v12 = vadd.f32 1.0, %v6902_v6 }
 0xba3   :  { %6907 = vrcp.f32 %v3777_v32 }
 0xba4   :  { %6909 = vrcp.f32 %v3784_v12 }
 0xbac   :  { %v6906_v38 = vpop.eup %6905 }
 0xbad   :  { %v6908_v15 = vpop.eup %6907  ;;  %v3788_v62 = vmul.f32 %v6906_v38, %v6904_v34 }
 0xbae   :  { %v3787_v35 = vmul.f32 %v6908_v15, %v9222_v27  ;;  %v6910_v61 = vpop.eup %6909 }
 0xbb0   :  { %v9264_v54 = vadd.f32 %v3788_v62, %v3787_v35 }
 0xbb2   :  { %6911 = vtanh.f32 %v9264_v54 }
 0xbbc   :  { %v6912_v8 = vpop.eup %6911 }
 0xbbd   :  { %v3791_v30 = vmul.f32 %v6912_v8, %v6910_v61 }
 0xbbf   :  { %3861 = vmatmul.mubr.f32.vlgmr.msra.gmra.mrb[22].mxu0 %v3791_v30  ;;  %3932 = vmatmul.mubr.f32.vlgmr.msra.gmra.mrb[22].mxu1 %v3791_v30 }
 0xbc0   :  { %6233 = vmatpush1.bf16.msra.mxu0 %v8846_v48  ;;  %6265 = vmatpush1.bf16.msra.mxu1 %v8855_v46 }
 0xbc1   :  { %6235 = vmatprep.subr.bf16.mxu0 %v8869_v58  ;;  %6267 = vmatprep.subr.bf16.mxu1 %v8880_v21 }
 0xbc2   :  { %4034 = vmatprep.mubr.f32.mxu0 %v6993_v3  ;;  %4105 = vmatprep.mubr.f32.mxu1 %v6993_v3 }
 0xbc4   :  { %6237 = vmatpush1.bf16.msra.mxu0 %v8882_v9  ;;  %6269 = vmatpush1.bf16.msra.mxu1 %v8891_v1 }
 0xbc5   :  { %6239 = vmatprep.subr.bf16.mxu0 %v8905_v50  ;;  %6271 = vmatprep.subr.bf16.mxu1 %v8916_v63 }
 0xbc8   :  { %6241 = vmatpush1.bf16.msra.mxu0 %v8918_v2  ;;  %6273 = vmatpush1.bf16.msra.mxu1 %v8927_v13 }
 0xbc9   :  { %6243 = vmatprep.subr.bf16.mxu0 %v8941_v26  ;;  %6275 = vmatprep.subr.bf16.mxu1 %v8952_v41 }
 0xbcc   :  { %6245 = vmatpush1.bf16.msra.mxu0 %v8954_v45  ;;  %6277 = vmatpush1.bf16.msra.mxu1 %v8966_v0 }
 0xbcd   :  { %6247 = vmatprep.subr.bf16.mxu0 %v8979_v19  ;;  %6279 = vmatprep.subr.bf16.mxu1 %v8981_v43 }
 0xbd0   :  { %6249 = vmatpush1.bf16.msra.mxu0 %v8993_v14  ;;  %6281 = vmatpush1.bf16.msra.mxu1 %v9006_v37 }
 0xbd1   :  { %6251 = vmatprep.subr.bf16.mxu0 %v9008_v49  ;;  %6283 = vmatprep.subr.bf16.mxu1 %v9019_v4 }
 0xbd4   :  { %6253 = vmatpush1.bf16.msra.mxu0 %v9031_v44  ;;  %6285 = vmatpush1.bf16.msra.mxu1 %v9044_v60 }
 0xbd5   :  { %6255 = vmatprep.subr.bf16.mxu0 %v9046_v7  ;;  %6287 = vmatprep.subr.bf16.mxu1 %v9058_v23 }
 0xbd8   :  { %6257 = vmatpush1.bf16.msra.mxu0 %v9067_v36  ;;  %6289 = vmatpush1.bf16.msra.mxu1 %v9071_v51 }
 0xbd9   :  { %6259 = vmatprep.subr.bf16.mxu0 %v9085_v11  ;;  %6291 = vmatprep.subr.bf16.mxu1 %v9096_v5 }
 0xbdc   :  { %6261 = vmatpush1.bf16.msra.mxu0 %v9098_v52  ;;  %6293 = vmatpush1.bf16.msra.mxu1 %v9107_v40 }
 0xbdd   :  { %6295 = vmatprep.subr.bf16.mxu0 %v8833_v39  ;;  %6327 = vmatprep.subr.bf16.mxu1 %v8844_v24 }
 0xc92   :  { %v3862_v27 = vpop.f32.mrb[22].mxu0  ;;  %v3933_v56 = vpop.f32.mrb[22].mxu1 }
 0xc93   :  { %v6548_v22 = vadd.f32 %v3862_v27, %v9162_v42  ;;  %v3864_v17 = vpop.f32.mrb[23].mxu0  ;;  %v3935_v25 = vpop.f32.mrb[23].mxu1  ;;  %v6564_v20 = vadd.f32 %v3933_v56, %v9177_v31 }
 0xc94   :  { %v6549_v47 = vadd.f32 %v3864_v17, %v9166_v18  ;;  %v6565_v10 = vadd.f32 %v3935_v25, %v9172_v29 }
 0xc95   :  { %v5074_v53 = vmul.f32 -1.442695, %v6548_v22 }
 0xc96   :  { %v5075_v57 = vmul.f32 -1.442695, %v6549_v47  ;;  %v5076_v16 = vmul.f32 -1.442695, %v6565_v10 }
 0xc97   :  { %6913 = vpow2.f32 %v5074_v53 }
 0xc98   :  { %6915 = vpow2.f32 %v5075_v57 }
 0xc99   :  { %6917 = vpow2.f32 %v5076_v16 }
 0xc9a   :  { %6919 = vtanh.f32 %v6564_v20 }
 0xca1   :  { %v6914_v28 = vpop.eup %6913 }
 0xca2   :  { %v6916_v33 = vpop.eup %6915  ;;  %v3945_v55 = vadd.f32 1.0, %v6914_v28 }
 0xca3   :  { %v3951_v59 = vadd.f32 1.0, %v6916_v33  ;;  %v6918_v32 = vpop.eup %6917 }
 0xca4   :  { %6921 = vrcp.f32 %v3945_v55  ;;  %v6920_v6 = vpop.eup %6919  ;;  %v3958_v62 = vadd.f32 1.0, %v6918_v32 }
 0xca5   :  { %6923 = vrcp.f32 %v3951_v59 }
 0xca6   :  { %6925 = vrcp.f32 %v3958_v62 }
 0xcae   :  { %v6922_v34 = vpop.eup %6921 }
 0xcaf   :  { %v6924_v38 = vpop.eup %6923  ;;  %v3962_v15 = vmul.f32 %v6922_v34, %v6920_v6 }
 0xcb0   :  { %v3961_v12 = vmul.f32 %v6924_v38, %v9264_v54  ;;  %v6926_v61 = vpop.eup %6925 }
 0xcb2   :  { %v9306_v35 = vadd.f32 %v3962_v15, %v3961_v12 }
 0xcb4   :  { %6927 = vtanh.f32 %v9306_v35 }
 0xcbe   :  { %v6928_v8 = vpop.eup %6927 }
 0xcbf   :  { %v3965_v30 = vmul.f32 %v6928_v8, %v6926_v61 }
 0xcc1   :  { %4035 = vmatmul.mubr.f32.vlgmr.msra.gmra.mrb[24].mxu0 %v3965_v30  ;;  %4106 = vmatmul.mubr.f32.vlgmr.msra.gmra.mrb[24].mxu1 %v3965_v30 }
 0xcc2   :  { %6297 = vmatpush1.bf16.msra.mxu0 %v8846_v48  ;;  %6329 = vmatpush1.bf16.msra.mxu1 %v8855_v46 }
 0xcc3   :  { %6299 = vmatprep.subr.bf16.mxu0 %v8869_v58  ;;  %6331 = vmatprep.subr.bf16.mxu1 %v8880_v21 }
 0xcc4   :  { %4208 = vmatprep.mubr.f32.mxu0 %v6993_v3  ;;  %4279 = vmatprep.mubr.f32.mxu1 %v6993_v3 }
 0xcc6   :  { %6301 = vmatpush1.bf16.msra.mxu0 %v8882_v9  ;;  %6333 = vmatpush1.bf16.msra.mxu1 %v8891_v1 }
 0xcc7   :  { %6303 = vmatprep.subr.bf16.mxu0 %v8905_v50  ;;  %6335 = vmatprep.subr.bf16.mxu1 %v8916_v63 }
 0xcca   :  { %6305 = vmatpush1.bf16.msra.mxu0 %v8918_v2  ;;  %6337 = vmatpush1.bf16.msra.mxu1 %v8927_v13 }
 0xccb   :  { %6307 = vmatprep.subr.bf16.mxu0 %v8941_v26  ;;  %6339 = vmatprep.subr.bf16.mxu1 %v8952_v41 }
 0xcce   :  { %6309 = vmatpush1.bf16.msra.mxu0 %v8954_v45  ;;  %6341 = vmatpush1.bf16.msra.mxu1 %v8966_v0 }
 0xccf   :  { %6311 = vmatprep.subr.bf16.mxu0 %v8979_v19  ;;  %6343 = vmatprep.subr.bf16.mxu1 %v8981_v43 }
 0xcd2   :  { %6313 = vmatpush1.bf16.msra.mxu0 %v8993_v14  ;;  %6345 = vmatpush1.bf16.msra.mxu1 %v9006_v37 }
 0xcd3   :  { %6315 = vmatprep.subr.bf16.mxu0 %v9008_v49  ;;  %6347 = vmatprep.subr.bf16.mxu1 %v9019_v4 }
 0xcd6   :  { %6317 = vmatpush1.bf16.msra.mxu0 %v9031_v44  ;;  %6349 = vmatpush1.bf16.msra.mxu1 %v9044_v60 }
 0xcd7   :  { %6319 = vmatprep.subr.bf16.mxu0 %v9046_v7  ;;  %6351 = vmatprep.subr.bf16.mxu1 %v9058_v23 }
 0xcda   :  { %6321 = vmatpush1.bf16.msra.mxu0 %v9067_v36  ;;  %6353 = vmatpush1.bf16.msra.mxu1 %v9071_v51 }
 0xcdb   :  { %6323 = vmatprep.subr.bf16.mxu0 %v9085_v11  ;;  %6355 = vmatprep.subr.bf16.mxu1 %v9096_v5 }
 0xcde   :  { %6325 = vmatpush1.bf16.msra.mxu0 %v9098_v52  ;;  %6357 = vmatpush1.bf16.msra.mxu1 %v9107_v40 }
 0xcdf   :  { %6359 = vmatprep.subr.bf16.mxu0 %v8833_v39  ;;  %6391 = vmatprep.subr.bf16.mxu1 %v8844_v24 }
 0xd94   :  { %v4036_v54 = vpop.f32.mrb[24].mxu0  ;;  %v4107_v27 = vpop.f32.mrb[24].mxu1 }
 0xd95   :  { %v6550_v56 = vadd.f32 %v4036_v54, %v9162_v42  ;;  %v4038_v22 = vpop.f32.mrb[25].mxu0  ;;  %v4109_v17 = vpop.f32.mrb[25].mxu1  ;;  %v6566_v16 = vadd.f32 %v4107_v27, %v9177_v31 }
 0xd96   :  { %v6551_v25 = vadd.f32 %v4038_v22, %v9166_v18  ;;  %v6567_v57 = vadd.f32 %v4109_v17, %v9172_v29 }
 0xd97   :  { %v5077_v47 = vmul.f32 -1.442695, %v6550_v56 }
 0xd98   :  { %v5078_v53 = vmul.f32 -1.442695, %v6551_v25  ;;  %v5079_v10 = vmul.f32 -1.442695, %v6567_v57 }
 0xd99   :  { %6929 = vpow2.f32 %v5077_v47 }
 0xd9a   :  { %6931 = vpow2.f32 %v5078_v53 }
 0xd9b   :  { %6933 = vpow2.f32 %v5079_v10 }
 0xd9c   :  { %6935 = vtanh.f32 %v6566_v16 }
 0xda3   :  { %v6930_v20 = vpop.eup %6929 }
 0xda4   :  { %v6932_v28 = vpop.eup %6931  ;;  %v4119_v33 = vadd.f32 1.0, %v6930_v20 }
 0xda5   :  { %v4125_v55 = vadd.f32 1.0, %v6932_v28  ;;  %v6934_v59 = vpop.eup %6933 }
 0xda6   :  { %6937 = vrcp.f32 %v4119_v33  ;;  %v6936_v32 = vpop.eup %6935  ;;  %v4132_v15 = vadd.f32 1.0, %v6934_v59 }
 0xda7   :  { %6939 = vrcp.f32 %v4125_v55 }
 0xda8   :  { %6941 = vrcp.f32 %v4132_v15 }
 0xdb0   :  { %v6938_v6 = vpop.eup %6937 }
 0xdb1   :  { %v6940_v34 = vpop.eup %6939  ;;  %v4136_v38 = vmul.f32 %v6938_v6, %v6936_v32 }
 0xdb2   :  { %v4135_v62 = vmul.f32 %v6940_v34, %v9306_v35  ;;  %v6942_v61 = vpop.eup %6941 }
 0xdb4   :  { %v9348_v12 = vadd.f32 %v4136_v38, %v4135_v62 }
 0xdb6   :  { %6943 = vtanh.f32 %v9348_v12 }
 0xdc0   :  { %v6944_v8 = vpop.eup %6943 }
 0xdc1   :  { %v4139_v30 = vmul.f32 %v6944_v8, %v6942_v61  ;;  %v4665_v8 = vld [vmem:[%s9498_s5 + $0x18] sm:$0xff] }
 0xdc3   :  { %4209 = vmatmul.mubr.f32.vlgmr.msra.gmra.mrb[26].mxu0 %v4139_v30  ;;  %4280 = vmatmul.mubr.f32.vlgmr.msra.gmra.mrb[26].mxu1 %v4139_v30 }
 0xdc4   :  { %6361 = vmatpush1.bf16.msra.mxu0 %v8846_v48  ;;  %6393 = vmatpush1.bf16.msra.mxu1 %v8855_v46 }
 0xdc5   :  { %6363 = vmatprep.subr.bf16.mxu0 %v8869_v58  ;;  %6395 = vmatprep.subr.bf16.mxu1 %v8880_v21 }
 0xdc6   :  { %4382 = vmatprep.mubr.f32.mxu0 %v6993_v3  ;;  %4453 = vmatprep.mubr.f32.mxu1 %v6993_v3 }
 0xdc8   :  { %6365 = vmatpush1.bf16.msra.mxu0 %v8882_v9  ;;  %6397 = vmatpush1.bf16.msra.mxu1 %v8891_v1 }
 0xdc9   :  { %6367 = vmatprep.subr.bf16.mxu0 %v8905_v50  ;;  %6399 = vmatprep.subr.bf16.mxu1 %v8916_v63 }
 0xdcc   :  { %6369 = vmatpush1.bf16.msra.mxu0 %v8918_v2  ;;  %6401 = vmatpush1.bf16.msra.mxu1 %v8927_v13 }
 0xdcd   :  { %6371 = vmatprep.subr.bf16.mxu0 %v8941_v26  ;;  %6403 = vmatprep.subr.bf16.mxu1 %v8952_v41 }
 0xdd0   :  { %6373 = vmatpush1.bf16.msra.mxu0 %v8954_v45  ;;  %6405 = vmatpush1.bf16.msra.mxu1 %v8966_v0 }
 0xdd1   :  { %6375 = vmatprep.subr.bf16.mxu0 %v8979_v19  ;;  %6407 = vmatprep.subr.bf16.mxu1 %v8981_v43 }
 0xdd4   :  { %6377 = vmatpush1.bf16.msra.mxu0 %v8993_v14  ;;  %6409 = vmatpush1.bf16.msra.mxu1 %v9006_v37 }
 0xdd5   :  { %6379 = vmatprep.subr.bf16.mxu0 %v9008_v49  ;;  %6411 = vmatprep.subr.bf16.mxu1 %v9019_v4 }
 0xdd8   :  { %6381 = vmatpush1.bf16.msra.mxu0 %v9031_v44  ;;  %6413 = vmatpush1.bf16.msra.mxu1 %v9044_v60 }
 0xdd9   :  { %6383 = vmatprep.subr.bf16.mxu0 %v9046_v7  ;;  %6415 = vmatprep.subr.bf16.mxu1 %v9058_v23 }
 0xddc   :  { %6385 = vmatpush1.bf16.msra.mxu0 %v9067_v36  ;;  %6417 = vmatpush1.bf16.msra.mxu1 %v9071_v51 }
 0xddd   :  { %6387 = vmatprep.subr.bf16.mxu0 %v9085_v11  ;;  %6419 = vmatprep.subr.bf16.mxu1 %v9096_v5 }
 0xde0   :  { %6389 = vmatpush1.bf16.msra.mxu0 %v9098_v52  ;;  %6421 = vmatpush1.bf16.msra.mxu1 %v9107_v40 }
 0xde1   :  { %6423 = vmatprep.subr.bf16.mxu0 %v8833_v39  ;;  %6455 = vmatprep.subr.bf16.mxu1 %v8844_v24 }
 0xe96   :  { %v4210_v35 = vpop.f32.mrb[26].mxu0  ;;  %v4281_v54 = vpop.f32.mrb[26].mxu1 }
 0xe97   :  { %v6552_v27 = vadd.f32 %v4210_v35, %v9162_v42  ;;  %v4212_v56 = vpop.f32.mrb[27].mxu0  ;;  %v4283_v22 = vpop.f32.mrb[27].mxu1  ;;  %v6568_v10 = vadd.f32 %v4281_v54, %v9177_v31  ;;  %v4666_v35 = vld [vmem:[%s9498_s5 + $0x20] sm:$0xff]  ;;  %v4667_v54 = vld [vmem:[%s9498_s5 + $0x28] sm:$0xff] }
 0xe98   :  { %v6553_v17 = vadd.f32 %v4212_v56, %v9166_v18  ;;  %v6569_v53 = vadd.f32 %v4283_v22, %v9172_v29  ;;  %v4668_v56 = vld [vmem:[%s9498_s5 + $0x30] sm:$0xff]  ;;  %v4669_v22 = vld [vmem:[%s9498_s5 + $0x38] sm:$0xff] }
 0xe99   :  { %v5080_v25 = vmul.f32 -1.442695, %v6552_v27  ;;  %v6493_v27 = vpack.c.bf16 %v4667_v54, %v4666_v35 }
 0xe9a   :  { %v5081_v47 = vmul.f32 -1.442695, %v6553_v17  ;;  %v5082_v57 = vmul.f32 -1.442695, %v6569_v53  ;;  %v6496_v17 = vpack.c.bf16 %v4669_v22, %v4668_v56 }
 0xe9b   :  { %6945 = vpow2.f32 %v5080_v25  ;;  %v4670_v25 = vld [vmem:[%s9498_s5 + $0x40] sm:$0xff] }
 0xe9c   :  { %6947 = vpow2.f32 %v5081_v47  ;;  %v4671_v47 = vld [vmem:[%s9498_s5 + $0x48] sm:$0xff] }
 0xe9d   :  { %6949 = vpow2.f32 %v5082_v57  ;;  %v6499_v53 = vpack.c.bf16 %v4671_v47, %v4670_v25  ;;  %v4672_v57 = vld [vmem:[%s9498_s5 + $0x50] sm:$0xff] }
 0xe9e   :  { %6951 = vtanh.f32 %v6568_v10  ;;  %v4673_v10 = vld [vmem:[%s9498_s5 + $0x58] sm:$0xff] }
 0xea5   :  { %v6946_v39 = vpop.eup %6945 }
 0xea6   :  { %v6948_v16 = vpop.eup %6947  ;;  %v4293_v24 = vadd.f32 1.0, %v6946_v39  ;;  %v4674_v39 = vld [vmem:[%s9498_s5 + $0x60] sm:$0xff] }
 0xea7   :  { %v4299_v20 = vadd.f32 1.0, %v6948_v16  ;;  %v6950_v28 = vpop.eup %6949  ;;  %v6502_v16 = vpack.c.bf16 %v4673_v10, %v4672_v57 }
 0xea8   :  { %6953 = vrcp.f32 %v4293_v24  ;;  %v6952_v33 = vpop.eup %6951  ;;  %v4306_v6 = vadd.f32 1.0, %v6950_v28  ;;  %v4675_v24 = vld [vmem:[%s9498_s5 + $0x68] sm:$0xff]  ;;  %v4676_v28 = vld [vmem:[%s9498_s5 + $0x70] sm:$0xff] }
 0xea9   :  { %6955 = vrcp.f32 %v4299_v20  ;;  %v6505_v20 = vpack.c.bf16 %v4675_v24, %v4674_v39 }
 0xeaa   :  { %6957 = vrcp.f32 %v4306_v6 }
 0xeb2   :  { %v6954_v55 = vpop.eup %6953 }
 0xeb3   :  { %v6956_v59 = vpop.eup %6955  ;;  %v4310_v32 = vmul.f32 %v6954_v55, %v6952_v33  ;;  %v4677_v33 = vld [vmem:[%s9498_s5 + $0x78] sm:$0xff] }
 0xeb4   :  { %v4309_v34 = vmul.f32 %v6956_v59, %v9348_v12  ;;  %v6958_v15 = vpop.eup %6957  ;;  %v4664_v12 = vld [vmem:[%s9498_s5 + $0x10] sm:$0xff]  ;;  %v6508_v55 = vpack.c.bf16 %v4677_v33, %v4676_v28 }
 0xeb5   :  { %v6490_v30 = vpack.c.bf16 %v4665_v8, %v4664_v12 }
 0xeb6   :  { %v9390_v38 = vadd.f32 %v4310_v32, %v4309_v34 }
 0xeb8   :  { %6959 = vtanh.f32 %v9390_v38 }
 0xec2   :  { %v6960_v62 = vpop.eup %6959 }
 0xec3   :  { %v4313_v61 = vmul.f32 %v6960_v62, %v6958_v15 }
 0xec5   :  { %4383 = vmatmul.mubr.f32.vlgmr.msra.gmra.mrb[28].mxu0 %v4313_v61  ;;  %4454 = vmatmul.mubr.f32.vlgmr.msra.gmra.mrb[28].mxu1 %v4313_v61 }
 0xec6   :  { %6425 = vmatpush1.bf16.msra.mxu0 %v8846_v48  ;;  %6457 = vmatpush1.bf16.msra.mxu1 %v8855_v46 }
 0xec7   :  { %6427 = vmatprep.subr.bf16.mxu0 %v8869_v58  ;;  %6459 = vmatprep.subr.bf16.mxu1 %v8880_v21 }
 0xec8   :  { %4556 = vmatprep.mubr.f32.mxu0 %v6993_v3  ;;  %4627 = vmatprep.mubr.f32.mxu1 %v6993_v3 }
 0xeca   :  { %6429 = vmatpush1.bf16.msra.mxu0 %v8882_v9  ;;  %6461 = vmatpush1.bf16.msra.mxu1 %v8891_v1 }
 0xecb   :  { %6431 = vmatprep.subr.bf16.mxu0 %v8905_v50  ;;  %6463 = vmatprep.subr.bf16.mxu1 %v8916_v63 }
 0xece   :  { %6433 = vmatpush1.bf16.msra.mxu0 %v8918_v2  ;;  %6465 = vmatpush1.bf16.msra.mxu1 %v8927_v13 }
 0xecf   :  { %6435 = vmatprep.subr.bf16.mxu0 %v8941_v26  ;;  %6467 = vmatprep.subr.bf16.mxu1 %v8952_v41 }
 0xed2   :  { %6437 = vmatpush1.bf16.msra.mxu0 %v8954_v45  ;;  %6469 = vmatpush1.bf16.msra.mxu1 %v8966_v0 }
 0xed3   :  { %6439 = vmatprep.subr.bf16.mxu0 %v8979_v19  ;;  %6471 = vmatprep.subr.bf16.mxu1 %v8981_v43 }
 0xed6   :  { %6441 = vmatpush1.bf16.msra.mxu0 %v8993_v14  ;;  %6473 = vmatpush1.bf16.msra.mxu1 %v9006_v37 }
 0xed7   :  { %6443 = vmatprep.subr.bf16.mxu0 %v9008_v49  ;;  %6475 = vmatprep.subr.bf16.mxu1 %v9019_v4 }
 0xeda   :  { %6445 = vmatpush1.bf16.msra.mxu0 %v9031_v44  ;;  %6477 = vmatpush1.bf16.msra.mxu1 %v9044_v60 }
 0xedb   :  { %6447 = vmatprep.subr.bf16.mxu0 %v9046_v7  ;;  %6479 = vmatprep.subr.bf16.mxu1 %v9058_v23 }
 0xede   :  { %6449 = vmatpush1.bf16.msra.mxu0 %v9067_v36  ;;  %6481 = vmatpush1.bf16.msra.mxu1 %v9071_v51 }
 0xedf   :  { %6451 = vmatprep.subr.bf16.mxu0 %v9085_v11  ;;  %6483 = vmatprep.subr.bf16.mxu1 %v9096_v5  ;;  %v4662_v11 = vld [vmem:[%s9498_s5] sm:$0xff]  ;;  %v4663_v5 = vld [vmem:[%s9498_s5 + $0x8] sm:$0xff] }
 0xee2   :  { %6453 = vmatpush1.bf16.msra.mxu0 %v9098_v52  ;;  %6485 = vmatpush1.bf16.msra.mxu1 %v9107_v40  ;;  %v6487_v52 = vpack.c.bf16 %v4663_v5, %v4662_v11  ;;  %v6994_v40 = vmov 0.0|0.0  }
 0xee3   :  { %6486 = vmatprep.subr.bf16.mxu0 %v6994_v40 }
 0xf98   :  { %v4384_v48 = vpop.f32.mrb[28].mxu0  ;;  %v4455_v46 = vpop.f32.mrb[28].mxu1 }
 0xf99   :  { %v6554_v58 = vadd.f32 %v4384_v48, %v9162_v42  ;;  %v4386_v21 = vpop.f32.mrb[29].mxu0  ;;  %v4457_v9 = vpop.f32.mrb[29].mxu1  ;;  %v6570_v26 = vadd.f32 %v4455_v46, %v9177_v31 }
 0xf9a   :  { %v6555_v1 = vadd.f32 %v4386_v21, %v9166_v18  ;;  %v6571_v2 = vadd.f32 %v4457_v9, %v9172_v29 }
 0xf9b   :  { %v5083_v50 = vmul.f32 -1.442695, %v6554_v58 }
 0xf9c   :  { %v5084_v63 = vmul.f32 -1.442695, %v6555_v1  ;;  %v5085_v13 = vmul.f32 -1.442695, %v6571_v2 }
 0xf9d   :  { %6961 = vpow2.f32 %v5083_v50 }
 0xf9e   :  { %6963 = vpow2.f32 %v5084_v63 }
 0xf9f   :  { %6965 = vpow2.f32 %v5085_v13 }
 0xfa0   :  { %6967 = vtanh.f32 %v6570_v26 }
 0xfa7   :  { %v6962_v41 = vpop.eup %6961 }
 0xfa8   :  { %v6964_v45 = vpop.eup %6963  ;;  %v4467_v0 = vadd.f32 1.0, %v6962_v41 }
 0xfa9   :  { %v4473_v19 = vadd.f32 1.0, %v6964_v45  ;;  %v6966_v43 = vpop.eup %6965 }
 0xfaa   :  { %6969 = vrcp.f32 %v4467_v0  ;;  %v6968_v14 = vpop.eup %6967  ;;  %v4480_v44 = vadd.f32 1.0, %v6966_v43  ;;  %v5089_v0 = vld [vmem:[%s9499_s6] ss:$0 sm:$0xff] }
 0xfab   :  { %6971 = vrcp.f32 %v4473_v19 }
 0xfac   :  { %6973 = vrcp.f32 %v4480_v44 }
 0xfb4   :  { %v6970_v37 = vpop.eup %6969 }
 0xfb5   :  { %v6972_v49 = vpop.eup %6971  ;;  %v4484_v4 = vmul.f32 %v6970_v37, %v6968_v14 }
 0xfb6   :  { %v4483_v60 = vmul.f32 %v6972_v49, %v9390_v38  ;;  %v6974_v23 = vpop.eup %6973 }
 0xfb8   :  { %v9430_v7 = vadd.f32 %v4484_v4, %v4483_v60 }
 0xfba   :  { %6975 = vtanh.f32 %v9430_v7 }
 0xfc4   :  { %v6976_v36 = vpop.eup %6975 }
 0xfc5   :  { %v4487_v51 = vmul.f32 %v6976_v36, %v6974_v23 }
 0xfc7   :  { %4557 = vmatmul.mubr.f32.vlgmr.msra.gmra.mrb[30].mxu0 %v4487_v51  ;;  %4628 = vmatmul.mubr.f32.vlgmr.msra.gmra.mrb[30].mxu1 %v4487_v51 }
 0xfc8   :  { %6488 = vmatpush3.bf16.msra.mxu0 %v6487_v52  ;;  %5139 = vmatprep.mubr.msk.f32.mxu0 %vm6995_vm0, %v6993_v3 }
 0xfc9   :  { %6489 = vmatprep.subr.bf16.mxu0 %v6994_v40 }
 0xfcc   :  { %6491 = vmatpush3.bf16.msra.mxu0 %v6490_v30 }
 0xfcd   :  { %6492 = vmatprep.subr.bf16.mxu0 %v6994_v40 }
 0xfd0   :  { %6494 = vmatpush3.bf16.msra.mxu0 %v6493_v27 }
 0xfd1   :  { %6495 = vmatprep.subr.bf16.mxu0 %v6994_v40 }
 0xfd4   :  { %6497 = vmatpush3.bf16.msra.mxu0 %v6496_v17 }
 0xfd5   :  { %6498 = vmatprep.subr.bf16.mxu0 %v6994_v40 }
 0xfd8   :  { %6500 = vmatpush3.bf16.msra.mxu0 %v6499_v53 }
 0xfd9   :  { %6501 = vmatprep.subr.bf16.mxu0 %v6994_v40 }
 0xfdc   :  { %6503 = vmatpush3.bf16.msra.mxu0 %v6502_v16 }
 0xfdd   :  { %6504 = vmatprep.subr.bf16.mxu0 %v6994_v40 }
 0xfe0   :  { %6506 = vmatpush3.bf16.msra.mxu0 %v6505_v20 }
 0xfe1   :  { %6507 = vmatprep.subr.bf16.mxu0 %v6994_v40 }
 0xfe4   :  { %6509 = vmatpush3.bf16.msra.mxu0 %v6508_v55 }
0x109a   :  { %v4558_v59 = vpop.f32.mrb[30].mxu0  ;;  %v4629_v32 = vpop.f32.mrb[30].mxu1 }
0x109b   :  { %v6556_v6 = vadd.f32 %v4558_v59, %v9162_v42  ;;  %v4560_v3 = vpop.f32.mrb[31].mxu0  ;;  %v4631_v34 = vpop.f32.mrb[31].mxu1  ;;  %v6572_v46 = vadd.f32 %v4629_v32, %v9177_v31 }
0x109c   :  { %v6557_v38 = vadd.f32 %v4560_v3, %v9166_v18  ;;  %v6573_v61 = vadd.f32 %v4631_v34, %v9172_v29 }
0x109d   :  { %v5086_v15 = vmul.f32 -1.442695, %v6556_v6 }
0x109e   :  { %v5087_v62 = vmul.f32 -1.442695, %v6557_v38  ;;  %v5088_v48 = vmul.f32 -1.442695, %v6573_v61 }
0x109f   :  { %6977 = vpow2.f32 %v5086_v15 }
0x10a0   :  { %6979 = vpow2.f32 %v5087_v62 }
0x10a1   :  { %6981 = vpow2.f32 %v5088_v48 }
0x10a2   :  { %6983 = vtanh.f32 %v6572_v46 }
0x10a9   :  { %v6978_v58 = vpop.eup %6977 }
0x10aa   :  { %v6980_v21 = vpop.eup %6979  ;;  %v4641_v9 = vadd.f32 1.0, %v6978_v58 }
0x10ab   :  { %v4647_v1 = vadd.f32 1.0, %v6980_v21  ;;  %v6982_v42 = vpop.eup %6981 }
0x10ac   :  { %6985 = vrcp.f32 %v4641_v9  ;;  %v6984_v50 = vpop.eup %6983  ;;  %v4654_v13 = vadd.f32 1.0, %v6982_v42 }
0x10ad   :  { %6987 = vrcp.f32 %v4647_v1 }
0x10ae   :  { %6989 = vrcp.f32 %v4654_v13 }
0x10b6   :  { %v6986_v18 = vpop.eup %6985 }
0x10b7   :  { %v6988_v63 = vpop.eup %6987  ;;  %v4658_v2 = vmul.f32 %v6986_v18, %v6984_v50 }
0x10b8   :  { %v4657_v26 = vmul.f32 %v6988_v63, %v9430_v7  ;;  %v6990_v31 = vpop.eup %6989 }
0x10ba   :  { %v4659_v29 = vadd.f32 %v4658_v2, %v4657_v26 }
0x10bc   :  { %6991 = vtanh.f32 %v4659_v29 }
0x10c6   :  { %v6992_v41 = vpop.eup %6991 }
0x10c7   :  { %v4661_v45 = vmul.f32 %v6992_v41, %v6990_v31 }
0x10c9   :  { %5140 = vmatmul.mubr.f32.vlgmr.msra.gmra.mrb[32].mxu0 %v4661_v45 }
0x119c   :  { %v4751_v19 = vpop.f32.mrb[32].mxu0 }
0x119d   :  { %v4752_v43 = vadd.f32 %v5089_v0, %v4751_v19  ;;  %v5141_v14 = vpop.f32.mrb[33].mxu0 }
0x119f   :  { %4755 = vst [vmem:[%s9500_s7] sm:$0xff] %v4752_v43 }

</bundles_post_ra>
